<compile_context>
chip_gen: v5e
topology: v5e:2x2
jax: 0.10.0
libtpu: 0.0.40
codegen_flags: <defaults>
</compile_context>

<pallas_src>
import functools

import jax
import jax.numpy as jnp
from jax import lax
from jax.experimental import pallas as pl
from jax.experimental.pallas import tpu as pltpu


# -------------------------- in-kernel building blocks -----------------------

def _layernorm(x, g, b, eps):
    # x: (S, H) f32, g/b: (1, H) f32
    m = jnp.mean(x, axis=-1, keepdims=True)
    v = jnp.mean(jnp.square(x - m), axis=-1, keepdims=True)
    return (x - m) * lax.rsqrt(v + eps) * g + b


def _softmax_rows(s):
    s = s - jnp.max(s, axis=-1, keepdims=True)
    p = jnp.exp(s)
    # divide -> EUP reciprocal + VPU multiply (frees the VALU divide)
    return p * pl.reciprocal(jnp.sum(p, axis=-1, keepdims=True), approx=True)


def _mha(x_q, x_kv, w_in, b_in, w_o, b_o, nhead):
    """Multi-head attention.

    w_in: (H, 3H) == PyTorch in_proj_weight.T (columns packed [q | k | v]).
    b_in: (1, 3H), w_o: (H, H) == out_proj.weight.T, b_o: (1, H).
    """
    H = x_q.shape[-1]
    dh = H // nhead
    scale = 1.0 / float(dh) ** 0.5
    q = jnp.dot(x_q, w_in[:, 0 * H:1 * H],
                preferred_element_type=jnp.float32) + b_in[:, 0 * H:1 * H]
    k = jnp.dot(x_kv, w_in[:, 1 * H:2 * H],
                preferred_element_type=jnp.float32) + b_in[:, 1 * H:2 * H]
    v = jnp.dot(x_kv, w_in[:, 2 * H:3 * H],
                preferred_element_type=jnp.float32) + b_in[:, 2 * H:3 * H]
    out = None
    for h in range(nhead):                     # nhead is tiny & static: unrolled
        sl = slice(h * dh, (h + 1) * dh)
        qh = q[:, sl] * scale
        kh = k[:, sl]
        vh = v[:, sl]
        # scores = qh @ kh^T  (contraction on last dims, no materialized transpose)
        s = lax.dot_general(qh, kh, (((1,), (1,)), ((), ())),
                            preferred_element_type=jnp.float32)
        p = _softmax_rows(s)
        ctx = jnp.dot(p, vh, preferred_element_type=jnp.float32)       # (S, dh)
        # fold this head straight into the output projection (no lane concat)
        contrib = jnp.dot(ctx, w_o[sl, :], preferred_element_type=jnp.float32)
        out = contrib if out is None else out + contrib
    return out + b_o


def _ffn(x, w1, b1, w2, b2):
    # w1/w2 stored bf16 (dominant HBM bytes); MXU bf16 inputs, f32 accumulate.
    h = jnp.dot(x.astype(w1.dtype), w1, preferred_element_type=jnp.float32) + b1
    h = jnp.maximum(h, 0.0)
    return jnp.dot(h.astype(w2.dtype), w2, preferred_element_type=jnp.float32) + b2


# ------------------------------ fused kernel --------------------------------

def _fused_forward_kernel(
        x_ref, fin_w, fin_b,
        e_win, e_bin, e_wo, e_bo, e_w1, e_b1, e_w2, e_b2,
        e_g1, e_be1, e_g2, e_be2,
        en_g, en_b,
        d_swin, d_sbin, d_swo, d_sbo,
        d_cwin, d_cbin, d_cwo, d_cbo,
        d_w1, d_b1, d_w2, d_b2,
        d_g1, d_be1, d_g2, d_be2, d_g3, d_be3,
        dn_g, dn_b,
        fout_w, fout_b,
        o_ref, *, nhead, num_layers, eps):
    x = x_ref[...].astype(jnp.float32)

    # fc_in + ReLU
    h = jnp.dot(x, fin_w[...], preferred_element_type=jnp.float32) + fin_b[...]
    h = jnp.maximum(h, 0.0)

    # ----------------------------- encoder (post-norm) ----------------------
    mem = h
    for l in range(num_layers):
        sa = _mha(mem, mem, e_win[l], e_bin[l], e_wo[l], e_bo[l], nhead)
        mem = _layernorm(mem + sa, e_g1[l], e_be1[l], eps)
        ff = _ffn(mem, e_w1[l], e_b1[l], e_w2[l], e_b2[l])
        mem = _layernorm(mem + ff, e_g2[l], e_be2[l], eps)
    mem = _layernorm(mem, en_g[...], en_b[...], eps)          # final encoder norm

    # ----------------------------- decoder (post-norm) ----------------------
    out = h
    for l in range(num_layers):
        sa = _mha(out, out, d_swin[l], d_sbin[l], d_swo[l], d_sbo[l], nhead)
        out = _layernorm(out + sa, d_g1[l], d_be1[l], eps)
        ca = _mha(out, mem, d_cwin[l], d_cbin[l], d_cwo[l], d_cbo[l], nhead)
        out = _layernorm(out + ca, d_g2[l], d_be2[l], eps)
        ff = _ffn(out, d_w1[l], d_b1[l], d_w2[l], d_b2[l])
        out = _layernorm(out + ff, d_g3[l], d_be3[l], eps)
    out = _layernorm(out, dn_g[...], dn_b[...], eps)          # final decoder norm

    # fc_out
    y = jnp.dot(out, fout_w[...], preferred_element_type=jnp.float32) + fout_b[...]
    o_ref[...] = y.astype(o_ref.dtype)


def mapping_transformer_forward(x, params, *, nhead=4, num_layers=2, eps=1e-5):
    B = x.shape[0]
    out_dim = params["fc_out_w"].shape[1]
    args = (
        x,
        params["fc_in_w"], params["fc_in_b"],
        params["e_win"], params["e_bin"], params["e_wo"], params["e_bo"],
        params["e_w1"], params["e_b1"], params["e_w2"], params["e_b2"],
        params["e_g1"], params["e_be1"], params["e_g2"], params["e_be2"],
        params["enc_norm_g"], params["enc_norm_b"],
        params["d_swin"], params["d_sbin"], params["d_swo"], params["d_sbo"],
        params["d_cwin"], params["d_cbin"], params["d_cwo"], params["d_cbo"],
        params["d_w1"], params["d_b1"], params["d_w2"], params["d_b2"],
        params["d_g1"], params["d_be1"], params["d_g2"], params["d_be2"],
        params["d_g3"], params["d_be3"],
        params["dec_norm_g"], params["dec_norm_b"],
        params["fc_out_w"], params["fc_out_b"],
    )
    kernel = functools.partial(_fused_forward_kernel, nhead=nhead,
                               num_layers=num_layers, eps=eps)
    vmem_spec = pl.BlockSpec(memory_space=pltpu.MemorySpace.VMEM)
    return pl.pallas_call(
        kernel,
        out_shape=jax.ShapeDtypeStruct((B, out_dim), jnp.float32),
        # single invocation (no grid): every operand is a whole-array VMEM block
        in_specs=[vmem_spec] * len(args),
        out_specs=vmem_spec,
    )(*args)


# ------------------------------ parameter init -------------------------------

def _uniform(key, shape, fan_in):
    bound = 1.0 / (fan_in ** 0.5)
    return jax.random.uniform(key, shape, jnp.float32, -bound, bound)


def init_params(key, input_dim, output_dim, H, num_layers, F):
    L = num_layers
    keys = jax.random.split(key, 12)
    zeros = lambda s: jnp.zeros(s, jnp.float32)
    ones = lambda s: jnp.ones(s, jnp.float32)
    return {
        "fc_in_w": _uniform(keys[0], (input_dim, H), input_dim),
        "fc_in_b": zeros((1, H)),
        # encoder layers (stacked on a leading layer axis)
        "e_win": _uniform(keys[1], (L, H, 3 * H), H), "e_bin": zeros((L, 1, 3 * H)),
        "e_wo":  _uniform(keys[2], (L, H, H), H),     "e_bo":  zeros((L, 1, H)),
        "e_w1":  _uniform(keys[3], (L, H, F), H).astype(jnp.bfloat16),
        "e_b1":  zeros((L, 1, F)),
        "e_w2":  _uniform(keys[4], (L, F, H), F).astype(jnp.bfloat16),
        "e_b2":  zeros((L, 1, H)),
        "e_g1": ones((L, 1, H)), "e_be1": zeros((L, 1, H)),
        "e_g2": ones((L, 1, H)), "e_be2": zeros((L, 1, H)),
        "enc_norm_g": ones((1, H)), "enc_norm_b": zeros((1, H)),
        # decoder layers (stacked)
        "d_swin": _uniform(keys[5], (L, H, 3 * H), H), "d_sbin": zeros((L, 1, 3 * H)),
        "d_swo":  _uniform(keys[6], (L, H, H), H),     "d_sbo":  zeros((L, 1, H)),
        "d_cwin": _uniform(keys[7], (L, H, 3 * H), H), "d_cbin": zeros((L, 1, 3 * H)),
        "d_cwo":  _uniform(keys[8], (L, H, H), H),     "d_cbo":  zeros((L, 1, H)),
        "d_w1":   _uniform(keys[9], (L, H, F), H).astype(jnp.bfloat16),
        "d_b1":   zeros((L, 1, F)),
        "d_w2":   _uniform(keys[10], (L, F, H), F).astype(jnp.bfloat16),
        "d_b2":   zeros((L, 1, H)),
        "d_g1": ones((L, 1, H)), "d_be1": zeros((L, 1, H)),
        "d_g2": ones((L, 1, H)), "d_be2": zeros((L, 1, H)),
        "d_g3": ones((L, 1, H)), "d_be3": zeros((L, 1, H)),
        "dec_norm_g": ones((1, H)), "dec_norm_b": zeros((1, H)),
        "fc_out_w": _uniform(keys[11], (H, output_dim), H),
        "fc_out_b": zeros((1, output_dim)),
    }


# ----------------------------------- main ------------------------------------

if __name__ == "__main__":
    batch, input_dim, output_dim = 8, 16, 16
    hidden_dim, num_layers, nhead = 32, 2, 4
    dim_feedforward = 2048  # nn.Transformer default

    key = jax.random.PRNGKey(0)
    pkey, xkey = jax.random.split(key)
    params = init_params(pkey, input_dim, output_dim, hidden_dim, num_layers,
                         dim_feedforward)
    x = jax.random.normal(xkey, (batch, input_dim), dtype=jnp.float32)

    fwd = jax.jit(functools.partial(mapping_transformer_forward,
                                    nhead=nhead, num_layers=num_layers))
    y = fwd(x, params)
    jax.block_until_ready(y)
    assert y.shape == (batch, output_dim) and y.dtype == jnp.float32
    assert bool(jnp.all(jnp.isfinite(y)))
    print("KERNEL_OK")
</pallas_src>

<mosaic_0001>
module attributes {stable_mosaic.version = 11 : i64} {
  func.func @_fused_forward_kernel(%arg0: memref<8x16xf32, #tpu.memory_space<vmem>>, %arg1: memref<16x32xf32, #tpu.memory_space<vmem>>, %arg2: memref<1x32xf32, #tpu.memory_space<vmem>>, %arg3: memref<2x32x96xf32, #tpu.memory_space<vmem>>, %arg4: memref<2x1x96xf32, #tpu.memory_space<vmem>>, %arg5: memref<2x32x32xf32, #tpu.memory_space<vmem>>, %arg6: memref<2x1x32xf32, #tpu.memory_space<vmem>>, %arg7: memref<2x32x2048xbf16, #tpu.memory_space<vmem>>, %arg8: memref<2x1x2048xf32, #tpu.memory_space<vmem>>, %arg9: memref<2x2048x32xbf16, #tpu.memory_space<vmem>>, %arg10: memref<2x1x32xf32, #tpu.memory_space<vmem>>, %arg11: memref<2x1x32xf32, #tpu.memory_space<vmem>>, %arg12: memref<2x1x32xf32, #tpu.memory_space<vmem>>, %arg13: memref<2x1x32xf32, #tpu.memory_space<vmem>>, %arg14: memref<2x1x32xf32, #tpu.memory_space<vmem>>, %arg15: memref<1x32xf32, #tpu.memory_space<vmem>>, %arg16: memref<1x32xf32, #tpu.memory_space<vmem>>, %arg17: memref<2x32x96xf32, #tpu.memory_space<vmem>>, %arg18: memref<2x1x96xf32, #tpu.memory_space<vmem>>, %arg19: memref<2x32x32xf32, #tpu.memory_space<vmem>>, %arg20: memref<2x1x32xf32, #tpu.memory_space<vmem>>, %arg21: memref<2x32x96xf32, #tpu.memory_space<vmem>>, %arg22: memref<2x1x96xf32, #tpu.memory_space<vmem>>, %arg23: memref<2x32x32xf32, #tpu.memory_space<vmem>>, %arg24: memref<2x1x32xf32, #tpu.memory_space<vmem>>, %arg25: memref<2x32x2048xbf16, #tpu.memory_space<vmem>>, %arg26: memref<2x1x2048xf32, #tpu.memory_space<vmem>>, %arg27: memref<2x2048x32xbf16, #tpu.memory_space<vmem>>, %arg28: memref<2x1x32xf32, #tpu.memory_space<vmem>>, %arg29: memref<2x1x32xf32, #tpu.memory_space<vmem>>, %arg30: memref<2x1x32xf32, #tpu.memory_space<vmem>>, %arg31: memref<2x1x32xf32, #tpu.memory_space<vmem>>, %arg32: memref<2x1x32xf32, #tpu.memory_space<vmem>>, %arg33: memref<2x1x32xf32, #tpu.memory_space<vmem>>, %arg34: memref<2x1x32xf32, #tpu.memory_space<vmem>>, %arg35: memref<1x32xf32, #tpu.memory_space<vmem>>, %arg36: memref<1x32xf32, #tpu.memory_space<vmem>>, %arg37: memref<32x16xf32, #tpu.memory_space<vmem>>, %arg38: memref<1x16xf32, #tpu.memory_space<vmem>>, %arg39: memref<8x16xf32, #tpu.memory_space<vmem>>) attributes {dimension_semantics = [], scalar_prefetch = 0 : i64, scratch_operands = 0 : i64, tpu.core_type = #tpu.core_type<tc>} {
    %c0 = arith.constant 0 : index
    %c0_0 = arith.constant 0 : index
    %0 = vector.load %arg0[%c0, %c0_0] : memref<8x16xf32, #tpu.memory_space<vmem>>, vector<8x16xf32>
    %c0_1 = arith.constant 0 : index
    %c0_2 = arith.constant 0 : index
    %1 = vector.load %arg1[%c0_1, %c0_2] : memref<16x32xf32, #tpu.memory_space<vmem>>, vector<16x32xf32>
    %cst = arith.constant dense<0.000000e+00> : vector<8x32xf32>
    %2 = tpu.matmul %0, %1, %cst {dimension_numbers = #tpu.dot_dimension_numbers<[1], [0], [0], [1], [0, 0, 1, 1], [], []>} : vector<8x16xf32>, vector<16x32xf32>, vector<8x32xf32> -> vector<8x32xf32>
    %c0_3 = arith.constant 0 : index
    %c0_4 = arith.constant 0 : index
    %3 = vector.load %arg2[%c0_3, %c0_4] : memref<1x32xf32, #tpu.memory_space<vmem>>, vector<1x32xf32>
    %4 = vector.broadcast %3 : vector<1x32xf32> to vector<8x32xf32>
    %5 = arith.addf %2, %4 : vector<8x32xf32>
    %cst_5 = arith.constant 0.000000e+00 : f32
    %6 = vector.broadcast %cst_5 : f32 to vector<8x32xf32>
    %7 = arith.maximumf %5, %6 : vector<8x32xf32>
    %c0_6 = arith.constant 0 : index
    %c0_7 = arith.constant 0 : index
    %c0_8 = arith.constant 0 : index
    %8 = vector.load %arg3[%c0_6, %c0_7, %c0_8] : memref<2x32x96xf32, #tpu.memory_space<vmem>>, vector<1x32x96xf32>
    %9 = vector.shape_cast %8 : vector<1x32x96xf32> to vector<32x96xf32>
    %c0_9 = arith.constant 0 : index
    %c0_10 = arith.constant 0 : index
    %c0_11 = arith.constant 0 : index
    %10 = vector.load %arg4[%c0_9, %c0_10, %c0_11] : memref<2x1x96xf32, #tpu.memory_space<vmem>>, vector<1x1x96xf32>
    %11 = vector.shape_cast %10 : vector<1x1x96xf32> to vector<1x96xf32>
    %c0_12 = arith.constant 0 : index
    %c0_13 = arith.constant 0 : index
    %c0_14 = arith.constant 0 : index
    %12 = vector.load %arg5[%c0_12, %c0_13, %c0_14] : memref<2x32x32xf32, #tpu.memory_space<vmem>>, vector<1x32x32xf32>
    %13 = vector.shape_cast %12 : vector<1x32x32xf32> to vector<32x32xf32>
    %c0_15 = arith.constant 0 : index
    %c0_16 = arith.constant 0 : index
    %c0_17 = arith.constant 0 : index
    %14 = vector.load %arg6[%c0_15, %c0_16, %c0_17] : memref<2x1x32xf32, #tpu.memory_space<vmem>>, vector<1x1x32xf32>
    %15 = vector.shape_cast %14 : vector<1x1x32xf32> to vector<1x32xf32>
    %16 = vector.extract_strided_slice %9 {offsets = [0, 0], sizes = [32, 32], strides = [1, 1]} : vector<32x96xf32> to vector<32x32xf32>
    %cst_18 = arith.constant dense<0.000000e+00> : vector<8x32xf32>
    %17 = tpu.matmul %7, %16, %cst_18 {dimension_numbers = #tpu.dot_dimension_numbers<[1], [0], [0], [1], [0, 0, 1, 1], [], []>} : vector<8x32xf32>, vector<32x32xf32>, vector<8x32xf32> -> vector<8x32xf32>
    %18 = vector.extract_strided_slice %11 {offsets = [0, 0], sizes = [1, 32], strides = [1, 1]} : vector<1x96xf32> to vector<1x32xf32>
    %19 = vector.broadcast %18 : vector<1x32xf32> to vector<8x32xf32>
    %20 = arith.addf %17, %19 : vector<8x32xf32>
    %21 = vector.extract_strided_slice %9 {offsets = [0, 32], sizes = [32, 32], strides = [1, 1]} : vector<32x96xf32> to vector<32x32xf32>
    %cst_19 = arith.constant dense<0.000000e+00> : vector<8x32xf32>
    %22 = tpu.matmul %7, %21, %cst_19 {dimension_numbers = #tpu.dot_dimension_numbers<[1], [0], [0], [1], [0, 0, 1, 1], [], []>} : vector<8x32xf32>, vector<32x32xf32>, vector<8x32xf32> -> vector<8x32xf32>
    %23 = vector.extract_strided_slice %11 {offsets = [0, 32], sizes = [1, 32], strides = [1, 1]} : vector<1x96xf32> to vector<1x32xf32>
    %24 = vector.broadcast %23 : vector<1x32xf32> to vector<8x32xf32>
    %25 = arith.addf %22, %24 : vector<8x32xf32>
    %26 = vector.extract_strided_slice %9 {offsets = [0, 64], sizes = [32, 32], strides = [1, 1]} : vector<32x96xf32> to vector<32x32xf32>
    %cst_20 = arith.constant dense<0.000000e+00> : vector<8x32xf32>
    %27 = tpu.matmul %7, %26, %cst_20 {dimension_numbers = #tpu.dot_dimension_numbers<[1], [0], [0], [1], [0, 0, 1, 1], [], []>} : vector<8x32xf32>, vector<32x32xf32>, vector<8x32xf32> -> vector<8x32xf32>
    %28 = vector.extract_strided_slice %11 {offsets = [0, 64], sizes = [1, 32], strides = [1, 1]} : vector<1x96xf32> to vector<1x32xf32>
    %29 = vector.broadcast %28 : vector<1x32xf32> to vector<8x32xf32>
    %30 = arith.addf %27, %29 : vector<8x32xf32>
    %31 = vector.extract_strided_slice %20 {offsets = [0, 0], sizes = [8, 8], strides = [1, 1]} : vector<8x32xf32> to vector<8x8xf32>
    %cst_21 = arith.constant 0.353553385 : f32
    %32 = vector.broadcast %cst_21 : f32 to vector<8x8xf32>
    %33 = arith.mulf %31, %32 : vector<8x8xf32>
    %34 = vector.extract_strided_slice %25 {offsets = [0, 0], sizes = [8, 8], strides = [1, 1]} : vector<8x32xf32> to vector<8x8xf32>
    %35 = vector.extract_strided_slice %30 {offsets = [0, 0], sizes = [8, 8], strides = [1, 1]} : vector<8x32xf32> to vector<8x8xf32>
    %cst_22 = arith.constant dense<0.000000e+00> : vector<8x8xf32>
    %36 = tpu.matmul %33, %34, %cst_22 {dimension_numbers = #tpu.dot_dimension_numbers<[1], [1], [0], [0], [0, 0, 1, 0], [], []>} : vector<8x8xf32>, vector<8x8xf32>, vector<8x8xf32> -> vector<8x8xf32>
    %cst_23 = arith.constant dense<0xFF800000> : vector<8xf32>
    %37 = vector.multi_reduction <maximumf>, %36, %cst_23 [1] : vector<8x8xf32> to vector<8xf32>
    %38 = vector.shape_cast %37 : vector<8xf32> to vector<8x1xf32>
    %39 = vector.broadcast %38 : vector<8x1xf32> to vector<8x8xf32>
    %40 = arith.subf %36, %39 : vector<8x8xf32>
    %41 = math.exp %40 : vector<8x8xf32>
    %cst_24 = arith.constant dense<0.000000e+00> : vector<8xf32>
    %42 = vector.multi_reduction <add>, %41, %cst_24 [1] : vector<8x8xf32> to vector<8xf32>
    %43 = vector.shape_cast %42 : vector<8xf32> to vector<8x1xf32>
    %44 = tpu.reciprocal %43 {approx = true} : vector<8x1xf32> -> vector<8x1xf32>
    %45 = vector.broadcast %44 : vector<8x1xf32> to vector<8x8xf32>
    %46 = arith.mulf %41, %45 : vector<8x8xf32>
    %cst_25 = arith.constant dense<0.000000e+00> : vector<8x8xf32>
    %47 = tpu.matmul %46, %35, %cst_25 {dimension_numbers = #tpu.dot_dimension_numbers<[1], [0], [0], [1], [0, 0, 1, 1], [], []>} : vector<8x8xf32>, vector<8x8xf32>, vector<8x8xf32> -> vector<8x8xf32>
    %48 = vector.extract_strided_slice %13 {offsets = [0, 0], sizes = [8, 32], strides = [1, 1]} : vector<32x32xf32> to vector<8x32xf32>
    %cst_26 = arith.constant dense<0.000000e+00> : vector<8x32xf32>
    %49 = tpu.matmul %47, %48, %cst_26 {dimension_numbers = #tpu.dot_dimension_numbers<[1], [0], [0], [1], [0, 0, 1, 1], [], []>} : vector<8x8xf32>, vector<8x32xf32>, vector<8x32xf32> -> vector<8x32xf32>
    %50 = vector.extract_strided_slice %20 {offsets = [0, 8], sizes = [8, 8], strides = [1, 1]} : vector<8x32xf32> to vector<8x8xf32>
    %cst_27 = arith.constant 0.353553385 : f32
    %51 = vector.broadcast %cst_27 : f32 to vector<8x8xf32>
    %52 = arith.mulf %50, %51 : vector<8x8xf32>
    %53 = vector.extract_strided_slice %25 {offsets = [0, 8], sizes = [8, 8], strides = [1, 1]} : vector<8x32xf32> to vector<8x8xf32>
    %54 = vector.extract_strided_slice %30 {offsets = [0, 8], sizes = [8, 8], strides = [1, 1]} : vector<8x32xf32> to vector<8x8xf32>
    %cst_28 = arith.constant dense<0.000000e+00> : vector<8x8xf32>
    %55 = tpu.matmul %52, %53, %cst_28 {dimension_numbers = #tpu.dot_dimension_numbers<[1], [1], [0], [0], [0, 0, 1, 0], [], []>} : vector<8x8xf32>, vector<8x8xf32>, vector<8x8xf32> -> vector<8x8xf32>
    %cst_29 = arith.constant dense<0xFF800000> : vector<8xf32>
    %56 = vector.multi_reduction <maximumf>, %55, %cst_29 [1] : vector<8x8xf32> to vector<8xf32>
    %57 = vector.shape_cast %56 : vector<8xf32> to vector<8x1xf32>
    %58 = vector.broadcast %57 : vector<8x1xf32> to vector<8x8xf32>
    %59 = arith.subf %55, %58 : vector<8x8xf32>
    %60 = math.exp %59 : vector<8x8xf32>
    %cst_30 = arith.constant dense<0.000000e+00> : vector<8xf32>
    %61 = vector.multi_reduction <add>, %60, %cst_30 [1] : vector<8x8xf32> to vector<8xf32>
    %62 = vector.shape_cast %61 : vector<8xf32> to vector<8x1xf32>
    %63 = tpu.reciprocal %62 {approx = true} : vector<8x1xf32> -> vector<8x1xf32>
    %64 = vector.broadcast %63 : vector<8x1xf32> to vector<8x8xf32>
    %65 = arith.mulf %60, %64 : vector<8x8xf32>
    %cst_31 = arith.constant dense<0.000000e+00> : vector<8x8xf32>
    %66 = tpu.matmul %65, %54, %cst_31 {dimension_numbers = #tpu.dot_dimension_numbers<[1], [0], [0], [1], [0, 0, 1, 1], [], []>} : vector<8x8xf32>, vector<8x8xf32>, vector<8x8xf32> -> vector<8x8xf32>
    %67 = vector.extract_strided_slice %13 {offsets = [8, 0], sizes = [8, 32], strides = [1, 1]} : vector<32x32xf32> to vector<8x32xf32>
    %cst_32 = arith.constant dense<0.000000e+00> : vector<8x32xf32>
    %68 = tpu.matmul %66, %67, %cst_32 {dimension_numbers = #tpu.dot_dimension_numbers<[1], [0], [0], [1], [0, 0, 1, 1], [], []>} : vector<8x8xf32>, vector<8x32xf32>, vector<8x32xf32> -> vector<8x32xf32>
    %69 = arith.addf %49, %68 : vector<8x32xf32>
    %70 = vector.extract_strided_slice %20 {offsets = [0, 16], sizes = [8, 8], strides = [1, 1]} : vector<8x32xf32> to vector<8x8xf32>
    %cst_33 = arith.constant 0.353553385 : f32
    %71 = vector.broadcast %cst_33 : f32 to vector<8x8xf32>
    %72 = arith.mulf %70, %71 : vector<8x8xf32>
    %73 = vector.extract_strided_slice %25 {offsets = [0, 16], sizes = [8, 8], strides = [1, 1]} : vector<8x32xf32> to vector<8x8xf32>
    %74 = vector.extract_strided_slice %30 {offsets = [0, 16], sizes = [8, 8], strides = [1, 1]} : vector<8x32xf32> to vector<8x8xf32>
    %cst_34 = arith.constant dense<0.000000e+00> : vector<8x8xf32>
    %75 = tpu.matmul %72, %73, %cst_34 {dimension_numbers = #tpu.dot_dimension_numbers<[1], [1], [0], [0], [0, 0, 1, 0], [], []>} : vector<8x8xf32>, vector<8x8xf32>, vector<8x8xf32> -> vector<8x8xf32>
    %cst_35 = arith.constant dense<0xFF800000> : vector<8xf32>
    %76 = vector.multi_reduction <maximumf>, %75, %cst_35 [1] : vector<8x8xf32> to vector<8xf32>
    %77 = vector.shape_cast %76 : vector<8xf32> to vector<8x1xf32>
    %78 = vector.broadcast %77 : vector<8x1xf32> to vector<8x8xf32>
    %79 = arith.subf %75, %78 : vector<8x8xf32>
    %80 = math.exp %79 : vector<8x8xf32>
    %cst_36 = arith.constant dense<0.000000e+00> : vector<8xf32>
    %81 = vector.multi_reduction <add>, %80, %cst_36 [1] : vector<8x8xf32> to vector<8xf32>
    %82 = vector.shape_cast %81 : vector<8xf32> to vector<8x1xf32>
    %83 = tpu.reciprocal %82 {approx = true} : vector<8x1xf32> -> vector<8x1xf32>
    %84 = vector.broadcast %83 : vector<8x1xf32> to vector<8x8xf32>
    %85 = arith.mulf %80, %84 : vector<8x8xf32>
    %cst_37 = arith.constant dense<0.000000e+00> : vector<8x8xf32>
    %86 = tpu.matmul %85, %74, %cst_37 {dimension_numbers = #tpu.dot_dimension_numbers<[1], [0], [0], [1], [0, 0, 1, 1], [], []>} : vector<8x8xf32>, vector<8x8xf32>, vector<8x8xf32> -> vector<8x8xf32>
    %87 = vector.extract_strided_slice %13 {offsets = [16, 0], sizes = [8, 32], strides = [1, 1]} : vector<32x32xf32> to vector<8x32xf32>
    %cst_38 = arith.constant dense<0.000000e+00> : vector<8x32xf32>
    %88 = tpu.matmul %86, %87, %cst_38 {dimension_numbers = #tpu.dot_dimension_numbers<[1], [0], [0], [1], [0, 0, 1, 1], [], []>} : vector<8x8xf32>, vector<8x32xf32>, vector<8x32xf32> -> vector<8x32xf32>
    %89 = arith.addf %69, %88 : vector<8x32xf32>
    %90 = vector.extract_strided_slice %20 {offsets = [0, 24], sizes = [8, 8], strides = [1, 1]} : vector<8x32xf32> to vector<8x8xf32>
    %cst_39 = arith.constant 0.353553385 : f32
    %91 = vector.broadcast %cst_39 : f32 to vector<8x8xf32>
    %92 = arith.mulf %90, %91 : vector<8x8xf32>
    %93 = vector.extract_strided_slice %25 {offsets = [0, 24], sizes = [8, 8], strides = [1, 1]} : vector<8x32xf32> to vector<8x8xf32>
    %94 = vector.extract_strided_slice %30 {offsets = [0, 24], sizes = [8, 8], strides = [1, 1]} : vector<8x32xf32> to vector<8x8xf32>
    %cst_40 = arith.constant dense<0.000000e+00> : vector<8x8xf32>
    %95 = tpu.matmul %92, %93, %cst_40 {dimension_numbers = #tpu.dot_dimension_numbers<[1], [1], [0], [0], [0, 0, 1, 0], [], []>} : vector<8x8xf32>, vector<8x8xf32>, vector<8x8xf32> -> vector<8x8xf32>
    %cst_41 = arith.constant dense<0xFF800000> : vector<8xf32>
    %96 = vector.multi_reduction <maximumf>, %95, %cst_41 [1] : vector<8x8xf32> to vector<8xf32>
    %97 = vector.shape_cast %96 : vector<8xf32> to vector<8x1xf32>
    %98 = vector.broadcast %97 : vector<8x1xf32> to vector<8x8xf32>
    %99 = arith.subf %95, %98 : vector<8x8xf32>
    %100 = math.exp %99 : vector<8x8xf32>
    %cst_42 = arith.constant dense<0.000000e+00> : vector<8xf32>
    %101 = vector.multi_reduction <add>, %100, %cst_42 [1] : vector<8x8xf32> to vector<8xf32>
    %102 = vector.shape_cast %101 : vector<8xf32> to vector<8x1xf32>
    %103 = tpu.reciprocal %102 {approx = true} : vector<8x1xf32> -> vector<8x1xf32>
    %104 = vector.broadcast %103 : vector<8x1xf32> to vector<8x8xf32>
    %105 = arith.mulf %100, %104 : vector<8x8xf32>
    %cst_43 = arith.constant dense<0.000000e+00> : vector<8x8xf32>
    %106 = tpu.matmul %105, %94, %cst_43 {dimension_numbers = #tpu.dot_dimension_numbers<[1], [0], [0], [1], [0, 0, 1, 1], [], []>} : vector<8x8xf32>, vector<8x8xf32>, vector<8x8xf32> -> vector<8x8xf32>
    %107 = vector.extract_strided_slice %13 {offsets = [24, 0], sizes = [8, 32], strides = [1, 1]} : vector<32x32xf32> to vector<8x32xf32>
    %cst_44 = arith.constant dense<0.000000e+00> : vector<8x32xf32>
    %108 = tpu.matmul %106, %107, %cst_44 {dimension_numbers = #tpu.dot_dimension_numbers<[1], [0], [0], [1], [0, 0, 1, 1], [], []>} : vector<8x8xf32>, vector<8x32xf32>, vector<8x32xf32> -> vector<8x32xf32>
    %109 = arith.addf %89, %108 : vector<8x32xf32>
    %110 = vector.broadcast %15 : vector<1x32xf32> to vector<8x32xf32>
    %111 = arith.addf %109, %110 : vector<8x32xf32>
    %112 = arith.addf %7, %111 : vector<8x32xf32>
    %c0_45 = arith.constant 0 : index
    %c0_46 = arith.constant 0 : index
    %c0_47 = arith.constant 0 : index
    %113 = vector.load %arg11[%c0_45, %c0_46, %c0_47] : memref<2x1x32xf32, #tpu.memory_space<vmem>>, vector<1x1x32xf32>
    %114 = vector.shape_cast %113 : vector<1x1x32xf32> to vector<1x32xf32>
    %c0_48 = arith.constant 0 : index
    %c0_49 = arith.constant 0 : index
    %c0_50 = arith.constant 0 : index
    %115 = vector.load %arg12[%c0_48, %c0_49, %c0_50] : memref<2x1x32xf32, #tpu.memory_space<vmem>>, vector<1x1x32xf32>
    %116 = vector.shape_cast %115 : vector<1x1x32xf32> to vector<1x32xf32>
    %cst_51 = arith.constant dense<0.000000e+00> : vector<8xf32>
    %117 = vector.multi_reduction <add>, %112, %cst_51 [1] : vector<8x32xf32> to vector<8xf32>
    %118 = vector.shape_cast %117 : vector<8xf32> to vector<8x1xf32>
    %cst_52 = arith.constant 3.200000e+01 : f32
    %119 = vector.broadcast %cst_52 : f32 to vector<8x1xf32>
    %120 = arith.divf %118, %119 : vector<8x1xf32>
    %121 = vector.broadcast %120 : vector<8x1xf32> to vector<8x32xf32>
    %122 = arith.subf %112, %121 : vector<8x32xf32>
    %123 = arith.mulf %122, %122 : vector<8x32xf32>
    %cst_53 = arith.constant dense<0.000000e+00> : vector<8xf32>
    %124 = vector.multi_reduction <add>, %123, %cst_53 [1] : vector<8x32xf32> to vector<8xf32>
    %125 = vector.shape_cast %124 : vector<8xf32> to vector<8x1xf32>
    %cst_54 = arith.constant 3.200000e+01 : f32
    %126 = vector.broadcast %cst_54 : f32 to vector<8x1xf32>
    %127 = arith.divf %125, %126 : vector<8x1xf32>
    %128 = vector.broadcast %120 : vector<8x1xf32> to vector<8x32xf32>
    %129 = arith.subf %112, %128 : vector<8x32xf32>
    %cst_55 = arith.constant 9.99999974E-6 : f32
    %130 = vector.broadcast %cst_55 : f32 to vector<8x1xf32>
    %131 = arith.addf %127, %130 : vector<8x1xf32>
    %132 = math.rsqrt %131 : vector<8x1xf32>
    %133 = vector.broadcast %132 : vector<8x1xf32> to vector<8x32xf32>
    %134 = arith.mulf %129, %133 : vector<8x32xf32>
    %135 = vector.broadcast %114 : vector<1x32xf32> to vector<8x32xf32>
    %136 = arith.mulf %134, %135 : vector<8x32xf32>
    %137 = vector.broadcast %116 : vector<1x32xf32> to vector<8x32xf32>
    %138 = arith.addf %136, %137 : vector<8x32xf32>
    %c0_56 = arith.constant 0 : index
    %c0_57 = arith.constant 0 : index
    %c0_58 = arith.constant 0 : index
    %139 = vector.load %arg7[%c0_56, %c0_57, %c0_58] : memref<2x32x2048xbf16, #tpu.memory_space<vmem>>, vector<1x32x2048xbf16>
    %140 = vector.shape_cast %139 : vector<1x32x2048xbf16> to vector<32x2048xbf16>
    %c0_59 = arith.constant 0 : index
    %c0_60 = arith.constant 0 : index
    %c0_61 = arith.constant 0 : index
    %141 = vector.load %arg8[%c0_59, %c0_60, %c0_61] : memref<2x1x2048xf32, #tpu.memory_space<vmem>>, vector<1x1x2048xf32>
    %142 = vector.shape_cast %141 : vector<1x1x2048xf32> to vector<1x2048xf32>
    %c0_62 = arith.constant 0 : index
    %c0_63 = arith.constant 0 : index
    %c0_64 = arith.constant 0 : index
    %143 = vector.load %arg9[%c0_62, %c0_63, %c0_64] : memref<2x2048x32xbf16, #tpu.memory_space<vmem>>, vector<1x2048x32xbf16>
    %144 = vector.shape_cast %143 : vector<1x2048x32xbf16> to vector<2048x32xbf16>
    %c0_65 = arith.constant 0 : index
    %c0_66 = arith.constant 0 : index
    %c0_67 = arith.constant 0 : index
    %145 = vector.load %arg10[%c0_65, %c0_66, %c0_67] : memref<2x1x32xf32, #tpu.memory_space<vmem>>, vector<1x1x32xf32>
    %146 = vector.shape_cast %145 : vector<1x1x32xf32> to vector<1x32xf32>
    %147 = arith.truncf %138 : vector<8x32xf32> to vector<8x32xbf16>
    %cst_68 = arith.constant dense<0.000000e+00> : vector<8x2048xf32>
    %148 = tpu.matmul %147, %140, %cst_68 {dimension_numbers = #tpu.dot_dimension_numbers<[1], [0], [0], [1], [0, 0, 1, 1], [], []>} : vector<8x32xbf16>, vector<32x2048xbf16>, vector<8x2048xf32> -> vector<8x2048xf32>
    %149 = vector.broadcast %142 : vector<1x2048xf32> to vector<8x2048xf32>
    %150 = arith.addf %148, %149 : vector<8x2048xf32>
    %cst_69 = arith.constant 0.000000e+00 : f32
    %151 = vector.broadcast %cst_69 : f32 to vector<8x2048xf32>
    %152 = arith.maximumf %150, %151 : vector<8x2048xf32>
    %153 = arith.truncf %152 : vector<8x2048xf32> to vector<8x2048xbf16>
    %cst_70 = arith.constant dense<0.000000e+00> : vector<8x32xf32>
    %154 = tpu.matmul %153, %144, %cst_70 {dimension_numbers = #tpu.dot_dimension_numbers<[1], [0], [0], [1], [0, 0, 1, 1], [], []>} : vector<8x2048xbf16>, vector<2048x32xbf16>, vector<8x32xf32> -> vector<8x32xf32>
    %155 = vector.broadcast %146 : vector<1x32xf32> to vector<8x32xf32>
    %156 = arith.addf %154, %155 : vector<8x32xf32>
    %157 = arith.addf %138, %156 : vector<8x32xf32>
    %c0_71 = arith.constant 0 : index
    %c0_72 = arith.constant 0 : index
    %c0_73 = arith.constant 0 : index
    %158 = vector.load %arg13[%c0_71, %c0_72, %c0_73] : memref<2x1x32xf32, #tpu.memory_space<vmem>>, vector<1x1x32xf32>
    %159 = vector.shape_cast %158 : vector<1x1x32xf32> to vector<1x32xf32>
    %c0_74 = arith.constant 0 : index
    %c0_75 = arith.constant 0 : index
    %c0_76 = arith.constant 0 : index
    %160 = vector.load %arg14[%c0_74, %c0_75, %c0_76] : memref<2x1x32xf32, #tpu.memory_space<vmem>>, vector<1x1x32xf32>
    %161 = vector.shape_cast %160 : vector<1x1x32xf32> to vector<1x32xf32>
    %cst_77 = arith.constant dense<0.000000e+00> : vector<8xf32>
    %162 = vector.multi_reduction <add>, %157, %cst_77 [1] : vector<8x32xf32> to vector<8xf32>
    %163 = vector.shape_cast %162 : vector<8xf32> to vector<8x1xf32>
    %cst_78 = arith.constant 3.200000e+01 : f32
    %164 = vector.broadcast %cst_78 : f32 to vector<8x1xf32>
    %165 = arith.divf %163, %164 : vector<8x1xf32>
    %166 = vector.broadcast %165 : vector<8x1xf32> to vector<8x32xf32>
    %167 = arith.subf %157, %166 : vector<8x32xf32>
    %168 = arith.mulf %167, %167 : vector<8x32xf32>
    %cst_79 = arith.constant dense<0.000000e+00> : vector<8xf32>
    %169 = vector.multi_reduction <add>, %168, %cst_79 [1] : vector<8x32xf32> to vector<8xf32>
    %170 = vector.shape_cast %169 : vector<8xf32> to vector<8x1xf32>
    %cst_80 = arith.constant 3.200000e+01 : f32
    %171 = vector.broadcast %cst_80 : f32 to vector<8x1xf32>
    %172 = arith.divf %170, %171 : vector<8x1xf32>
    %173 = vector.broadcast %165 : vector<8x1xf32> to vector<8x32xf32>
    %174 = arith.subf %157, %173 : vector<8x32xf32>
    %cst_81 = arith.constant 9.99999974E-6 : f32
    %175 = vector.broadcast %cst_81 : f32 to vector<8x1xf32>
    %176 = arith.addf %172, %175 : vector<8x1xf32>
    %177 = math.rsqrt %176 : vector<8x1xf32>
    %178 = vector.broadcast %177 : vector<8x1xf32> to vector<8x32xf32>
    %179 = arith.mulf %174, %178 : vector<8x32xf32>
    %180 = vector.broadcast %159 : vector<1x32xf32> to vector<8x32xf32>
    %181 = arith.mulf %179, %180 : vector<8x32xf32>
    %182 = vector.broadcast %161 : vector<1x32xf32> to vector<8x32xf32>
    %183 = arith.addf %181, %182 : vector<8x32xf32>
    %c1 = arith.constant 1 : index
    %c0_82 = arith.constant 0 : index
    %c0_83 = arith.constant 0 : index
    %184 = vector.load %arg3[%c1, %c0_82, %c0_83] : memref<2x32x96xf32, #tpu.memory_space<vmem>>, vector<1x32x96xf32>
    %185 = vector.shape_cast %184 : vector<1x32x96xf32> to vector<32x96xf32>
    %c1_84 = arith.constant 1 : index
    %c0_85 = arith.constant 0 : index
    %c0_86 = arith.constant 0 : index
    %186 = vector.load %arg4[%c1_84, %c0_85, %c0_86] : memref<2x1x96xf32, #tpu.memory_space<vmem>>, vector<1x1x96xf32>
    %187 = vector.shape_cast %186 : vector<1x1x96xf32> to vector<1x96xf32>
    %c1_87 = arith.constant 1 : index
    %c0_88 = arith.constant 0 : index
    %c0_89 = arith.constant 0 : index
    %188 = vector.load %arg5[%c1_87, %c0_88, %c0_89] : memref<2x32x32xf32, #tpu.memory_space<vmem>>, vector<1x32x32xf32>
    %189 = vector.shape_cast %188 : vector<1x32x32xf32> to vector<32x32xf32>
    %c1_90 = arith.constant 1 : index
    %c0_91 = arith.constant 0 : index
    %c0_92 = arith.constant 0 : index
    %190 = vector.load %arg6[%c1_90, %c0_91, %c0_92] : memref<2x1x32xf32, #tpu.memory_space<vmem>>, vector<1x1x32xf32>
    %191 = vector.shape_cast %190 : vector<1x1x32xf32> to vector<1x32xf32>
    %192 = vector.extract_strided_slice %185 {offsets = [0, 0], sizes = [32, 32], strides = [1, 1]} : vector<32x96xf32> to vector<32x32xf32>
    %cst_93 = arith.constant dense<0.000000e+00> : vector<8x32xf32>
    %193 = tpu.matmul %183, %192, %cst_93 {dimension_numbers = #tpu.dot_dimension_numbers<[1], [0], [0], [1], [0, 0, 1, 1], [], []>} : vector<8x32xf32>, vector<32x32xf32>, vector<8x32xf32> -> vector<8x32xf32>
    %194 = vector.extract_strided_slice %187 {offsets = [0, 0], sizes = [1, 32], strides = [1, 1]} : vector<1x96xf32> to vector<1x32xf32>
    %195 = vector.broadcast %194 : vector<1x32xf32> to vector<8x32xf32>
    %196 = arith.addf %193, %195 : vector<8x32xf32>
    %197 = vector.extract_strided_slice %185 {offsets = [0, 32], sizes = [32, 32], strides = [1, 1]} : vector<32x96xf32> to vector<32x32xf32>
    %cst_94 = arith.constant dense<0.000000e+00> : vector<8x32xf32>
    %198 = tpu.matmul %183, %197, %cst_94 {dimension_numbers = #tpu.dot_dimension_numbers<[1], [0], [0], [1], [0, 0, 1, 1], [], []>} : vector<8x32xf32>, vector<32x32xf32>, vector<8x32xf32> -> vector<8x32xf32>
    %199 = vector.extract_strided_slice %187 {offsets = [0, 32], sizes = [1, 32], strides = [1, 1]} : vector<1x96xf32> to vector<1x32xf32>
    %200 = vector.broadcast %199 : vector<1x32xf32> to vector<8x32xf32>
    %201 = arith.addf %198, %200 : vector<8x32xf32>
    %202 = vector.extract_strided_slice %185 {offsets = [0, 64], sizes = [32, 32], strides = [1, 1]} : vector<32x96xf32> to vector<32x32xf32>
    %cst_95 = arith.constant dense<0.000000e+00> : vector<8x32xf32>
    %203 = tpu.matmul %183, %202, %cst_95 {dimension_numbers = #tpu.dot_dimension_numbers<[1], [0], [0], [1], [0, 0, 1, 1], [], []>} : vector<8x32xf32>, vector<32x32xf32>, vector<8x32xf32> -> vector<8x32xf32>
    %204 = vector.extract_strided_slice %187 {offsets = [0, 64], sizes = [1, 32], strides = [1, 1]} : vector<1x96xf32> to vector<1x32xf32>
    %205 = vector.broadcast %204 : vector<1x32xf32> to vector<8x32xf32>
    %206 = arith.addf %203, %205 : vector<8x32xf32>
    %207 = vector.extract_strided_slice %196 {offsets = [0, 0], sizes = [8, 8], strides = [1, 1]} : vector<8x32xf32> to vector<8x8xf32>
    %cst_96 = arith.constant 0.353553385 : f32
    %208 = vector.broadcast %cst_96 : f32 to vector<8x8xf32>
    %209 = arith.mulf %207, %208 : vector<8x8xf32>
    %210 = vector.extract_strided_slice %201 {offsets = [0, 0], sizes = [8, 8], strides = [1, 1]} : vector<8x32xf32> to vector<8x8xf32>
    %211 = vector.extract_strided_slice %206 {offsets = [0, 0], sizes = [8, 8], strides = [1, 1]} : vector<8x32xf32> to vector<8x8xf32>
    %cst_97 = arith.constant dense<0.000000e+00> : vector<8x8xf32>
    %212 = tpu.matmul %209, %210, %cst_97 {dimension_numbers = #tpu.dot_dimension_numbers<[1], [1], [0], [0], [0, 0, 1, 0], [], []>} : vector<8x8xf32>, vector<8x8xf32>, vector<8x8xf32> -> vector<8x8xf32>
    %cst_98 = arith.constant dense<0xFF800000> : vector<8xf32>
    %213 = vector.multi_reduction <maximumf>, %212, %cst_98 [1] : vector<8x8xf32> to vector<8xf32>
    %214 = vector.shape_cast %213 : vector<8xf32> to vector<8x1xf32>
    %215 = vector.broadcast %214 : vector<8x1xf32> to vector<8x8xf32>
    %216 = arith.subf %212, %215 : vector<8x8xf32>
    %217 = math.exp %216 : vector<8x8xf32>
    %cst_99 = arith.constant dense<0.000000e+00> : vector<8xf32>
    %218 = vector.multi_reduction <add>, %217, %cst_99 [1] : vector<8x8xf32> to vector<8xf32>
    %219 = vector.shape_cast %218 : vector<8xf32> to vector<8x1xf32>
    %220 = tpu.reciprocal %219 {approx = true} : vector<8x1xf32> -> vector<8x1xf32>
    %221 = vector.broadcast %220 : vector<8x1xf32> to vector<8x8xf32>
    %222 = arith.mulf %217, %221 : vector<8x8xf32>
    %cst_100 = arith.constant dense<0.000000e+00> : vector<8x8xf32>
    %223 = tpu.matmul %222, %211, %cst_100 {dimension_numbers = #tpu.dot_dimension_numbers<[1], [0], [0], [1], [0, 0, 1, 1], [], []>} : vector<8x8xf32>, vector<8x8xf32>, vector<8x8xf32> -> vector<8x8xf32>
    %224 = vector.extract_strided_slice %189 {offsets = [0, 0], sizes = [8, 32], strides = [1, 1]} : vector<32x32xf32> to vector<8x32xf32>
    %cst_101 = arith.constant dense<0.000000e+00> : vector<8x32xf32>
    %225 = tpu.matmul %223, %224, %cst_101 {dimension_numbers = #tpu.dot_dimension_numbers<[1], [0], [0], [1], [0, 0, 1, 1], [], []>} : vector<8x8xf32>, vector<8x32xf32>, vector<8x32xf32> -> vector<8x32xf32>
    %226 = vector.extract_strided_slice %196 {offsets = [0, 8], sizes = [8, 8], strides = [1, 1]} : vector<8x32xf32> to vector<8x8xf32>
    %cst_102 = arith.constant 0.353553385 : f32
    %227 = vector.broadcast %cst_102 : f32 to vector<8x8xf32>
    %228 = arith.mulf %226, %227 : vector<8x8xf32>
    %229 = vector.extract_strided_slice %201 {offsets = [0, 8], sizes = [8, 8], strides = [1, 1]} : vector<8x32xf32> to vector<8x8xf32>
    %230 = vector.extract_strided_slice %206 {offsets = [0, 8], sizes = [8, 8], strides = [1, 1]} : vector<8x32xf32> to vector<8x8xf32>
    %cst_103 = arith.constant dense<0.000000e+00> : vector<8x8xf32>
    %231 = tpu.matmul %228, %229, %cst_103 {dimension_numbers = #tpu.dot_dimension_numbers<[1], [1], [0], [0], [0, 0, 1, 0], [], []>} : vector<8x8xf32>, vector<8x8xf32>, vector<8x8xf32> -> vector<8x8xf32>
    %cst_104 = arith.constant dense<0xFF800000> : vector<8xf32>
    %232 = vector.multi_reduction <maximumf>, %231, %cst_104 [1] : vector<8x8xf32> to vector<8xf32>
    %233 = vector.shape_cast %232 : vector<8xf32> to vector<8x1xf32>
    %234 = vector.broadcast %233 : vector<8x1xf32> to vector<8x8xf32>
    %235 = arith.subf %231, %234 : vector<8x8xf32>
    %236 = math.exp %235 : vector<8x8xf32>
    %cst_105 = arith.constant dense<0.000000e+00> : vector<8xf32>
    %237 = vector.multi_reduction <add>, %236, %cst_105 [1] : vector<8x8xf32> to vector<8xf32>
    %238 = vector.shape_cast %237 : vector<8xf32> to vector<8x1xf32>
    %239 = tpu.reciprocal %238 {approx = true} : vector<8x1xf32> -> vector<8x1xf32>
    %240 = vector.broadcast %239 : vector<8x1xf32> to vector<8x8xf32>
    %241 = arith.mulf %236, %240 : vector<8x8xf32>
    %cst_106 = arith.constant dense<0.000000e+00> : vector<8x8xf32>
    %242 = tpu.matmul %241, %230, %cst_106 {dimension_numbers = #tpu.dot_dimension_numbers<[1], [0], [0], [1], [0, 0, 1, 1], [], []>} : vector<8x8xf32>, vector<8x8xf32>, vector<8x8xf32> -> vector<8x8xf32>
    %243 = vector.extract_strided_slice %189 {offsets = [8, 0], sizes = [8, 32], strides = [1, 1]} : vector<32x32xf32> to vector<8x32xf32>
    %cst_107 = arith.constant dense<0.000000e+00> : vector<8x32xf32>
    %244 = tpu.matmul %242, %243, %cst_107 {dimension_numbers = #tpu.dot_dimension_numbers<[1], [0], [0], [1], [0, 0, 1, 1], [], []>} : vector<8x8xf32>, vector<8x32xf32>, vector<8x32xf32> -> vector<8x32xf32>
    %245 = arith.addf %225, %244 : vector<8x32xf32>
    %246 = vector.extract_strided_slice %196 {offsets = [0, 16], sizes = [8, 8], strides = [1, 1]} : vector<8x32xf32> to vector<8x8xf32>
    %cst_108 = arith.constant 0.353553385 : f32
    %247 = vector.broadcast %cst_108 : f32 to vector<8x8xf32>
    %248 = arith.mulf %246, %247 : vector<8x8xf32>
    %249 = vector.extract_strided_slice %201 {offsets = [0, 16], sizes = [8, 8], strides = [1, 1]} : vector<8x32xf32> to vector<8x8xf32>
    %250 = vector.extract_strided_slice %206 {offsets = [0, 16], sizes = [8, 8], strides = [1, 1]} : vector<8x32xf32> to vector<8x8xf32>
    %cst_109 = arith.constant dense<0.000000e+00> : vector<8x8xf32>
    %251 = tpu.matmul %248, %249, %cst_109 {dimension_numbers = #tpu.dot_dimension_numbers<[1], [1], [0], [0], [0, 0, 1, 0], [], []>} : vector<8x8xf32>, vector<8x8xf32>, vector<8x8xf32> -> vector<8x8xf32>
    %cst_110 = arith.constant dense<0xFF800000> : vector<8xf32>
    %252 = vector.multi_reduction <maximumf>, %251, %cst_110 [1] : vector<8x8xf32> to vector<8xf32>
    %253 = vector.shape_cast %252 : vector<8xf32> to vector<8x1xf32>
    %254 = vector.broadcast %253 : vector<8x1xf32> to vector<8x8xf32>
    %255 = arith.subf %251, %254 : vector<8x8xf32>
    %256 = math.exp %255 : vector<8x8xf32>
    %cst_111 = arith.constant dense<0.000000e+00> : vector<8xf32>
    %257 = vector.multi_reduction <add>, %256, %cst_111 [1] : vector<8x8xf32> to vector<8xf32>
    %258 = vector.shape_cast %257 : vector<8xf32> to vector<8x1xf32>
    %259 = tpu.reciprocal %258 {approx = true} : vector<8x1xf32> -> vector<8x1xf32>
    %260 = vector.broadcast %259 : vector<8x1xf32> to vector<8x8xf32>
    %261 = arith.mulf %256, %260 : vector<8x8xf32>
    %cst_112 = arith.constant dense<0.000000e+00> : vector<8x8xf32>
    %262 = tpu.matmul %261, %250, %cst_112 {dimension_numbers = #tpu.dot_dimension_numbers<[1], [0], [0], [1], [0, 0, 1, 1], [], []>} : vector<8x8xf32>, vector<8x8xf32>, vector<8x8xf32> -> vector<8x8xf32>
    %263 = vector.extract_strided_slice %189 {offsets = [16, 0], sizes = [8, 32], strides = [1, 1]} : vector<32x32xf32> to vector<8x32xf32>
    %cst_113 = arith.constant dense<0.000000e+00> : vector<8x32xf32>
    %264 = tpu.matmul %262, %263, %cst_113 {dimension_numbers = #tpu.dot_dimension_numbers<[1], [0], [0], [1], [0, 0, 1, 1], [], []>} : vector<8x8xf32>, vector<8x32xf32>, vector<8x32xf32> -> vector<8x32xf32>
    %265 = arith.addf %245, %264 : vector<8x32xf32>
    %266 = vector.extract_strided_slice %196 {offsets = [0, 24], sizes = [8, 8], strides = [1, 1]} : vector<8x32xf32> to vector<8x8xf32>
    %cst_114 = arith.constant 0.353553385 : f32
    %267 = vector.broadcast %cst_114 : f32 to vector<8x8xf32>
    %268 = arith.mulf %266, %267 : vector<8x8xf32>
    %269 = vector.extract_strided_slice %201 {offsets = [0, 24], sizes = [8, 8], strides = [1, 1]} : vector<8x32xf32> to vector<8x8xf32>
    %270 = vector.extract_strided_slice %206 {offsets = [0, 24], sizes = [8, 8], strides = [1, 1]} : vector<8x32xf32> to vector<8x8xf32>
    %cst_115 = arith.constant dense<0.000000e+00> : vector<8x8xf32>
    %271 = tpu.matmul %268, %269, %cst_115 {dimension_numbers = #tpu.dot_dimension_numbers<[1], [1], [0], [0], [0, 0, 1, 0], [], []>} : vector<8x8xf32>, vector<8x8xf32>, vector<8x8xf32> -> vector<8x8xf32>
    %cst_116 = arith.constant dense<0xFF800000> : vector<8xf32>
    %272 = vector.multi_reduction <maximumf>, %271, %cst_116 [1] : vector<8x8xf32> to vector<8xf32>
    %273 = vector.shape_cast %272 : vector<8xf32> to vector<8x1xf32>
    %274 = vector.broadcast %273 : vector<8x1xf32> to vector<8x8xf32>
    %275 = arith.subf %271, %274 : vector<8x8xf32>
    %276 = math.exp %275 : vector<8x8xf32>
    %cst_117 = arith.constant dense<0.000000e+00> : vector<8xf32>
    %277 = vector.multi_reduction <add>, %276, %cst_117 [1] : vector<8x8xf32> to vector<8xf32>
    %278 = vector.shape_cast %277 : vector<8xf32> to vector<8x1xf32>
    %279 = tpu.reciprocal %278 {approx = true} : vector<8x1xf32> -> vector<8x1xf32>
    %280 = vector.broadcast %279 : vector<8x1xf32> to vector<8x8xf32>
    %281 = arith.mulf %276, %280 : vector<8x8xf32>
    %cst_118 = arith.constant dense<0.000000e+00> : vector<8x8xf32>
    %282 = tpu.matmul %281, %270, %cst_118 {dimension_numbers = #tpu.dot_dimension_numbers<[1], [0], [0], [1], [0, 0, 1, 1], [], []>} : vector<8x8xf32>, vector<8x8xf32>, vector<8x8xf32> -> vector<8x8xf32>
    %283 = vector.extract_strided_slice %189 {offsets = [24, 0], sizes = [8, 32], strides = [1, 1]} : vector<32x32xf32> to vector<8x32xf32>
    %cst_119 = arith.constant dense<0.000000e+00> : vector<8x32xf32>
    %284 = tpu.matmul %282, %283, %cst_119 {dimension_numbers = #tpu.dot_dimension_numbers<[1], [0], [0], [1], [0, 0, 1, 1], [], []>} : vector<8x8xf32>, vector<8x32xf32>, vector<8x32xf32> -> vector<8x32xf32>
    %285 = arith.addf %265, %284 : vector<8x32xf32>
    %286 = vector.broadcast %191 : vector<1x32xf32> to vector<8x32xf32>
    %287 = arith.addf %285, %286 : vector<8x32xf32>
    %288 = arith.addf %183, %287 : vector<8x32xf32>
    %c1_120 = arith.constant 1 : index
    %c0_121 = arith.constant 0 : index
    %c0_122 = arith.constant 0 : index
    %289 = vector.load %arg11[%c1_120, %c0_121, %c0_122] : memref<2x1x32xf32, #tpu.memory_space<vmem>>, vector<1x1x32xf32>
    %290 = vector.shape_cast %289 : vector<1x1x32xf32> to vector<1x32xf32>
    %c1_123 = arith.constant 1 : index
    %c0_124 = arith.constant 0 : index
    %c0_125 = arith.constant 0 : index
    %291 = vector.load %arg12[%c1_123, %c0_124, %c0_125] : memref<2x1x32xf32, #tpu.memory_space<vmem>>, vector<1x1x32xf32>
    %292 = vector.shape_cast %291 : vector<1x1x32xf32> to vector<1x32xf32>
    %cst_126 = arith.constant dense<0.000000e+00> : vector<8xf32>
    %293 = vector.multi_reduction <add>, %288, %cst_126 [1] : vector<8x32xf32> to vector<8xf32>
    %294 = vector.shape_cast %293 : vector<8xf32> to vector<8x1xf32>
    %cst_127 = arith.constant 3.200000e+01 : f32
    %295 = vector.broadcast %cst_127 : f32 to vector<8x1xf32>
    %296 = arith.divf %294, %295 : vector<8x1xf32>
    %297 = vector.broadcast %296 : vector<8x1xf32> to vector<8x32xf32>
    %298 = arith.subf %288, %297 : vector<8x32xf32>
    %299 = arith.mulf %298, %298 : vector<8x32xf32>
    %cst_128 = arith.constant dense<0.000000e+00> : vector<8xf32>
    %300 = vector.multi_reduction <add>, %299, %cst_128 [1] : vector<8x32xf32> to vector<8xf32>
    %301 = vector.shape_cast %300 : vector<8xf32> to vector<8x1xf32>
    %cst_129 = arith.constant 3.200000e+01 : f32
    %302 = vector.broadcast %cst_129 : f32 to vector<8x1xf32>
    %303 = arith.divf %301, %302 : vector<8x1xf32>
    %304 = vector.broadcast %296 : vector<8x1xf32> to vector<8x32xf32>
    %305 = arith.subf %288, %304 : vector<8x32xf32>
    %cst_130 = arith.constant 9.99999974E-6 : f32
    %306 = vector.broadcast %cst_130 : f32 to vector<8x1xf32>
    %307 = arith.addf %303, %306 : vector<8x1xf32>
    %308 = math.rsqrt %307 : vector<8x1xf32>
    %309 = vector.broadcast %308 : vector<8x1xf32> to vector<8x32xf32>
    %310 = arith.mulf %305, %309 : vector<8x32xf32>
    %311 = vector.broadcast %290 : vector<1x32xf32> to vector<8x32xf32>
    %312 = arith.mulf %310, %311 : vector<8x32xf32>
    %313 = vector.broadcast %292 : vector<1x32xf32> to vector<8x32xf32>
    %314 = arith.addf %312, %313 : vector<8x32xf32>
    %c1_131 = arith.constant 1 : index
    %c0_132 = arith.constant 0 : index
    %c0_133 = arith.constant 0 : index
    %315 = vector.load %arg7[%c1_131, %c0_132, %c0_133] : memref<2x32x2048xbf16, #tpu.memory_space<vmem>>, vector<1x32x2048xbf16>
    %316 = vector.shape_cast %315 : vector<1x32x2048xbf16> to vector<32x2048xbf16>
    %c1_134 = arith.constant 1 : index
    %c0_135 = arith.constant 0 : index
    %c0_136 = arith.constant 0 : index
    %317 = vector.load %arg8[%c1_134, %c0_135, %c0_136] : memref<2x1x2048xf32, #tpu.memory_space<vmem>>, vector<1x1x2048xf32>
    %318 = vector.shape_cast %317 : vector<1x1x2048xf32> to vector<1x2048xf32>
    %c1_137 = arith.constant 1 : index
    %c0_138 = arith.constant 0 : index
    %c0_139 = arith.constant 0 : index
    %319 = vector.load %arg9[%c1_137, %c0_138, %c0_139] : memref<2x2048x32xbf16, #tpu.memory_space<vmem>>, vector<1x2048x32xbf16>
    %320 = vector.shape_cast %319 : vector<1x2048x32xbf16> to vector<2048x32xbf16>
    %c1_140 = arith.constant 1 : index
    %c0_141 = arith.constant 0 : index
    %c0_142 = arith.constant 0 : index
    %321 = vector.load %arg10[%c1_140, %c0_141, %c0_142] : memref<2x1x32xf32, #tpu.memory_space<vmem>>, vector<1x1x32xf32>
    %322 = vector.shape_cast %321 : vector<1x1x32xf32> to vector<1x32xf32>
    %323 = arith.truncf %314 : vector<8x32xf32> to vector<8x32xbf16>
    %cst_143 = arith.constant dense<0.000000e+00> : vector<8x2048xf32>
    %324 = tpu.matmul %323, %316, %cst_143 {dimension_numbers = #tpu.dot_dimension_numbers<[1], [0], [0], [1], [0, 0, 1, 1], [], []>} : vector<8x32xbf16>, vector<32x2048xbf16>, vector<8x2048xf32> -> vector<8x2048xf32>
    %325 = vector.broadcast %318 : vector<1x2048xf32> to vector<8x2048xf32>
    %326 = arith.addf %324, %325 : vector<8x2048xf32>
    %cst_144 = arith.constant 0.000000e+00 : f32
    %327 = vector.broadcast %cst_144 : f32 to vector<8x2048xf32>
    %328 = arith.maximumf %326, %327 : vector<8x2048xf32>
    %329 = arith.truncf %328 : vector<8x2048xf32> to vector<8x2048xbf16>
    %cst_145 = arith.constant dense<0.000000e+00> : vector<8x32xf32>
    %330 = tpu.matmul %329, %320, %cst_145 {dimension_numbers = #tpu.dot_dimension_numbers<[1], [0], [0], [1], [0, 0, 1, 1], [], []>} : vector<8x2048xbf16>, vector<2048x32xbf16>, vector<8x32xf32> -> vector<8x32xf32>
    %331 = vector.broadcast %322 : vector<1x32xf32> to vector<8x32xf32>
    %332 = arith.addf %330, %331 : vector<8x32xf32>
    %333 = arith.addf %314, %332 : vector<8x32xf32>
    %c1_146 = arith.constant 1 : index
    %c0_147 = arith.constant 0 : index
    %c0_148 = arith.constant 0 : index
    %334 = vector.load %arg13[%c1_146, %c0_147, %c0_148] : memref<2x1x32xf32, #tpu.memory_space<vmem>>, vector<1x1x32xf32>
    %335 = vector.shape_cast %334 : vector<1x1x32xf32> to vector<1x32xf32>
    %c1_149 = arith.constant 1 : index
    %c0_150 = arith.constant 0 : index
    %c0_151 = arith.constant 0 : index
    %336 = vector.load %arg14[%c1_149, %c0_150, %c0_151] : memref<2x1x32xf32, #tpu.memory_space<vmem>>, vector<1x1x32xf32>
    %337 = vector.shape_cast %336 : vector<1x1x32xf32> to vector<1x32xf32>
    %cst_152 = arith.constant dense<0.000000e+00> : vector<8xf32>
    %338 = vector.multi_reduction <add>, %333, %cst_152 [1] : vector<8x32xf32> to vector<8xf32>
    %339 = vector.shape_cast %338 : vector<8xf32> to vector<8x1xf32>
    %cst_153 = arith.constant 3.200000e+01 : f32
    %340 = vector.broadcast %cst_153 : f32 to vector<8x1xf32>
    %341 = arith.divf %339, %340 : vector<8x1xf32>
    %342 = vector.broadcast %341 : vector<8x1xf32> to vector<8x32xf32>
    %343 = arith.subf %333, %342 : vector<8x32xf32>
    %344 = arith.mulf %343, %343 : vector<8x32xf32>
    %cst_154 = arith.constant dense<0.000000e+00> : vector<8xf32>
    %345 = vector.multi_reduction <add>, %344, %cst_154 [1] : vector<8x32xf32> to vector<8xf32>
    %346 = vector.shape_cast %345 : vector<8xf32> to vector<8x1xf32>
    %cst_155 = arith.constant 3.200000e+01 : f32
    %347 = vector.broadcast %cst_155 : f32 to vector<8x1xf32>
    %348 = arith.divf %346, %347 : vector<8x1xf32>
    %349 = vector.broadcast %341 : vector<8x1xf32> to vector<8x32xf32>
    %350 = arith.subf %333, %349 : vector<8x32xf32>
    %cst_156 = arith.constant 9.99999974E-6 : f32
    %351 = vector.broadcast %cst_156 : f32 to vector<8x1xf32>
    %352 = arith.addf %348, %351 : vector<8x1xf32>
    %353 = math.rsqrt %352 : vector<8x1xf32>
    %354 = vector.broadcast %353 : vector<8x1xf32> to vector<8x32xf32>
    %355 = arith.mulf %350, %354 : vector<8x32xf32>
    %356 = vector.broadcast %335 : vector<1x32xf32> to vector<8x32xf32>
    %357 = arith.mulf %355, %356 : vector<8x32xf32>
    %358 = vector.broadcast %337 : vector<1x32xf32> to vector<8x32xf32>
    %359 = arith.addf %357, %358 : vector<8x32xf32>
    %c0_157 = arith.constant 0 : index
    %c0_158 = arith.constant 0 : index
    %360 = vector.load %arg15[%c0_157, %c0_158] : memref<1x32xf32, #tpu.memory_space<vmem>>, vector<1x32xf32>
    %c0_159 = arith.constant 0 : index
    %c0_160 = arith.constant 0 : index
    %361 = vector.load %arg16[%c0_159, %c0_160] : memref<1x32xf32, #tpu.memory_space<vmem>>, vector<1x32xf32>
    %cst_161 = arith.constant dense<0.000000e+00> : vector<8xf32>
    %362 = vector.multi_reduction <add>, %359, %cst_161 [1] : vector<8x32xf32> to vector<8xf32>
    %363 = vector.shape_cast %362 : vector<8xf32> to vector<8x1xf32>
    %cst_162 = arith.constant 3.200000e+01 : f32
    %364 = vector.broadcast %cst_162 : f32 to vector<8x1xf32>
    %365 = arith.divf %363, %364 : vector<8x1xf32>
    %366 = vector.broadcast %365 : vector<8x1xf32> to vector<8x32xf32>
    %367 = arith.subf %359, %366 : vector<8x32xf32>
    %368 = arith.mulf %367, %367 : vector<8x32xf32>
    %cst_163 = arith.constant dense<0.000000e+00> : vector<8xf32>
    %369 = vector.multi_reduction <add>, %368, %cst_163 [1] : vector<8x32xf32> to vector<8xf32>
    %370 = vector.shape_cast %369 : vector<8xf32> to vector<8x1xf32>
    %cst_164 = arith.constant 3.200000e+01 : f32
    %371 = vector.broadcast %cst_164 : f32 to vector<8x1xf32>
    %372 = arith.divf %370, %371 : vector<8x1xf32>
    %373 = vector.broadcast %365 : vector<8x1xf32> to vector<8x32xf32>
    %374 = arith.subf %359, %373 : vector<8x32xf32>
    %cst_165 = arith.constant 9.99999974E-6 : f32
    %375 = vector.broadcast %cst_165 : f32 to vector<8x1xf32>
    %376 = arith.addf %372, %375 : vector<8x1xf32>
    %377 = math.rsqrt %376 : vector<8x1xf32>
    %378 = vector.broadcast %377 : vector<8x1xf32> to vector<8x32xf32>
    %379 = arith.mulf %374, %378 : vector<8x32xf32>
    %380 = vector.broadcast %360 : vector<1x32xf32> to vector<8x32xf32>
    %381 = arith.mulf %379, %380 : vector<8x32xf32>
    %382 = vector.broadcast %361 : vector<1x32xf32> to vector<8x32xf32>
    %383 = arith.addf %381, %382 : vector<8x32xf32>
    %c0_166 = arith.constant 0 : index
    %c0_167 = arith.constant 0 : index
    %c0_168 = arith.constant 0 : index
    %384 = vector.load %arg17[%c0_166, %c0_167, %c0_168] : memref<2x32x96xf32, #tpu.memory_space<vmem>>, vector<1x32x96xf32>
    %385 = vector.shape_cast %384 : vector<1x32x96xf32> to vector<32x96xf32>
    %c0_169 = arith.constant 0 : index
    %c0_170 = arith.constant 0 : index
    %c0_171 = arith.constant 0 : index
    %386 = vector.load %arg18[%c0_169, %c0_170, %c0_171] : memref<2x1x96xf32, #tpu.memory_space<vmem>>, vector<1x1x96xf32>
    %387 = vector.shape_cast %386 : vector<1x1x96xf32> to vector<1x96xf32>
    %c0_172 = arith.constant 0 : index
    %c0_173 = arith.constant 0 : index
    %c0_174 = arith.constant 0 : index
    %388 = vector.load %arg19[%c0_172, %c0_173, %c0_174] : memref<2x32x32xf32, #tpu.memory_space<vmem>>, vector<1x32x32xf32>
    %389 = vector.shape_cast %388 : vector<1x32x32xf32> to vector<32x32xf32>
    %c0_175 = arith.constant 0 : index
    %c0_176 = arith.constant 0 : index
    %c0_177 = arith.constant 0 : index
    %390 = vector.load %arg20[%c0_175, %c0_176, %c0_177] : memref<2x1x32xf32, #tpu.memory_space<vmem>>, vector<1x1x32xf32>
    %391 = vector.shape_cast %390 : vector<1x1x32xf32> to vector<1x32xf32>
    %392 = vector.extract_strided_slice %385 {offsets = [0, 0], sizes = [32, 32], strides = [1, 1]} : vector<32x96xf32> to vector<32x32xf32>
    %cst_178 = arith.constant dense<0.000000e+00> : vector<8x32xf32>
    %393 = tpu.matmul %7, %392, %cst_178 {dimension_numbers = #tpu.dot_dimension_numbers<[1], [0], [0], [1], [0, 0, 1, 1], [], []>} : vector<8x32xf32>, vector<32x32xf32>, vector<8x32xf32> -> vector<8x32xf32>
    %394 = vector.extract_strided_slice %387 {offsets = [0, 0], sizes = [1, 32], strides = [1, 1]} : vector<1x96xf32> to vector<1x32xf32>
    %395 = vector.broadcast %394 : vector<1x32xf32> to vector<8x32xf32>
    %396 = arith.addf %393, %395 : vector<8x32xf32>
    %397 = vector.extract_strided_slice %385 {offsets = [0, 32], sizes = [32, 32], strides = [1, 1]} : vector<32x96xf32> to vector<32x32xf32>
    %cst_179 = arith.constant dense<0.000000e+00> : vector<8x32xf32>
    %398 = tpu.matmul %7, %397, %cst_179 {dimension_numbers = #tpu.dot_dimension_numbers<[1], [0], [0], [1], [0, 0, 1, 1], [], []>} : vector<8x32xf32>, vector<32x32xf32>, vector<8x32xf32> -> vector<8x32xf32>
    %399 = vector.extract_strided_slice %387 {offsets = [0, 32], sizes = [1, 32], strides = [1, 1]} : vector<1x96xf32> to vector<1x32xf32>
    %400 = vector.broadcast %399 : vector<1x32xf32> to vector<8x32xf32>
    %401 = arith.addf %398, %400 : vector<8x32xf32>
    %402 = vector.extract_strided_slice %385 {offsets = [0, 64], sizes = [32, 32], strides = [1, 1]} : vector<32x96xf32> to vector<32x32xf32>
    %cst_180 = arith.constant dense<0.000000e+00> : vector<8x32xf32>
    %403 = tpu.matmul %7, %402, %cst_180 {dimension_numbers = #tpu.dot_dimension_numbers<[1], [0], [0], [1], [0, 0, 1, 1], [], []>} : vector<8x32xf32>, vector<32x32xf32>, vector<8x32xf32> -> vector<8x32xf32>
    %404 = vector.extract_strided_slice %387 {offsets = [0, 64], sizes = [1, 32], strides = [1, 1]} : vector<1x96xf32> to vector<1x32xf32>
    %405 = vector.broadcast %404 : vector<1x32xf32> to vector<8x32xf32>
    %406 = arith.addf %403, %405 : vector<8x32xf32>
    %407 = vector.extract_strided_slice %396 {offsets = [0, 0], sizes = [8, 8], strides = [1, 1]} : vector<8x32xf32> to vector<8x8xf32>
    %cst_181 = arith.constant 0.353553385 : f32
    %408 = vector.broadcast %cst_181 : f32 to vector<8x8xf32>
    %409 = arith.mulf %407, %408 : vector<8x8xf32>
    %410 = vector.extract_strided_slice %401 {offsets = [0, 0], sizes = [8, 8], strides = [1, 1]} : vector<8x32xf32> to vector<8x8xf32>
    %411 = vector.extract_strided_slice %406 {offsets = [0, 0], sizes = [8, 8], strides = [1, 1]} : vector<8x32xf32> to vector<8x8xf32>
    %cst_182 = arith.constant dense<0.000000e+00> : vector<8x8xf32>
    %412 = tpu.matmul %409, %410, %cst_182 {dimension_numbers = #tpu.dot_dimension_numbers<[1], [1], [0], [0], [0, 0, 1, 0], [], []>} : vector<8x8xf32>, vector<8x8xf32>, vector<8x8xf32> -> vector<8x8xf32>
    %cst_183 = arith.constant dense<0xFF800000> : vector<8xf32>
    %413 = vector.multi_reduction <maximumf>, %412, %cst_183 [1] : vector<8x8xf32> to vector<8xf32>
    %414 = vector.shape_cast %413 : vector<8xf32> to vector<8x1xf32>
    %415 = vector.broadcast %414 : vector<8x1xf32> to vector<8x8xf32>
    %416 = arith.subf %412, %415 : vector<8x8xf32>
    %417 = math.exp %416 : vector<8x8xf32>
    %cst_184 = arith.constant dense<0.000000e+00> : vector<8xf32>
    %418 = vector.multi_reduction <add>, %417, %cst_184 [1] : vector<8x8xf32> to vector<8xf32>
    %419 = vector.shape_cast %418 : vector<8xf32> to vector<8x1xf32>
    %420 = tpu.reciprocal %419 {approx = true} : vector<8x1xf32> -> vector<8x1xf32>
    %421 = vector.broadcast %420 : vector<8x1xf32> to vector<8x8xf32>
    %422 = arith.mulf %417, %421 : vector<8x8xf32>
    %cst_185 = arith.constant dense<0.000000e+00> : vector<8x8xf32>
    %423 = tpu.matmul %422, %411, %cst_185 {dimension_numbers = #tpu.dot_dimension_numbers<[1], [0], [0], [1], [0, 0, 1, 1], [], []>} : vector<8x8xf32>, vector<8x8xf32>, vector<8x8xf32> -> vector<8x8xf32>
    %424 = vector.extract_strided_slice %389 {offsets = [0, 0], sizes = [8, 32], strides = [1, 1]} : vector<32x32xf32> to vector<8x32xf32>
    %cst_186 = arith.constant dense<0.000000e+00> : vector<8x32xf32>
    %425 = tpu.matmul %423, %424, %cst_186 {dimension_numbers = #tpu.dot_dimension_numbers<[1], [0], [0], [1], [0, 0, 1, 1], [], []>} : vector<8x8xf32>, vector<8x32xf32>, vector<8x32xf32> -> vector<8x32xf32>
    %426 = vector.extract_strided_slice %396 {offsets = [0, 8], sizes = [8, 8], strides = [1, 1]} : vector<8x32xf32> to vector<8x8xf32>
    %cst_187 = arith.constant 0.353553385 : f32
    %427 = vector.broadcast %cst_187 : f32 to vector<8x8xf32>
    %428 = arith.mulf %426, %427 : vector<8x8xf32>
    %429 = vector.extract_strided_slice %401 {offsets = [0, 8], sizes = [8, 8], strides = [1, 1]} : vector<8x32xf32> to vector<8x8xf32>
    %430 = vector.extract_strided_slice %406 {offsets = [0, 8], sizes = [8, 8], strides = [1, 1]} : vector<8x32xf32> to vector<8x8xf32>
    %cst_188 = arith.constant dense<0.000000e+00> : vector<8x8xf32>
    %431 = tpu.matmul %428, %429, %cst_188 {dimension_numbers = #tpu.dot_dimension_numbers<[1], [1], [0], [0], [0, 0, 1, 0], [], []>} : vector<8x8xf32>, vector<8x8xf32>, vector<8x8xf32> -> vector<8x8xf32>
    %cst_189 = arith.constant dense<0xFF800000> : vector<8xf32>
    %432 = vector.multi_reduction <maximumf>, %431, %cst_189 [1] : vector<8x8xf32> to vector<8xf32>
    %433 = vector.shape_cast %432 : vector<8xf32> to vector<8x1xf32>
    %434 = vector.broadcast %433 : vector<8x1xf32> to vector<8x8xf32>
    %435 = arith.subf %431, %434 : vector<8x8xf32>
    %436 = math.exp %435 : vector<8x8xf32>
    %cst_190 = arith.constant dense<0.000000e+00> : vector<8xf32>
    %437 = vector.multi_reduction <add>, %436, %cst_190 [1] : vector<8x8xf32> to vector<8xf32>
    %438 = vector.shape_cast %437 : vector<8xf32> to vector<8x1xf32>
    %439 = tpu.reciprocal %438 {approx = true} : vector<8x1xf32> -> vector<8x1xf32>
    %440 = vector.broadcast %439 : vector<8x1xf32> to vector<8x8xf32>
    %441 = arith.mulf %436, %440 : vector<8x8xf32>
    %cst_191 = arith.constant dense<0.000000e+00> : vector<8x8xf32>
    %442 = tpu.matmul %441, %430, %cst_191 {dimension_numbers = #tpu.dot_dimension_numbers<[1], [0], [0], [1], [0, 0, 1, 1], [], []>} : vector<8x8xf32>, vector<8x8xf32>, vector<8x8xf32> -> vector<8x8xf32>
    %443 = vector.extract_strided_slice %389 {offsets = [8, 0], sizes = [8, 32], strides = [1, 1]} : vector<32x32xf32> to vector<8x32xf32>
    %cst_192 = arith.constant dense<0.000000e+00> : vector<8x32xf32>
    %444 = tpu.matmul %442, %443, %cst_192 {dimension_numbers = #tpu.dot_dimension_numbers<[1], [0], [0], [1], [0, 0, 1, 1], [], []>} : vector<8x8xf32>, vector<8x32xf32>, vector<8x32xf32> -> vector<8x32xf32>
    %445 = arith.addf %425, %444 : vector<8x32xf32>
    %446 = vector.extract_strided_slice %396 {offsets = [0, 16], sizes = [8, 8], strides = [1, 1]} : vector<8x32xf32> to vector<8x8xf32>
    %cst_193 = arith.constant 0.353553385 : f32
    %447 = vector.broadcast %cst_193 : f32 to vector<8x8xf32>
    %448 = arith.mulf %446, %447 : vector<8x8xf32>
    %449 = vector.extract_strided_slice %401 {offsets = [0, 16], sizes = [8, 8], strides = [1, 1]} : vector<8x32xf32> to vector<8x8xf32>
    %450 = vector.extract_strided_slice %406 {offsets = [0, 16], sizes = [8, 8], strides = [1, 1]} : vector<8x32xf32> to vector<8x8xf32>
    %cst_194 = arith.constant dense<0.000000e+00> : vector<8x8xf32>
    %451 = tpu.matmul %448, %449, %cst_194 {dimension_numbers = #tpu.dot_dimension_numbers<[1], [1], [0], [0], [0, 0, 1, 0], [], []>} : vector<8x8xf32>, vector<8x8xf32>, vector<8x8xf32> -> vector<8x8xf32>
    %cst_195 = arith.constant dense<0xFF800000> : vector<8xf32>
    %452 = vector.multi_reduction <maximumf>, %451, %cst_195 [1] : vector<8x8xf32> to vector<8xf32>
    %453 = vector.shape_cast %452 : vector<8xf32> to vector<8x1xf32>
    %454 = vector.broadcast %453 : vector<8x1xf32> to vector<8x8xf32>
    %455 = arith.subf %451, %454 : vector<8x8xf32>
    %456 = math.exp %455 : vector<8x8xf32>
    %cst_196 = arith.constant dense<0.000000e+00> : vector<8xf32>
    %457 = vector.multi_reduction <add>, %456, %cst_196 [1] : vector<8x8xf32> to vector<8xf32>
    %458 = vector.shape_cast %457 : vector<8xf32> to vector<8x1xf32>
    %459 = tpu.reciprocal %458 {approx = true} : vector<8x1xf32> -> vector<8x1xf32>
    %460 = vector.broadcast %459 : vector<8x1xf32> to vector<8x8xf32>
    %461 = arith.mulf %456, %460 : vector<8x8xf32>
    %cst_197 = arith.constant dense<0.000000e+00> : vector<8x8xf32>
    %462 = tpu.matmul %461, %450, %cst_197 {dimension_numbers = #tpu.dot_dimension_numbers<[1], [0], [0], [1], [0, 0, 1, 1], [], []>} : vector<8x8xf32>, vector<8x8xf32>, vector<8x8xf32> -> vector<8x8xf32>
    %463 = vector.extract_strided_slice %389 {offsets = [16, 0], sizes = [8, 32], strides = [1, 1]} : vector<32x32xf32> to vector<8x32xf32>
    %cst_198 = arith.constant dense<0.000000e+00> : vector<8x32xf32>
    %464 = tpu.matmul %462, %463, %cst_198 {dimension_numbers = #tpu.dot_dimension_numbers<[1], [0], [0], [1], [0, 0, 1, 1], [], []>} : vector<8x8xf32>, vector<8x32xf32>, vector<8x32xf32> -> vector<8x32xf32>
    %465 = arith.addf %445, %464 : vector<8x32xf32>
    %466 = vector.extract_strided_slice %396 {offsets = [0, 24], sizes = [8, 8], strides = [1, 1]} : vector<8x32xf32> to vector<8x8xf32>
    %cst_199 = arith.constant 0.353553385 : f32
    %467 = vector.broadcast %cst_199 : f32 to vector<8x8xf32>
    %468 = arith.mulf %466, %467 : vector<8x8xf32>
    %469 = vector.extract_strided_slice %401 {offsets = [0, 24], sizes = [8, 8], strides = [1, 1]} : vector<8x32xf32> to vector<8x8xf32>
    %470 = vector.extract_strided_slice %406 {offsets = [0, 24], sizes = [8, 8], strides = [1, 1]} : vector<8x32xf32> to vector<8x8xf32>
    %cst_200 = arith.constant dense<0.000000e+00> : vector<8x8xf32>
    %471 = tpu.matmul %468, %469, %cst_200 {dimension_numbers = #tpu.dot_dimension_numbers<[1], [1], [0], [0], [0, 0, 1, 0], [], []>} : vector<8x8xf32>, vector<8x8xf32>, vector<8x8xf32> -> vector<8x8xf32>
    %cst_201 = arith.constant dense<0xFF800000> : vector<8xf32>
    %472 = vector.multi_reduction <maximumf>, %471, %cst_201 [1] : vector<8x8xf32> to vector<8xf32>
    %473 = vector.shape_cast %472 : vector<8xf32> to vector<8x1xf32>
    %474 = vector.broadcast %473 : vector<8x1xf32> to vector<8x8xf32>
    %475 = arith.subf %471, %474 : vector<8x8xf32>
    %476 = math.exp %475 : vector<8x8xf32>
    %cst_202 = arith.constant dense<0.000000e+00> : vector<8xf32>
    %477 = vector.multi_reduction <add>, %476, %cst_202 [1] : vector<8x8xf32> to vector<8xf32>
    %478 = vector.shape_cast %477 : vector<8xf32> to vector<8x1xf32>
    %479 = tpu.reciprocal %478 {approx = true} : vector<8x1xf32> -> vector<8x1xf32>
    %480 = vector.broadcast %479 : vector<8x1xf32> to vector<8x8xf32>
    %481 = arith.mulf %476, %480 : vector<8x8xf32>
    %cst_203 = arith.constant dense<0.000000e+00> : vector<8x8xf32>
    %482 = tpu.matmul %481, %470, %cst_203 {dimension_numbers = #tpu.dot_dimension_numbers<[1], [0], [0], [1], [0, 0, 1, 1], [], []>} : vector<8x8xf32>, vector<8x8xf32>, vector<8x8xf32> -> vector<8x8xf32>
    %483 = vector.extract_strided_slice %389 {offsets = [24, 0], sizes = [8, 32], strides = [1, 1]} : vector<32x32xf32> to vector<8x32xf32>
    %cst_204 = arith.constant dense<0.000000e+00> : vector<8x32xf32>
    %484 = tpu.matmul %482, %483, %cst_204 {dimension_numbers = #tpu.dot_dimension_numbers<[1], [0], [0], [1], [0, 0, 1, 1], [], []>} : vector<8x8xf32>, vector<8x32xf32>, vector<8x32xf32> -> vector<8x32xf32>
    %485 = arith.addf %465, %484 : vector<8x32xf32>
    %486 = vector.broadcast %391 : vector<1x32xf32> to vector<8x32xf32>
    %487 = arith.addf %485, %486 : vector<8x32xf32>
    %488 = arith.addf %7, %487 : vector<8x32xf32>
    %c0_205 = arith.constant 0 : index
    %c0_206 = arith.constant 0 : index
    %c0_207 = arith.constant 0 : index
    %489 = vector.load %arg29[%c0_205, %c0_206, %c0_207] : memref<2x1x32xf32, #tpu.memory_space<vmem>>, vector<1x1x32xf32>
    %490 = vector.shape_cast %489 : vector<1x1x32xf32> to vector<1x32xf32>
    %c0_208 = arith.constant 0 : index
    %c0_209 = arith.constant 0 : index
    %c0_210 = arith.constant 0 : index
    %491 = vector.load %arg30[%c0_208, %c0_209, %c0_210] : memref<2x1x32xf32, #tpu.memory_space<vmem>>, vector<1x1x32xf32>
    %492 = vector.shape_cast %491 : vector<1x1x32xf32> to vector<1x32xf32>
    %cst_211 = arith.constant dense<0.000000e+00> : vector<8xf32>
    %493 = vector.multi_reduction <add>, %488, %cst_211 [1] : vector<8x32xf32> to vector<8xf32>
    %494 = vector.shape_cast %493 : vector<8xf32> to vector<8x1xf32>
    %cst_212 = arith.constant 3.200000e+01 : f32
    %495 = vector.broadcast %cst_212 : f32 to vector<8x1xf32>
    %496 = arith.divf %494, %495 : vector<8x1xf32>
    %497 = vector.broadcast %496 : vector<8x1xf32> to vector<8x32xf32>
    %498 = arith.subf %488, %497 : vector<8x32xf32>
    %499 = arith.mulf %498, %498 : vector<8x32xf32>
    %cst_213 = arith.constant dense<0.000000e+00> : vector<8xf32>
    %500 = vector.multi_reduction <add>, %499, %cst_213 [1] : vector<8x32xf32> to vector<8xf32>
    %501 = vector.shape_cast %500 : vector<8xf32> to vector<8x1xf32>
    %cst_214 = arith.constant 3.200000e+01 : f32
    %502 = vector.broadcast %cst_214 : f32 to vector<8x1xf32>
    %503 = arith.divf %501, %502 : vector<8x1xf32>
    %504 = vector.broadcast %496 : vector<8x1xf32> to vector<8x32xf32>
    %505 = arith.subf %488, %504 : vector<8x32xf32>
    %cst_215 = arith.constant 9.99999974E-6 : f32
    %506 = vector.broadcast %cst_215 : f32 to vector<8x1xf32>
    %507 = arith.addf %503, %506 : vector<8x1xf32>
    %508 = math.rsqrt %507 : vector<8x1xf32>
    %509 = vector.broadcast %508 : vector<8x1xf32> to vector<8x32xf32>
    %510 = arith.mulf %505, %509 : vector<8x32xf32>
    %511 = vector.broadcast %490 : vector<1x32xf32> to vector<8x32xf32>
    %512 = arith.mulf %510, %511 : vector<8x32xf32>
    %513 = vector.broadcast %492 : vector<1x32xf32> to vector<8x32xf32>
    %514 = arith.addf %512, %513 : vector<8x32xf32>
    %c0_216 = arith.constant 0 : index
    %c0_217 = arith.constant 0 : index
    %c0_218 = arith.constant 0 : index
    %515 = vector.load %arg21[%c0_216, %c0_217, %c0_218] : memref<2x32x96xf32, #tpu.memory_space<vmem>>, vector<1x32x96xf32>
    %516 = vector.shape_cast %515 : vector<1x32x96xf32> to vector<32x96xf32>
    %c0_219 = arith.constant 0 : index
    %c0_220 = arith.constant 0 : index
    %c0_221 = arith.constant 0 : index
    %517 = vector.load %arg22[%c0_219, %c0_220, %c0_221] : memref<2x1x96xf32, #tpu.memory_space<vmem>>, vector<1x1x96xf32>
    %518 = vector.shape_cast %517 : vector<1x1x96xf32> to vector<1x96xf32>
    %c0_222 = arith.constant 0 : index
    %c0_223 = arith.constant 0 : index
    %c0_224 = arith.constant 0 : index
    %519 = vector.load %arg23[%c0_222, %c0_223, %c0_224] : memref<2x32x32xf32, #tpu.memory_space<vmem>>, vector<1x32x32xf32>
    %520 = vector.shape_cast %519 : vector<1x32x32xf32> to vector<32x32xf32>
    %c0_225 = arith.constant 0 : index
    %c0_226 = arith.constant 0 : index
    %c0_227 = arith.constant 0 : index
    %521 = vector.load %arg24[%c0_225, %c0_226, %c0_227] : memref<2x1x32xf32, #tpu.memory_space<vmem>>, vector<1x1x32xf32>
    %522 = vector.shape_cast %521 : vector<1x1x32xf32> to vector<1x32xf32>
    %523 = vector.extract_strided_slice %516 {offsets = [0, 0], sizes = [32, 32], strides = [1, 1]} : vector<32x96xf32> to vector<32x32xf32>
    %cst_228 = arith.constant dense<0.000000e+00> : vector<8x32xf32>
    %524 = tpu.matmul %514, %523, %cst_228 {dimension_numbers = #tpu.dot_dimension_numbers<[1], [0], [0], [1], [0, 0, 1, 1], [], []>} : vector<8x32xf32>, vector<32x32xf32>, vector<8x32xf32> -> vector<8x32xf32>
    %525 = vector.extract_strided_slice %518 {offsets = [0, 0], sizes = [1, 32], strides = [1, 1]} : vector<1x96xf32> to vector<1x32xf32>
    %526 = vector.broadcast %525 : vector<1x32xf32> to vector<8x32xf32>
    %527 = arith.addf %524, %526 : vector<8x32xf32>
    %528 = vector.extract_strided_slice %516 {offsets = [0, 32], sizes = [32, 32], strides = [1, 1]} : vector<32x96xf32> to vector<32x32xf32>
    %cst_229 = arith.constant dense<0.000000e+00> : vector<8x32xf32>
    %529 = tpu.matmul %383, %528, %cst_229 {dimension_numbers = #tpu.dot_dimension_numbers<[1], [0], [0], [1], [0, 0, 1, 1], [], []>} : vector<8x32xf32>, vector<32x32xf32>, vector<8x32xf32> -> vector<8x32xf32>
    %530 = vector.extract_strided_slice %518 {offsets = [0, 32], sizes = [1, 32], strides = [1, 1]} : vector<1x96xf32> to vector<1x32xf32>
    %531 = vector.broadcast %530 : vector<1x32xf32> to vector<8x32xf32>
    %532 = arith.addf %529, %531 : vector<8x32xf32>
    %533 = vector.extract_strided_slice %516 {offsets = [0, 64], sizes = [32, 32], strides = [1, 1]} : vector<32x96xf32> to vector<32x32xf32>
    %cst_230 = arith.constant dense<0.000000e+00> : vector<8x32xf32>
    %534 = tpu.matmul %383, %533, %cst_230 {dimension_numbers = #tpu.dot_dimension_numbers<[1], [0], [0], [1], [0, 0, 1, 1], [], []>} : vector<8x32xf32>, vector<32x32xf32>, vector<8x32xf32> -> vector<8x32xf32>
    %535 = vector.extract_strided_slice %518 {offsets = [0, 64], sizes = [1, 32], strides = [1, 1]} : vector<1x96xf32> to vector<1x32xf32>
    %536 = vector.broadcast %535 : vector<1x32xf32> to vector<8x32xf32>
    %537 = arith.addf %534, %536 : vector<8x32xf32>
    %538 = vector.extract_strided_slice %527 {offsets = [0, 0], sizes = [8, 8], strides = [1, 1]} : vector<8x32xf32> to vector<8x8xf32>
    %cst_231 = arith.constant 0.353553385 : f32
    %539 = vector.broadcast %cst_231 : f32 to vector<8x8xf32>
    %540 = arith.mulf %538, %539 : vector<8x8xf32>
    %541 = vector.extract_strided_slice %532 {offsets = [0, 0], sizes = [8, 8], strides = [1, 1]} : vector<8x32xf32> to vector<8x8xf32>
    %542 = vector.extract_strided_slice %537 {offsets = [0, 0], sizes = [8, 8], strides = [1, 1]} : vector<8x32xf32> to vector<8x8xf32>
    %cst_232 = arith.constant dense<0.000000e+00> : vector<8x8xf32>
    %543 = tpu.matmul %540, %541, %cst_232 {dimension_numbers = #tpu.dot_dimension_numbers<[1], [1], [0], [0], [0, 0, 1, 0], [], []>} : vector<8x8xf32>, vector<8x8xf32>, vector<8x8xf32> -> vector<8x8xf32>
    %cst_233 = arith.constant dense<0xFF800000> : vector<8xf32>
    %544 = vector.multi_reduction <maximumf>, %543, %cst_233 [1] : vector<8x8xf32> to vector<8xf32>
    %545 = vector.shape_cast %544 : vector<8xf32> to vector<8x1xf32>
    %546 = vector.broadcast %545 : vector<8x1xf32> to vector<8x8xf32>
    %547 = arith.subf %543, %546 : vector<8x8xf32>
    %548 = math.exp %547 : vector<8x8xf32>
    %cst_234 = arith.constant dense<0.000000e+00> : vector<8xf32>
    %549 = vector.multi_reduction <add>, %548, %cst_234 [1] : vector<8x8xf32> to vector<8xf32>
    %550 = vector.shape_cast %549 : vector<8xf32> to vector<8x1xf32>
    %551 = tpu.reciprocal %550 {approx = true} : vector<8x1xf32> -> vector<8x1xf32>
    %552 = vector.broadcast %551 : vector<8x1xf32> to vector<8x8xf32>
    %553 = arith.mulf %548, %552 : vector<8x8xf32>
    %cst_235 = arith.constant dense<0.000000e+00> : vector<8x8xf32>
    %554 = tpu.matmul %553, %542, %cst_235 {dimension_numbers = #tpu.dot_dimension_numbers<[1], [0], [0], [1], [0, 0, 1, 1], [], []>} : vector<8x8xf32>, vector<8x8xf32>, vector<8x8xf32> -> vector<8x8xf32>
    %555 = vector.extract_strided_slice %520 {offsets = [0, 0], sizes = [8, 32], strides = [1, 1]} : vector<32x32xf32> to vector<8x32xf32>
    %cst_236 = arith.constant dense<0.000000e+00> : vector<8x32xf32>
    %556 = tpu.matmul %554, %555, %cst_236 {dimension_numbers = #tpu.dot_dimension_numbers<[1], [0], [0], [1], [0, 0, 1, 1], [], []>} : vector<8x8xf32>, vector<8x32xf32>, vector<8x32xf32> -> vector<8x32xf32>
    %557 = vector.extract_strided_slice %527 {offsets = [0, 8], sizes = [8, 8], strides = [1, 1]} : vector<8x32xf32> to vector<8x8xf32>
    %cst_237 = arith.constant 0.353553385 : f32
    %558 = vector.broadcast %cst_237 : f32 to vector<8x8xf32>
    %559 = arith.mulf %557, %558 : vector<8x8xf32>
    %560 = vector.extract_strided_slice %532 {offsets = [0, 8], sizes = [8, 8], strides = [1, 1]} : vector<8x32xf32> to vector<8x8xf32>
    %561 = vector.extract_strided_slice %537 {offsets = [0, 8], sizes = [8, 8], strides = [1, 1]} : vector<8x32xf32> to vector<8x8xf32>
    %cst_238 = arith.constant dense<0.000000e+00> : vector<8x8xf32>
    %562 = tpu.matmul %559, %560, %cst_238 {dimension_numbers = #tpu.dot_dimension_numbers<[1], [1], [0], [0], [0, 0, 1, 0], [], []>} : vector<8x8xf32>, vector<8x8xf32>, vector<8x8xf32> -> vector<8x8xf32>
    %cst_239 = arith.constant dense<0xFF800000> : vector<8xf32>
    %563 = vector.multi_reduction <maximumf>, %562, %cst_239 [1] : vector<8x8xf32> to vector<8xf32>
    %564 = vector.shape_cast %563 : vector<8xf32> to vector<8x1xf32>
    %565 = vector.broadcast %564 : vector<8x1xf32> to vector<8x8xf32>
    %566 = arith.subf %562, %565 : vector<8x8xf32>
    %567 = math.exp %566 : vector<8x8xf32>
    %cst_240 = arith.constant dense<0.000000e+00> : vector<8xf32>
    %568 = vector.multi_reduction <add>, %567, %cst_240 [1] : vector<8x8xf32> to vector<8xf32>
    %569 = vector.shape_cast %568 : vector<8xf32> to vector<8x1xf32>
    %570 = tpu.reciprocal %569 {approx = true} : vector<8x1xf32> -> vector<8x1xf32>
    %571 = vector.broadcast %570 : vector<8x1xf32> to vector<8x8xf32>
    %572 = arith.mulf %567, %571 : vector<8x8xf32>
    %cst_241 = arith.constant dense<0.000000e+00> : vector<8x8xf32>
    %573 = tpu.matmul %572, %561, %cst_241 {dimension_numbers = #tpu.dot_dimension_numbers<[1], [0], [0], [1], [0, 0, 1, 1], [], []>} : vector<8x8xf32>, vector<8x8xf32>, vector<8x8xf32> -> vector<8x8xf32>
    %574 = vector.extract_strided_slice %520 {offsets = [8, 0], sizes = [8, 32], strides = [1, 1]} : vector<32x32xf32> to vector<8x32xf32>
    %cst_242 = arith.constant dense<0.000000e+00> : vector<8x32xf32>
    %575 = tpu.matmul %573, %574, %cst_242 {dimension_numbers = #tpu.dot_dimension_numbers<[1], [0], [0], [1], [0, 0, 1, 1], [], []>} : vector<8x8xf32>, vector<8x32xf32>, vector<8x32xf32> -> vector<8x32xf32>
    %576 = arith.addf %556, %575 : vector<8x32xf32>
    %577 = vector.extract_strided_slice %527 {offsets = [0, 16], sizes = [8, 8], strides = [1, 1]} : vector<8x32xf32> to vector<8x8xf32>
    %cst_243 = arith.constant 0.353553385 : f32
    %578 = vector.broadcast %cst_243 : f32 to vector<8x8xf32>
    %579 = arith.mulf %577, %578 : vector<8x8xf32>
    %580 = vector.extract_strided_slice %532 {offsets = [0, 16], sizes = [8, 8], strides = [1, 1]} : vector<8x32xf32> to vector<8x8xf32>
    %581 = vector.extract_strided_slice %537 {offsets = [0, 16], sizes = [8, 8], strides = [1, 1]} : vector<8x32xf32> to vector<8x8xf32>
    %cst_244 = arith.constant dense<0.000000e+00> : vector<8x8xf32>
    %582 = tpu.matmul %579, %580, %cst_244 {dimension_numbers = #tpu.dot_dimension_numbers<[1], [1], [0], [0], [0, 0, 1, 0], [], []>} : vector<8x8xf32>, vector<8x8xf32>, vector<8x8xf32> -> vector<8x8xf32>
    %cst_245 = arith.constant dense<0xFF800000> : vector<8xf32>
    %583 = vector.multi_reduction <maximumf>, %582, %cst_245 [1] : vector<8x8xf32> to vector<8xf32>
    %584 = vector.shape_cast %583 : vector<8xf32> to vector<8x1xf32>
    %585 = vector.broadcast %584 : vector<8x1xf32> to vector<8x8xf32>
    %586 = arith.subf %582, %585 : vector<8x8xf32>
    %587 = math.exp %586 : vector<8x8xf32>
    %cst_246 = arith.constant dense<0.000000e+00> : vector<8xf32>
    %588 = vector.multi_reduction <add>, %587, %cst_246 [1] : vector<8x8xf32> to vector<8xf32>
    %589 = vector.shape_cast %588 : vector<8xf32> to vector<8x1xf32>
    %590 = tpu.reciprocal %589 {approx = true} : vector<8x1xf32> -> vector<8x1xf32>
    %591 = vector.broadcast %590 : vector<8x1xf32> to vector<8x8xf32>
    %592 = arith.mulf %587, %591 : vector<8x8xf32>
    %cst_247 = arith.constant dense<0.000000e+00> : vector<8x8xf32>
    %593 = tpu.matmul %592, %581, %cst_247 {dimension_numbers = #tpu.dot_dimension_numbers<[1], [0], [0], [1], [0, 0, 1, 1], [], []>} : vector<8x8xf32>, vector<8x8xf32>, vector<8x8xf32> -> vector<8x8xf32>
    %594 = vector.extract_strided_slice %520 {offsets = [16, 0], sizes = [8, 32], strides = [1, 1]} : vector<32x32xf32> to vector<8x32xf32>
    %cst_248 = arith.constant dense<0.000000e+00> : vector<8x32xf32>
    %595 = tpu.matmul %593, %594, %cst_248 {dimension_numbers = #tpu.dot_dimension_numbers<[1], [0], [0], [1], [0, 0, 1, 1], [], []>} : vector<8x8xf32>, vector<8x32xf32>, vector<8x32xf32> -> vector<8x32xf32>
    %596 = arith.addf %576, %595 : vector<8x32xf32>
    %597 = vector.extract_strided_slice %527 {offsets = [0, 24], sizes = [8, 8], strides = [1, 1]} : vector<8x32xf32> to vector<8x8xf32>
    %cst_249 = arith.constant 0.353553385 : f32
    %598 = vector.broadcast %cst_249 : f32 to vector<8x8xf32>
    %599 = arith.mulf %597, %598 : vector<8x8xf32>
    %600 = vector.extract_strided_slice %532 {offsets = [0, 24], sizes = [8, 8], strides = [1, 1]} : vector<8x32xf32> to vector<8x8xf32>
    %601 = vector.extract_strided_slice %537 {offsets = [0, 24], sizes = [8, 8], strides = [1, 1]} : vector<8x32xf32> to vector<8x8xf32>
    %cst_250 = arith.constant dense<0.000000e+00> : vector<8x8xf32>
    %602 = tpu.matmul %599, %600, %cst_250 {dimension_numbers = #tpu.dot_dimension_numbers<[1], [1], [0], [0], [0, 0, 1, 0], [], []>} : vector<8x8xf32>, vector<8x8xf32>, vector<8x8xf32> -> vector<8x8xf32>
    %cst_251 = arith.constant dense<0xFF800000> : vector<8xf32>
    %603 = vector.multi_reduction <maximumf>, %602, %cst_251 [1] : vector<8x8xf32> to vector<8xf32>
    %604 = vector.shape_cast %603 : vector<8xf32> to vector<8x1xf32>
    %605 = vector.broadcast %604 : vector<8x1xf32> to vector<8x8xf32>
    %606 = arith.subf %602, %605 : vector<8x8xf32>
    %607 = math.exp %606 : vector<8x8xf32>
    %cst_252 = arith.constant dense<0.000000e+00> : vector<8xf32>
    %608 = vector.multi_reduction <add>, %607, %cst_252 [1] : vector<8x8xf32> to vector<8xf32>
    %609 = vector.shape_cast %608 : vector<8xf32> to vector<8x1xf32>
    %610 = tpu.reciprocal %609 {approx = true} : vector<8x1xf32> -> vector<8x1xf32>
    %611 = vector.broadcast %610 : vector<8x1xf32> to vector<8x8xf32>
    %612 = arith.mulf %607, %611 : vector<8x8xf32>
    %cst_253 = arith.constant dense<0.000000e+00> : vector<8x8xf32>
    %613 = tpu.matmul %612, %601, %cst_253 {dimension_numbers = #tpu.dot_dimension_numbers<[1], [0], [0], [1], [0, 0, 1, 1], [], []>} : vector<8x8xf32>, vector<8x8xf32>, vector<8x8xf32> -> vector<8x8xf32>
    %614 = vector.extract_strided_slice %520 {offsets = [24, 0], sizes = [8, 32], strides = [1, 1]} : vector<32x32xf32> to vector<8x32xf32>
    %cst_254 = arith.constant dense<0.000000e+00> : vector<8x32xf32>
    %615 = tpu.matmul %613, %614, %cst_254 {dimension_numbers = #tpu.dot_dimension_numbers<[1], [0], [0], [1], [0, 0, 1, 1], [], []>} : vector<8x8xf32>, vector<8x32xf32>, vector<8x32xf32> -> vector<8x32xf32>
    %616 = arith.addf %596, %615 : vector<8x32xf32>
    %617 = vector.broadcast %522 : vector<1x32xf32> to vector<8x32xf32>
    %618 = arith.addf %616, %617 : vector<8x32xf32>
    %619 = arith.addf %514, %618 : vector<8x32xf32>
    %c0_255 = arith.constant 0 : index
    %c0_256 = arith.constant 0 : index
    %c0_257 = arith.constant 0 : index
    %620 = vector.load %arg31[%c0_255, %c0_256, %c0_257] : memref<2x1x32xf32, #tpu.memory_space<vmem>>, vector<1x1x32xf32>
    %621 = vector.shape_cast %620 : vector<1x1x32xf32> to vector<1x32xf32>
    %c0_258 = arith.constant 0 : index
    %c0_259 = arith.constant 0 : index
    %c0_260 = arith.constant 0 : index
    %622 = vector.load %arg32[%c0_258, %c0_259, %c0_260] : memref<2x1x32xf32, #tpu.memory_space<vmem>>, vector<1x1x32xf32>
    %623 = vector.shape_cast %622 : vector<1x1x32xf32> to vector<1x32xf32>
    %cst_261 = arith.constant dense<0.000000e+00> : vector<8xf32>
    %624 = vector.multi_reduction <add>, %619, %cst_261 [1] : vector<8x32xf32> to vector<8xf32>
    %625 = vector.shape_cast %624 : vector<8xf32> to vector<8x1xf32>
    %cst_262 = arith.constant 3.200000e+01 : f32
    %626 = vector.broadcast %cst_262 : f32 to vector<8x1xf32>
    %627 = arith.divf %625, %626 : vector<8x1xf32>
    %628 = vector.broadcast %627 : vector<8x1xf32> to vector<8x32xf32>
    %629 = arith.subf %619, %628 : vector<8x32xf32>
    %630 = arith.mulf %629, %629 : vector<8x32xf32>
    %cst_263 = arith.constant dense<0.000000e+00> : vector<8xf32>
    %631 = vector.multi_reduction <add>, %630, %cst_263 [1] : vector<8x32xf32> to vector<8xf32>
    %632 = vector.shape_cast %631 : vector<8xf32> to vector<8x1xf32>
    %cst_264 = arith.constant 3.200000e+01 : f32
    %633 = vector.broadcast %cst_264 : f32 to vector<8x1xf32>
    %634 = arith.divf %632, %633 : vector<8x1xf32>
    %635 = vector.broadcast %627 : vector<8x1xf32> to vector<8x32xf32>
    %636 = arith.subf %619, %635 : vector<8x32xf32>
    %cst_265 = arith.constant 9.99999974E-6 : f32
    %637 = vector.broadcast %cst_265 : f32 to vector<8x1xf32>
    %638 = arith.addf %634, %637 : vector<8x1xf32>
    %639 = math.rsqrt %638 : vector<8x1xf32>
    %640 = vector.broadcast %639 : vector<8x1xf32> to vector<8x32xf32>
    %641 = arith.mulf %636, %640 : vector<8x32xf32>
    %642 = vector.broadcast %621 : vector<1x32xf32> to vector<8x32xf32>
    %643 = arith.mulf %641, %642 : vector<8x32xf32>
    %644 = vector.broadcast %623 : vector<1x32xf32> to vector<8x32xf32>
    %645 = arith.addf %643, %644 : vector<8x32xf32>
    %c0_266 = arith.constant 0 : index
    %c0_267 = arith.constant 0 : index
    %c0_268 = arith.constant 0 : index
    %646 = vector.load %arg25[%c0_266, %c0_267, %c0_268] : memref<2x32x2048xbf16, #tpu.memory_space<vmem>>, vector<1x32x2048xbf16>
    %647 = vector.shape_cast %646 : vector<1x32x2048xbf16> to vector<32x2048xbf16>
    %c0_269 = arith.constant 0 : index
    %c0_270 = arith.constant 0 : index
    %c0_271 = arith.constant 0 : index
    %648 = vector.load %arg26[%c0_269, %c0_270, %c0_271] : memref<2x1x2048xf32, #tpu.memory_space<vmem>>, vector<1x1x2048xf32>
    %649 = vector.shape_cast %648 : vector<1x1x2048xf32> to vector<1x2048xf32>
    %c0_272 = arith.constant 0 : index
    %c0_273 = arith.constant 0 : index
    %c0_274 = arith.constant 0 : index
    %650 = vector.load %arg27[%c0_272, %c0_273, %c0_274] : memref<2x2048x32xbf16, #tpu.memory_space<vmem>>, vector<1x2048x32xbf16>
    %651 = vector.shape_cast %650 : vector<1x2048x32xbf16> to vector<2048x32xbf16>
    %c0_275 = arith.constant 0 : index
    %c0_276 = arith.constant 0 : index
    %c0_277 = arith.constant 0 : index
    %652 = vector.load %arg28[%c0_275, %c0_276, %c0_277] : memref<2x1x32xf32, #tpu.memory_space<vmem>>, vector<1x1x32xf32>
    %653 = vector.shape_cast %652 : vector<1x1x32xf32> to vector<1x32xf32>
    %654 = arith.truncf %645 : vector<8x32xf32> to vector<8x32xbf16>
    %cst_278 = arith.constant dense<0.000000e+00> : vector<8x2048xf32>
    %655 = tpu.matmul %654, %647, %cst_278 {dimension_numbers = #tpu.dot_dimension_numbers<[1], [0], [0], [1], [0, 0, 1, 1], [], []>} : vector<8x32xbf16>, vector<32x2048xbf16>, vector<8x2048xf32> -> vector<8x2048xf32>
    %656 = vector.broadcast %649 : vector<1x2048xf32> to vector<8x2048xf32>
    %657 = arith.addf %655, %656 : vector<8x2048xf32>
    %cst_279 = arith.constant 0.000000e+00 : f32
    %658 = vector.broadcast %cst_279 : f32 to vector<8x2048xf32>
    %659 = arith.maximumf %657, %658 : vector<8x2048xf32>
    %660 = arith.truncf %659 : vector<8x2048xf32> to vector<8x2048xbf16>
    %cst_280 = arith.constant dense<0.000000e+00> : vector<8x32xf32>
    %661 = tpu.matmul %660, %651, %cst_280 {dimension_numbers = #tpu.dot_dimension_numbers<[1], [0], [0], [1], [0, 0, 1, 1], [], []>} : vector<8x2048xbf16>, vector<2048x32xbf16>, vector<8x32xf32> -> vector<8x32xf32>
    %662 = vector.broadcast %653 : vector<1x32xf32> to vector<8x32xf32>
    %663 = arith.addf %661, %662 : vector<8x32xf32>
    %664 = arith.addf %645, %663 : vector<8x32xf32>
    %c0_281 = arith.constant 0 : index
    %c0_282 = arith.constant 0 : index
    %c0_283 = arith.constant 0 : index
    %665 = vector.load %arg33[%c0_281, %c0_282, %c0_283] : memref<2x1x32xf32, #tpu.memory_space<vmem>>, vector<1x1x32xf32>
    %666 = vector.shape_cast %665 : vector<1x1x32xf32> to vector<1x32xf32>
    %c0_284 = arith.constant 0 : index
    %c0_285 = arith.constant 0 : index
    %c0_286 = arith.constant 0 : index
    %667 = vector.load %arg34[%c0_284, %c0_285, %c0_286] : memref<2x1x32xf32, #tpu.memory_space<vmem>>, vector<1x1x32xf32>
    %668 = vector.shape_cast %667 : vector<1x1x32xf32> to vector<1x32xf32>
    %cst_287 = arith.constant dense<0.000000e+00> : vector<8xf32>
    %669 = vector.multi_reduction <add>, %664, %cst_287 [1] : vector<8x32xf32> to vector<8xf32>
    %670 = vector.shape_cast %669 : vector<8xf32> to vector<8x1xf32>
    %cst_288 = arith.constant 3.200000e+01 : f32
    %671 = vector.broadcast %cst_288 : f32 to vector<8x1xf32>
    %672 = arith.divf %670, %671 : vector<8x1xf32>
    %673 = vector.broadcast %672 : vector<8x1xf32> to vector<8x32xf32>
    %674 = arith.subf %664, %673 : vector<8x32xf32>
    %675 = arith.mulf %674, %674 : vector<8x32xf32>
    %cst_289 = arith.constant dense<0.000000e+00> : vector<8xf32>
    %676 = vector.multi_reduction <add>, %675, %cst_289 [1] : vector<8x32xf32> to vector<8xf32>
    %677 = vector.shape_cast %676 : vector<8xf32> to vector<8x1xf32>
    %cst_290 = arith.constant 3.200000e+01 : f32
    %678 = vector.broadcast %cst_290 : f32 to vector<8x1xf32>
    %679 = arith.divf %677, %678 : vector<8x1xf32>
    %680 = vector.broadcast %672 : vector<8x1xf32> to vector<8x32xf32>
    %681 = arith.subf %664, %680 : vector<8x32xf32>
    %cst_291 = arith.constant 9.99999974E-6 : f32
    %682 = vector.broadcast %cst_291 : f32 to vector<8x1xf32>
    %683 = arith.addf %679, %682 : vector<8x1xf32>
    %684 = math.rsqrt %683 : vector<8x1xf32>
    %685 = vector.broadcast %684 : vector<8x1xf32> to vector<8x32xf32>
    %686 = arith.mulf %681, %685 : vector<8x32xf32>
    %687 = vector.broadcast %666 : vector<1x32xf32> to vector<8x32xf32>
    %688 = arith.mulf %686, %687 : vector<8x32xf32>
    %689 = vector.broadcast %668 : vector<1x32xf32> to vector<8x32xf32>
    %690 = arith.addf %688, %689 : vector<8x32xf32>
    %c1_292 = arith.constant 1 : index
    %c0_293 = arith.constant 0 : index
    %c0_294 = arith.constant 0 : index
    %691 = vector.load %arg17[%c1_292, %c0_293, %c0_294] : memref<2x32x96xf32, #tpu.memory_space<vmem>>, vector<1x32x96xf32>
    %692 = vector.shape_cast %691 : vector<1x32x96xf32> to vector<32x96xf32>
    %c1_295 = arith.constant 1 : index
    %c0_296 = arith.constant 0 : index
    %c0_297 = arith.constant 0 : index
    %693 = vector.load %arg18[%c1_295, %c0_296, %c0_297] : memref<2x1x96xf32, #tpu.memory_space<vmem>>, vector<1x1x96xf32>
    %694 = vector.shape_cast %693 : vector<1x1x96xf32> to vector<1x96xf32>
    %c1_298 = arith.constant 1 : index
    %c0_299 = arith.constant 0 : index
    %c0_300 = arith.constant 0 : index
    %695 = vector.load %arg19[%c1_298, %c0_299, %c0_300] : memref<2x32x32xf32, #tpu.memory_space<vmem>>, vector<1x32x32xf32>
    %696 = vector.shape_cast %695 : vector<1x32x32xf32> to vector<32x32xf32>
    %c1_301 = arith.constant 1 : index
    %c0_302 = arith.constant 0 : index
    %c0_303 = arith.constant 0 : index
    %697 = vector.load %arg20[%c1_301, %c0_302, %c0_303] : memref<2x1x32xf32, #tpu.memory_space<vmem>>, vector<1x1x32xf32>
    %698 = vector.shape_cast %697 : vector<1x1x32xf32> to vector<1x32xf32>
    %699 = vector.extract_strided_slice %692 {offsets = [0, 0], sizes = [32, 32], strides = [1, 1]} : vector<32x96xf32> to vector<32x32xf32>
    %cst_304 = arith.constant dense<0.000000e+00> : vector<8x32xf32>
    %700 = tpu.matmul %690, %699, %cst_304 {dimension_numbers = #tpu.dot_dimension_numbers<[1], [0], [0], [1], [0, 0, 1, 1], [], []>} : vector<8x32xf32>, vector<32x32xf32>, vector<8x32xf32> -> vector<8x32xf32>
    %701 = vector.extract_strided_slice %694 {offsets = [0, 0], sizes = [1, 32], strides = [1, 1]} : vector<1x96xf32> to vector<1x32xf32>
    %702 = vector.broadcast %701 : vector<1x32xf32> to vector<8x32xf32>
    %703 = arith.addf %700, %702 : vector<8x32xf32>
    %704 = vector.extract_strided_slice %692 {offsets = [0, 32], sizes = [32, 32], strides = [1, 1]} : vector<32x96xf32> to vector<32x32xf32>
    %cst_305 = arith.constant dense<0.000000e+00> : vector<8x32xf32>
    %705 = tpu.matmul %690, %704, %cst_305 {dimension_numbers = #tpu.dot_dimension_numbers<[1], [0], [0], [1], [0, 0, 1, 1], [], []>} : vector<8x32xf32>, vector<32x32xf32>, vector<8x32xf32> -> vector<8x32xf32>
    %706 = vector.extract_strided_slice %694 {offsets = [0, 32], sizes = [1, 32], strides = [1, 1]} : vector<1x96xf32> to vector<1x32xf32>
    %707 = vector.broadcast %706 : vector<1x32xf32> to vector<8x32xf32>
    %708 = arith.addf %705, %707 : vector<8x32xf32>
    %709 = vector.extract_strided_slice %692 {offsets = [0, 64], sizes = [32, 32], strides = [1, 1]} : vector<32x96xf32> to vector<32x32xf32>
    %cst_306 = arith.constant dense<0.000000e+00> : vector<8x32xf32>
    %710 = tpu.matmul %690, %709, %cst_306 {dimension_numbers = #tpu.dot_dimension_numbers<[1], [0], [0], [1], [0, 0, 1, 1], [], []>} : vector<8x32xf32>, vector<32x32xf32>, vector<8x32xf32> -> vector<8x32xf32>
    %711 = vector.extract_strided_slice %694 {offsets = [0, 64], sizes = [1, 32], strides = [1, 1]} : vector<1x96xf32> to vector<1x32xf32>
    %712 = vector.broadcast %711 : vector<1x32xf32> to vector<8x32xf32>
    %713 = arith.addf %710, %712 : vector<8x32xf32>
    %714 = vector.extract_strided_slice %703 {offsets = [0, 0], sizes = [8, 8], strides = [1, 1]} : vector<8x32xf32> to vector<8x8xf32>
    %cst_307 = arith.constant 0.353553385 : f32
    %715 = vector.broadcast %cst_307 : f32 to vector<8x8xf32>
    %716 = arith.mulf %714, %715 : vector<8x8xf32>
    %717 = vector.extract_strided_slice %708 {offsets = [0, 0], sizes = [8, 8], strides = [1, 1]} : vector<8x32xf32> to vector<8x8xf32>
    %718 = vector.extract_strided_slice %713 {offsets = [0, 0], sizes = [8, 8], strides = [1, 1]} : vector<8x32xf32> to vector<8x8xf32>
    %cst_308 = arith.constant dense<0.000000e+00> : vector<8x8xf32>
    %719 = tpu.matmul %716, %717, %cst_308 {dimension_numbers = #tpu.dot_dimension_numbers<[1], [1], [0], [0], [0, 0, 1, 0], [], []>} : vector<8x8xf32>, vector<8x8xf32>, vector<8x8xf32> -> vector<8x8xf32>
    %cst_309 = arith.constant dense<0xFF800000> : vector<8xf32>
    %720 = vector.multi_reduction <maximumf>, %719, %cst_309 [1] : vector<8x8xf32> to vector<8xf32>
    %721 = vector.shape_cast %720 : vector<8xf32> to vector<8x1xf32>
    %722 = vector.broadcast %721 : vector<8x1xf32> to vector<8x8xf32>
    %723 = arith.subf %719, %722 : vector<8x8xf32>
    %724 = math.exp %723 : vector<8x8xf32>
    %cst_310 = arith.constant dense<0.000000e+00> : vector<8xf32>
    %725 = vector.multi_reduction <add>, %724, %cst_310 [1] : vector<8x8xf32> to vector<8xf32>
    %726 = vector.shape_cast %725 : vector<8xf32> to vector<8x1xf32>
    %727 = tpu.reciprocal %726 {approx = true} : vector<8x1xf32> -> vector<8x1xf32>
    %728 = vector.broadcast %727 : vector<8x1xf32> to vector<8x8xf32>
    %729 = arith.mulf %724, %728 : vector<8x8xf32>
    %cst_311 = arith.constant dense<0.000000e+00> : vector<8x8xf32>
    %730 = tpu.matmul %729, %718, %cst_311 {dimension_numbers = #tpu.dot_dimension_numbers<[1], [0], [0], [1], [0, 0, 1, 1], [], []>} : vector<8x8xf32>, vector<8x8xf32>, vector<8x8xf32> -> vector<8x8xf32>
    %731 = vector.extract_strided_slice %696 {offsets = [0, 0], sizes = [8, 32], strides = [1, 1]} : vector<32x32xf32> to vector<8x32xf32>
    %cst_312 = arith.constant dense<0.000000e+00> : vector<8x32xf32>
    %732 = tpu.matmul %730, %731, %cst_312 {dimension_numbers = #tpu.dot_dimension_numbers<[1], [0], [0], [1], [0, 0, 1, 1], [], []>} : vector<8x8xf32>, vector<8x32xf32>, vector<8x32xf32> -> vector<8x32xf32>
    %733 = vector.extract_strided_slice %703 {offsets = [0, 8], sizes = [8, 8], strides = [1, 1]} : vector<8x32xf32> to vector<8x8xf32>
    %cst_313 = arith.constant 0.353553385 : f32
    %734 = vector.broadcast %cst_313 : f32 to vector<8x8xf32>
    %735 = arith.mulf %733, %734 : vector<8x8xf32>
    %736 = vector.extract_strided_slice %708 {offsets = [0, 8], sizes = [8, 8], strides = [1, 1]} : vector<8x32xf32> to vector<8x8xf32>
    %737 = vector.extract_strided_slice %713 {offsets = [0, 8], sizes = [8, 8], strides = [1, 1]} : vector<8x32xf32> to vector<8x8xf32>
    %cst_314 = arith.constant dense<0.000000e+00> : vector<8x8xf32>
    %738 = tpu.matmul %735, %736, %cst_314 {dimension_numbers = #tpu.dot_dimension_numbers<[1], [1], [0], [0], [0, 0, 1, 0], [], []>} : vector<8x8xf32>, vector<8x8xf32>, vector<8x8xf32> -> vector<8x8xf32>
    %cst_315 = arith.constant dense<0xFF800000> : vector<8xf32>
    %739 = vector.multi_reduction <maximumf>, %738, %cst_315 [1] : vector<8x8xf32> to vector<8xf32>
    %740 = vector.shape_cast %739 : vector<8xf32> to vector<8x1xf32>
    %741 = vector.broadcast %740 : vector<8x1xf32> to vector<8x8xf32>
    %742 = arith.subf %738, %741 : vector<8x8xf32>
    %743 = math.exp %742 : vector<8x8xf32>
    %cst_316 = arith.constant dense<0.000000e+00> : vector<8xf32>
    %744 = vector.multi_reduction <add>, %743, %cst_316 [1] : vector<8x8xf32> to vector<8xf32>
    %745 = vector.shape_cast %744 : vector<8xf32> to vector<8x1xf32>
    %746 = tpu.reciprocal %745 {approx = true} : vector<8x1xf32> -> vector<8x1xf32>
    %747 = vector.broadcast %746 : vector<8x1xf32> to vector<8x8xf32>
    %748 = arith.mulf %743, %747 : vector<8x8xf32>
    %cst_317 = arith.constant dense<0.000000e+00> : vector<8x8xf32>
    %749 = tpu.matmul %748, %737, %cst_317 {dimension_numbers = #tpu.dot_dimension_numbers<[1], [0], [0], [1], [0, 0, 1, 1], [], []>} : vector<8x8xf32>, vector<8x8xf32>, vector<8x8xf32> -> vector<8x8xf32>
    %750 = vector.extract_strided_slice %696 {offsets = [8, 0], sizes = [8, 32], strides = [1, 1]} : vector<32x32xf32> to vector<8x32xf32>
    %cst_318 = arith.constant dense<0.000000e+00> : vector<8x32xf32>
    %751 = tpu.matmul %749, %750, %cst_318 {dimension_numbers = #tpu.dot_dimension_numbers<[1], [0], [0], [1], [0, 0, 1, 1], [], []>} : vector<8x8xf32>, vector<8x32xf32>, vector<8x32xf32> -> vector<8x32xf32>
    %752 = arith.addf %732, %751 : vector<8x32xf32>
    %753 = vector.extract_strided_slice %703 {offsets = [0, 16], sizes = [8, 8], strides = [1, 1]} : vector<8x32xf32> to vector<8x8xf32>
    %cst_319 = arith.constant 0.353553385 : f32
    %754 = vector.broadcast %cst_319 : f32 to vector<8x8xf32>
    %755 = arith.mulf %753, %754 : vector<8x8xf32>
    %756 = vector.extract_strided_slice %708 {offsets = [0, 16], sizes = [8, 8], strides = [1, 1]} : vector<8x32xf32> to vector<8x8xf32>
    %757 = vector.extract_strided_slice %713 {offsets = [0, 16], sizes = [8, 8], strides = [1, 1]} : vector<8x32xf32> to vector<8x8xf32>
    %cst_320 = arith.constant dense<0.000000e+00> : vector<8x8xf32>
    %758 = tpu.matmul %755, %756, %cst_320 {dimension_numbers = #tpu.dot_dimension_numbers<[1], [1], [0], [0], [0, 0, 1, 0], [], []>} : vector<8x8xf32>, vector<8x8xf32>, vector<8x8xf32> -> vector<8x8xf32>
    %cst_321 = arith.constant dense<0xFF800000> : vector<8xf32>
    %759 = vector.multi_reduction <maximumf>, %758, %cst_321 [1] : vector<8x8xf32> to vector<8xf32>
    %760 = vector.shape_cast %759 : vector<8xf32> to vector<8x1xf32>
    %761 = vector.broadcast %760 : vector<8x1xf32> to vector<8x8xf32>
    %762 = arith.subf %758, %761 : vector<8x8xf32>
    %763 = math.exp %762 : vector<8x8xf32>
    %cst_322 = arith.constant dense<0.000000e+00> : vector<8xf32>
    %764 = vector.multi_reduction <add>, %763, %cst_322 [1] : vector<8x8xf32> to vector<8xf32>
    %765 = vector.shape_cast %764 : vector<8xf32> to vector<8x1xf32>
    %766 = tpu.reciprocal %765 {approx = true} : vector<8x1xf32> -> vector<8x1xf32>
    %767 = vector.broadcast %766 : vector<8x1xf32> to vector<8x8xf32>
    %768 = arith.mulf %763, %767 : vector<8x8xf32>
    %cst_323 = arith.constant dense<0.000000e+00> : vector<8x8xf32>
    %769 = tpu.matmul %768, %757, %cst_323 {dimension_numbers = #tpu.dot_dimension_numbers<[1], [0], [0], [1], [0, 0, 1, 1], [], []>} : vector<8x8xf32>, vector<8x8xf32>, vector<8x8xf32> -> vector<8x8xf32>
    %770 = vector.extract_strided_slice %696 {offsets = [16, 0], sizes = [8, 32], strides = [1, 1]} : vector<32x32xf32> to vector<8x32xf32>
    %cst_324 = arith.constant dense<0.000000e+00> : vector<8x32xf32>
    %771 = tpu.matmul %769, %770, %cst_324 {dimension_numbers = #tpu.dot_dimension_numbers<[1], [0], [0], [1], [0, 0, 1, 1], [], []>} : vector<8x8xf32>, vector<8x32xf32>, vector<8x32xf32> -> vector<8x32xf32>
    %772 = arith.addf %752, %771 : vector<8x32xf32>
    %773 = vector.extract_strided_slice %703 {offsets = [0, 24], sizes = [8, 8], strides = [1, 1]} : vector<8x32xf32> to vector<8x8xf32>
    %cst_325 = arith.constant 0.353553385 : f32
    %774 = vector.broadcast %cst_325 : f32 to vector<8x8xf32>
    %775 = arith.mulf %773, %774 : vector<8x8xf32>
    %776 = vector.extract_strided_slice %708 {offsets = [0, 24], sizes = [8, 8], strides = [1, 1]} : vector<8x32xf32> to vector<8x8xf32>
    %777 = vector.extract_strided_slice %713 {offsets = [0, 24], sizes = [8, 8], strides = [1, 1]} : vector<8x32xf32> to vector<8x8xf32>
    %cst_326 = arith.constant dense<0.000000e+00> : vector<8x8xf32>
    %778 = tpu.matmul %775, %776, %cst_326 {dimension_numbers = #tpu.dot_dimension_numbers<[1], [1], [0], [0], [0, 0, 1, 0], [], []>} : vector<8x8xf32>, vector<8x8xf32>, vector<8x8xf32> -> vector<8x8xf32>
    %cst_327 = arith.constant dense<0xFF800000> : vector<8xf32>
    %779 = vector.multi_reduction <maximumf>, %778, %cst_327 [1] : vector<8x8xf32> to vector<8xf32>
    %780 = vector.shape_cast %779 : vector<8xf32> to vector<8x1xf32>
    %781 = vector.broadcast %780 : vector<8x1xf32> to vector<8x8xf32>
    %782 = arith.subf %778, %781 : vector<8x8xf32>
    %783 = math.exp %782 : vector<8x8xf32>
    %cst_328 = arith.constant dense<0.000000e+00> : vector<8xf32>
    %784 = vector.multi_reduction <add>, %783, %cst_328 [1] : vector<8x8xf32> to vector<8xf32>
    %785 = vector.shape_cast %784 : vector<8xf32> to vector<8x1xf32>
    %786 = tpu.reciprocal %785 {approx = true} : vector<8x1xf32> -> vector<8x1xf32>
    %787 = vector.broadcast %786 : vector<8x1xf32> to vector<8x8xf32>
    %788 = arith.mulf %783, %787 : vector<8x8xf32>
    %cst_329 = arith.constant dense<0.000000e+00> : vector<8x8xf32>
    %789 = tpu.matmul %788, %777, %cst_329 {dimension_numbers = #tpu.dot_dimension_numbers<[1], [0], [0], [1], [0, 0, 1, 1], [], []>} : vector<8x8xf32>, vector<8x8xf32>, vector<8x8xf32> -> vector<8x8xf32>
    %790 = vector.extract_strided_slice %696 {offsets = [24, 0], sizes = [8, 32], strides = [1, 1]} : vector<32x32xf32> to vector<8x32xf32>
    %cst_330 = arith.constant dense<0.000000e+00> : vector<8x32xf32>
    %791 = tpu.matmul %789, %790, %cst_330 {dimension_numbers = #tpu.dot_dimension_numbers<[1], [0], [0], [1], [0, 0, 1, 1], [], []>} : vector<8x8xf32>, vector<8x32xf32>, vector<8x32xf32> -> vector<8x32xf32>
    %792 = arith.addf %772, %791 : vector<8x32xf32>
    %793 = vector.broadcast %698 : vector<1x32xf32> to vector<8x32xf32>
    %794 = arith.addf %792, %793 : vector<8x32xf32>
    %795 = arith.addf %690, %794 : vector<8x32xf32>
    %c1_331 = arith.constant 1 : index
    %c0_332 = arith.constant 0 : index
    %c0_333 = arith.constant 0 : index
    %796 = vector.load %arg29[%c1_331, %c0_332, %c0_333] : memref<2x1x32xf32, #tpu.memory_space<vmem>>, vector<1x1x32xf32>
    %797 = vector.shape_cast %796 : vector<1x1x32xf32> to vector<1x32xf32>
    %c1_334 = arith.constant 1 : index
    %c0_335 = arith.constant 0 : index
    %c0_336 = arith.constant 0 : index
    %798 = vector.load %arg30[%c1_334, %c0_335, %c0_336] : memref<2x1x32xf32, #tpu.memory_space<vmem>>, vector<1x1x32xf32>
    %799 = vector.shape_cast %798 : vector<1x1x32xf32> to vector<1x32xf32>
    %cst_337 = arith.constant dense<0.000000e+00> : vector<8xf32>
    %800 = vector.multi_reduction <add>, %795, %cst_337 [1] : vector<8x32xf32> to vector<8xf32>
    %801 = vector.shape_cast %800 : vector<8xf32> to vector<8x1xf32>
    %cst_338 = arith.constant 3.200000e+01 : f32
    %802 = vector.broadcast %cst_338 : f32 to vector<8x1xf32>
    %803 = arith.divf %801, %802 : vector<8x1xf32>
    %804 = vector.broadcast %803 : vector<8x1xf32> to vector<8x32xf32>
    %805 = arith.subf %795, %804 : vector<8x32xf32>
    %806 = arith.mulf %805, %805 : vector<8x32xf32>
    %cst_339 = arith.constant dense<0.000000e+00> : vector<8xf32>
    %807 = vector.multi_reduction <add>, %806, %cst_339 [1] : vector<8x32xf32> to vector<8xf32>
    %808 = vector.shape_cast %807 : vector<8xf32> to vector<8x1xf32>
    %cst_340 = arith.constant 3.200000e+01 : f32
    %809 = vector.broadcast %cst_340 : f32 to vector<8x1xf32>
    %810 = arith.divf %808, %809 : vector<8x1xf32>
    %811 = vector.broadcast %803 : vector<8x1xf32> to vector<8x32xf32>
    %812 = arith.subf %795, %811 : vector<8x32xf32>
    %cst_341 = arith.constant 9.99999974E-6 : f32
    %813 = vector.broadcast %cst_341 : f32 to vector<8x1xf32>
    %814 = arith.addf %810, %813 : vector<8x1xf32>
    %815 = math.rsqrt %814 : vector<8x1xf32>
    %816 = vector.broadcast %815 : vector<8x1xf32> to vector<8x32xf32>
    %817 = arith.mulf %812, %816 : vector<8x32xf32>
    %818 = vector.broadcast %797 : vector<1x32xf32> to vector<8x32xf32>
    %819 = arith.mulf %817, %818 : vector<8x32xf32>
    %820 = vector.broadcast %799 : vector<1x32xf32> to vector<8x32xf32>
    %821 = arith.addf %819, %820 : vector<8x32xf32>
    %c1_342 = arith.constant 1 : index
    %c0_343 = arith.constant 0 : index
    %c0_344 = arith.constant 0 : index
    %822 = vector.load %arg21[%c1_342, %c0_343, %c0_344] : memref<2x32x96xf32, #tpu.memory_space<vmem>>, vector<1x32x96xf32>
    %823 = vector.shape_cast %822 : vector<1x32x96xf32> to vector<32x96xf32>
    %c1_345 = arith.constant 1 : index
    %c0_346 = arith.constant 0 : index
    %c0_347 = arith.constant 0 : index
    %824 = vector.load %arg22[%c1_345, %c0_346, %c0_347] : memref<2x1x96xf32, #tpu.memory_space<vmem>>, vector<1x1x96xf32>
    %825 = vector.shape_cast %824 : vector<1x1x96xf32> to vector<1x96xf32>
    %c1_348 = arith.constant 1 : index
    %c0_349 = arith.constant 0 : index
    %c0_350 = arith.constant 0 : index
    %826 = vector.load %arg23[%c1_348, %c0_349, %c0_350] : memref<2x32x32xf32, #tpu.memory_space<vmem>>, vector<1x32x32xf32>
    %827 = vector.shape_cast %826 : vector<1x32x32xf32> to vector<32x32xf32>
    %c1_351 = arith.constant 1 : index
    %c0_352 = arith.constant 0 : index
    %c0_353 = arith.constant 0 : index
    %828 = vector.load %arg24[%c1_351, %c0_352, %c0_353] : memref<2x1x32xf32, #tpu.memory_space<vmem>>, vector<1x1x32xf32>
    %829 = vector.shape_cast %828 : vector<1x1x32xf32> to vector<1x32xf32>
    %830 = vector.extract_strided_slice %823 {offsets = [0, 0], sizes = [32, 32], strides = [1, 1]} : vector<32x96xf32> to vector<32x32xf32>
    %cst_354 = arith.constant dense<0.000000e+00> : vector<8x32xf32>
    %831 = tpu.matmul %821, %830, %cst_354 {dimension_numbers = #tpu.dot_dimension_numbers<[1], [0], [0], [1], [0, 0, 1, 1], [], []>} : vector<8x32xf32>, vector<32x32xf32>, vector<8x32xf32> -> vector<8x32xf32>
    %832 = vector.extract_strided_slice %825 {offsets = [0, 0], sizes = [1, 32], strides = [1, 1]} : vector<1x96xf32> to vector<1x32xf32>
    %833 = vector.broadcast %832 : vector<1x32xf32> to vector<8x32xf32>
    %834 = arith.addf %831, %833 : vector<8x32xf32>
    %835 = vector.extract_strided_slice %823 {offsets = [0, 32], sizes = [32, 32], strides = [1, 1]} : vector<32x96xf32> to vector<32x32xf32>
    %cst_355 = arith.constant dense<0.000000e+00> : vector<8x32xf32>
    %836 = tpu.matmul %383, %835, %cst_355 {dimension_numbers = #tpu.dot_dimension_numbers<[1], [0], [0], [1], [0, 0, 1, 1], [], []>} : vector<8x32xf32>, vector<32x32xf32>, vector<8x32xf32> -> vector<8x32xf32>
    %837 = vector.extract_strided_slice %825 {offsets = [0, 32], sizes = [1, 32], strides = [1, 1]} : vector<1x96xf32> to vector<1x32xf32>
    %838 = vector.broadcast %837 : vector<1x32xf32> to vector<8x32xf32>
    %839 = arith.addf %836, %838 : vector<8x32xf32>
    %840 = vector.extract_strided_slice %823 {offsets = [0, 64], sizes = [32, 32], strides = [1, 1]} : vector<32x96xf32> to vector<32x32xf32>
    %cst_356 = arith.constant dense<0.000000e+00> : vector<8x32xf32>
    %841 = tpu.matmul %383, %840, %cst_356 {dimension_numbers = #tpu.dot_dimension_numbers<[1], [0], [0], [1], [0, 0, 1, 1], [], []>} : vector<8x32xf32>, vector<32x32xf32>, vector<8x32xf32> -> vector<8x32xf32>
    %842 = vector.extract_strided_slice %825 {offsets = [0, 64], sizes = [1, 32], strides = [1, 1]} : vector<1x96xf32> to vector<1x32xf32>
    %843 = vector.broadcast %842 : vector<1x32xf32> to vector<8x32xf32>
    %844 = arith.addf %841, %843 : vector<8x32xf32>
    %845 = vector.extract_strided_slice %834 {offsets = [0, 0], sizes = [8, 8], strides = [1, 1]} : vector<8x32xf32> to vector<8x8xf32>
    %cst_357 = arith.constant 0.353553385 : f32
    %846 = vector.broadcast %cst_357 : f32 to vector<8x8xf32>
    %847 = arith.mulf %845, %846 : vector<8x8xf32>
    %848 = vector.extract_strided_slice %839 {offsets = [0, 0], sizes = [8, 8], strides = [1, 1]} : vector<8x32xf32> to vector<8x8xf32>
    %849 = vector.extract_strided_slice %844 {offsets = [0, 0], sizes = [8, 8], strides = [1, 1]} : vector<8x32xf32> to vector<8x8xf32>
    %cst_358 = arith.constant dense<0.000000e+00> : vector<8x8xf32>
    %850 = tpu.matmul %847, %848, %cst_358 {dimension_numbers = #tpu.dot_dimension_numbers<[1], [1], [0], [0], [0, 0, 1, 0], [], []>} : vector<8x8xf32>, vector<8x8xf32>, vector<8x8xf32> -> vector<8x8xf32>
    %cst_359 = arith.constant dense<0xFF800000> : vector<8xf32>
    %851 = vector.multi_reduction <maximumf>, %850, %cst_359 [1] : vector<8x8xf32> to vector<8xf32>
    %852 = vector.shape_cast %851 : vector<8xf32> to vector<8x1xf32>
    %853 = vector.broadcast %852 : vector<8x1xf32> to vector<8x8xf32>
    %854 = arith.subf %850, %853 : vector<8x8xf32>
    %855 = math.exp %854 : vector<8x8xf32>
    %cst_360 = arith.constant dense<0.000000e+00> : vector<8xf32>
    %856 = vector.multi_reduction <add>, %855, %cst_360 [1] : vector<8x8xf32> to vector<8xf32>
    %857 = vector.shape_cast %856 : vector<8xf32> to vector<8x1xf32>
    %858 = tpu.reciprocal %857 {approx = true} : vector<8x1xf32> -> vector<8x1xf32>
    %859 = vector.broadcast %858 : vector<8x1xf32> to vector<8x8xf32>
    %860 = arith.mulf %855, %859 : vector<8x8xf32>
    %cst_361 = arith.constant dense<0.000000e+00> : vector<8x8xf32>
    %861 = tpu.matmul %860, %849, %cst_361 {dimension_numbers = #tpu.dot_dimension_numbers<[1], [0], [0], [1], [0, 0, 1, 1], [], []>} : vector<8x8xf32>, vector<8x8xf32>, vector<8x8xf32> -> vector<8x8xf32>
    %862 = vector.extract_strided_slice %827 {offsets = [0, 0], sizes = [8, 32], strides = [1, 1]} : vector<32x32xf32> to vector<8x32xf32>
    %cst_362 = arith.constant dense<0.000000e+00> : vector<8x32xf32>
    %863 = tpu.matmul %861, %862, %cst_362 {dimension_numbers = #tpu.dot_dimension_numbers<[1], [0], [0], [1], [0, 0, 1, 1], [], []>} : vector<8x8xf32>, vector<8x32xf32>, vector<8x32xf32> -> vector<8x32xf32>
    %864 = vector.extract_strided_slice %834 {offsets = [0, 8], sizes = [8, 8], strides = [1, 1]} : vector<8x32xf32> to vector<8x8xf32>
    %cst_363 = arith.constant 0.353553385 : f32
    %865 = vector.broadcast %cst_363 : f32 to vector<8x8xf32>
    %866 = arith.mulf %864, %865 : vector<8x8xf32>
    %867 = vector.extract_strided_slice %839 {offsets = [0, 8], sizes = [8, 8], strides = [1, 1]} : vector<8x32xf32> to vector<8x8xf32>
    %868 = vector.extract_strided_slice %844 {offsets = [0, 8], sizes = [8, 8], strides = [1, 1]} : vector<8x32xf32> to vector<8x8xf32>
    %cst_364 = arith.constant dense<0.000000e+00> : vector<8x8xf32>
    %869 = tpu.matmul %866, %867, %cst_364 {dimension_numbers = #tpu.dot_dimension_numbers<[1], [1], [0], [0], [0, 0, 1, 0], [], []>} : vector<8x8xf32>, vector<8x8xf32>, vector<8x8xf32> -> vector<8x8xf32>
    %cst_365 = arith.constant dense<0xFF800000> : vector<8xf32>
    %870 = vector.multi_reduction <maximumf>, %869, %cst_365 [1] : vector<8x8xf32> to vector<8xf32>
    %871 = vector.shape_cast %870 : vector<8xf32> to vector<8x1xf32>
    %872 = vector.broadcast %871 : vector<8x1xf32> to vector<8x8xf32>
    %873 = arith.subf %869, %872 : vector<8x8xf32>
    %874 = math.exp %873 : vector<8x8xf32>
    %cst_366 = arith.constant dense<0.000000e+00> : vector<8xf32>
    %875 = vector.multi_reduction <add>, %874, %cst_366 [1] : vector<8x8xf32> to vector<8xf32>
    %876 = vector.shape_cast %875 : vector<8xf32> to vector<8x1xf32>
    %877 = tpu.reciprocal %876 {approx = true} : vector<8x1xf32> -> vector<8x1xf32>
    %878 = vector.broadcast %877 : vector<8x1xf32> to vector<8x8xf32>
    %879 = arith.mulf %874, %878 : vector<8x8xf32>
    %cst_367 = arith.constant dense<0.000000e+00> : vector<8x8xf32>
    %880 = tpu.matmul %879, %868, %cst_367 {dimension_numbers = #tpu.dot_dimension_numbers<[1], [0], [0], [1], [0, 0, 1, 1], [], []>} : vector<8x8xf32>, vector<8x8xf32>, vector<8x8xf32> -> vector<8x8xf32>
    %881 = vector.extract_strided_slice %827 {offsets = [8, 0], sizes = [8, 32], strides = [1, 1]} : vector<32x32xf32> to vector<8x32xf32>
    %cst_368 = arith.constant dense<0.000000e+00> : vector<8x32xf32>
    %882 = tpu.matmul %880, %881, %cst_368 {dimension_numbers = #tpu.dot_dimension_numbers<[1], [0], [0], [1], [0, 0, 1, 1], [], []>} : vector<8x8xf32>, vector<8x32xf32>, vector<8x32xf32> -> vector<8x32xf32>
    %883 = arith.addf %863, %882 : vector<8x32xf32>
    %884 = vector.extract_strided_slice %834 {offsets = [0, 16], sizes = [8, 8], strides = [1, 1]} : vector<8x32xf32> to vector<8x8xf32>
    %cst_369 = arith.constant 0.353553385 : f32
    %885 = vector.broadcast %cst_369 : f32 to vector<8x8xf32>
    %886 = arith.mulf %884, %885 : vector<8x8xf32>
    %887 = vector.extract_strided_slice %839 {offsets = [0, 16], sizes = [8, 8], strides = [1, 1]} : vector<8x32xf32> to vector<8x8xf32>
    %888 = vector.extract_strided_slice %844 {offsets = [0, 16], sizes = [8, 8], strides = [1, 1]} : vector<8x32xf32> to vector<8x8xf32>
    %cst_370 = arith.constant dense<0.000000e+00> : vector<8x8xf32>
    %889 = tpu.matmul %886, %887, %cst_370 {dimension_numbers = #tpu.dot_dimension_numbers<[1], [1], [0], [0], [0, 0, 1, 0], [], []>} : vector<8x8xf32>, vector<8x8xf32>, vector<8x8xf32> -> vector<8x8xf32>
    %cst_371 = arith.constant dense<0xFF800000> : vector<8xf32>
    %890 = vector.multi_reduction <maximumf>, %889, %cst_371 [1] : vector<8x8xf32> to vector<8xf32>
    %891 = vector.shape_cast %890 : vector<8xf32> to vector<8x1xf32>
    %892 = vector.broadcast %891 : vector<8x1xf32> to vector<8x8xf32>
    %893 = arith.subf %889, %892 : vector<8x8xf32>
    %894 = math.exp %893 : vector<8x8xf32>
    %cst_372 = arith.constant dense<0.000000e+00> : vector<8xf32>
    %895 = vector.multi_reduction <add>, %894, %cst_372 [1] : vector<8x8xf32> to vector<8xf32>
    %896 = vector.shape_cast %895 : vector<8xf32> to vector<8x1xf32>
    %897 = tpu.reciprocal %896 {approx = true} : vector<8x1xf32> -> vector<8x1xf32>
    %898 = vector.broadcast %897 : vector<8x1xf32> to vector<8x8xf32>
    %899 = arith.mulf %894, %898 : vector<8x8xf32>
    %cst_373 = arith.constant dense<0.000000e+00> : vector<8x8xf32>
    %900 = tpu.matmul %899, %888, %cst_373 {dimension_numbers = #tpu.dot_dimension_numbers<[1], [0], [0], [1], [0, 0, 1, 1], [], []>} : vector<8x8xf32>, vector<8x8xf32>, vector<8x8xf32> -> vector<8x8xf32>
    %901 = vector.extract_strided_slice %827 {offsets = [16, 0], sizes = [8, 32], strides = [1, 1]} : vector<32x32xf32> to vector<8x32xf32>
    %cst_374 = arith.constant dense<0.000000e+00> : vector<8x32xf32>
    %902 = tpu.matmul %900, %901, %cst_374 {dimension_numbers = #tpu.dot_dimension_numbers<[1], [0], [0], [1], [0, 0, 1, 1], [], []>} : vector<8x8xf32>, vector<8x32xf32>, vector<8x32xf32> -> vector<8x32xf32>
    %903 = arith.addf %883, %902 : vector<8x32xf32>
    %904 = vector.extract_strided_slice %834 {offsets = [0, 24], sizes = [8, 8], strides = [1, 1]} : vector<8x32xf32> to vector<8x8xf32>
    %cst_375 = arith.constant 0.353553385 : f32
    %905 = vector.broadcast %cst_375 : f32 to vector<8x8xf32>
    %906 = arith.mulf %904, %905 : vector<8x8xf32>
    %907 = vector.extract_strided_slice %839 {offsets = [0, 24], sizes = [8, 8], strides = [1, 1]} : vector<8x32xf32> to vector<8x8xf32>
    %908 = vector.extract_strided_slice %844 {offsets = [0, 24], sizes = [8, 8], strides = [1, 1]} : vector<8x32xf32> to vector<8x8xf32>
    %cst_376 = arith.constant dense<0.000000e+00> : vector<8x8xf32>
    %909 = tpu.matmul %906, %907, %cst_376 {dimension_numbers = #tpu.dot_dimension_numbers<[1], [1], [0], [0], [0, 0, 1, 0], [], []>} : vector<8x8xf32>, vector<8x8xf32>, vector<8x8xf32> -> vector<8x8xf32>
    %cst_377 = arith.constant dense<0xFF800000> : vector<8xf32>
    %910 = vector.multi_reduction <maximumf>, %909, %cst_377 [1] : vector<8x8xf32> to vector<8xf32>
    %911 = vector.shape_cast %910 : vector<8xf32> to vector<8x1xf32>
    %912 = vector.broadcast %911 : vector<8x1xf32> to vector<8x8xf32>
    %913 = arith.subf %909, %912 : vector<8x8xf32>
    %914 = math.exp %913 : vector<8x8xf32>
    %cst_378 = arith.constant dense<0.000000e+00> : vector<8xf32>
    %915 = vector.multi_reduction <add>, %914, %cst_378 [1] : vector<8x8xf32> to vector<8xf32>
    %916 = vector.shape_cast %915 : vector<8xf32> to vector<8x1xf32>
    %917 = tpu.reciprocal %916 {approx = true} : vector<8x1xf32> -> vector<8x1xf32>
    %918 = vector.broadcast %917 : vector<8x1xf32> to vector<8x8xf32>
    %919 = arith.mulf %914, %918 : vector<8x8xf32>
    %cst_379 = arith.constant dense<0.000000e+00> : vector<8x8xf32>
    %920 = tpu.matmul %919, %908, %cst_379 {dimension_numbers = #tpu.dot_dimension_numbers<[1], [0], [0], [1], [0, 0, 1, 1], [], []>} : vector<8x8xf32>, vector<8x8xf32>, vector<8x8xf32> -> vector<8x8xf32>
    %921 = vector.extract_strided_slice %827 {offsets = [24, 0], sizes = [8, 32], strides = [1, 1]} : vector<32x32xf32> to vector<8x32xf32>
    %cst_380 = arith.constant dense<0.000000e+00> : vector<8x32xf32>
    %922 = tpu.matmul %920, %921, %cst_380 {dimension_numbers = #tpu.dot_dimension_numbers<[1], [0], [0], [1], [0, 0, 1, 1], [], []>} : vector<8x8xf32>, vector<8x32xf32>, vector<8x32xf32> -> vector<8x32xf32>
    %923 = arith.addf %903, %922 : vector<8x32xf32>
    %924 = vector.broadcast %829 : vector<1x32xf32> to vector<8x32xf32>
    %925 = arith.addf %923, %924 : vector<8x32xf32>
    %926 = arith.addf %821, %925 : vector<8x32xf32>
    %c1_381 = arith.constant 1 : index
    %c0_382 = arith.constant 0 : index
    %c0_383 = arith.constant 0 : index
    %927 = vector.load %arg31[%c1_381, %c0_382, %c0_383] : memref<2x1x32xf32, #tpu.memory_space<vmem>>, vector<1x1x32xf32>
    %928 = vector.shape_cast %927 : vector<1x1x32xf32> to vector<1x32xf32>
    %c1_384 = arith.constant 1 : index
    %c0_385 = arith.constant 0 : index
    %c0_386 = arith.constant 0 : index
    %929 = vector.load %arg32[%c1_384, %c0_385, %c0_386] : memref<2x1x32xf32, #tpu.memory_space<vmem>>, vector<1x1x32xf32>
    %930 = vector.shape_cast %929 : vector<1x1x32xf32> to vector<1x32xf32>
    %cst_387 = arith.constant dense<0.000000e+00> : vector<8xf32>
    %931 = vector.multi_reduction <add>, %926, %cst_387 [1] : vector<8x32xf32> to vector<8xf32>
    %932 = vector.shape_cast %931 : vector<8xf32> to vector<8x1xf32>
    %cst_388 = arith.constant 3.200000e+01 : f32
    %933 = vector.broadcast %cst_388 : f32 to vector<8x1xf32>
    %934 = arith.divf %932, %933 : vector<8x1xf32>
    %935 = vector.broadcast %934 : vector<8x1xf32> to vector<8x32xf32>
    %936 = arith.subf %926, %935 : vector<8x32xf32>
    %937 = arith.mulf %936, %936 : vector<8x32xf32>
    %cst_389 = arith.constant dense<0.000000e+00> : vector<8xf32>
    %938 = vector.multi_reduction <add>, %937, %cst_389 [1] : vector<8x32xf32> to vector<8xf32>
    %939 = vector.shape_cast %938 : vector<8xf32> to vector<8x1xf32>
    %cst_390 = arith.constant 3.200000e+01 : f32
    %940 = vector.broadcast %cst_390 : f32 to vector<8x1xf32>
    %941 = arith.divf %939, %940 : vector<8x1xf32>
    %942 = vector.broadcast %934 : vector<8x1xf32> to vector<8x32xf32>
    %943 = arith.subf %926, %942 : vector<8x32xf32>
    %cst_391 = arith.constant 9.99999974E-6 : f32
    %944 = vector.broadcast %cst_391 : f32 to vector<8x1xf32>
    %945 = arith.addf %941, %944 : vector<8x1xf32>
    %946 = math.rsqrt %945 : vector<8x1xf32>
    %947 = vector.broadcast %946 : vector<8x1xf32> to vector<8x32xf32>
    %948 = arith.mulf %943, %947 : vector<8x32xf32>
    %949 = vector.broadcast %928 : vector<1x32xf32> to vector<8x32xf32>
    %950 = arith.mulf %948, %949 : vector<8x32xf32>
    %951 = vector.broadcast %930 : vector<1x32xf32> to vector<8x32xf32>
    %952 = arith.addf %950, %951 : vector<8x32xf32>
    %c1_392 = arith.constant 1 : index
    %c0_393 = arith.constant 0 : index
    %c0_394 = arith.constant 0 : index
    %953 = vector.load %arg25[%c1_392, %c0_393, %c0_394] : memref<2x32x2048xbf16, #tpu.memory_space<vmem>>, vector<1x32x2048xbf16>
    %954 = vector.shape_cast %953 : vector<1x32x2048xbf16> to vector<32x2048xbf16>
    %c1_395 = arith.constant 1 : index
    %c0_396 = arith.constant 0 : index
    %c0_397 = arith.constant 0 : index
    %955 = vector.load %arg26[%c1_395, %c0_396, %c0_397] : memref<2x1x2048xf32, #tpu.memory_space<vmem>>, vector<1x1x2048xf32>
    %956 = vector.shape_cast %955 : vector<1x1x2048xf32> to vector<1x2048xf32>
    %c1_398 = arith.constant 1 : index
    %c0_399 = arith.constant 0 : index
    %c0_400 = arith.constant 0 : index
    %957 = vector.load %arg27[%c1_398, %c0_399, %c0_400] : memref<2x2048x32xbf16, #tpu.memory_space<vmem>>, vector<1x2048x32xbf16>
    %958 = vector.shape_cast %957 : vector<1x2048x32xbf16> to vector<2048x32xbf16>
    %c1_401 = arith.constant 1 : index
    %c0_402 = arith.constant 0 : index
    %c0_403 = arith.constant 0 : index
    %959 = vector.load %arg28[%c1_401, %c0_402, %c0_403] : memref<2x1x32xf32, #tpu.memory_space<vmem>>, vector<1x1x32xf32>
    %960 = vector.shape_cast %959 : vector<1x1x32xf32> to vector<1x32xf32>
    %961 = arith.truncf %952 : vector<8x32xf32> to vector<8x32xbf16>
    %cst_404 = arith.constant dense<0.000000e+00> : vector<8x2048xf32>
    %962 = tpu.matmul %961, %954, %cst_404 {dimension_numbers = #tpu.dot_dimension_numbers<[1], [0], [0], [1], [0, 0, 1, 1], [], []>} : vector<8x32xbf16>, vector<32x2048xbf16>, vector<8x2048xf32> -> vector<8x2048xf32>
    %963 = vector.broadcast %956 : vector<1x2048xf32> to vector<8x2048xf32>
    %964 = arith.addf %962, %963 : vector<8x2048xf32>
    %cst_405 = arith.constant 0.000000e+00 : f32
    %965 = vector.broadcast %cst_405 : f32 to vector<8x2048xf32>
    %966 = arith.maximumf %964, %965 : vector<8x2048xf32>
    %967 = arith.truncf %966 : vector<8x2048xf32> to vector<8x2048xbf16>
    %cst_406 = arith.constant dense<0.000000e+00> : vector<8x32xf32>
    %968 = tpu.matmul %967, %958, %cst_406 {dimension_numbers = #tpu.dot_dimension_numbers<[1], [0], [0], [1], [0, 0, 1, 1], [], []>} : vector<8x2048xbf16>, vector<2048x32xbf16>, vector<8x32xf32> -> vector<8x32xf32>
    %969 = vector.broadcast %960 : vector<1x32xf32> to vector<8x32xf32>
    %970 = arith.addf %968, %969 : vector<8x32xf32>
    %971 = arith.addf %952, %970 : vector<8x32xf32>
    %c1_407 = arith.constant 1 : index
    %c0_408 = arith.constant 0 : index
    %c0_409 = arith.constant 0 : index
    %972 = vector.load %arg33[%c1_407, %c0_408, %c0_409] : memref<2x1x32xf32, #tpu.memory_space<vmem>>, vector<1x1x32xf32>
    %973 = vector.shape_cast %972 : vector<1x1x32xf32> to vector<1x32xf32>
    %c1_410 = arith.constant 1 : index
    %c0_411 = arith.constant 0 : index
    %c0_412 = arith.constant 0 : index
    %974 = vector.load %arg34[%c1_410, %c0_411, %c0_412] : memref<2x1x32xf32, #tpu.memory_space<vmem>>, vector<1x1x32xf32>
    %975 = vector.shape_cast %974 : vector<1x1x32xf32> to vector<1x32xf32>
    %cst_413 = arith.constant dense<0.000000e+00> : vector<8xf32>
    %976 = vector.multi_reduction <add>, %971, %cst_413 [1] : vector<8x32xf32> to vector<8xf32>
    %977 = vector.shape_cast %976 : vector<8xf32> to vector<8x1xf32>
    %cst_414 = arith.constant 3.200000e+01 : f32
    %978 = vector.broadcast %cst_414 : f32 to vector<8x1xf32>
    %979 = arith.divf %977, %978 : vector<8x1xf32>
    %980 = vector.broadcast %979 : vector<8x1xf32> to vector<8x32xf32>
    %981 = arith.subf %971, %980 : vector<8x32xf32>
    %982 = arith.mulf %981, %981 : vector<8x32xf32>
    %cst_415 = arith.constant dense<0.000000e+00> : vector<8xf32>
    %983 = vector.multi_reduction <add>, %982, %cst_415 [1] : vector<8x32xf32> to vector<8xf32>
    %984 = vector.shape_cast %983 : vector<8xf32> to vector<8x1xf32>
    %cst_416 = arith.constant 3.200000e+01 : f32
    %985 = vector.broadcast %cst_416 : f32 to vector<8x1xf32>
    %986 = arith.divf %984, %985 : vector<8x1xf32>
    %987 = vector.broadcast %979 : vector<8x1xf32> to vector<8x32xf32>
    %988 = arith.subf %971, %987 : vector<8x32xf32>
    %cst_417 = arith.constant 9.99999974E-6 : f32
    %989 = vector.broadcast %cst_417 : f32 to vector<8x1xf32>
    %990 = arith.addf %986, %989 : vector<8x1xf32>
    %991 = math.rsqrt %990 : vector<8x1xf32>
    %992 = vector.broadcast %991 : vector<8x1xf32> to vector<8x32xf32>
    %993 = arith.mulf %988, %992 : vector<8x32xf32>
    %994 = vector.broadcast %973 : vector<1x32xf32> to vector<8x32xf32>
    %995 = arith.mulf %993, %994 : vector<8x32xf32>
    %996 = vector.broadcast %975 : vector<1x32xf32> to vector<8x32xf32>
    %997 = arith.addf %995, %996 : vector<8x32xf32>
    %c0_418 = arith.constant 0 : index
    %c0_419 = arith.constant 0 : index
    %998 = vector.load %arg35[%c0_418, %c0_419] : memref<1x32xf32, #tpu.memory_space<vmem>>, vector<1x32xf32>
    %c0_420 = arith.constant 0 : index
    %c0_421 = arith.constant 0 : index
    %999 = vector.load %arg36[%c0_420, %c0_421] : memref<1x32xf32, #tpu.memory_space<vmem>>, vector<1x32xf32>
    %cst_422 = arith.constant dense<0.000000e+00> : vector<8xf32>
    %1000 = vector.multi_reduction <add>, %997, %cst_422 [1] : vector<8x32xf32> to vector<8xf32>
    %1001 = vector.shape_cast %1000 : vector<8xf32> to vector<8x1xf32>
    %cst_423 = arith.constant 3.200000e+01 : f32
    %1002 = vector.broadcast %cst_423 : f32 to vector<8x1xf32>
    %1003 = arith.divf %1001, %1002 : vector<8x1xf32>
    %1004 = vector.broadcast %1003 : vector<8x1xf32> to vector<8x32xf32>
    %1005 = arith.subf %997, %1004 : vector<8x32xf32>
    %1006 = arith.mulf %1005, %1005 : vector<8x32xf32>
    %cst_424 = arith.constant dense<0.000000e+00> : vector<8xf32>
    %1007 = vector.multi_reduction <add>, %1006, %cst_424 [1] : vector<8x32xf32> to vector<8xf32>
    %1008 = vector.shape_cast %1007 : vector<8xf32> to vector<8x1xf32>
    %cst_425 = arith.constant 3.200000e+01 : f32
    %1009 = vector.broadcast %cst_425 : f32 to vector<8x1xf32>
    %1010 = arith.divf %1008, %1009 : vector<8x1xf32>
    %1011 = vector.broadcast %1003 : vector<8x1xf32> to vector<8x32xf32>
    %1012 = arith.subf %997, %1011 : vector<8x32xf32>
    %cst_426 = arith.constant 9.99999974E-6 : f32
    %1013 = vector.broadcast %cst_426 : f32 to vector<8x1xf32>
    %1014 = arith.addf %1010, %1013 : vector<8x1xf32>
    %1015 = math.rsqrt %1014 : vector<8x1xf32>
    %1016 = vector.broadcast %1015 : vector<8x1xf32> to vector<8x32xf32>
    %1017 = arith.mulf %1012, %1016 : vector<8x32xf32>
    %1018 = vector.broadcast %998 : vector<1x32xf32> to vector<8x32xf32>
    %1019 = arith.mulf %1017, %1018 : vector<8x32xf32>
    %1020 = vector.broadcast %999 : vector<1x32xf32> to vector<8x32xf32>
    %1021 = arith.addf %1019, %1020 : vector<8x32xf32>
    %c0_427 = arith.constant 0 : index
    %c0_428 = arith.constant 0 : index
    %1022 = vector.load %arg37[%c0_427, %c0_428] : memref<32x16xf32, #tpu.memory_space<vmem>>, vector<32x16xf32>
    %cst_429 = arith.constant dense<0.000000e+00> : vector<8x16xf32>
    %1023 = tpu.matmul %1021, %1022, %cst_429 {dimension_numbers = #tpu.dot_dimension_numbers<[1], [0], [0], [1], [0, 0, 1, 1], [], []>} : vector<8x32xf32>, vector<32x16xf32>, vector<8x16xf32> -> vector<8x16xf32>
    %c0_430 = arith.constant 0 : index
    %c0_431 = arith.constant 0 : index
    %1024 = vector.load %arg38[%c0_430, %c0_431] : memref<1x16xf32, #tpu.memory_space<vmem>>, vector<1x16xf32>
    %1025 = vector.broadcast %1024 : vector<1x16xf32> to vector<8x16xf32>
    %1026 = arith.addf %1023, %1025 : vector<8x16xf32>
    %c0_432 = arith.constant 0 : index
    %c0_433 = arith.constant 0 : index
    %1027 = vector.load %arg39[%c0_432, %c0_433] : memref<8x16xf32, #tpu.memory_space<vmem>>, vector<8x16xf32>
    tpu.vector_store %arg39[%c0_432, %c0_433], %1026 {strides = array<i32>} : memref<8x16xf32, #tpu.memory_space<vmem>>, vector<8x16xf32>,
    return
  }
}

</mosaic_0001>

<bundles_post_ra>
// kernel: mapping_transformer_forward.1
= control target key start
LH: loop header
LB: loop body
LE: loop exit
PB: predicated region body
PF: predicated region fallthrough
CT: control target
= control target key end

     0   :  { %s14696_s6 = smov 1   ;;  %s14697_s10 = smov 2   ;;  %s16498_s0 = inlined_call_operand.smem [shape: u32[40], index: -1, kind: input, shape index: {}] }
   0x1   :  { %s14750_s5 = sld [smem:[%s16498_s0]]   ;;  %s14698_s14 = smov 3  }
   0x2   :  { %s14755_s9 = sld [smem:[%s16498_s0 + %s14696_s6]]   ;;  %s14699_s18 = smov 4  }
   0x3   :  { %s14760_s13 = sld [smem:[%s16498_s0 + %s14697_s10]]   ;;  %s14700_s22 = smov 5  }
   0x4   :  { %s14765_s17 = sld [smem:[%s16498_s0 + %s14698_s14]]   ;;  %s14701_s26 = smov 6  }
   0x5   :  { %s14770_s21 = sld [smem:[%s16498_s0 + %s14699_s18]]   ;;  %s14702_s30 = smov 7  }
   0x6   :  { %s14775_s25 = sld [smem:[%s16498_s0 + %s14700_s22]]   ;;  %s14703_s4 = smov 8  }
   0x7   :  { %s14780_s29 = sld [smem:[%s16498_s0 + %s14701_s26]]   ;;  %s14704_s10 = smov 9  }
   0x8   :  { %s14785_s3 = sld [smem:[%s16498_s0 + %s14702_s30]]   ;;  %s14705_s15 = smov 10  }
   0x9   :  { %s14790_s8 = sld [smem:[%s16498_s0 + %s14703_s4]]   ;;  %s14706_s20 = smov 11  }
   0xa   :  { %s14795_s14 = sld [smem:[%s16498_s0 + %s14704_s10]]   ;;  %s14707_s26 = smov 12  }
   0xb   :  { %s14800_s19 = sld [smem:[%s16498_s0 + %s14705_s15]]   ;;  %s14708_s1 = smov 13  }
   0xc   :  { %s14805_s24 = sld [smem:[%s16498_s0 + %s14706_s20]]   ;;  %s14709_s7 = smov 14  }
   0xd   :  { %s14810_s30 = sld [smem:[%s16498_s0 + %s14707_s26]]   ;;  %s14710_s15 = smov 15  }
   0xe   :  { %s14815_s6 = sld [smem:[%s16498_s0 + %s14708_s1]]   ;;  %s14711_s22 = smov 16  }
   0xf   :  { %s14820_s12 = sld [smem:[%s16498_s0 + %s14709_s7]]   ;;  %s14712_s28 = smov 17  }
  0x10   :  { %s14825_s20 = sld [smem:[%s16498_s0 + %s14710_s15]]   ;;  %s14713_s7 = smov 18  }
  0x11   :  { %s14830_s27 = sld [smem:[%s16498_s0 + %s14711_s22]]   ;;  %s14714_s15 = smov 19  }
  0x12   :  { %s14835_s4 = sld [smem:[%s16498_s0 + %s14712_s28]]   ;;  %s14715_s22 = smov 20  }
  0x13   :  { %s14716_s28 = smov 21  }
  0x15   :  { %16518 = sst [smem:[#allocation5_spill]] %s14820_s12 }
  0x16   :  { %16519 = sst [smem:[#allocation6_spill]] %s14825_s20 }
  0x17   :  { %16520 = sst [smem:[#allocation7_spill]] %s14830_s27 }
  0x18   :  { %16521 = sst [smem:[#allocation8_spill]] %s14835_s4 }
  0x19   :  { %s14840_s12 = sld [smem:[%s16498_s0 + %s14713_s7]]   ;;  %s14717_s7 = smov 22  }
  0x1a   :  { %s14845_s20 = sld [smem:[%s16498_s0 + %s14714_s15]]   ;;  %s14718_s15 = smov 23  }
  0x1b   :  { %s14850_s27 = sld [smem:[%s16498_s0 + %s14715_s22]]   ;;  %s14719_s22 = smov 24  }
  0x1c   :  { %s14855_s4 = sld [smem:[%s16498_s0 + %s14716_s28]]   ;;  %s14720_s28 = smov 25  }
  0x1f   :  { %16522 = sst [smem:[#allocation9_spill]] %s14840_s12 }
  0x20   :  { %16523 = sst [smem:[#allocation10_spill]] %s14845_s20 }
  0x21   :  { %16524 = sst [smem:[#allocation11_spill]] %s14850_s27 }
  0x22   :  { %16525 = sst [smem:[#allocation12_spill]] %s14855_s4 }
  0x23   :  { %s14860_s12 = sld [smem:[%s16498_s0 + %s14717_s7]]   ;;  %s14721_s7 = smov 26  }
  0x24   :  { %s14865_s20 = sld [smem:[%s16498_s0 + %s14718_s15]]   ;;  %s14722_s15 = smov 27  }
  0x25   :  { %s14870_s27 = sld [smem:[%s16498_s0 + %s14719_s22]]   ;;  %s14723_s22 = smov 28  }
  0x26   :  { %s14875_s4 = sld [smem:[%s16498_s0 + %s14720_s28]]   ;;  %s14724_s28 = smov 29  }
  0x29   :  { %16526 = sst [smem:[#allocation13_spill]] %s14860_s12 }
  0x2a   :  { %16527 = sst [smem:[#allocation14_spill]] %s14865_s20 }
  0x2b   :  { %16528 = sst [smem:[#allocation15_spill]] %s14870_s27 }
  0x2c   :  { %16529 = sst [smem:[#allocation16_spill]] %s14875_s4 }
  0x2d   :  { %s14880_s12 = sld [smem:[%s16498_s0 + %s14721_s7]]   ;;  %s14725_s7 = smov 30  }
  0x2e   :  { %s14885_s20 = sld [smem:[%s16498_s0 + %s14722_s15]]   ;;  %s14726_s15 = smov 31  }
  0x2f   :  { %s14890_s27 = sld [smem:[%s16498_s0 + %s14723_s22]]   ;;  %s14727_s22 = smov 32  }
  0x30   :  { %s14895_s4 = sld [smem:[%s16498_s0 + %s14724_s28]]   ;;  %s14728_s28 = smov 33  }
  0x33   :  { %16530 = sst [smem:[#allocation17_spill]] %s14880_s12 }
  0x34   :  { %16531 = sst [smem:[#allocation18_spill]] %s14885_s20 }
  0x35   :  { %16532 = sst [smem:[#allocation19_spill]] %s14890_s27 }
  0x36   :  { %16533 = sst [smem:[#allocation20_spill]] %s14895_s4 }
  0x37   :  { %s14900_s12 = sld [smem:[%s16498_s0 + %s14725_s7]]   ;;  %s14729_s7 = smov 34  }
  0x38   :  { %s14905_s20 = sld [smem:[%s16498_s0 + %s14726_s15]]   ;;  %s14730_s15 = smov 35  }
  0x39   :  { %s14910_s27 = sld [smem:[%s16498_s0 + %s14727_s22]]   ;;  %s14731_s22 = smov 36  }
  0x3a   :  { %s14915_s4 = sld [smem:[%s16498_s0 + %s14728_s28]]   ;;  %s14732_s28 = smov 37  }
  0x3d   :  { %16534 = sst [smem:[#allocation21_spill]] %s14900_s12 }
  0x3e   :  { %16535 = sst [smem:[#allocation22_spill]] %s14905_s20 }
  0x3f   :  { %16536 = sst [smem:[#allocation23_spill]] %s14910_s27 }
  0x40   :  { %16537 = sst [smem:[#allocation24_spill]] %s14915_s4 }
  0x41   :  { %s14920_s12 = sld [smem:[%s16498_s0 + %s14729_s7]]   ;;  %s14733_s7 = smov 38  }
  0x42   :  { %s14925_s20 = sld [smem:[%s16498_s0 + %s14730_s15]]   ;;  %s14734_s15 = smov 39  }
  0x43   :  { %s14930_s27 = sld [smem:[%s16498_s0 + %s14731_s22]]  }
  0x44   :  { %s14935_s4 = sld [smem:[%s16498_s0 + %s14732_s28]]  }
  0x47   :  { %16538 = sst [smem:[#allocation25_spill]] %s14920_s12 }
  0x48   :  { %16539 = sst [smem:[#allocation26_spill]] %s14925_s20 }
  0x49   :  { %s14940_s12 = sld [smem:[%s16498_s0 + %s14733_s7]]  }
  0x4a   :  { %s14945_s20 = sld [smem:[%s16498_s0 + %s14734_s15]]  }
  0x4b   :  { %v166_v0 = vld [vmem:[%s14755_s9 + $0x8] sm:$0xff]  ;;  %v14506_v1 = vld [vmem:[%s14770_s21] ss:$0 sm:$0xff]  ;;  %v198_v3 = vld [vmem:[%s14765_s17 + $0x10] sm:$0xff]  ;;  %vm171_vm0 = vcmask 130048   ;;  %s14735_s22 = smov 96  }
  0x4c   :  { %189 = vmatpush.msra.mxu0 %v166_v0  ;;  %v165_v2 = vld [vmem:[%s14755_s9] sm:$0xff]  ;;  %v199_v4 = vld [vmem:[%s14765_s17 + $0x18] sm:$0xff]  ;;  %249 = vrot.lane.b32.xlu1 %v14506_v1, %s14735_s22  ;;  %v197_v8 = vld [vmem:[%s14765_s17 + $0x8] sm:$0xff]  ;;  %s14736_s0 = smov 64  }
  0x4d   :  { %v14386_v5 = vpack.i.bf16 %v198_v3, %v199_v4  ;;  %v164_v6 = vld [vmem:[%s14750_s5] sm:$0xff]  ;;  %225 = vmatpush.msra.mxu1 %v199_v4 }
  0x4e   :  { %v196_v7 = vld [vmem:[%s14765_s17] sm:$0xff]  ;;  %190 = vmatpush.msra.mxu0 %v165_v2 }
  0x4f   :  { %v14401_v9 = vpack.i.bf16 %v196_v7, %v197_v8  ;;  %14387 = vrot.lane.b32.xlu0 %v14386_v5, %s14735_s22  ;;  %10338 = vmatmul.msk.f32.vlgmr.msra.gmra.mxu0 %vm171_vm0, %v164_v6 }
  0x50   :  { %226 = vmatpush.msra.mxu1 %v198_v3 }
  0x51   :  { %14402 = vrot.lane.b32.xlu2 %v14401_v9, %s14736_s0 }
  0x52   :  { %227 = vmatpush.msra.mxu1 %v197_v8 }
  0x54   :  { %228 = vmatpush.msra.mxu1 %v196_v7  ;;  %14397 = vrot.lane.b32.xlu1 %v14386_v5, %s14736_s0 }
  0x57   :  { %14392 = vrot.lane.b32.xlu0 %v14401_v9, %s14735_s22 }
  0x58   :  { %84 = vsyncpa [#allocation3], 0  ;;  %v14507_v19 = vld [vmem:[%s14760_s13] ss:$0 sm:$0xff]  ;;  %vm209_vm1 = vcmask 261120   ;;  %vm308_vm2 = vcmask 64512  }
  0x59   :  { %s14737_s5 = smov 120   ;;  %s14738_s9 = smov 112   ;;  %v201_v48 = vld [vmem:[%s14775_s25] sm:$0xff] }
  0x5a   :  { %s14739_s13 = smov 104   ;;  %s16551_s23 = sld [smem:[#allocation14_spill]] }
  0x5b   :  { %s16552_s26 = sld [smem:[#allocation15_spill]] }
  0x5c   :  { %284 = vrot.lane.b32.xlu1 %v14506_v1, %s14736_s0  ;;  %s16553_s28 = sld [smem:[#allocation16_spill]] }
  0x5d   :  { %s16554_s1 = sld [smem:[#allocation22_spill]] }
  0x5e   :  { %s16555_s2 = sld [smem:[#allocation23_spill]] }
  0x5f   :  { %s16556_s7 = sld [smem:[#allocation18_spill]] }
  0x60   :  { %s16557_s10 = sld [smem:[#allocation17_spill]] }
  0x61   :  { %s16558_s11 = sld [smem:[#allocation19_spill]] }
  0x62   :  { %s16559_s15 = sld [smem:[#allocation24_spill]] }
  0x63   :  { %s16560_s16 = sld [smem:[#allocation25_spill]] }
  0x64   :  { %s16561_s18 = sld [smem:[#allocation26_spill]] }
  0xab   :  { %v14403_v15 = vpop.permute.xlu2 %14402 }
  0xac   :  { %v14404_v22 = vunpack.i.l.bf16 %v14403_v15  ;;  %v14405_v24 = vunpack.i.h.bf16 %v14403_v15 }
  0xbe   :  { %v250_v10 = vpop.permute.xlu1 %249 }
  0xc1   :  { %v14388_v11 = vpop.permute.xlu0 %14387 }
  0xc2   :  { %v14389_v12 = vunpack.i.l.bf16 %v14388_v11  ;;  %v14390_v13 = vunpack.i.h.bf16 %v14388_v11  ;;  %v202_v11 = vld [vmem:[%s14775_s25 + $0x8] sm:$0xff] }
  0xc4   :  { %264 = vmatpush.msra.mxu2 %v14389_v12 }
  0xc6   :  { %265 = vmatpush.msra.mxu2 %v14390_v13  ;;  %v14398_v14 = vpop.permute.xlu1 %14397 }
  0xc7   :  { %v14399_v16 = vunpack.i.l.bf16 %v14398_v14  ;;  %v14400_v17 = vunpack.i.h.bf16 %v14398_v14 }
  0xc9   :  { %v14393_v18 = vpop.permute.xlu0 %14392  ;;  %299 = vmatpush.msra.mxu3 %v14399_v16 }
  0xca   :  { %v14394_v20 = vunpack.i.l.bf16 %v14393_v18  ;;  %v14395_v21 = vunpack.i.h.bf16 %v14393_v18 }
  0xcb   :  { %300 = vmatpush.msra.mxu3 %v14400_v17 }
  0xcc   :  { %v192_v23 = vpop.f32.mrf.mxu0  ;;  %266 = vmatpush.msra.mxu2 %v14394_v20 }
  0xcd   :  { %v193_v25 = vadd.f32 %v14507_v19, %v192_v23  ;;  %301 = vmatpush.msra.mxu3 %v14404_v22 }
  0xce   :  { %267 = vmatpush.msra.mxu2 %v14395_v21  ;;  %v285_v28 = vpop.permute.xlu1 %284 }
  0xcf   :  { %v14963_v26 = vmax.f32 %v193_v25, 0.0  ;;  %302 = vmatpush.msra.mxu3 %v14405_v24  ;;  %v204_v25 = vld [vmem:[%s14775_s25 + $0x18] sm:$0xff] }
  0xd1   :  { %10339 = vmatmul.msk.f32.vlgmr.msra.gmra.mxu1 %vm209_vm1, %v14963_v26  ;;  %10340 = vmatmul.msk.f32.vlgmr.msra.gmra.mxu2 %vm209_vm1, %v14963_v26 }
  0xd2   :  { %10341 = vmatmul.msk.f32.vlgmr.msra.gmra.mxu3 %vm209_vm1, %v14963_v26 }
 0x14e   :  { %v230_v27 = vpop.f32.mrf.mxu1 }
 0x14f   :  { %v231_v29 = vadd.f32 %v14506_v1, %v230_v27  ;;  %v203_v27 = vld [vmem:[%s14775_s25 + $0x10] sm:$0xff] }
 0x151   :  { %v307_v34 = vmul.f32 0.35355338, %v231_v29 }
 0x154   :  { %v269_v30 = vpop.f32.mrf.mxu2 }
 0x155   :  { %v270_v31 = vadd.f32 %v269_v30, %v250_v10  ;;  %v304_v32 = vpop.f32.mrf.mxu3 }
 0x156   :  { %v14971_v33 = vadd.f32 %v304_v32, %v285_v28 }
 0x157   :  { %371 = vrot.lane.b32.xlu1 %v270_v31, %s14737_s5  ;;  %10342 = vmatpush.xpose.msk.msrb.mxu0 %vm308_vm2, %v270_v31 }
 0x158   :  { %364 = vmatpush.msrb.mxu1 %v14971_v33 }
 0x15a   :  { %10343 = vmatmul.msk.f32.vlgmr.msrb.gmra.mxu0 %vm308_vm2, %v307_v34  ;;  %476 = vmatpush.msra.mxu1 %v201_v48 }
 0x15b   :  { %453 = vmatpush.msra.mxu0 %v202_v11 }
 0x15d   :  { %564 = vmatpush.msrb.mxu0 %v203_v27 }
 0x15f   :  { %369 = vrot.lane.b32.xlu1 %v307_v34, %s14737_s5 }
 0x167   :  { %483 = vrot.lane.b32.xlu1 %v270_v31, %s14738_s9 }
 0x16f   :  { %572 = vrot.lane.b32.xlu1 %v270_v31, %s14739_s13 }
 0x177   :  { %570 = vrot.lane.b32.xlu1 %v307_v34, %s14739_s13 }
 0x1c9   :  { %v372_v35 = vpop.permute.xlu1 %371 }
 0x1ca   :  { %10345 = vmatpush.xpose.msk.msrb.mxu2 %vm308_vm2, %v372_v35 }
 0x1d1   :  { %v370_v36 = vpop.permute.xlu1 %369 }
 0x1d2   :  { %10346 = vmatmul.msk.f32.vlgmr.msrb.gmra.mxu2 %vm308_vm2, %v370_v36 }
 0x1d7   :  { %v332_v37 = vpop.f32.mrf.mxu0 }
 0x1d8   :  { %v335_v38 = vsel %vm308_vm2, %v332_v37, -inf }
 0x1d9   :  { %v484_v39 = vpop.permute.xlu1 %483  ;;  %336 = vmax.xlane.f32.xlu2 %v335_v38 }
 0x1da   :  { %10350 = vmatpush.xpose.msk.msra.mxu2 %vm308_vm2, %v484_v39 }
 0x1e1   :  { %v573_v54 = vpop.permute.xlu1 %572 }
 0x1e9   :  { %v571_v2 = vpop.permute.xlu1 %570 }
 0x1f1   :  { %481 = vrot.lane.b32.xlu2 %v307_v34, %s14738_s9  ;;  %v14508_v34 = vld [vmem:[%s14780_s29] ss:$0 sm:$0xff] }
 0x24c   :  { %v337_v40 = vpop.xlane.xlu2 %336 }
 0x24d   :  { %v338_v41 = vsub.f32 %v332_v37, %v337_v40  ;;  %v14740_v40 = vmov 32.0  }
 0x24f   :  { %v339_v42 = vmul.f32 1.442695, %v338_v41 }
 0x251   :  { %14548 = vpow2.f32 %v339_v42 }
 0x254   :  { %v482_v43 = vpop.permute.xlu2 %481 }
 0x255   :  { %10351 = vmatmul.msk.f32.vlgmr.msra.gmra.mxu2 %vm308_vm2, %v482_v43  ;;  %v394_v46 = vpop.f32.mrf.mxu2 }
 0x256   :  { %v397_v47 = vsel %vm308_vm2, %v394_v46, -inf }
 0x257   :  { %v14549_v44 = vpop.eup %14548 }
 0x258   :  { %v341_v45 = vsel %vm308_vm2, %v14549_v44, 0.0 }
 0x259   :  { %342 = vadd.xlane.f32.xlu0 %v341_v45 }
 0x261   :  { %398 = vmax.xlane.f32.xlu0 %v397_v47 }
 0x2cc   :  { %v343_v49 = vpop.xlane.xlu0 %342 }
 0x2cd   :  { %14550 = vrcp.f32 %v343_v49 }
 0x2d3   :  { %v14551_v50 = vpop.eup %14550 }
 0x2d4   :  { %v399_v51 = vpop.xlane.xlu0 %398  ;;  %v345_v52 = vmul.f32 %v14551_v50, %v14549_v44 }
 0x2d5   :  { %v400_v53 = vsub.f32 %v394_v46, %v399_v51 }
 0x2d6   :  { %10344 = vmatmul.msk.f32.vlgmr.msrb.gmra.mxu1 %vm308_vm2, %v345_v52  ;;  %v10424_v52 = vld [vmem:[%s14785_s3 + $0x80] sm:$0xf] }
 0x2d7   :  { %v401_v55 = vmul.f32 1.442695, %v400_v53  ;;  %10354 = vmatpush.xpose.msk.msrb.mxu1 %vm308_vm2, %v573_v54  ;;  %v13724_v53 = vld [vmem:[%s14785_s3 + $0xbc] sm:$0xf0]  ;;  %v13716_v54 = vld [vmem:[%s14785_s3 + $0x84] sm:$0xf] }
 0x2d8   :  { %v506_v56 = vpop.f32.mrf.mxu2 }
 0x2d9   :  { %14552 = vpow2.f32 %v401_v55  ;;  %v509_v57 = vsel %vm308_vm2, %v506_v56, -inf  ;;  %v10425_v55 = vor.u32 %v13724_v53, %v10424_v52  ;;  %v10456_v53 = vld [vmem:[%s14785_s3 + $0xa0] sm:$0xf] }
 0x2da   :  { %510 = vmax.xlane.f32.xlu0 %v509_v57  ;;  %v10432_v57 = vld [vmem:[%s14785_s3 + $0x88] sm:$0xf] }
 0x2df   :  { %v14553_v58 = vpop.eup %14552 }
 0x2e0   :  { %v403_v59 = vsel %vm308_vm2, %v14553_v58, 0.0 }
 0x2e1   :  { %404 = vadd.xlane.f32.xlu2 %v403_v59 }
 0x34d   :  { %v511_v60 = vpop.xlane.xlu0 %510 }
 0x34e   :  { %v512_v61 = vsub.f32 %v506_v56, %v511_v60  ;;  %v10426_v56 = vld [vmem:[%s14785_s3 + $0xc0] sm:$0xf0] }
 0x34f   :  { %v10429_v59 = vor.u32 %v13716_v54, %v10426_v56  ;;  %v13728_v54 = vld [vmem:[%s14785_s3 + $0xdc] sm:$0xf0]  ;;  %v10458_v56 = vld [vmem:[%s14785_s3 + $0xe0] sm:$0xf0] }
 0x350   :  { %v513_v62 = vmul.f32 1.442695, %v512_v61  ;;  %v13717_v61 = vld [vmem:[%s14785_s3 + $0x8c] sm:$0xf] }
 0x352   :  { %14554 = vpow2.f32 %v513_v62  ;;  %v10434_v62 = vld [vmem:[%s14785_s3 + $0xc8] sm:$0xf0] }
 0x353   :  { %v366_v63 = vpop.f32.mrf.mxu1 }
 0x354   :  { %10349 = vmatmul.msk.f32.vlgmr.msra.gmra.mxu1 %vm308_vm2, %v366_v63  ;;  %v405_v4 = vpop.xlane.xlu2 %404  ;;  %v10437_v63 = vor.u32 %v13717_v61, %v10434_v62  ;;  %v10466_v61 = vld [vmem:[%s14785_s3 + $0xe8] sm:$0xf0]  ;;  %v10457_v62 = vor.u32 %v13728_v54, %v10456_v53  ;;  %v13736_v53 = vld [vmem:[%s14795_s14 + $0x20] sm:$0xff] }
 0x355   :  { %14556 = vrcp.f32 %v405_v4  ;;  %1211 = vmatpush.bf16.msra.mxu1 %v10429_v59  ;;  %v10362_v4 = vld [vmem:[%s14785_s3 + $0x40] sm:$0xf0]  ;;  %v13729_v59 = vld [vmem:[%s14785_s3 + $0xe4] sm:$0xf0] }
 0x356   :  { %v13744_v54 = vld [vmem:[%s14795_s14 + $0x60] sm:$0xff] }
 0x358   :  { %v14555_v0 = vpop.eup %14554 }
 0x359   :  { %v515_v1 = vsel %vm308_vm2, %v14555_v0, 0.0 }
 0x35a   :  { %516 = vadd.xlane.f32.xlu0 %v515_v1  ;;  %v13708_v1 = vld [vmem:[%s14785_s3 + $0x3c] sm:$0xf0] }
 0x35b   :  { %v14557_v8 = vpop.eup %14556 }
 0x35c   :  { %10355 = vmatmul.msk.f32.vlgmr.msrb.gmra.mxu1 %vm308_vm2, %v571_v2  ;;  %v407_v10 = vmul.f32 %v14557_v8, %v14553_v58  ;;  %v13725_v58 = vld [vmem:[%s14785_s3 + $0xc4] sm:$0xf0]  ;;  %v13700_v2 = vld [vmem:[%s14785_s3 + $0x4] sm:$0xf] }
 0x35d   :  { %v10433_v60 = vor.u32 %v13725_v58, %v10432_v57  ;;  %v10464_v57 = vld [vmem:[%s14785_s3 + $0xa8] sm:$0xf] }
 0x36e   :  { %409 = vrot.lane.b32.xlu0 %v14971_v33, %s14737_s5 }
 0x3cd   :  { %v517_v5 = vpop.xlane.xlu0 %516 }
 0x3d1   :  { %v478_v3 = vpop.f32.mrf.mxu1 }
 0x3d9   :  { %v595_v6 = vpop.f32.mrf.mxu1 }
 0x3da   :  { %v598_v7 = vsel %vm308_vm2, %v595_v6, -inf }
 0x3db   :  { %599 = vmax.xlane.f32.xlu1 %v598_v7  ;;  %v10365_v7 = vor.u32 %v13700_v2, %v10362_v4  ;;  %v10465_v2 = vor.u32 %v13729_v59, %v10464_v57  ;;  %v13704_v4 = vld [vmem:[%s14785_s3 + $0x24] sm:$0xf]  ;;  %v13735_v57 = vld [vmem:[%s14795_s14 + $0x18] sm:$0xff] }
 0x3dc   :  { %v13743_v59 = vld [vmem:[%s14795_s14 + $0x58] sm:$0xff] }
 0x3dd   :  { %1212 = vmatpush.bf16.msra.mxu1 %v10365_v7  ;;  %v13713_v7 = vld [vmem:[%s14785_s3 + $0x64] sm:$0xf0] }
 0x3e0   :  { %v410_v9 = vpop.permute.xlu0 %409 }
 0x3e1   :  { %430 = vmatpush.msrb.mxu3 %v410_v9  ;;  %v13701_v9 = vld [vmem:[%s14785_s3 + $0xc] sm:$0xf] }
 0x3e2   :  { %10347 = vmatmul.msk.f32.vlgmr.msrb.gmra.mxu3 %vm308_vm2, %v407_v10  ;;  %v10370_v10 = vld [vmem:[%s14785_s3 + $0x48] sm:$0xf0] }
 0x3e3   :  { %v10373_v11 = vor.u32 %v13701_v9, %v10370_v10  ;;  %v10402_v9 = vld [vmem:[%s14785_s3 + $0x68] sm:$0xf0] }
 0x3f4   :  { %609 = vrot.lane.b32.xlu1 %v14971_v33, %s14739_s13 }
 0x44e   :  { %v600_v12 = vpop.xlane.xlu1 %599 }
 0x44f   :  { %v601_v13 = vsub.f32 %v595_v6, %v600_v12  ;;  %v13709_v6 = vld [vmem:[%s14785_s3 + $0x44] sm:$0xf0] }
 0x451   :  { %v602_v14 = vmul.f32 1.442695, %v601_v13  ;;  %v10440_v13 = vld [vmem:[%s14785_s3 + $0x90] sm:$0xf] }
 0x453   :  { %14558 = vpow2.f32 %v602_v14  ;;  %v13726_v14 = vld [vmem:[%s14785_s3 + $0xcc] sm:$0xf0] }
 0x459   :  { %v14559_v15 = vpop.eup %14558 }
 0x45a   :  { %v604_v16 = vsel %vm308_vm2, %v14559_v15, 0.0 }
 0x45b   :  { %605 = vadd.xlane.f32.xlu0 %v604_v16 }
 0x465   :  { %v432_v17 = vpop.f32.mrf.mxu3 }
 0x466   :  { %v610_v18 = vpop.permute.xlu1 %609  ;;  %10348 = vmatmul.msk.f32.vlgmr.msra.gmra.mxu0 %vm308_vm2, %v432_v17  ;;  %v10441_v17 = vor.u32 %v13726_v14, %v10440_v13  ;;  %v10472_v14 = vld [vmem:[%s14785_s3 + $0xb0] sm:$0xf] }
 0x467   :  { %630 = vmatpush.msrb.mxu2 %v610_v18  ;;  %1198 = vmatpush.bf16.msra.mxu0 %v10425_v55  ;;  %v10442_v18 = vld [vmem:[%s14785_s3 + $0xd0] sm:$0xf0]  ;;  %v13720_v55 = vld [vmem:[%s14785_s3 + $0xa4] sm:$0xf] }
 0x469   :  { %1224 = vmatpush.bf16.msra.mxu2 %v10433_v60  ;;  %v13721_v60 = vld [vmem:[%s14785_s3 + $0xac] sm:$0xf] }
 0x46f   :  { %520 = vrot.lane.b32.xlu0 %v14971_v33, %s14738_s9 }
 0x4ce   :  { %v606_v19 = vpop.xlane.xlu0 %605 }
 0x4cf   :  { %14560 = vrcp.f32 %v606_v19  ;;  %v10448_v19 = vld [vmem:[%s14785_s3 + $0x98] sm:$0xf] }
 0x4d0   :  { %14562 = vrcp.f32 %v517_v5  ;;  %v10368_v5 = vld [vmem:[%s14785_s3 + $0x8] sm:$0xf] }
 0x4d1   :  { %14564 = vrcp.f32 %v14740_v40  ;;  %v10369_v8 = vor.u32 %v13709_v6, %v10368_v5  ;;  %v10394_v5 = vld [vmem:[%s14785_s3 + $0x60] sm:$0xf0]  ;;  %v10400_v6 = vld [vmem:[%s14785_s3 + $0x28] sm:$0xf] }
 0x4d3   :  { %1225 = vmatpush.bf16.msra.mxu2 %v10369_v8  ;;  %v13705_v8 = vld [vmem:[%s14785_s3 + $0x2c] sm:$0xf] }
 0x4d4   :  { %v10405_v13 = vor.u32 %v13705_v8, %v10402_v9  ;;  %v13779_v8 = vld [vmem:[%s14795_s14 + $0x178] sm:$0xff]  ;;  %v13748_v9 = vld [vmem:[%s14795_s14 + $0x80] sm:$0xff] }
 0x4d5   :  { %v14561_v20 = vpop.eup %14560 }
 0x4d6   :  { %v608_v21 = vmul.f32 %v14561_v20, %v14559_v15  ;;  %v14563_v22 = vpop.eup %14562  ;;  %v13718_v15 = vld [vmem:[%s14785_s3 + $0x94] sm:$0xf]  ;;  %v13727_v20 = vld [vmem:[%s14785_s3 + $0xd4] sm:$0xf0] }
 0x4d7   :  { %v519_v23 = vmul.f32 %v14563_v22, %v14555_v0  ;;  %v14565_v41 = vpop.eup %14564  ;;  %v10360_v0 = vld [vmem:[%s14785_s3] sm:$0xf]  ;;  %v10449_v22 = vor.u32 %v13727_v20, %v10448_v19  ;;  %v13731_v19 = vld [vmem:[%s14785_s3 + $0xf4] sm:$0xf0]  ;;  %v13723_v20 = vld [vmem:[%s14785_s3 + $0xbc] sm:$0xf] }
 0x4d8   :  { %10356 = vmatmul.msk.f32.vlgmr.msrb.gmra.mxu2 %vm308_vm2, %v608_v21  ;;  %v670_v42 = vmul.f32 32.0, %v14565_v41  ;;  %vm674_vm3 = vweird.f32 %v14565_v41  ;;  %v10445_v21 = vor.u32 %v13718_v15, %v10442_v18  ;;  %v13730_v15 = vld [vmem:[%s14785_s3 + $0xec] sm:$0xf0]  ;;  %v10480_v18 = vld [vmem:[%s14785_s3 + $0xb8] sm:$0xf] }
 0x4d9   :  { %1276 = vmatpush.bf16.msrb.mxu2 %v10449_v22  ;;  %v10473_v22 = vor.u32 %v13730_v15, %v10472_v14  ;;  %v13778_v14 = vld [vmem:[%s14795_s14 + $0x170] sm:$0xff] }
 0x4da   :  { %v671_v43 = vsub.f32 1.0, %v670_v42  ;;  %1263 = vmatpush.bf16.msrb.mxu1 %v10445_v21  ;;  %v10482_v21 = vld [vmem:[%s14785_s3 + $0xf8] sm:$0xf0]  ;;  %v13786_v15 = vld [vmem:[%s14795_s14 + $0x1b0] sm:$0xff] }
 0x4dc   :  { %v672_v44 = vmul.f32 %v14565_v41, %v671_v43 }
 0x4de   :  { %v673_v45 = vadd.f32 %v14565_v41, %v672_v44 }
 0x4e0   :  { %v15017_v46 = vsel %vm674_vm3, %v14565_v41, %v673_v45 }
 0x4e1   :  { %v521_v24 = vpop.permute.xlu0 %520 }
 0x4e2   :  { %541 = vmatpush.msra.mxu3 %v521_v24  ;;  %v10450_v24 = vld [vmem:[%s14785_s3 + $0xd8] sm:$0xf0] }
 0x4e3   :  { %10352 = vmatmul.msk.f32.vlgmr.msra.gmra.mxu3 %vm308_vm2, %v519_v23  ;;  %v455_v30 = vpop.f32.mrf.mxu0  ;;  %v13719_v23 = vld [vmem:[%s14785_s3 + $0x9c] sm:$0xf] }
 0x4e4   :  { %653 = vmatpush.msrb.mxu3 %v204_v25  ;;  %v479_v31 = vadd.f32 %v478_v3, %v455_v30  ;;  %v10361_v3 = vor.u32 %v13708_v1, %v10360_v0  ;;  %v10376_v25 = vld [vmem:[%s14785_s3 + $0x10] sm:$0xf]  ;;  %v13702_v30 = vld [vmem:[%s14785_s3 + $0x14] sm:$0xf]  ;;  %v10392_v0 = vld [vmem:[%s14785_s3 + $0x20] sm:$0xf] }
 0x4e5   :  { %v13712_v1 = vld [vmem:[%s14785_s3 + $0x5c] sm:$0xf0] }
 0x4e6   :  { %1237 = vmatpush.bf16.msra.mxu3 %v10437_v63  ;;  %1199 = vmatpush.bf16.msra.mxu0 %v10361_v3  ;;  %v10461_v63 = vor.u32 %v13720_v55, %v10458_v56  ;;  %v10469_v3 = vor.u32 %v13721_v60, %v10466_v61  ;;  %v10393_v10 = vor.u32 %v13712_v1, %v10392_v0  ;;  %v13752_v55 = vld [vmem:[%s14795_s14 + $0xa0] sm:$0xff]  ;;  %v13751_v60 = vld [vmem:[%s14795_s14 + $0x98] sm:$0xff]  ;;  %v13750_v0 = vld [vmem:[%s14795_s14 + $0x90] sm:$0xff] }
 0x4e7   :  { %v13760_v56 = vld [vmem:[%s14795_s14 + $0xe0] sm:$0xff]  ;;  %v13759_v61 = vld [vmem:[%s14795_s14 + $0xd8] sm:$0xff]  ;;  %v13758_v1 = vld [vmem:[%s14795_s14 + $0xd0] sm:$0xff] }
 0x4ea   :  { %1238 = vmatpush.bf16.msra.mxu3 %v10373_v11  ;;  %v10397_v11 = vor.u32 %v13704_v4, %v10394_v5  ;;  %v13757_v4 = vld [vmem:[%s14795_s14 + $0xc8] sm:$0xff]  ;;  %v13732_v5 = vld [vmem:[%s14795_s14] sm:$0xff] }
 0x55b   :  { %v632_v28 = vpop.f32.mrf.mxu2 }
 0x55c   :  { %10357 = vmatmul.msk.f32.vlgmr.msrb.gmra.mxu3 %vm308_vm2, %v632_v28  ;;  %v10453_v28 = vor.u32 %v13719_v23, %v10450_v24  ;;  %v10408_v24 = vld [vmem:[%s14785_s3 + $0x30] sm:$0xf] }
 0x55e   :  { %1289 = vmatpush.bf16.msrb.mxu3 %v10453_v28  ;;  %v10485_v28 = vor.u32 %v13723_v20, %v10482_v21  ;;  %v13793_v20 = vld [vmem:[%s14795_s14 + $0x1e8] sm:$0xff]  ;;  %v13768_v21 = vld [vmem:[%s14795_s14 + $0x120] sm:$0xff] }
 0x566   :  { %v543_v29 = vpop.f32.mrf.mxu3 }
 0x567   :  { %10353 = vmatmul.msk.f32.vlgmr.msrb.gmra.mxu0 %vm308_vm2, %v543_v29  ;;  %v13710_v29 = vld [vmem:[%s14785_s3 + $0x4c] sm:$0xf0] }
 0x568   :  { %1250 = vmatpush.bf16.msrb.mxu0 %v10441_v17  ;;  %v10474_v17 = vld [vmem:[%s14785_s3 + $0xf0] sm:$0xf0] }
 0x5df   :  { %v655_v35 = vpop.f32.mrf.mxu3 }
 0x5e4   :  { %v566_v32 = vpop.f32.mrf.mxu0 }
 0x5e5   :  { %v569_v33 = vadd.f32 %v566_v32, %v479_v31  ;;  %v10377_v31 = vor.u32 %v13710_v29, %v10376_v25  ;;  %v10378_v32 = vld [vmem:[%s14785_s3 + $0x50] sm:$0xf0]  ;;  %v13714_v25 = vld [vmem:[%s14785_s3 + $0x6c] sm:$0xf0] }
 0x5e6   :  { %v13706_v29 = vld [vmem:[%s14785_s3 + $0x34] sm:$0xf] }
 0x5e7   :  { %v658_v36 = vadd.f32 %v655_v35, %v569_v33  ;;  %v10384_v33 = vld [vmem:[%s14785_s3 + $0x18] sm:$0xf]  ;;  %v10381_v35 = vor.u32 %v13702_v30, %v10378_v32  ;;  %1251 = vmatpush.bf16.msrb.mxu0 %v10377_v31  ;;  %v10410_v30 = vld [vmem:[%s14785_s3 + $0x70] sm:$0xf0] }
 0x5e8   :  { %v10416_v31 = vld [vmem:[%s14785_s3 + $0x38] sm:$0xf] }
 0x5e9   :  { %v662_v37 = vadd.f32 %v14508_v34, %v658_v36  ;;  %v13711_v34 = vld [vmem:[%s14785_s3 + $0x54] sm:$0xf0]  ;;  %1264 = vmatpush.bf16.msrb.mxu1 %v10381_v35  ;;  %v10409_v35 = vor.u32 %v13714_v25, %v10408_v24  ;;  %v13792_v24 = vld [vmem:[%s14795_s14 + $0x1e0] sm:$0xff] }
 0x5ea   :  { %v10385_v36 = vor.u32 %v13711_v34, %v10384_v33  ;;  %v13715_v32 = vld [vmem:[%s14785_s3 + $0x74] sm:$0xf0]  ;;  %v13707_v33 = vld [vmem:[%s14785_s3 + $0x3c] sm:$0xf] }
 0x5eb   :  { %v663_v38 = vadd.f32 %v662_v37, %v14963_v26  ;;  %v13703_v37 = vld [vmem:[%s14785_s3 + $0x1c] sm:$0xf] }
 0x5ec   :  { %1277 = vmatpush.bf16.msrb.mxu2 %v10385_v36  ;;  %v10418_v34 = vld [vmem:[%s14785_s3 + $0x78] sm:$0xf0]  ;;  %v10413_v36 = vor.u32 %v13706_v29, %v10410_v30  ;;  %v13774_v29 = vld [vmem:[%s14795_s14 + $0x150] sm:$0xff] }
 0x5ed   :  { %v666_v39 = vsel %vm209_vm1, %v663_v38, 0.0  ;;  %v13767_v25 = vld [vmem:[%s14795_s14 + $0x118] sm:$0xff] }
 0x5ee   :  { %667 = vadd.xlane.f32.xlu2 %v666_v39  ;;  %v13783_v30 = vld [vmem:[%s14795_s14 + $0x198] sm:$0xff] }
 0x661   :  { %v668_v47 = vpop.xlane.xlu2 %667 }
 0x662   :  { %v676_v48 = vmul.f32 %v15017_v46, %v668_v47  ;;  %v14509_v47 = vld [vmem:[%s14805_s24] ss:$0 sm:$0xff] }
 0x664   :  { %v15020_v49 = vsub.f32 %v663_v38, %v676_v48  ;;  %v10386_v38 = vld [vmem:[%s14785_s3 + $0x58] sm:$0xf0] }
 0x665   :  { %v10389_v39 = vor.u32 %v13703_v37, %v10386_v38  ;;  %v10417_v37 = vor.u32 %v13715_v32, %v10416_v31  ;;  %v10421_v38 = vor.u32 %v13707_v33, %v10418_v34  ;;  %v13791_v31 = vld [vmem:[%s14795_s14 + $0x1d8] sm:$0xff]  ;;  %v13765_v32 = vld [vmem:[%s14795_s14 + $0x108] sm:$0xff]  ;;  %v13782_v34 = vld [vmem:[%s14795_s14 + $0x190] sm:$0xff] }
 0x666   :  { %v678_v50 = vmul.f32 %v15020_v49, %v15020_v49  ;;  %v13773_v33 = vld [vmem:[%s14795_s14 + $0x148] sm:$0xff] }
 0x667   :  { %1290 = vmatpush.bf16.msrb.mxu3 %v10389_v39  ;;  %v13739_v39 = vld [vmem:[%s14795_s14 + $0x38] sm:$0xff] }
 0x668   :  { %v679_v51 = vsel %vm209_vm1, %v678_v50, 0.0  ;;  %v14510_v50 = vld [vmem:[%s14810_s30] ss:$0 sm:$0xff] }
 0x669   :  { %680 = vadd.xlane.f32.xlu0 %v679_v51 }
 0x6dc   :  { %v681_v12 = vpop.xlane.xlu0 %680 }
 0x6dd   :  { %v682_v16 = vmul.f32 %v681_v12, %v15017_v46  ;;  %v10401_v12 = vor.u32 %v13713_v7, %v10400_v6  ;;  %v13740_v6 = vld [vmem:[%s14795_s14 + $0x40] sm:$0xff]  ;;  %v13771_v7 = vld [vmem:[%s14795_s14 + $0x138] sm:$0xff] }
 0x6df   :  { %v683_v27 = vadd.f32 1e-05, %v682_v16  ;;  %v13722_v16 = vld [vmem:[%s14785_s3 + $0xb4] sm:$0xf] }
 0x6e0   :  { %v10477_v23 = vor.u32 %v13722_v16, %v10474_v17  ;;  %v13794_v16 = vld [vmem:[%s14795_s14 + $0x1f0] sm:$0xff]  ;;  %v13769_v17 = vld [vmem:[%s14795_s14 + $0x128] sm:$0xff] }
 0x6e1   :  { %14566 = vrsqrt.f32 %v683_v27  ;;  %vm690_vm5 = vweird.f32 %v683_v27 }
 0x6e7   :  { %v14567_v40 = vpop.eup %14566 }
 0x6e8   :  { %v685_v41 = vmul.f32 %v14567_v40, %v683_v27  ;;  %vm691_vm4 = vweird.f32 %v14567_v40  ;;  %v10481_v27 = vor.u32 %v13731_v19, %v10480_v18  ;;  %v13777_v18 = vld [vmem:[%s14795_s14 + $0x168] sm:$0xff] }
 0x6e9   :  { %vm692_vm6 = vmor %vm690_vm5, %vm691_vm4  ;;  %v13785_v19 = vld [vmem:[%s14795_s14 + $0x1a8] sm:$0xff] }
 0x6ea   :  { %v686_v42 = vmul.f32 %v14567_v40, %v685_v41  ;;  %v13755_v41 = vld [vmem:[%s14795_s14 + $0xb8] sm:$0xff] }
 0x6ec   :  { %v687_v43 = vmul.f32 0.5, %v686_v42  ;;  %v13763_v42 = vld [vmem:[%s14795_s14 + $0xf8] sm:$0xff] }
 0x6ee   :  { %v688_v44 = vsub.f32 1.5, %v687_v43  ;;  %v13738_v43 = vld [vmem:[%s14795_s14 + $0x30] sm:$0xff] }
 0x6f0   :  { %v689_v45 = vmul.f32 %v14567_v40, %v688_v44  ;;  %v13746_v44 = vld [vmem:[%s14795_s14 + $0x70] sm:$0xff] }
 0x6f2   :  { %v693_v48 = vsel %vm692_vm6, %v14567_v40, %v689_v45  ;;  %v13747_v40 = vld [vmem:[%s14795_s14 + $0x78] sm:$0xff]  ;;  %v13754_v45 = vld [vmem:[%s14795_s14 + $0xb0] sm:$0xff] }
 0x6f3   :  { %v694_v51 = vmul.f32 %v693_v48, %v15020_v49  ;;  %v13737_v48 = vld [vmem:[%s14795_s14 + $0x28] sm:$0xff] }
 0x6f5   :  { %v698_v52 = vmul.f32 %v14509_v47, %v694_v51  ;;  %v13762_v47 = vld [vmem:[%s14795_s14 + $0xf0] sm:$0xff]  ;;  %v13753_v51 = vld [vmem:[%s14795_s14 + $0xa8] sm:$0xff] }
 0x6f7   :  { %v15066_v58 = vadd.f32 %v14510_v50, %v698_v52  ;;  %v13745_v50 = vld [vmem:[%s14795_s14 + $0x68] sm:$0xff] }
 0x6f8   :  { %v13761_v52 = vld [vmem:[%s14795_s14 + $0xe8] sm:$0xff] }
 0x6f9   :  { %v15073_v49 = vpack.c.bf16 %v15066_v58, %v15066_v58 }
 0x6fb   :  { %10486 = vmatmul.msk.bf16.vlgmr.msra.gmra.mxu0 %vm209_vm1, %v15073_v49  ;;  %10487 = vmatmul.msk.bf16.vlgmr.msra.gmra.mxu1 %vm209_vm1, %v15073_v49 }
 0x6fc   :  { %10488 = vmatmul.msk.bf16.vlgmr.msra.gmra.mxu2 %vm209_vm1, %v15073_v49  ;;  %10489 = vmatmul.msk.bf16.vlgmr.msra.gmra.mxu3 %vm209_vm1, %v15073_v49 }
 0x6fd   :  { %1302 = vmatpush.bf16.msra.mxu0 %v10457_v62  ;;  %1315 = vmatpush.bf16.msra.mxu1 %v10461_v63  ;;  %v13734_v62 = vld [vmem:[%s14795_s14 + $0x10] sm:$0xff] }
 0x6fe   :  { %1328 = vmatpush.bf16.msra.mxu2 %v10465_v2  ;;  %1341 = vmatpush.bf16.msra.mxu3 %v10469_v3  ;;  %v13742_v63 = vld [vmem:[%s14795_s14 + $0x50] sm:$0xff]  ;;  %v13733_v2 = vld [vmem:[%s14795_s14 + $0x8] sm:$0xff] }
 0x6ff   :  { %v13749_v3 = vld [vmem:[%s14795_s14 + $0x88] sm:$0xff] }
 0x701   :  { %1303 = vmatpush.bf16.msra.mxu0 %v10393_v10  ;;  %1316 = vmatpush.bf16.msra.mxu1 %v10397_v11  ;;  %v13756_v10 = vld [vmem:[%s14795_s14 + $0xc0] sm:$0xff]  ;;  %v13787_v11 = vld [vmem:[%s14795_s14 + $0x1b8] sm:$0xff] }
 0x702   :  { %1329 = vmatpush.bf16.msra.mxu2 %v10401_v12  ;;  %1342 = vmatpush.bf16.msra.mxu3 %v10405_v13  ;;  %v13795_v12 = vld [vmem:[%s14795_s14 + $0x1f8] sm:$0xff]  ;;  %v13770_v13 = vld [vmem:[%s14795_s14 + $0x130] sm:$0xff] }
 0x70b   :  { %10490 = vmatmul.msk.bf16.vlgmr.msrb.gmra.mxu0 %vm209_vm1, %v15073_v49  ;;  %10491 = vmatmul.msk.bf16.vlgmr.msrb.gmra.mxu1 %vm209_vm1, %v15073_v49 }
 0x70c   :  { %10492 = vmatmul.msk.bf16.vlgmr.msrb.gmra.mxu2 %vm209_vm1, %v15073_v49  ;;  %10493 = vmatmul.msk.bf16.vlgmr.msrb.gmra.mxu3 %vm209_vm1, %v15073_v49 }
 0x70d   :  { %1354 = vmatpush.bf16.msrb.mxu0 %v10473_v22  ;;  %1367 = vmatpush.bf16.msrb.mxu1 %v10477_v23  ;;  %v13776_v22 = vld [vmem:[%s14795_s14 + $0x160] sm:$0xff] }
 0x70e   :  { %1380 = vmatpush.bf16.msrb.mxu2 %v10481_v27  ;;  %1393 = vmatpush.bf16.msrb.mxu3 %v10485_v28  ;;  %v13784_v23 = vld [vmem:[%s14795_s14 + $0x1a0] sm:$0xff]  ;;  %v13775_v27 = vld [vmem:[%s14795_s14 + $0x158] sm:$0xff]  ;;  %v13766_v28 = vld [vmem:[%s14795_s14 + $0x110] sm:$0xff] }
 0x711   :  { %1355 = vmatpush.bf16.msrb.mxu0 %v10409_v35  ;;  %1368 = vmatpush.bf16.msrb.mxu1 %v10413_v36  ;;  %v13790_v35 = vld [vmem:[%s14795_s14 + $0x1d0] sm:$0xff]  ;;  %v13764_v36 = vld [vmem:[%s14795_s14 + $0x100] sm:$0xff] }
 0x712   :  { %1381 = vmatpush.bf16.msrb.mxu2 %v10417_v37  ;;  %1394 = vmatpush.bf16.msrb.mxu3 %v10421_v38  ;;  %v13772_v37 = vld [vmem:[%s14795_s14 + $0x140] sm:$0xff]  ;;  %v13781_v38 = vld [vmem:[%s14795_s14 + $0x188] sm:$0xff] }
 0x71b   :  { %10494 = vmatmul.msk.bf16.vlgmr.msra.gmra.mxu0 %vm209_vm1, %v15073_v49  ;;  %10495 = vmatmul.msk.bf16.vlgmr.msra.gmra.mxu1 %vm209_vm1, %v15073_v49 }
 0x71c   :  { %10496 = vmatmul.msk.bf16.vlgmr.msra.gmra.mxu2 %vm209_vm1, %v15073_v49  ;;  %10497 = vmatmul.msk.bf16.vlgmr.msra.gmra.mxu3 %vm209_vm1, %v15073_v49 }
 0x71d   :  { %2203 = vmatpush.bf16.msra.mxu0 %v13739_v39  ;;  %2216 = vmatpush.bf16.msra.mxu1 %v13747_v40  ;;  %v13789_v39 = vld [vmem:[%s14795_s14 + $0x1c8] sm:$0xff]  ;;  %v13780_v40 = vld [vmem:[%s14795_s14 + $0x180] sm:$0xff] }
 0x71e   :  { %2229 = vmatpush.bf16.msra.mxu2 %v13755_v41  ;;  %2242 = vmatpush.bf16.msra.mxu3 %v13763_v42  ;;  %v13788_v41 = vld [vmem:[%s14795_s14 + $0x1c0] sm:$0xff] }
 0x71f   :  { %v15196_v42 = vld [vmem:[%s14790_s8] sm:$0xff] }
 0x721   :  { %2204 = vmatpush.bf16.msra.mxu0 %v13738_v43  ;;  %2217 = vmatpush.bf16.msra.mxu1 %v13746_v44  ;;  %v997_v43 = vperm.slane %v15196_v42, 0  ;;  %v998_v44 = vperm.slane %v15196_v42, 1 }
 0x722   :  { %2230 = vmatpush.bf16.msra.mxu2 %v13754_v45  ;;  %2243 = vmatpush.bf16.msra.mxu3 %v13762_v47 }
 0x725   :  { %2205 = vmatpush.bf16.msra.mxu0 %v13737_v48  ;;  %2218 = vmatpush.bf16.msra.mxu1 %v13745_v50 }
 0x726   :  { %2231 = vmatpush.bf16.msra.mxu2 %v13753_v51  ;;  %2244 = vmatpush.bf16.msra.mxu3 %v13761_v52 }
 0x729   :  { %2206 = vmatpush.bf16.msra.mxu0 %v13736_v53  ;;  %2219 = vmatpush.bf16.msra.mxu1 %v13744_v54  ;;  %v999_v53 = vperm.slane %v15196_v42, 2  ;;  %v1000_v54 = vperm.slane %v15196_v42, 3 }
 0x72a   :  { %2232 = vmatpush.bf16.msra.mxu2 %v13752_v55  ;;  %2245 = vmatpush.bf16.msra.mxu3 %v13760_v56  ;;  %v13803_v55 = vld [vmem:[%s14795_s14 + $0x238] sm:$0xff] }
 0x72b   :  { %10498 = vmatmul.msk.bf16.vlgmr.msrb.gmra.mxu0 %vm209_vm1, %v15073_v49  ;;  %10499 = vmatmul.msk.bf16.vlgmr.msrb.gmra.mxu1 %vm209_vm1, %v15073_v49  ;;  %v13811_v56 = vld [vmem:[%s14795_s14 + $0x278] sm:$0xff] }
 0x72c   :  { %10500 = vmatmul.msk.bf16.vlgmr.msrb.gmra.mxu2 %vm209_vm1, %v15073_v49  ;;  %10501 = vmatmul.msk.bf16.vlgmr.msrb.gmra.mxu3 %vm209_vm1, %v15073_v49  ;;  %v13741_v49 = vld [vmem:[%s14795_s14 + $0x48] sm:$0xff] }
 0x72d   :  { %2207 = vmatpush.bf16.msra.mxu0 %v13735_v57  ;;  %2220 = vmatpush.bf16.msra.mxu1 %v13743_v59 }
 0x72e   :  { %2233 = vmatpush.bf16.msra.mxu2 %v13751_v60  ;;  %2246 = vmatpush.bf16.msra.mxu3 %v13759_v61 }
 0x731   :  { %2208 = vmatpush.bf16.msra.mxu0 %v13734_v62  ;;  %2221 = vmatpush.bf16.msra.mxu1 %v13742_v63 }
 0x732   :  { %2234 = vmatpush.bf16.msra.mxu2 %v13750_v0  ;;  %2247 = vmatpush.bf16.msra.mxu3 %v13758_v1 }
 0x735   :  { %2209 = vmatpush.bf16.msra.mxu0 %v13733_v2  ;;  %2222 = vmatpush.bf16.msra.mxu1 %v13741_v49  ;;  %v13802_v2 = vld [vmem:[%s14795_s14 + $0x230] sm:$0xff] }
 0x736   :  { %2235 = vmatpush.bf16.msra.mxu2 %v13749_v3  ;;  %2248 = vmatpush.bf16.msra.mxu3 %v13757_v4  ;;  %v13810_v49 = vld [vmem:[%s14795_s14 + $0x270] sm:$0xff] }
 0x739   :  { %2210 = vmatpush.bf16.msra.mxu0 %v13732_v5  ;;  %2223 = vmatpush.bf16.msra.mxu1 %v13740_v6  ;;  %v13819_v5 = vld [vmem:[%s14795_s14 + $0x2b8] sm:$0xff] }
 0x73a   :  { %2236 = vmatpush.bf16.msra.mxu2 %v13748_v9  ;;  %2249 = vmatpush.bf16.msra.mxu3 %v13756_v10  ;;  %v13827_v6 = vld [vmem:[%s14795_s14 + $0x2f8] sm:$0xff]  ;;  %v13801_v9 = vld [vmem:[%s14795_s14 + $0x228] sm:$0xff] }
 0x73b   :  { %v13809_v10 = vld [vmem:[%s14795_s14 + $0x268] sm:$0xff] }
 0x73d   :  { %2255 = vmatpush.bf16.msrb.mxu0 %v13771_v7  ;;  %2268 = vmatpush.bf16.msrb.mxu1 %v13779_v8 }
 0x73e   :  { %2281 = vmatpush.bf16.msrb.mxu2 %v13787_v11  ;;  %2294 = vmatpush.bf16.msrb.mxu3 %v13795_v12  ;;  %v1001_v11 = vperm.slane %v15196_v42, 4  ;;  %v1002_v12 = vperm.slane %v15196_v42, 5 }
 0x741   :  { %2256 = vmatpush.bf16.msrb.mxu0 %v13770_v13  ;;  %2269 = vmatpush.bf16.msrb.mxu1 %v13778_v14 }
 0x742   :  { %2282 = vmatpush.bf16.msrb.mxu2 %v13786_v15  ;;  %2295 = vmatpush.bf16.msrb.mxu3 %v13794_v16  ;;  %v13818_v15 = vld [vmem:[%s14795_s14 + $0x2b0] sm:$0xff] }
 0x743   :  { %v13826_v16 = vld [vmem:[%s14795_s14 + $0x2f0] sm:$0xff] }
 0x745   :  { %2257 = vmatpush.bf16.msrb.mxu0 %v13769_v17  ;;  %2270 = vmatpush.bf16.msrb.mxu1 %v13777_v18 }
 0x746   :  { %2283 = vmatpush.bf16.msrb.mxu2 %v13785_v19  ;;  %2296 = vmatpush.bf16.msrb.mxu3 %v13793_v20  ;;  %v13800_v19 = vld [vmem:[%s14795_s14 + $0x220] sm:$0xff] }
 0x747   :  { %v13808_v20 = vld [vmem:[%s14795_s14 + $0x260] sm:$0xff] }
 0x749   :  { %2258 = vmatpush.bf16.msrb.mxu0 %v13768_v21  ;;  %2271 = vmatpush.bf16.msrb.mxu1 %v13776_v22 }
 0x74a   :  { %2284 = vmatpush.bf16.msrb.mxu2 %v13784_v23  ;;  %2297 = vmatpush.bf16.msrb.mxu3 %v13792_v24 }
 0x74d   :  { %2259 = vmatpush.bf16.msrb.mxu0 %v13767_v25  ;;  %2272 = vmatpush.bf16.msrb.mxu1 %v13775_v27  ;;  %v13817_v25 = vld [vmem:[%s14795_s14 + $0x2a8] sm:$0xff] }
 0x74e   :  { %2285 = vmatpush.bf16.msrb.mxu2 %v13783_v30  ;;  %2298 = vmatpush.bf16.msrb.mxu3 %v13791_v31  ;;  %v13825_v27 = vld [vmem:[%s14795_s14 + $0x2e8] sm:$0xff] }
 0x751   :  { %2260 = vmatpush.bf16.msrb.mxu0 %v13766_v28  ;;  %2273 = vmatpush.bf16.msrb.mxu1 %v13774_v29  ;;  %v1003_v28 = vperm.slane %v15196_v42, 6  ;;  %v1004_v29 = vperm.slane %v15196_v42, 7  ;;  %v13798_v42 = vld [vmem:[%s14795_s14 + $0x210] sm:$0xff] }
 0x752   :  { %2286 = vmatpush.bf16.msrb.mxu2 %v13782_v34  ;;  %2299 = vmatpush.bf16.msrb.mxu3 %v13790_v35 }
 0x755   :  { %2261 = vmatpush.bf16.msrb.mxu0 %v13765_v32  ;;  %2274 = vmatpush.bf16.msrb.mxu1 %v13773_v33  ;;  %v13799_v32 = vld [vmem:[%s14795_s14 + $0x218] sm:$0xff] }
 0x756   :  { %2287 = vmatpush.bf16.msrb.mxu2 %v13781_v38  ;;  %2300 = vmatpush.bf16.msrb.mxu3 %v13789_v39  ;;  %v13807_v33 = vld [vmem:[%s14795_s14 + $0x258] sm:$0xff] }
 0x759   :  { %2262 = vmatpush.bf16.msrb.mxu0 %v13764_v36  ;;  %2275 = vmatpush.bf16.msrb.mxu1 %v13772_v37  ;;  %v13816_v36 = vld [vmem:[%s14795_s14 + $0x2a0] sm:$0xff] }
 0x75a   :  { %2288 = vmatpush.bf16.msrb.mxu2 %v13780_v40  ;;  %2301 = vmatpush.bf16.msrb.mxu3 %v13788_v41  ;;  %v13824_v37 = vld [vmem:[%s14795_s14 + $0x2e0] sm:$0xff] }
 0x778   :  { %v1201_v45 = vpop.f32.mrf.mxu0  ;;  %v1214_v47 = vpop.f32.mrf.mxu1 }
 0x779   :  { %v1202_v48 = vadd.f32 %v1201_v45, %v997_v43  ;;  %v1215_v50 = vadd.f32 %v1214_v47, %v998_v44  ;;  %v13806_v43 = vld [vmem:[%s14795_s14 + $0x250] sm:$0xff]  ;;  %v15227_v47 = vld [vmem:[%s14790_s8 + $0x8] sm:$0xff] }
 0x77b   :  { %v1400_v51 = vmax.f32 %v1202_v48, 0.0  ;;  %v1401_v52 = vmax.f32 %v1215_v50, 0.0  ;;  %v13815_v48 = vld [vmem:[%s14795_s14 + $0x298] sm:$0xff] }
 0x77c   :  { %v13823_v50 = vld [vmem:[%s14795_s14 + $0x2d8] sm:$0xff] }
 0x77d   :  { %v1416_v57 = vpack.c.bf16 %v1400_v51, %v1400_v51  ;;  %v1417_v59 = vpack.c.bf16 %v1401_v52, %v1401_v52 }
 0x77f   :  { %v1227_v60 = vpop.f32.mrf.mxu2  ;;  %v1240_v61 = vpop.f32.mrf.mxu3  ;;  %2211 = vmatmul.bf16.vlgmr.msra.gmra.mxu0 %v1416_v57  ;;  %2224 = vmatmul.bf16.vlgmr.msra.gmra.mxu1 %v1417_v59 }
 0x780   :  { %v1228_v62 = vadd.f32 %v1227_v60, %v999_v53  ;;  %v1241_v63 = vadd.f32 %v1240_v61, %v1000_v54  ;;  %2307 = vmatpush.bf16.msra.mxu0 %v13803_v55  ;;  %2320 = vmatpush.bf16.msra.mxu1 %v13811_v56  ;;  %v1203_v0 = vpop.f32.mrf.mxu0  ;;  %v1216_v1 = vpop.f32.mrf.mxu1  ;;  %v13797_v53 = vld [vmem:[%s14795_s14 + $0x208] sm:$0xff]  ;;  %v1005_v55 = vperm.slane %v15227_v47, 0  ;;  %v1006_v56 = vperm.slane %v15227_v47, 1  ;;  %v13814_v60 = vld [vmem:[%s14795_s14 + $0x290] sm:$0xff] }
 0x781   :  { %v13805_v54 = vld [vmem:[%s14795_s14 + $0x248] sm:$0xff]  ;;  %v13822_v61 = vld [vmem:[%s14795_s14 + $0x2d0] sm:$0xff] }
 0x782   :  { %v1402_v3 = vmax.f32 %v1228_v62, 0.0  ;;  %v1403_v4 = vmax.f32 %v1241_v63, 0.0 }
 0x784   :  { %v1418_v7 = vpack.c.bf16 %v1402_v3, %v1402_v3  ;;  %v1419_v8 = vpack.c.bf16 %v1403_v4, %v1403_v4  ;;  %2308 = vmatpush.bf16.msra.mxu0 %v13802_v2  ;;  %2321 = vmatpush.bf16.msra.mxu1 %v13810_v49  ;;  %v13796_v2 = vld [vmem:[%s14795_s14 + $0x200] sm:$0xff]  ;;  %v13835_v3 = vld [vmem:[%s14795_s14 + $0x338] sm:$0xff] }
 0x785   :  { %v13804_v49 = vld [vmem:[%s14795_s14 + $0x240] sm:$0xff]  ;;  %v13843_v4 = vld [vmem:[%s14795_s14 + $0x378] sm:$0xff] }
 0x786   :  { %2237 = vmatmul.bf16.vlgmr.msra.gmra.mxu2 %v1418_v7  ;;  %2250 = vmatmul.bf16.vlgmr.msra.gmra.mxu3 %v1419_v8  ;;  %v13813_v7 = vld [vmem:[%s14795_s14 + $0x288] sm:$0xff] }
 0x787   :  { %2333 = vmatpush.bf16.msra.mxu2 %v13819_v5  ;;  %2346 = vmatpush.bf16.msra.mxu3 %v13827_v6  ;;  %v1229_v13 = vpop.f32.mrf.mxu2  ;;  %v1242_v14 = vpop.f32.mrf.mxu3  ;;  %v13821_v8 = vld [vmem:[%s14795_s14 + $0x2c8] sm:$0xff] }
 0x788   :  { %2309 = vmatpush.bf16.msra.mxu0 %v13801_v9  ;;  %2322 = vmatpush.bf16.msra.mxu1 %v13809_v10  ;;  %v1253_v17 = vpop.f32.mrf.mxu0  ;;  %v1266_v18 = vpop.f32.mrf.mxu1  ;;  %v1007_v9 = vperm.slane %v15227_v47, 2  ;;  %v1008_v10 = vperm.slane %v15227_v47, 3  ;;  %v13834_v13 = vld [vmem:[%s14795_s14 + $0x330] sm:$0xff] }
 0x789   :  { %v1254_v21 = vadd.f32 %v1253_v17, %v1001_v11  ;;  %v1267_v22 = vadd.f32 %v1266_v18, %v1002_v12  ;;  %v13842_v14 = vld [vmem:[%s14795_s14 + $0x370] sm:$0xff]  ;;  %v13812_v17 = vld [vmem:[%s14795_s14 + $0x280] sm:$0xff] }
 0x78a   :  { %v13820_v18 = vld [vmem:[%s14795_s14 + $0x2c0] sm:$0xff] }
 0x78b   :  { %v1404_v23 = vmax.f32 %v1254_v21, 0.0  ;;  %v1405_v24 = vmax.f32 %v1267_v22, 0.0  ;;  %2334 = vmatpush.bf16.msra.mxu2 %v13818_v15  ;;  %2347 = vmatpush.bf16.msra.mxu3 %v13826_v16 }
 0x78c   :  { %2310 = vmatpush.bf16.msra.mxu0 %v13800_v19  ;;  %2323 = vmatpush.bf16.msra.mxu1 %v13808_v20 }
 0x78d   :  { %v1420_v30 = vpack.c.bf16 %v1404_v23, %v1404_v23  ;;  %v1421_v31 = vpack.c.bf16 %v1405_v24, %v1405_v24  ;;  %v13851_v23 = vld [vmem:[%s14795_s14 + $0x3b8] sm:$0xff] }
 0x78e   :  { %v13859_v24 = vld [vmem:[%s14795_s14 + $0x3f8] sm:$0xff] }
 0x78f   :  { %2335 = vmatpush.bf16.msra.mxu2 %v13817_v25  ;;  %2348 = vmatpush.bf16.msra.mxu3 %v13825_v27  ;;  %v1279_v34 = vpop.f32.mrf.mxu2  ;;  %v1292_v35 = vpop.f32.mrf.mxu3 }
 0x790   :  { %v1280_v38 = vadd.f32 %v1279_v34, %v1003_v28  ;;  %v1293_v39 = vadd.f32 %v1292_v35, %v1004_v29  ;;  %2263 = vmatmul.bf16.vlgmr.msrb.gmra.mxu0 %v1420_v30  ;;  %2276 = vmatmul.bf16.vlgmr.msrb.gmra.mxu1 %v1421_v31  ;;  %v1255_v40 = vpop.f32.mrf.mxu0  ;;  %v1268_v41 = vpop.f32.mrf.mxu1  ;;  %v13833_v28 = vld [vmem:[%s14795_s14 + $0x328] sm:$0xff]  ;;  %v13832_v34 = vld [vmem:[%s14795_s14 + $0x320] sm:$0xff] }
 0x791   :  { %2311 = vmatpush.bf16.msra.mxu0 %v13799_v32  ;;  %2324 = vmatpush.bf16.msra.mxu1 %v13807_v33  ;;  %v13841_v29 = vld [vmem:[%s14795_s14 + $0x368] sm:$0xff]  ;;  %v13850_v32 = vld [vmem:[%s14795_s14 + $0x3b0] sm:$0xff]  ;;  %v13840_v35 = vld [vmem:[%s14795_s14 + $0x360] sm:$0xff] }
 0x792   :  { %v1406_v44 = vmax.f32 %v1280_v38, 0.0  ;;  %v1407_v45 = vmax.f32 %v1293_v39, 0.0  ;;  %v13858_v33 = vld [vmem:[%s14795_s14 + $0x3f0] sm:$0xff]  ;;  %v13849_v40 = vld [vmem:[%s14795_s14 + $0x3a8] sm:$0xff] }
 0x793   :  { %2336 = vmatpush.bf16.msra.mxu2 %v13816_v36  ;;  %2349 = vmatpush.bf16.msra.mxu3 %v13824_v37  ;;  %v13857_v41 = vld [vmem:[%s14795_s14 + $0x3e8] sm:$0xff] }
 0x794   :  { %v1422_v51 = vpack.c.bf16 %v1406_v44, %v1406_v44  ;;  %v1423_v52 = vpack.c.bf16 %v1407_v45, %v1407_v45  ;;  %v13848_v44 = vld [vmem:[%s14795_s14 + $0x3a0] sm:$0xff] }
 0x795   :  { %2312 = vmatpush.bf16.msra.mxu0 %v13798_v42  ;;  %2325 = vmatpush.bf16.msra.mxu1 %v13806_v43  ;;  %v13831_v42 = vld [vmem:[%s14795_s14 + $0x318] sm:$0xff]  ;;  %v13856_v45 = vld [vmem:[%s14795_s14 + $0x3e0] sm:$0xff] }
 0x796   :  { %2289 = vmatmul.bf16.vlgmr.msrb.gmra.mxu2 %v1422_v51  ;;  %2302 = vmatmul.bf16.vlgmr.msrb.gmra.mxu3 %v1423_v52  ;;  %v13839_v43 = vld [vmem:[%s14795_s14 + $0x358] sm:$0xff]  ;;  %v1009_v51 = vperm.slane %v15227_v47, 4  ;;  %v1010_v52 = vperm.slane %v15227_v47, 5 }
 0x797   :  { %2337 = vmatpush.bf16.msra.mxu2 %v13815_v48  ;;  %2350 = vmatpush.bf16.msra.mxu3 %v13823_v50  ;;  %v1281_v57 = vpop.f32.mrf.mxu2  ;;  %v1294_v59 = vpop.f32.mrf.mxu3  ;;  %v13830_v48 = vld [vmem:[%s14795_s14 + $0x310] sm:$0xff] }
 0x798   :  { %v1305_v62 = vpop.f32.mrf.mxu0  ;;  %v1318_v63 = vpop.f32.mrf.mxu1  ;;  %v13838_v50 = vld [vmem:[%s14795_s14 + $0x350] sm:$0xff]  ;;  %v13847_v57 = vld [vmem:[%s14795_s14 + $0x398] sm:$0xff] }
 0x799   :  { %2313 = vmatpush.bf16.msra.mxu0 %v13797_v53  ;;  %2326 = vmatpush.bf16.msra.mxu1 %v13805_v54  ;;  %v1306_v0 = vadd.f32 %v1305_v62, %v1005_v55  ;;  %v1319_v1 = vadd.f32 %v1318_v63, %v1006_v56  ;;  %v13855_v59 = vld [vmem:[%s14795_s14 + $0x3d8] sm:$0xff] }
 0x79b   :  { %v1408_v5 = vmax.f32 %v1306_v0, 0.0  ;;  %v1409_v6 = vmax.f32 %v1319_v1, 0.0  ;;  %2338 = vmatpush.bf16.msra.mxu2 %v13814_v60  ;;  %2351 = vmatpush.bf16.msra.mxu3 %v13822_v61  ;;  %v13829_v60 = vld [vmem:[%s14795_s14 + $0x308] sm:$0xff]  ;;  %v13846_v0 = vld [vmem:[%s14795_s14 + $0x390] sm:$0xff] }
 0x79c   :  { %v13837_v61 = vld [vmem:[%s14795_s14 + $0x348] sm:$0xff]  ;;  %v13854_v1 = vld [vmem:[%s14795_s14 + $0x3d0] sm:$0xff] }
 0x79d   :  { %v1424_v11 = vpack.c.bf16 %v1408_v5, %v1408_v5  ;;  %v1425_v12 = vpack.c.bf16 %v1409_v6, %v1409_v6  ;;  %2314 = vmatpush.bf16.msra.mxu0 %v13796_v2  ;;  %2327 = vmatpush.bf16.msra.mxu1 %v13804_v49  ;;  %v1011_v2 = vperm.slane %v15227_v47, 6  ;;  %v1012_v49 = vperm.slane %v15227_v47, 7 }
 0x79f   :  { %2339 = vmatpush.bf16.msra.mxu2 %v13813_v7  ;;  %2352 = vmatpush.bf16.msra.mxu3 %v13821_v8  ;;  %v1331_v15 = vpop.f32.mrf.mxu2  ;;  %v1344_v16 = vpop.f32.mrf.mxu3 }
 0x7a0   :  { %v1332_v19 = vadd.f32 %v1331_v15, %v1007_v9  ;;  %v1345_v20 = vadd.f32 %v1344_v16, %v1008_v10  ;;  %2315 = vmatmul.bf16.vlgmr.msra.gmra.mxu0 %v1424_v11  ;;  %2328 = vmatmul.bf16.vlgmr.msra.gmra.mxu1 %v1425_v12  ;;  %v1307_v21 = vpop.f32.mrf.mxu0  ;;  %v1320_v22 = vpop.f32.mrf.mxu1  ;;  %v13845_v9 = vld [vmem:[%s14795_s14 + $0x388] sm:$0xff]  ;;  %v13852_v15 = vld [vmem:[%s14795_s14 + $0x3c0] sm:$0xff] }
 0x7a1   :  { %2359 = vmatpush.bf16.msrb.mxu0 %v13835_v3  ;;  %2372 = vmatpush.bf16.msrb.mxu1 %v13843_v4  ;;  %v13828_v3 = vld [vmem:[%s14795_s14 + $0x300] sm:$0xff]  ;;  %v13853_v10 = vld [vmem:[%s14795_s14 + $0x3c8] sm:$0xff] }
 0x7a2   :  { %v1410_v25 = vmax.f32 %v1332_v19, 0.0  ;;  %v1411_v27 = vmax.f32 %v1345_v20, 0.0  ;;  %v13836_v4 = vld [vmem:[%s14795_s14 + $0x340] sm:$0xff] }
 0x7a3   :  { %2340 = vmatpush.bf16.msra.mxu2 %v13812_v17  ;;  %2353 = vmatpush.bf16.msra.mxu3 %v13820_v18 }
 0x7a4   :  { %v1426_v30 = vpack.c.bf16 %v1410_v25, %v1410_v25  ;;  %v1427_v31 = vpack.c.bf16 %v1411_v27, %v1411_v27 }
 0x7a5   :  { %2360 = vmatpush.bf16.msrb.mxu0 %v13834_v13  ;;  %2373 = vmatpush.bf16.msrb.mxu1 %v13842_v14  ;;  %v13844_v14 = vld [vmem:[%s14795_s14 + $0x380] sm:$0xff] }
 0x7a6   :  { %2341 = vmatmul.bf16.vlgmr.msra.gmra.mxu2 %v1426_v30  ;;  %2354 = vmatmul.bf16.vlgmr.msra.gmra.mxu3 %v1427_v31  ;;  %v14511_v31 = vld [vmem:[%s14800_s19] ss:$0 sm:$0xff] }
 0x7a7   :  { %2385 = vmatpush.bf16.msrb.mxu2 %v13851_v23  ;;  %2398 = vmatpush.bf16.msrb.mxu3 %v13859_v24  ;;  %v1333_v36 = vpop.f32.mrf.mxu2  ;;  %v1346_v37 = vpop.f32.mrf.mxu3 }
 0x7a8   :  { %v1357_v38 = vpop.f32.mrf.mxu0  ;;  %v1370_v39 = vpop.f32.mrf.mxu1 }
 0x7a9   :  { %2361 = vmatpush.bf16.msrb.mxu0 %v13833_v28  ;;  %2374 = vmatpush.bf16.msrb.mxu1 %v13841_v29  ;;  %v1358_v62 = vadd.f32 %v1357_v38, %v1009_v51  ;;  %v1371_v63 = vadd.f32 %v1370_v39, %v1010_v52 }
 0x7ab   :  { %2386 = vmatpush.bf16.msrb.mxu2 %v13850_v32  ;;  %2399 = vmatpush.bf16.msrb.mxu3 %v13858_v33  ;;  %v1412_v5 = vmax.f32 %v1358_v62, 0.0  ;;  %v1413_v6 = vmax.f32 %v1371_v63, 0.0 }
 0x7ad   :  { %2362 = vmatpush.bf16.msrb.mxu0 %v13832_v34  ;;  %2375 = vmatpush.bf16.msrb.mxu1 %v13840_v35  ;;  %v1428_v13 = vpack.c.bf16 %v1412_v5, %v1412_v5  ;;  %v1429_v47 = vpack.c.bf16 %v1413_v6, %v1413_v6 }
 0x7af   :  { %2387 = vmatpush.bf16.msrb.mxu2 %v13849_v40  ;;  %2400 = vmatpush.bf16.msrb.mxu3 %v13857_v41  ;;  %v1383_v53 = vpop.f32.mrf.mxu2  ;;  %v1396_v54 = vpop.f32.mrf.mxu3 }
 0x7b0   :  { %v1359_v55 = vpop.f32.mrf.mxu0  ;;  %v1372_v56 = vpop.f32.mrf.mxu1  ;;  %v1384_v11 = vadd.f32 %v1383_v53, %v1011_v2  ;;  %v1397_v12 = vadd.f32 %v1396_v54, %v1012_v49 }
 0x7b1   :  { %2363 = vmatpush.bf16.msrb.mxu0 %v13831_v42  ;;  %2376 = vmatpush.bf16.msrb.mxu1 %v13839_v43 }
 0x7b2   :  { %v1414_v16 = vmax.f32 %v1384_v11, 0.0  ;;  %v1415_v17 = vmax.f32 %v1397_v12, 0.0  ;;  %v11016_v11 = vld [vmem:[%s14765_s17 + $0x30] sm:$0xff]  ;;  %v11017_v12 = vld [vmem:[%s14765_s17 + $0x38] sm:$0xff] }
 0x7b3   :  { %2388 = vmatpush.bf16.msrb.mxu2 %v13848_v44  ;;  %2401 = vmatpush.bf16.msrb.mxu3 %v13856_v45 }
 0x7b4   :  { %v1430_v18 = vpack.c.bf16 %v1414_v16, %v1414_v16  ;;  %v1431_v19 = vpack.c.bf16 %v1415_v17, %v1415_v17 }
 0x7b5   :  { %2364 = vmatpush.bf16.msrb.mxu0 %v13830_v48  ;;  %2377 = vmatpush.bf16.msrb.mxu1 %v13838_v50 }
 0x7b7   :  { %2389 = vmatpush.bf16.msrb.mxu2 %v13847_v57  ;;  %2402 = vmatpush.bf16.msrb.mxu3 %v13855_v59  ;;  %v1385_v7 = vpop.f32.mrf.mxu2  ;;  %v1398_v8 = vpop.f32.mrf.mxu3 }
 0x7b9   :  { %2365 = vmatpush.bf16.msrb.mxu0 %v13829_v60  ;;  %2378 = vmatpush.bf16.msrb.mxu1 %v13837_v61 }
 0x7bb   :  { %2390 = vmatpush.bf16.msrb.mxu2 %v13846_v0  ;;  %2403 = vmatpush.bf16.msrb.mxu3 %v13854_v1 }
 0x7bd   :  { %2366 = vmatpush.bf16.msrb.mxu0 %v13828_v3  ;;  %2379 = vmatpush.bf16.msrb.mxu1 %v13836_v4 }
 0x7bf   :  { %2391 = vmatpush.bf16.msrb.mxu2 %v13845_v9  ;;  %2404 = vmatpush.bf16.msrb.mxu3 %v13853_v10 }
 0x7c0   :  { %2367 = vmatmul.bf16.vlgmr.msrb.gmra.mxu0 %v1428_v13  ;;  %2380 = vmatmul.bf16.vlgmr.msrb.gmra.mxu1 %v1429_v47  ;;  %v14406_v13 = vpack.i.bf16 %v11016_v11, %v11017_v12  ;;  %v11015_v47 = vld [vmem:[%s14765_s17 + $0x28] sm:$0xff] }
 0x7c1   :  { %2476 = vmatpush.msra.mxu0 %v11017_v12 }
 0x7c2   :  { %14407 = vrot.lane.b32.xlu1 %v14406_v13, %s14735_s22 }
 0x7c3   :  { %2392 = vmatpush.bf16.msrb.mxu2 %v13844_v14  ;;  %2405 = vmatpush.bf16.msrb.mxu3 %v13852_v15  ;;  %v14512_v14 = vld [vmem:[%s14770_s21 + $0x1] ss:$0 sm:$0xff]  ;;  %s16541_s21 = sld [smem:[#allocation8_spill]] }
 0x7c4   :  { %2477 = vmatpush.msra.mxu0 %v11016_v11  ;;  %v11014_v15 = vld [vmem:[%s14765_s17 + $0x20] sm:$0xff]  ;;  %s16540_s17 = sld [smem:[#allocation5_spill]] }
 0x7c6   :  { %2393 = vmatmul.bf16.vlgmr.msrb.gmra.mxu2 %v1430_v18  ;;  %2406 = vmatmul.bf16.vlgmr.msrb.gmra.mxu3 %v1431_v19 }
 0x7c7   :  { %2478 = vmatpush.msra.mxu0 %v11015_v47 }
 0x7c9   :  { %2479 = vmatpush.msra.mxu0 %v11014_v15 }
 0x7ca   :  { %2500 = vrot.lane.b32.xlu1 %v14512_v14, %s14735_s22 }
 0x7d2   :  { %14417 = vrot.lane.b32.xlu1 %v14406_v13, %s14736_s0 }
 0x7fc   :  { %v2212_v20 = vpop.f32.mrf.mxu0  ;;  %v2225_v21 = vpop.f32.mrf.mxu1 }
 0x7fd   :  { %v2213_v34 = vadd.f32 %v14511_v31, %v2212_v20 }
 0x7ff   :  { %v2226_v37 = vadd.f32 %v2225_v21, %v2213_v34 }
 0x804   :  { %v2214_v22 = vpop.f32.mrf.mxu0  ;;  %v2227_v23 = vpop.f32.mrf.mxu1 }
 0x809   :  { %v2238_v24 = vpop.f32.mrf.mxu2  ;;  %v2251_v25 = vpop.f32.mrf.mxu3 }
 0x80a   :  { %v2239_v40 = vadd.f32 %v2238_v24, %v2226_v37 }
 0x80c   :  { %v2252_v43 = vadd.f32 %v2251_v25, %v2239_v40 }
 0x80d   :  { %v2264_v27 = vpop.f32.mrf.mxu0  ;;  %v2277_v28 = vpop.f32.mrf.mxu1 }
 0x80e   :  { %v2265_v48 = vadd.f32 %v2264_v27, %v2252_v43 }
 0x810   :  { %v2278_v52 = vadd.f32 %v2277_v28, %v2265_v48 }
 0x811   :  { %v2240_v29 = vpop.f32.mrf.mxu2  ;;  %v2253_v30 = vpop.f32.mrf.mxu3 }
 0x815   :  { %v2266_v32 = vpop.f32.mrf.mxu0  ;;  %v2279_v33 = vpop.f32.mrf.mxu1 }
 0x819   :  { %v2290_v35 = vpop.f32.mrf.mxu2  ;;  %v2303_v36 = vpop.f32.mrf.mxu3 }
 0x81a   :  { %v2291_v53 = vadd.f32 %v2290_v35, %v2278_v52 }
 0x81c   :  { %v2304_v54 = vadd.f32 %v2303_v36, %v2291_v53 }
 0x81d   :  { %v2316_v38 = vpop.f32.mrf.mxu0  ;;  %v2329_v39 = vpop.f32.mrf.mxu1 }
 0x81e   :  { %v2317_v57 = vadd.f32 %v2316_v38, %v2304_v54 }
 0x820   :  { %v2330_v59 = vadd.f32 %v2329_v39, %v2317_v57 }
 0x821   :  { %v2292_v41 = vpop.f32.mrf.mxu2  ;;  %v2305_v42 = vpop.f32.mrf.mxu3 }
 0x825   :  { %v2318_v44 = vpop.f32.mrf.mxu0  ;;  %v2331_v45 = vpop.f32.mrf.mxu1 }
 0x826   :  { %v14513_v44 = vld [vmem:[%s14815_s6] ss:$0 sm:$0xff] }
 0x829   :  { %v2342_v50 = vpop.f32.mrf.mxu2  ;;  %v2355_v51 = vpop.f32.mrf.mxu3 }
 0x82a   :  { %v2343_v62 = vadd.f32 %v2342_v50, %v2330_v59  ;;  %v14514_v50 = vld [vmem:[%s16540_s17] ss:$0 sm:$0xff] }
 0x82c   :  { %v2356_v63 = vadd.f32 %v2355_v51, %v2343_v62 }
 0x831   :  { %v2344_v55 = vpop.f32.mrf.mxu2  ;;  %v2357_v56 = vpop.f32.mrf.mxu3 }
 0x834   :  { %v14408_v21 = vpop.permute.xlu1 %14407 }
 0x835   :  { %v14410_v22 = vunpack.i.h.bf16 %v14408_v21  ;;  %v14409_v23 = vunpack.i.l.bf16 %v14408_v21 }
 0x837   :  { %2515 = vmatpush.msra.mxu1 %v14409_v23 }
 0x839   :  { %2516 = vmatpush.msra.mxu1 %v14410_v22 }
 0x83c   :  { %v2501_v24 = vpop.permute.xlu1 %2500 }
 0x83d   :  { %v2368_v60 = vpop.f32.mrf.mxu0  ;;  %v2381_v61 = vpop.f32.mrf.mxu1 }
 0x83e   :  { %v2369_v0 = vadd.f32 %v2368_v60, %v2356_v63 }
 0x840   :  { %v2382_v49 = vadd.f32 %v2381_v61, %v2369_v0 }
 0x844   :  { %v14418_v25 = vpop.permute.xlu1 %14417 }
 0x845   :  { %v2370_v1 = vpop.f32.mrf.mxu0  ;;  %v2383_v2 = vpop.f32.mrf.mxu1  ;;  %v14419_v27 = vunpack.i.l.bf16 %v14418_v25  ;;  %v14420_v28 = vunpack.i.h.bf16 %v14418_v25 }
 0x847   :  { %2550 = vmatpush.msra.mxu2 %v14419_v27 }
 0x849   :  { %v2394_v3 = vpop.f32.mrf.mxu2  ;;  %v2407_v4 = vpop.f32.mrf.mxu3  ;;  %2551 = vmatpush.msra.mxu2 %v14420_v28 }
 0x84a   :  { %v2395_v5 = vadd.f32 %v2394_v3, %v2382_v49 }
 0x84c   :  { %v2408_v6 = vadd.f32 %v2407_v4, %v2395_v5 }
 0x84e   :  { %v2411_v7 = vadd.f32 %v2408_v6, %v15066_v58  ;;  %v14421_v58 = vpack.i.bf16 %v11014_v15, %v11015_v47 }
 0x850   :  { %v2414_v8 = vsel %vm209_vm1, %v2411_v7, 0.0  ;;  %14422 = vrot.lane.b32.xlu1 %v14421_v58, %s14736_s0 }
 0x851   :  { %v2396_v9 = vpop.f32.mrf.mxu2  ;;  %v2409_v10 = vpop.f32.mrf.mxu3  ;;  %2415 = vadd.xlane.f32.xlu2 %v2414_v8  ;;  %v11019_v8 = vld [vmem:[%s14775_s25 + $0x20] sm:$0xff] }
 0x858   :  { %2535 = vrot.lane.b32.xlu1 %v14512_v14, %s14736_s0 }
 0x8c2   :  { %v14423_v29 = vpop.permute.xlu1 %14422 }
 0x8c3   :  { %v14424_v30 = vunpack.i.l.bf16 %v14423_v29  ;;  %v14425_v31 = vunpack.i.h.bf16 %v14423_v29 }
 0x8c4   :  { %v2416_v16 = vpop.xlane.xlu2 %2415 }
 0x8c5   :  { %v2417_v17 = vmul.f32 %v2416_v16, %v15017_v46  ;;  %2552 = vmatpush.msra.mxu2 %v14424_v30 }
 0x8c7   :  { %v2418_v18 = vsub.f32 %v2411_v7, %v2417_v17  ;;  %2553 = vmatpush.msra.mxu2 %v14425_v31 }
 0x8c9   :  { %v2419_v19 = vmul.f32 %v2418_v18, %v2418_v18 }
 0x8ca   :  { %v2536_v59 = vpop.permute.xlu1 %2535 }
 0x8cb   :  { %v2420_v20 = vsel %vm209_vm1, %v2419_v19, 0.0 }
 0x8cc   :  { %2421 = vadd.xlane.f32.xlu2 %v2420_v20 }
 0x8e4   :  { %14412 = vrot.lane.b32.xlu2 %v14421_v58, %s14735_s22 }
 0x93f   :  { %v2422_v32 = vpop.xlane.xlu2 %2421 }
 0x940   :  { %v2423_v33 = vmul.f32 %v2422_v32, %v15017_v46 }
 0x942   :  { %v2424_v34 = vadd.f32 1e-05, %v2423_v33 }
 0x944   :  { %14568 = vrsqrt.f32 %v2424_v34  ;;  %vm2431_vm8 = vweird.f32 %v2424_v34 }
 0x947   :  { %v14413_v35 = vpop.permute.xlu2 %14412 }
 0x948   :  { %v14415_v36 = vunpack.i.h.bf16 %v14413_v35  ;;  %v14414_v37 = vunpack.i.l.bf16 %v14413_v35 }
 0x94a   :  { %v14569_v38 = vpop.eup %14568  ;;  %2517 = vmatpush.msra.mxu1 %v14414_v37 }
 0x94b   :  { %v2426_v39 = vmul.f32 %v14569_v38, %v2424_v34  ;;  %vm2432_vm7 = vweird.f32 %v14569_v38 }
 0x94c   :  { %2518 = vmatpush.msra.mxu1 %v14415_v36  ;;  %vm2433_vm9 = vmor %vm2431_vm8, %vm2432_vm7 }
 0x94d   :  { %v2427_v40 = vmul.f32 %v14569_v38, %v2426_v39 }
 0x94f   :  { %v2428_v41 = vmul.f32 0.5, %v2427_v40 }
 0x951   :  { %v2429_v42 = vsub.f32 1.5, %v2428_v41 }
 0x953   :  { %v2430_v43 = vmul.f32 %v14569_v38, %v2429_v42 }
 0x955   :  { %v2434_v45 = vsel %vm2433_vm9, %v14569_v38, %v2430_v43 }
 0x956   :  { %v2435_v48 = vmul.f32 %v2434_v45, %v2418_v18  ;;  %v11021_v45 = vld [vmem:[%s14775_s25 + $0x30] sm:$0xff] }
 0x958   :  { %v2439_v51 = vmul.f32 %v14513_v44, %v2435_v48  ;;  %v11020_v44 = vld [vmem:[%s14775_s25 + $0x28] sm:$0xff] }
 0x95a   :  { %v15300_v52 = vadd.f32 %v14514_v50, %v2439_v51 }
 0x95c   :  { %11024 = vmatmul.msk.f32.vlgmr.msra.gmra.mxu0 %vm209_vm1, %v15300_v52  ;;  %11025 = vmatmul.msk.f32.vlgmr.msra.gmra.mxu1 %vm209_vm1, %v15300_v52 }
 0x95d   :  { %11026 = vmatmul.msk.f32.vlgmr.msra.gmra.mxu2 %vm209_vm1, %v15300_v52 }
 0x9d9   :  { %v2481_v53 = vpop.f32.mrf.mxu0  ;;  %v2520_v54 = vpop.f32.mrf.mxu1 }
 0x9da   :  { %v2482_v55 = vadd.f32 %v14512_v14, %v2481_v53  ;;  %v2521_v56 = vadd.f32 %v2520_v54, %v2501_v24 }
 0x9dc   :  { %v2558_v57 = vmul.f32 0.35355338, %v2482_v55  ;;  %11027 = vmatpush.xpose.msk.msra.mxu3 %vm308_vm2, %v2521_v56 }
 0x9de   :  { %2619 = vrot.lane.b32.xlu1 %v2558_v57, %s14737_s5 }
 0x9df   :  { %11028 = vmatmul.msk.f32.vlgmr.msra.gmra.mxu3 %vm308_vm2, %v2558_v57 }
 0x9e0   :  { %v2555_v60 = vpop.f32.mrf.mxu2  ;;  %2703 = vmatpush.msrb.mxu3 %v11020_v44  ;;  %v11354_v44 = vld [vmem:[%s14785_s3 + $0x110] sm:$0xf] }
 0x9e1   :  { %v15311_v61 = vadd.f32 %v2555_v60, %v2536_v59 }
 0x9e2   :  { %2814 = vmatpush.msra.mxu3 %v11021_v45 }
 0x9e3   :  { %2614 = vmatpush.msrb.mxu0 %v15311_v61 }
 0x9e5   :  { %2726 = vmatpush.msra.mxu0 %v11019_v8 }
 0x9e6   :  { %2733 = vrot.lane.b32.xlu1 %v2521_v56, %s14738_s9 }
 0x9ee   :  { %2731 = vrot.lane.b32.xlu1 %v2558_v57, %s14738_s9 }
 0x9f6   :  { %2820 = vrot.lane.b32.xlu1 %v2558_v57, %s14739_s13 }
 0xa50   :  { %v2620_v49 = vpop.permute.xlu1 %2619 }
 0xa58   :  { %v2734_v6 = vpop.permute.xlu1 %2733 }
 0xa60   :  { %v2732_v7 = vpop.permute.xlu1 %2731 }
 0xa62   :  { %v2582_v62 = vpop.f32.mrf.mxu3 }
 0xa63   :  { %v2585_v63 = vsel %vm308_vm2, %v2582_v62, -inf }
 0xa64   :  { %2586 = vmax.xlane.f32.xlu0 %v2585_v63  ;;  %v14515_v63 = vld [vmem:[%s14780_s29 + $0x1] ss:$0 sm:$0xff]  ;;  %s16543_s29 = sld [smem:[#allocation10_spill]] }
 0xa68   :  { %v2821_v19 = vpop.permute.xlu1 %2820 }
 0xa78   :  { %2621 = vrot.lane.b32.xlu0 %v2521_v56, %s14737_s5 }
 0xa80   :  { %2822 = vrot.lane.b32.xlu0 %v2521_v56, %s14739_s13  ;;  %v11022_v56 = vld [vmem:[%s14775_s25 + $0x38] sm:$0xff]  ;;  %s16542_s25 = sld [smem:[#allocation9_spill]] }
 0xad7   :  { %v2587_v0 = vpop.xlane.xlu0 %2586 }
 0xad8   :  { %v2588_v1 = vsub.f32 %v2582_v62, %v2587_v0 }
 0xada   :  { %v2589_v2 = vmul.f32 1.442695, %v2588_v1 }
 0xadc   :  { %14570 = vpow2.f32 %v2589_v2 }
 0xae2   :  { %v14571_v3 = vpop.eup %14570 }
 0xae3   :  { %v2591_v4 = vsel %vm308_vm2, %v14571_v3, 0.0 }
 0xae4   :  { %2592 = vadd.xlane.f32.xlu2 %v2591_v4 }
 0xaea   :  { %v2622_v5 = vpop.permute.xlu0 %2621 }
 0xaeb   :  { %11030 = vmatpush.xpose.msk.msrb.mxu1 %vm308_vm2, %v2622_v5 }
 0xaee   :  { %11031 = vmatmul.msk.f32.vlgmr.msrb.gmra.mxu1 %vm308_vm2, %v2620_v49 }
 0xaef   :  { %11035 = vmatpush.xpose.msk.msra.mxu1 %vm308_vm2, %v2734_v6 }
 0xaf2   :  { %v2823_v12 = vpop.permute.xlu0 %2822 }
 0xaf6   :  { %11036 = vmatmul.msk.f32.vlgmr.msra.gmra.mxu1 %vm308_vm2, %v2732_v7 }
 0xb57   :  { %v2593_v9 = vpop.xlane.xlu2 %2592 }
 0xb58   :  { %14572 = vrcp.f32 %v2593_v9  ;;  %v11402_v9 = vld [vmem:[%s14785_s3 + $0x180] sm:$0xf] }
 0xb5e   :  { %v14573_v10 = vpop.eup %14572 }
 0xb5f   :  { %v2595_v11 = vmul.f32 %v14573_v10, %v14571_v3  ;;  %v13876_v10 = vld [vmem:[%s14785_s3 + $0x184] sm:$0xf] }
 0xb61   :  { %11029 = vmatmul.msk.f32.vlgmr.msrb.gmra.mxu0 %vm308_vm2, %v2595_v11 }
 0xb62   :  { %11039 = vmatpush.xpose.msk.msrb.mxu0 %vm308_vm2, %v2823_v12  ;;  %v11404_v12 = vld [vmem:[%s14785_s3 + $0x1c0] sm:$0xf0] }
 0xb6b   :  { %v2644_v13 = vpop.f32.mrf.mxu1 }
 0xb6c   :  { %v2647_v47 = vsel %vm308_vm2, %v2644_v13, -inf }
 0xb6d   :  { %2648 = vmax.xlane.f32.xlu0 %v2647_v47  ;;  %v13885_v47 = vld [vmem:[%s14785_s3 + $0x1c4] sm:$0xf0] }
 0xb73   :  { %v2756_v14 = vpop.f32.mrf.mxu1 }
 0xb74   :  { %v2759_v15 = vsel %vm308_vm2, %v2756_v14, -inf }
 0xb75   :  { %2760 = vmax.xlane.f32.xlu1 %v2759_v15 }
 0xb8e   :  { %2770 = vrot.lane.b32.xlu1 %v15311_v61, %s14738_s9 }
 0xbde   :  { %v2616_v58 = vpop.f32.mrf.mxu0 }
 0xbdf   :  { %11034 = vmatmul.msk.f32.vlgmr.msra.gmra.mxu0 %vm308_vm2, %v2616_v58  ;;  %v13877_v58 = vld [vmem:[%s14785_s3 + $0x18c] sm:$0xf] }
 0xbe0   :  { %v2649_v16 = vpop.xlane.xlu0 %2648 }
 0xbe1   :  { %v2650_v17 = vsub.f32 %v2644_v13, %v2649_v16  ;;  %v11410_v13 = vld [vmem:[%s14785_s3 + $0x188] sm:$0xf]  ;;  %v11412_v16 = vld [vmem:[%s14785_s3 + $0x1c8] sm:$0xf0] }
 0xbe2   :  { %v11411_v15 = vor.u32 %v13885_v47, %v11410_v13  ;;  %v11442_v13 = vld [vmem:[%s14785_s3 + $0x1a8] sm:$0xf] }
 0xbe3   :  { %v2651_v18 = vmul.f32 1.442695, %v2650_v17  ;;  %v11415_v17 = vor.u32 %v13877_v58, %v11412_v16  ;;  %v11444_v58 = vld [vmem:[%s14785_s3 + $0x1e8] sm:$0xf0] }
 0xbe5   :  { %14574 = vpow2.f32 %v2651_v18  ;;  %v11338_v18 = vld [vmem:[%s14785_s3 + $0x100] sm:$0xf] }
 0xbe7   :  { %11040 = vmatmul.msk.f32.vlgmr.msrb.gmra.mxu0 %vm308_vm2, %v2821_v19  ;;  %v13868_v19 = vld [vmem:[%s14785_s3 + $0x13c] sm:$0xf0] }
 0xbe8   :  { %v2761_v22 = vpop.xlane.xlu1 %2760 }
 0xbe9   :  { %v2762_v23 = vsub.f32 %v2756_v14, %v2761_v22  ;;  %v11407_v14 = vor.u32 %v13876_v10, %v11404_v12  ;;  %v11340_v22 = vld [vmem:[%s14785_s3 + $0x140] sm:$0xf0]  ;;  %v13888_v10 = vld [vmem:[%s14785_s3 + $0x1dc] sm:$0xf0] }
 0xbea   :  { %v11436_v12 = vld [vmem:[%s14785_s3 + $0x1e0] sm:$0xf0] }
 0xbeb   :  { %v14575_v20 = vpop.eup %14574  ;;  %v2763_v25 = vmul.f32 1.442695, %v2762_v23  ;;  %3460 = vmatpush.bf16.msra.mxu0 %v11407_v14  ;;  %v11346_v23 = vld [vmem:[%s14785_s3 + $0x108] sm:$0xf] }
 0xbec   :  { %v2653_v21 = vsel %vm308_vm2, %v14575_v20, 0.0  ;;  %v13889_v14 = vld [vmem:[%s14785_s3 + $0x1e4] sm:$0xf0] }
 0xbed   :  { %2654 = vadd.xlane.f32.xlu2 %v2653_v21  ;;  %14576 = vpow2.f32 %v2763_v25  ;;  %v11339_v21 = vor.u32 %v13868_v19, %v11338_v18  ;;  %v11370_v18 = vld [vmem:[%s14785_s3 + $0x120] sm:$0xf] }
 0xbee   :  { %v13872_v19 = vld [vmem:[%s14785_s3 + $0x15c] sm:$0xf0] }
 0xbf3   :  { %v14577_v29 = vpop.eup %14576 }
 0xbf4   :  { %v2765_v30 = vsel %vm308_vm2, %v14577_v29, 0.0 }
 0xc00   :  { %v2771_v41 = vpop.permute.xlu1 %2770 }
 0xc5c   :  { %v2728_v24 = vpop.f32.mrf.mxu0 }
 0xc60   :  { %v2655_v31 = vpop.xlane.xlu2 %2654 }
 0xc64   :  { %v2845_v27 = vpop.f32.mrf.mxu0 }
 0xc65   :  { %v2848_v28 = vsel %vm308_vm2, %v2845_v27, -inf }
 0xc66   :  { %2849 = vmax.xlane.f32.xlu2 %v2848_v28  ;;  %v13861_v28 = vld [vmem:[%s14785_s3 + $0x10c] sm:$0xf] }
 0xc6e   :  { %2766 = vadd.xlane.f32.xlu2 %v2765_v30 }
 0xc86   :  { %2659 = vrot.lane.b32.xlu2 %v15311_v61, %s14737_s5 }
 0xcd9   :  { %v2850_v32 = vpop.xlane.xlu2 %2849 }
 0xcda   :  { %v2851_v33 = vsub.f32 %v2845_v27, %v2850_v32  ;;  %v11418_v32 = vld [vmem:[%s14785_s3 + $0x190] sm:$0xf] }
 0xcdc   :  { %v2852_v34 = vmul.f32 1.442695, %v2851_v33  ;;  %v13886_v33 = vld [vmem:[%s14785_s3 + $0x1cc] sm:$0xf0] }
 0xcde   :  { %14578 = vpow2.f32 %v2852_v34  ;;  %v13878_v34 = vld [vmem:[%s14785_s3 + $0x194] sm:$0xf] }
 0xcdf   :  { %14580 = vrcp.f32 %v2655_v31 }
 0xce1   :  { %v2767_v35 = vpop.xlane.xlu2 %2766 }
 0xce2   :  { %14582 = vrcp.f32 %v2767_v35 }
 0xce4   :  { %v14579_v36 = vpop.eup %14578 }
 0xce5   :  { %v2854_v37 = vsel %vm308_vm2, %v14579_v36, 0.0  ;;  %v14581_v38 = vpop.eup %14580 }
 0xce6   :  { %2855 = vadd.xlane.f32.xlu0 %v2854_v37  ;;  %v2657_v39 = vmul.f32 %v14581_v38, %v14575_v20  ;;  %v13860_v20 = vld [vmem:[%s14785_s3 + $0x104] sm:$0xf]  ;;  %v11420_v37 = vld [vmem:[%s14785_s3 + $0x1d0] sm:$0xf0]  ;;  %v11426_v38 = vld [vmem:[%s14785_s3 + $0x198] sm:$0xf] }
 0xce7   :  { %v11343_v25 = vor.u32 %v13860_v20, %v11340_v22  ;;  %v11443_v20 = vor.u32 %v13889_v14, %v11442_v13  ;;  %v13864_v22 = vld [vmem:[%s14785_s3 + $0x124] sm:$0xf]  ;;  %v13913_v13 = vld [vmem:[%s14795_s14 + $0x4a8] sm:$0xff] }
 0xce8   :  { %v14583_v42 = vpop.eup %14582  ;;  %v13897_v14 = vld [vmem:[%s14795_s14 + $0x428] sm:$0xff] }
 0xce9   :  { %v2660_v40 = vpop.permute.xlu2 %2659  ;;  %v2769_v43 = vmul.f32 %v14583_v42, %v14577_v29  ;;  %v11348_v29 = vld [vmem:[%s14785_s3 + $0x148] sm:$0xf0]  ;;  %3461 = vmatpush.bf16.msra.mxu0 %v11343_v25  ;;  %v13879_v42 = vld [vmem:[%s14785_s3 + $0x19c] sm:$0xf]  ;;  %v13873_v25 = vld [vmem:[%s14785_s3 + $0x164] sm:$0xf0] }
 0xcea   :  { %2680 = vmatpush.msrb.mxu2 %v2660_v40  ;;  %v11351_v30 = vor.u32 %v13861_v28, %v11348_v29  ;;  %v11423_v40 = vor.u32 %v13878_v34, %v11420_v37  ;;  %v11380_v28 = vld [vmem:[%s14785_s3 + $0x168] sm:$0xf0]  ;;  %v11371_v29 = vor.u32 %v13872_v19, %v11370_v18  ;;  %v13890_v34 = vld [vmem:[%s14785_s3 + $0x1ec] sm:$0xf0]  ;;  %v11458_v37 = vld [vmem:[%s14785_s3 + $0x1b8] sm:$0xf] }
 0xceb   :  { %11032 = vmatmul.msk.f32.vlgmr.msrb.gmra.mxu2 %vm308_vm2, %v2657_v39  ;;  %v13887_v39 = vld [vmem:[%s14785_s3 + $0x1d4] sm:$0xf0]  ;;  %v13920_v18 = vld [vmem:[%s14795_s14 + $0x4e0] sm:$0xff] }
 0xcec   :  { %2791 = vmatpush.msra.mxu2 %v2771_v41  ;;  %v11427_v41 = vor.u32 %v13887_v39, %v11426_v38  ;;  %v13891_v38 = vld [vmem:[%s14785_s3 + $0x1f4] sm:$0xf0]  ;;  %v13883_v39 = vld [vmem:[%s14785_s3 + $0x1bc] sm:$0xf] }
 0xced   :  { %3512 = vmatpush.bf16.msrb.mxu0 %v11423_v40  ;;  %v11460_v40 = vld [vmem:[%s14785_s3 + $0x1f8] sm:$0xf0] }
 0xcee   :  { %2903 = vmatpush.msrb.mxu2 %v11022_v56  ;;  %v13871_v56 = vld [vmem:[%s14785_s3 + $0x154] sm:$0xf0] }
 0xcef   :  { %v13903_v19 = vld [vmem:[%s14795_s14 + $0x458] sm:$0xff] }
 0xcf3   :  { %11037 = vmatmul.msk.f32.vlgmr.msra.gmra.mxu2 %vm308_vm2, %v2769_v43  ;;  %v11428_v43 = vld [vmem:[%s14785_s3 + $0x1d8] sm:$0xf0] }
 0xcf4   :  { %3486 = vmatpush.bf16.msra.mxu2 %v11415_v17 }
 0xcf8   :  { %3487 = vmatpush.bf16.msra.mxu2 %v11351_v30 }
 0xcfa   :  { %2859 = vrot.lane.b32.xlu0 %v15311_v61, %s14739_s13 }
 0xd59   :  { %v2856_v48 = vpop.xlane.xlu0 %2855 }
 0xd5a   :  { %14584 = vrcp.f32 %v2856_v48  ;;  %v11431_v48 = vor.u32 %v13879_v42, %v11428_v43  ;;  %v11386_v43 = vld [vmem:[%s14785_s3 + $0x130] sm:$0xf] }
 0xd60   :  { %v14585_v50 = vpop.eup %14584 }
 0xd61   :  { %v2858_v51 = vmul.f32 %v14585_v50, %v14579_v36  ;;  %v11419_v36 = vor.u32 %v13886_v33, %v11418_v32  ;;  %v13870_v50 = vld [vmem:[%s14785_s3 + $0x14c] sm:$0xf0] }
 0xd62   :  { %v11450_v33 = vld [vmem:[%s14785_s3 + $0x1b0] sm:$0xf] }
 0xd6c   :  { %v2860_v53 = vpop.permute.xlu0 %2859 }
 0xd6d   :  { %2880 = vmatpush.msrb.mxu1 %v2860_v53  ;;  %v11355_v53 = vor.u32 %v13870_v50, %v11354_v44  ;;  %v13874_v44 = vld [vmem:[%s14785_s3 + $0x16c] sm:$0xf0]  ;;  %v13866_v50 = vld [vmem:[%s14785_s3 + $0x134] sm:$0xf] }
 0xd6e   :  { %v2682_v54 = vpop.f32.mrf.mxu2  ;;  %11041 = vmatmul.msk.f32.vlgmr.msrb.gmra.mxu1 %vm308_vm2, %v2858_v51  ;;  %v13862_v51 = vld [vmem:[%s14785_s3 + $0x114] sm:$0xf] }
 0xd6f   :  { %11033 = vmatmul.msk.f32.vlgmr.msrb.gmra.mxu3 %vm308_vm2, %v2682_v54  ;;  %3473 = vmatpush.bf16.msra.mxu1 %v11411_v15  ;;  %v11356_v54 = vld [vmem:[%s14785_s3 + $0x150] sm:$0xf0]  ;;  %v13881_v15 = vld [vmem:[%s14785_s3 + $0x1ac] sm:$0xf] }
 0xd76   :  { %v2793_v55 = vpop.f32.mrf.mxu2 }
 0xd77   :  { %11038 = vmatmul.msk.f32.vlgmr.msra.gmra.mxu3 %vm308_vm2, %v2793_v55  ;;  %v11362_v55 = vld [vmem:[%s14785_s3 + $0x118] sm:$0xf] }
 0xdeb   :  { %v2882_v57 = vpop.f32.mrf.mxu1 }
 0xdec   :  { %11042 = vmatmul.msk.f32.vlgmr.msrb.gmra.mxu2 %vm308_vm2, %v2882_v57  ;;  %v11359_v57 = vor.u32 %v13862_v51, %v11356_v54  ;;  %v11388_v51 = vld [vmem:[%s14785_s3 + $0x170] sm:$0xf0]  ;;  %v13875_v54 = vld [vmem:[%s14785_s3 + $0x174] sm:$0xf0] }
 0xded   :  { %3538 = vmatpush.bf16.msrb.mxu2 %v11431_v48  ;;  %v11463_v48 = vor.u32 %v13883_v39, %v11460_v40  ;;  %v13938_v39 = vld [vmem:[%s14795_s14 + $0x570] sm:$0xff] }
 0xdee   :  { %3513 = vmatpush.bf16.msrb.mxu0 %v11359_v57  ;;  %v15451_v57 = vld [vmem:[%s16541_s21 + $0x10] sm:$0xff] }
 0xdef   :  { %v13946_v40 = vld [vmem:[%s14795_s14 + $0x5b0] sm:$0xff] }
 0xdf2   :  { %v2705_v59 = vpop.f32.mrf.mxu3 }
 0xdf3   :  { %v2729_v61 = vadd.f32 %v2728_v24, %v2705_v59  ;;  %v13869_v24 = vld [vmem:[%s14785_s3 + $0x144] sm:$0xf0]  ;;  %v11363_v59 = vor.u32 %v13871_v56, %v11362_v55  ;;  %v13867_v55 = vld [vmem:[%s14785_s3 + $0x13c] sm:$0xf] }
 0xdf4   :  { %v11347_v27 = vor.u32 %v13869_v24, %v11346_v23  ;;  %v11372_v23 = vld [vmem:[%s14785_s3 + $0x160] sm:$0xf0]  ;;  %v11378_v24 = vld [vmem:[%s14785_s3 + $0x128] sm:$0xf]  ;;  %v11396_v56 = vld [vmem:[%s14785_s3 + $0x178] sm:$0xf0] }
 0xdf5   :  { %v11375_v30 = vor.u32 %v13864_v22, %v11372_v23  ;;  %v13919_v22 = vld [vmem:[%s14795_s14 + $0x4d8] sm:$0xff]  ;;  %v13902_v23 = vld [vmem:[%s14795_s14 + $0x450] sm:$0xff] }
 0xdf6   :  { %3474 = vmatpush.bf16.msra.mxu1 %v11347_v27  ;;  %v13865_v27 = vld [vmem:[%s14785_s3 + $0x12c] sm:$0xf] }
 0xdf7   :  { %v11383_v32 = vor.u32 %v13865_v27, %v11380_v28  ;;  %v13918_v27 = vld [vmem:[%s14795_s14 + $0x4d0] sm:$0xff]  ;;  %v13901_v28 = vld [vmem:[%s14795_s14 + $0x448] sm:$0xff] }
 0xdfa   :  { %v2816_v60 = vpop.f32.mrf.mxu3  ;;  %3525 = vmatpush.bf16.msrb.mxu1 %v11427_v41  ;;  %v11451_v41 = vor.u32 %v13890_v34, %v11450_v33  ;;  %v13939_v33 = vld [vmem:[%s14795_s14 + $0x578] sm:$0xff] }
 0xdfb   :  { %v2819_v62 = vadd.f32 %v2816_v60, %v2729_v61  ;;  %v13863_v60 = vld [vmem:[%s14785_s3 + $0x11c] sm:$0xf] }
 0xdfc   :  { %v11364_v61 = vld [vmem:[%s14785_s3 + $0x158] sm:$0xf0] }
 0xdfd   :  { %v13947_v34 = vld [vmem:[%s14795_s14 + $0x5b8] sm:$0xff] }
 0xdfe   :  { %3526 = vmatpush.bf16.msrb.mxu1 %v11363_v59  ;;  %v15454_v59 = vld [vmem:[%s16541_s21 + $0x18] sm:$0xff] }
 0xe6f   :  { %v2905_v0 = vpop.f32.mrf.mxu2 }
 0xe70   :  { %v2908_v1 = vadd.f32 %v2905_v0, %v2819_v62  ;;  %v11367_v62 = vor.u32 %v13863_v60, %v11364_v61  ;;  %v11387_v60 = vor.u32 %v13874_v44, %v11386_v43  ;;  %v11391_v61 = vor.u32 %v13866_v50, %v11388_v51  ;;  %v13937_v43 = vld [vmem:[%s14795_s14 + $0x568] sm:$0xff]  ;;  %v13936_v50 = vld [vmem:[%s14795_s14 + $0x560] sm:$0xff] }
 0xe71   :  { %v13945_v44 = vld [vmem:[%s14795_s14 + $0x5a8] sm:$0xff]  ;;  %v13944_v51 = vld [vmem:[%s14795_s14 + $0x5a0] sm:$0xff] }
 0xe72   :  { %v2912_v2 = vadd.f32 %v14515_v63, %v2908_v1  ;;  %3539 = vmatpush.bf16.msrb.mxu2 %v11367_v62  ;;  %v14426_v62 = vpack.i.bf16 %v15451_v57, %v15454_v59 }
 0xe74   :  { %v2913_v49 = vadd.f32 %v2912_v2, %v15300_v52  ;;  %v13884_v52 = vld [vmem:[%s14785_s3 + $0x1bc] sm:$0xf0]  ;;  %14427 = vrot.lane.b32.xlu1 %v14426_v62, %s14735_s22 }
 0xe75   :  { %v11403_v11 = vor.u32 %v13884_v52, %v11402_v9  ;;  %v11434_v52 = vld [vmem:[%s14785_s3 + $0x1a0] sm:$0xf] }
 0xe76   :  { %v2918_v3 = vsel %vm209_vm1, %v2913_v49, 0.0  ;;  %v11435_v16 = vor.u32 %v13888_v10, %v11434_v52  ;;  %v13914_v52 = vld [vmem:[%s14795_s14 + $0x4b0] sm:$0xff] }
 0xe77   :  { %2919 = vadd.xlane.f32.xlu2 %v2918_v3  ;;  %3447 = vmatpush.bf16.msrb.mxu3 %v11403_v11  ;;  %v13880_v11 = vld [vmem:[%s14785_s3 + $0x1a4] sm:$0xf]  ;;  %v13898_v10 = vld [vmem:[%s14795_s14 + $0x430] sm:$0xff] }
 0xe78   :  { %v11439_v17 = vor.u32 %v13880_v11, %v11436_v12  ;;  %v13922_v11 = vld [vmem:[%s14795_s14 + $0x4f0] sm:$0xff]  ;;  %v13905_v12 = vld [vmem:[%s14795_s14 + $0x468] sm:$0xff] }
 0xe7b   :  { %3448 = vmatpush.bf16.msrb.mxu3 %v11339_v21  ;;  %v11447_v21 = vor.u32 %v13881_v15, %v11444_v58  ;;  %v13921_v15 = vld [vmem:[%s14795_s14 + $0x4e8] sm:$0xff]  ;;  %v13904_v58 = vld [vmem:[%s14795_s14 + $0x460] sm:$0xff] }
 0xe7f   :  { %3499 = vmatpush.bf16.msra.mxu3 %v11419_v36  ;;  %v11452_v36 = vld [vmem:[%s14785_s3 + $0x1f0] sm:$0xf0] }
 0xe83   :  { %3500 = vmatpush.bf16.msra.mxu3 %v11355_v53  ;;  %v11394_v53 = vld [vmem:[%s14785_s3 + $0x138] sm:$0xf] }
 0xe8f   :  { %14437 = vrot.lane.b32.xlu2 %v14426_v62, %s14736_s0  ;;  %v13927_v62 = vld [vmem:[%s14795_s14 + $0x518] sm:$0xff] }
 0xeea   :  { %v2920_v4 = vpop.xlane.xlu2 %2919 }
 0xeeb   :  { %v2921_v5 = vmul.f32 %v2920_v4, %v15017_v46  ;;  %v14516_v4 = vld [vmem:[%s14805_s24 + $0x1] ss:$0 sm:$0xff]  ;;  %s16548_s24 = sld [smem:[#allocation7_spill]] }
 0xeed   :  { %v15355_v6 = vsub.f32 %v2913_v49, %v2921_v5 }
 0xeef   :  { %v2923_v7 = vmul.f32 %v15355_v6, %v15355_v6 }
 0xef1   :  { %v2924_v8 = vsel %vm209_vm1, %v2923_v7, 0.0  ;;  %v14517_v7 = vld [vmem:[%s14810_s30 + $0x1] ss:$0 sm:$0xff]  ;;  %s16549_s30 = sld [smem:[#allocation20_spill]] }
 0xef2   :  { %2925 = vadd.xlane.f32.xlu0 %v2924_v8 }
 0xf65   :  { %v2926_v31 = vpop.xlane.xlu0 %2925 }
 0xf66   :  { %v2927_v35 = vmul.f32 %v2926_v31, %v15017_v46  ;;  %v11379_v31 = vor.u32 %v13873_v25, %v11378_v24  ;;  %v13910_v24 = vld [vmem:[%s14795_s14 + $0x490] sm:$0xff] }
 0xf67   :  { %v13894_v25 = vld [vmem:[%s14795_s14 + $0x410] sm:$0xff] }
 0xf68   :  { %v2928_v45 = vadd.f32 1e-05, %v2927_v35  ;;  %v13882_v35 = vld [vmem:[%s14785_s3 + $0x1b4] sm:$0xf]  ;;  %s16544_s3 = sld [smem:[#allocation11_spill]] }
 0xf69   :  { %v11455_v42 = vor.u32 %v13882_v35, %v11452_v36  ;;  %v13892_v35 = vld [vmem:[%s14795_s14 + $0x400] sm:$0xff] }
 0xf6a   :  { %14586 = vrsqrt.f32 %v2928_v45  ;;  %vm2935_vm11 = vweird.f32 %v2928_v45  ;;  %v13916_v36 = vld [vmem:[%s14795_s14 + $0x4c0] sm:$0xff] }
 0xf70   :  { %v14587_v63 = vpop.eup %14586 }
 0xf71   :  { %v2930_v0 = vmul.f32 %v14587_v63, %v2928_v45  ;;  %vm2936_vm10 = vweird.f32 %v14587_v63  ;;  %v11459_v45 = vor.u32 %v13891_v38, %v11458_v37  ;;  %v13931_v37 = vld [vmem:[%s14795_s14 + $0x538] sm:$0xff] }
 0xf72   :  { %vm2937_vm12 = vmor %vm2935_vm11, %vm2936_vm10  ;;  %v13955_v38 = vld [vmem:[%s14795_s14 + $0x5f8] sm:$0xff] }
 0xf73   :  { %v2931_v1 = vmul.f32 %v14587_v63, %v2930_v0  ;;  %v11399_v0 = vor.u32 %v13867_v55, %v11396_v56  ;;  %v13935_v55 = vld [vmem:[%s14795_s14 + $0x558] sm:$0xff] }
 0xf74   :  { %v13943_v56 = vld [vmem:[%s14795_s14 + $0x598] sm:$0xff] }
 0xf75   :  { %v2932_v2 = vmul.f32 0.5, %v2931_v1  ;;  %v15460_v1 = vld [vmem:[%s16541_s21] sm:$0xff] }
 0xf77   :  { %v2933_v49 = vsub.f32 1.5, %v2932_v2  ;;  %v15463_v2 = vld [vmem:[%s16541_s21 + $0x8] sm:$0xff] }
 0xf79   :  { %v2934_v3 = vmul.f32 %v14587_v63, %v2933_v49  ;;  %v14431_v49 = vpack.i.bf16 %v15460_v1, %v15463_v2 }
 0xf7b   :  { %v2938_v5 = vsel %vm2937_vm12, %v14587_v63, %v2934_v3  ;;  %v11395_v63 = vor.u32 %v13875_v54, %v11394_v53  ;;  %14432 = vrot.lane.b32.xlu1 %v14431_v49, %s14735_s22  ;;  %v13907_v3 = vld [vmem:[%s14795_s14 + $0x478] sm:$0xff]  ;;  %v13928_v53 = vld [vmem:[%s14795_s14 + $0x520] sm:$0xff] }
 0xf7c   :  { %v2939_v8 = vmul.f32 %v2938_v5, %v15355_v6  ;;  %v13899_v5 = vld [vmem:[%s14795_s14 + $0x438] sm:$0xff]  ;;  %v13952_v54 = vld [vmem:[%s14795_s14 + $0x5e0] sm:$0xff] }
 0xf7e   :  { %v2943_v9 = vmul.f32 %v14516_v4, %v2939_v8  ;;  %v13915_v4 = vld [vmem:[%s14795_s14 + $0x4b8] sm:$0xff]  ;;  %v15477_v8 = vld [vmem:[%s16542_s25] ss:$0 sm:$0xff] }
 0xf80   :  { %v15401_v47 = vadd.f32 %v14517_v7, %v2943_v9  ;;  %v13923_v7 = vld [vmem:[%s14795_s14 + $0x4f8] sm:$0xff]  ;;  %v13906_v9 = vld [vmem:[%s14795_s14 + $0x470] sm:$0xff] }
 0xf82   :  { %v15408_v6 = vpack.c.bf16 %v15401_v47, %v15401_v47 }
 0xf83   :  { %4776 = vrot.lane.b32.xlu1 %v15477_v8, %s14735_s22 }
 0xf84   :  { %11464 = vmatmul.msk.bf16.vlgmr.msrb.gmra.mxu3 %vm209_vm1, %v15408_v6  ;;  %11465 = vmatmul.msk.bf16.vlgmr.msra.gmra.mxu0 %vm209_vm1, %v15408_v6 }
 0xf85   :  { %11466 = vmatmul.msk.bf16.vlgmr.msra.gmra.mxu1 %vm209_vm1, %v15408_v6  ;;  %11467 = vmatmul.msk.bf16.vlgmr.msra.gmra.mxu2 %vm209_vm1, %v15408_v6 }
 0xf86   :  { %3551 = vmatpush.bf16.msrb.mxu3 %v11435_v16  ;;  %3564 = vmatpush.bf16.msra.mxu0 %v11439_v17  ;;  %v13912_v16 = vld [vmem:[%s14795_s14 + $0x4a0] sm:$0xff] }
 0xf87   :  { %3577 = vmatpush.bf16.msra.mxu1 %v11443_v20  ;;  %3590 = vmatpush.bf16.msra.mxu2 %v11447_v21  ;;  %v13896_v17 = vld [vmem:[%s14795_s14 + $0x420] sm:$0xff]  ;;  %v13911_v20 = vld [vmem:[%s14795_s14 + $0x498] sm:$0xff] }
 0xf88   :  { %v13895_v21 = vld [vmem:[%s14795_s14 + $0x418] sm:$0xff] }
 0xf8a   :  { %3552 = vmatpush.bf16.msrb.mxu3 %v11371_v29  ;;  %3565 = vmatpush.bf16.msra.mxu0 %v11375_v30  ;;  %v13893_v29 = vld [vmem:[%s14795_s14 + $0x408] sm:$0xff] }
 0xf8b   :  { %3578 = vmatpush.bf16.msra.mxu1 %v11379_v31  ;;  %3591 = vmatpush.bf16.msra.mxu2 %v11383_v32  ;;  %v13917_v30 = vld [vmem:[%s14795_s14 + $0x4c8] sm:$0xff]  ;;  %v13900_v31 = vld [vmem:[%s14795_s14 + $0x440] sm:$0xff] }
 0xf8c   :  { %14442 = vrot.lane.b32.xlu1 %v14431_v49, %s14736_s0  ;;  %v13908_v32 = vld [vmem:[%s14795_s14 + $0x480] sm:$0xff]  ;;  %v13941_v49 = vld [vmem:[%s14795_s14 + $0x588] sm:$0xff] }
 0xf94   :  { %11468 = vmatmul.msk.bf16.vlgmr.msra.gmra.mxu3 %vm209_vm1, %v15408_v6  ;;  %11469 = vmatmul.msk.bf16.vlgmr.msrb.gmra.mxu0 %vm209_vm1, %v15408_v6 }
 0xf95   :  { %11470 = vmatmul.msk.bf16.vlgmr.msrb.gmra.mxu1 %vm209_vm1, %v15408_v6  ;;  %11471 = vmatmul.msk.bf16.vlgmr.msrb.gmra.mxu2 %vm209_vm1, %v15408_v6 }
 0xf96   :  { %3603 = vmatpush.bf16.msra.mxu3 %v11451_v41  ;;  %3616 = vmatpush.bf16.msrb.mxu0 %v11455_v42  ;;  %v13930_v41 = vld [vmem:[%s14795_s14 + $0x530] sm:$0xff] }
 0xf97   :  { %3629 = vmatpush.bf16.msrb.mxu1 %v11459_v45  ;;  %3642 = vmatpush.bf16.msrb.mxu2 %v11463_v48  ;;  %v13954_v42 = vld [vmem:[%s14795_s14 + $0x5f0] sm:$0xff]  ;;  %v13929_v45 = vld [vmem:[%s14795_s14 + $0x528] sm:$0xff] }
 0xf98   :  { %v13953_v48 = vld [vmem:[%s14795_s14 + $0x5e8] sm:$0xff] }
 0xf9a   :  { %3604 = vmatpush.bf16.msra.mxu3 %v11387_v60  ;;  %3617 = vmatpush.bf16.msrb.mxu0 %v11391_v61  ;;  %v13934_v60 = vld [vmem:[%s14795_s14 + $0x550] sm:$0xff] }
 0xf9b   :  { %3630 = vmatpush.bf16.msrb.mxu1 %v11395_v63  ;;  %3643 = vmatpush.bf16.msrb.mxu2 %v11399_v0  ;;  %v13942_v61 = vld [vmem:[%s14795_s14 + $0x590] sm:$0xff]  ;;  %v13951_v63 = vld [vmem:[%s14795_s14 + $0x5d8] sm:$0xff]  ;;  %v13933_v0 = vld [vmem:[%s14795_s14 + $0x548] sm:$0xff] }
 0xfa4   :  { %11472 = vmatmul.msk.bf16.vlgmr.msrb.gmra.mxu3 %vm209_vm1, %v15408_v6  ;;  %11473 = vmatmul.msk.bf16.vlgmr.msra.gmra.mxu0 %vm209_vm1, %v15408_v6 }
 0xfa5   :  { %11474 = vmatmul.msk.bf16.vlgmr.msra.gmra.mxu1 %vm209_vm1, %v15408_v6  ;;  %11475 = vmatmul.msk.bf16.vlgmr.msra.gmra.mxu2 %vm209_vm1, %v15408_v6 }
 0xfa6   :  { %4465 = vmatpush.bf16.msra.mxu0 %v13907_v3  ;;  %4478 = vmatpush.bf16.msra.mxu1 %v13915_v4  ;;  %v13926_v3 = vld [vmem:[%s14795_s14 + $0x510] sm:$0xff] }
 0xfa7   :  { %4452 = vmatpush.bf16.msrb.mxu3 %v13899_v5  ;;  %4491 = vmatpush.bf16.msra.mxu2 %v13923_v7  ;;  %v13950_v4 = vld [vmem:[%s14795_s14 + $0x5d0] sm:$0xff]  ;;  %v13932_v5 = vld [vmem:[%s14795_s14 + $0x540] sm:$0xff] }
 0xfa8   :  { %v13940_v7 = vld [vmem:[%s14795_s14 + $0x580] sm:$0xff] }
 0xfaa   :  { %4466 = vmatpush.bf16.msra.mxu0 %v13906_v9  ;;  %4479 = vmatpush.bf16.msra.mxu1 %v13914_v52  ;;  %v13925_v9 = vld [vmem:[%s14795_s14 + $0x508] sm:$0xff] }
 0xfab   :  { %4453 = vmatpush.bf16.msrb.mxu3 %v13898_v10  ;;  %4492 = vmatpush.bf16.msra.mxu2 %v13922_v11  ;;  %v13949_v52 = vld [vmem:[%s14795_s14 + $0x5c8] sm:$0xff]  ;;  %v13924_v10 = vld [vmem:[%s14795_s14 + $0x500] sm:$0xff] }
 0xfac   :  { %v13948_v11 = vld [vmem:[%s14795_s14 + $0x5c0] sm:$0xff] }
 0xfae   :  { %4467 = vmatpush.bf16.msra.mxu0 %v13905_v12  ;;  %4480 = vmatpush.bf16.msra.mxu1 %v13913_v13  ;;  %v15556_v12 = vld [vmem:[%s14790_s8 + $0x10] sm:$0xff] }
 0xfaf   :  { %4454 = vmatpush.bf16.msrb.mxu3 %v13897_v14  ;;  %4493 = vmatpush.bf16.msra.mxu2 %v13921_v15  ;;  %v3247_v13 = vperm.slane %v15556_v12, 1  ;;  %v3248_v14 = vperm.slane %v15556_v12, 2 }
 0xfb2   :  { %4468 = vmatpush.bf16.msra.mxu0 %v13904_v58  ;;  %4481 = vmatpush.bf16.msra.mxu1 %v13912_v16 }
 0xfb3   :  { %4455 = vmatpush.bf16.msrb.mxu3 %v13896_v17  ;;  %4494 = vmatpush.bf16.msra.mxu2 %v13920_v18 }
 0xfb4   :  { %11476 = vmatmul.msk.bf16.vlgmr.msra.gmra.mxu3 %vm209_vm1, %v15408_v6  ;;  %11477 = vmatmul.msk.bf16.vlgmr.msrb.gmra.mxu0 %vm209_vm1, %v15408_v6 }
 0xfb5   :  { %11478 = vmatmul.msk.bf16.vlgmr.msrb.gmra.mxu1 %vm209_vm1, %v15408_v6  ;;  %11479 = vmatmul.msk.bf16.vlgmr.msrb.gmra.mxu2 %vm209_vm1, %v15408_v6  ;;  %v13909_v6 = vld [vmem:[%s14795_s14 + $0x488] sm:$0xff] }
 0xfb6   :  { %4469 = vmatpush.bf16.msra.mxu0 %v13903_v19  ;;  %4482 = vmatpush.bf16.msra.mxu1 %v13911_v20  ;;  %v3246_v19 = vperm.slane %v15556_v12, 0 }
 0xfb7   :  { %4456 = vmatpush.bf16.msrb.mxu3 %v13895_v21  ;;  %4495 = vmatpush.bf16.msra.mxu2 %v13919_v22  ;;  %v3249_v21 = vperm.slane %v15556_v12, 3  ;;  %v13971_v22 = vld [vmem:[%s14795_s14 + $0x678] sm:$0xff] }
 0xfba   :  { %4470 = vmatpush.bf16.msra.mxu0 %v13902_v23  ;;  %4483 = vmatpush.bf16.msra.mxu1 %v13910_v24  ;;  %v13979_v24 = vld [vmem:[%s14795_s14 + $0x6b8] sm:$0xff] }
 0xfbb   :  { %4457 = vmatpush.bf16.msrb.mxu3 %v13894_v25  ;;  %4496 = vmatpush.bf16.msra.mxu2 %v13918_v27 }
 0xfbe   :  { %4471 = vmatpush.bf16.msra.mxu0 %v13901_v28  ;;  %4484 = vmatpush.bf16.msra.mxu1 %v13909_v6 }
 0xfbf   :  { %4458 = vmatpush.bf16.msrb.mxu3 %v13893_v29  ;;  %4497 = vmatpush.bf16.msra.mxu2 %v13917_v30 }
 0xfc2   :  { %4472 = vmatpush.bf16.msra.mxu0 %v13900_v31  ;;  %4485 = vmatpush.bf16.msra.mxu1 %v13908_v32  ;;  %v13970_v31 = vld [vmem:[%s14795_s14 + $0x670] sm:$0xff] }
 0xfc3   :  { %4459 = vmatpush.bf16.msrb.mxu3 %v13892_v35  ;;  %4498 = vmatpush.bf16.msra.mxu2 %v13916_v36  ;;  %v13963_v36 = vld [vmem:[%s14795_s14 + $0x638] sm:$0xff] }
 0xfc6   :  { %4517 = vmatpush.bf16.msrb.mxu0 %v13939_v33  ;;  %4530 = vmatpush.bf16.msrb.mxu1 %v13947_v34  ;;  %v13978_v34 = vld [vmem:[%s14795_s14 + $0x6b0] sm:$0xff] }
 0xfc7   :  { %4504 = vmatpush.bf16.msra.mxu3 %v13931_v37  ;;  %4543 = vmatpush.bf16.msrb.mxu2 %v13955_v38  ;;  %v13987_v38 = vld [vmem:[%s14795_s14 + $0x6f8] sm:$0xff] }
 0xfca   :  { %4518 = vmatpush.bf16.msrb.mxu0 %v13938_v39  ;;  %4531 = vmatpush.bf16.msrb.mxu1 %v13946_v40  ;;  %v13969_v40 = vld [vmem:[%s14795_s14 + $0x668] sm:$0xff] }
 0xfcb   :  { %4505 = vmatpush.bf16.msra.mxu3 %v13930_v41  ;;  %4544 = vmatpush.bf16.msrb.mxu2 %v13954_v42  ;;  %v13977_v41 = vld [vmem:[%s14795_s14 + $0x6a8] sm:$0xff]  ;;  %v3251_v42 = vperm.slane %v15556_v12, 5 }
 0xfce   :  { %4519 = vmatpush.bf16.msrb.mxu0 %v13937_v43  ;;  %4532 = vmatpush.bf16.msrb.mxu1 %v13945_v44  ;;  %v3252_v44 = vperm.slane %v15556_v12, 6 }
 0xfcf   :  { %4506 = vmatpush.bf16.msra.mxu3 %v13929_v45  ;;  %4545 = vmatpush.bf16.msrb.mxu2 %v13953_v48  ;;  %v13962_v45 = vld [vmem:[%s14795_s14 + $0x630] sm:$0xff] }
 0xfd2   :  { %4520 = vmatpush.bf16.msrb.mxu0 %v13936_v50  ;;  %4533 = vmatpush.bf16.msrb.mxu1 %v13944_v51  ;;  %v13986_v50 = vld [vmem:[%s14795_s14 + $0x6f0] sm:$0xff] }
 0xfd3   :  { %4507 = vmatpush.bf16.msra.mxu3 %v13928_v53  ;;  %4546 = vmatpush.bf16.msrb.mxu2 %v13952_v54  ;;  %v13968_v53 = vld [vmem:[%s14795_s14 + $0x660] sm:$0xff] }
 0xfd6   :  { %4521 = vmatpush.bf16.msrb.mxu0 %v13935_v55  ;;  %4534 = vmatpush.bf16.msrb.mxu1 %v13943_v56  ;;  %v13976_v56 = vld [vmem:[%s14795_s14 + $0x6a0] sm:$0xff] }
 0xfd7   :  { %4508 = vmatpush.bf16.msra.mxu3 %v13927_v62  ;;  %4547 = vmatpush.bf16.msrb.mxu2 %v13951_v63  ;;  %v13985_v63 = vld [vmem:[%s14795_s14 + $0x6e8] sm:$0xff] }
 0xfda   :  { %4522 = vmatpush.bf16.msrb.mxu0 %v13934_v60  ;;  %4535 = vmatpush.bf16.msrb.mxu1 %v13942_v61  ;;  %v13961_v61 = vld [vmem:[%s14795_s14 + $0x628] sm:$0xff] }
 0xfdb   :  { %4509 = vmatpush.bf16.msra.mxu3 %v13926_v3  ;;  %4548 = vmatpush.bf16.msrb.mxu2 %v13950_v4  ;;  %v3253_v3 = vperm.slane %v15556_v12, 7  ;;  %v13967_v4 = vld [vmem:[%s14795_s14 + $0x658] sm:$0xff] }
 0xfde   :  { %4523 = vmatpush.bf16.msrb.mxu0 %v13933_v0  ;;  %4536 = vmatpush.bf16.msrb.mxu1 %v13941_v49  ;;  %v3250_v0 = vperm.slane %v15556_v12, 4 }
 0xfdf   :  { %4510 = vmatpush.bf16.msra.mxu3 %v13925_v9  ;;  %4549 = vmatpush.bf16.msrb.mxu2 %v13949_v52 }
 0xfe2   :  { %4524 = vmatpush.bf16.msrb.mxu0 %v13932_v5  ;;  %4537 = vmatpush.bf16.msrb.mxu1 %v13940_v7  ;;  %v13975_v7 = vld [vmem:[%s14795_s14 + $0x698] sm:$0xff] }
 0xfe3   :  { %4511 = vmatpush.bf16.msra.mxu3 %v13924_v10  ;;  %4550 = vmatpush.bf16.msrb.mxu2 %v13948_v11  ;;  %v13960_v10 = vld [vmem:[%s14795_s14 + $0x620] sm:$0xff] }
0x1001   :  { %v3463_v15 = vpop.f32.mrf.mxu0 }
0x1002   :  { %v3464_v58 = vadd.f32 %v3463_v15, %v3247_v13  ;;  %v3476_v16 = vpop.f32.mrf.mxu1 }
0x1003   :  { %v3477_v17 = vadd.f32 %v3476_v16, %v3248_v14  ;;  %v13984_v14 = vld [vmem:[%s14795_s14 + $0x6e0] sm:$0xff] }
0x1004   :  { %v3650_v18 = vmax.f32 %v3464_v58, 0.0  ;;  %v13966_v58 = vld [vmem:[%s14795_s14 + $0x650] sm:$0xff] }
0x1005   :  { %v3651_v20 = vmax.f32 %v3477_v17, 0.0 }
0x1006   :  { %v3666_v23 = vpack.c.bf16 %v3650_v18, %v3650_v18  ;;  %v13974_v18 = vld [vmem:[%s14795_s14 + $0x690] sm:$0xff] }
0x1007   :  { %v3667_v25 = vpack.c.bf16 %v3651_v20, %v3651_v20  ;;  %v3450_v27 = vpop.f32.mrf.mxu3  ;;  %v13959_v20 = vld [vmem:[%s14795_s14 + $0x618] sm:$0xff] }
0x1008   :  { %v3451_v28 = vadd.f32 %v3450_v27, %v3246_v19  ;;  %v3489_v6 = vpop.f32.mrf.mxu2  ;;  %4473 = vmatmul.bf16.vlgmr.msra.gmra.mxu0 %v3666_v23  ;;  %v13983_v23 = vld [vmem:[%s14795_s14 + $0x6d8] sm:$0xff]  ;;  %v13973_v27 = vld [vmem:[%s14795_s14 + $0x688] sm:$0xff] }
0x1009   :  { %v3490_v29 = vadd.f32 %v3489_v6, %v3249_v21  ;;  %4486 = vmatmul.bf16.vlgmr.msra.gmra.mxu1 %v3667_v25  ;;  %4569 = vmatpush.bf16.msra.mxu0 %v13971_v22  ;;  %v3465_v30 = vpop.f32.mrf.mxu0  ;;  %v15588_v21 = vld [vmem:[%s14790_s8 + $0x18] sm:$0xff]  ;;  %v13965_v25 = vld [vmem:[%s14795_s14 + $0x648] sm:$0xff]  ;;  %s16545_s8 = sld [smem:[#allocation12_spill]] }
0x100a   :  { %v3649_v32 = vmax.f32 %v3451_v28, 0.0  ;;  %4582 = vmatpush.bf16.msra.mxu1 %v13979_v24  ;;  %v3478_v33 = vpop.f32.mrf.mxu1  ;;  %v3255_v28 = vperm.slane %v15588_v21, 1  ;;  %v13958_v30 = vld [vmem:[%s14795_s14 + $0x610] sm:$0xff] }
0x100b   :  { %v3652_v35 = vmax.f32 %v3490_v29, 0.0  ;;  %v3256_v29 = vperm.slane %v15588_v21, 2 }
0x100c   :  { %v3665_v37 = vpack.c.bf16 %v3649_v32, %v3649_v32  ;;  %v13982_v32 = vld [vmem:[%s14795_s14 + $0x6d0] sm:$0xff] }
0x100d   :  { %v3668_v39 = vpack.c.bf16 %v3652_v35, %v3652_v35  ;;  %4570 = vmatpush.bf16.msra.mxu0 %v13970_v31 }
0x100e   :  { %4583 = vmatpush.bf16.msra.mxu1 %v13978_v34  ;;  %4460 = vmatmul.bf16.vlgmr.msrb.gmra.mxu3 %v3665_v37  ;;  %v13964_v34 = vld [vmem:[%s14795_s14 + $0x640] sm:$0xff] }
0x100f   :  { %4499 = vmatmul.bf16.vlgmr.msra.gmra.mxu2 %v3668_v39  ;;  %4556 = vmatpush.bf16.msrb.mxu3 %v13963_v36  ;;  %v3452_v43 = vpop.f32.mrf.mxu3  ;;  %v13972_v37 = vld [vmem:[%s14795_s14 + $0x680] sm:$0xff] }
0x1010   :  { %4595 = vmatpush.bf16.msra.mxu2 %v13987_v38  ;;  %v3491_v48 = vpop.f32.mrf.mxu2  ;;  %v14003_v38 = vld [vmem:[%s14795_s14 + $0x778] sm:$0xff]  ;;  %v13981_v43 = vld [vmem:[%s14795_s14 + $0x6c8] sm:$0xff] }
0x1011   :  { %4571 = vmatpush.bf16.msra.mxu0 %v13969_v40  ;;  %v3515_v51 = vpop.f32.mrf.mxu0  ;;  %v14011_v40 = vld [vmem:[%s14795_s14 + $0x7b8] sm:$0xff] }
0x1012   :  { %4584 = vmatpush.bf16.msra.mxu1 %v13977_v41  ;;  %v3516_v54 = vadd.f32 %v3515_v51, %v3251_v42  ;;  %v3528_v55 = vpop.f32.mrf.mxu1  ;;  %v13957_v41 = vld [vmem:[%s14795_s14 + $0x608] sm:$0xff] }
0x1013   :  { %v3529_v60 = vadd.f32 %v3528_v55, %v3252_v44  ;;  %4557 = vmatpush.bf16.msrb.mxu3 %v13962_v45  ;;  %v3254_v44 = vperm.slane %v15588_v21, 0  ;;  %v15604_v45 = vpop.permute.xlu1 %14427 }
0x1014   :  { %v3654_v62 = vmax.f32 %v3516_v54, 0.0  ;;  %4596 = vmatpush.bf16.msra.mxu2 %v13986_v50  ;;  %v3257_v50 = vperm.slane %v15588_v21, 3 }
0x1015   :  { %v3655_v49 = vmax.f32 %v3529_v60, 0.0  ;;  %4572 = vmatpush.bf16.msra.mxu0 %v13968_v53  ;;  %v14002_v53 = vld [vmem:[%s14795_s14 + $0x770] sm:$0xff]  ;;  %v13956_v60 = vld [vmem:[%s14795_s14 + $0x600] sm:$0xff] }
0x1016   :  { %v3670_v5 = vpack.c.bf16 %v3654_v62, %v3654_v62  ;;  %4585 = vmatpush.bf16.msra.mxu1 %v13976_v56  ;;  %v14010_v56 = vld [vmem:[%s14795_s14 + $0x7b0] sm:$0xff] }
0x1017   :  { %v3671_v9 = vpack.c.bf16 %v3655_v49, %v3655_v49  ;;  %4558 = vmatpush.bf16.msrb.mxu3 %v13961_v61  ;;  %v3502_v52 = vpop.f32.mrf.mxu3 }
0x1018   :  { %4597 = vmatpush.bf16.msra.mxu2 %v13985_v63  ;;  %v3503_v11 = vadd.f32 %v3502_v52, %v3250_v0  ;;  %v3541_v13 = vpop.f32.mrf.mxu2  ;;  %4525 = vmatmul.bf16.vlgmr.msrb.gmra.mxu0 %v3670_v5  ;;  %v13980_v63 = vld [vmem:[%s14795_s14 + $0x6c0] sm:$0xff]  ;;  %v13995_v0 = vld [vmem:[%s14795_s14 + $0x738] sm:$0xff] }
0x1019   :  { %v3542_v15 = vadd.f32 %v3541_v13, %v3253_v3  ;;  %4538 = vmatmul.bf16.vlgmr.msrb.gmra.mxu1 %v3671_v9  ;;  %4573 = vmatpush.bf16.msra.mxu0 %v13967_v4  ;;  %v3517_v12 = vpop.f32.mrf.mxu0  ;;  %v14019_v4 = vld [vmem:[%s14795_s14 + $0x7f8] sm:$0xff]  ;;  %v14001_v9 = vld [vmem:[%s14795_s14 + $0x768] sm:$0xff]  ;;  %v13994_v13 = vld [vmem:[%s14795_s14 + $0x730] sm:$0xff] }
0x101a   :  { %v3653_v16 = vmax.f32 %v3503_v11, 0.0  ;;  %4586 = vmatpush.bf16.msra.mxu1 %v13975_v7  ;;  %v3530_v17 = vpop.f32.mrf.mxu1  ;;  %v14000_v12 = vld [vmem:[%s14795_s14 + $0x760] sm:$0xff] }
0x101b   :  { %v3656_v19 = vmax.f32 %v3542_v15, 0.0  ;;  %4559 = vmatpush.bf16.msrb.mxu3 %v13960_v10  ;;  %v14009_v10 = vld [vmem:[%s14795_s14 + $0x7a8] sm:$0xff]  ;;  %v14018_v15 = vld [vmem:[%s14795_s14 + $0x7f0] sm:$0xff]  ;;  %v14008_v17 = vld [vmem:[%s14795_s14 + $0x7a0] sm:$0xff] }
0x101c   :  { %v3669_v22 = vpack.c.bf16 %v3653_v16, %v3653_v16  ;;  %4598 = vmatpush.bf16.msra.mxu2 %v13984_v14 }
0x101d   :  { %v3672_v24 = vpack.c.bf16 %v3656_v19, %v3656_v19  ;;  %4574 = vmatpush.bf16.msra.mxu0 %v13966_v58  ;;  %v15618_v58 = vpop.permute.xlu1 %14432  ;;  %v13993_v19 = vld [vmem:[%s14795_s14 + $0x728] sm:$0xff] }
0x101e   :  { %4587 = vmatpush.bf16.msra.mxu1 %v13974_v18  ;;  %4512 = vmatmul.bf16.vlgmr.msra.gmra.mxu3 %v3669_v22  ;;  %v14017_v22 = vld [vmem:[%s14795_s14 + $0x7e8] sm:$0xff] }
0x101f   :  { %4551 = vmatmul.bf16.vlgmr.msrb.gmra.mxu2 %v3672_v24  ;;  %4560 = vmatpush.bf16.msrb.mxu3 %v13959_v20  ;;  %v3504_v6 = vpop.f32.mrf.mxu3  ;;  %v13999_v24 = vld [vmem:[%s14795_s14 + $0x758] sm:$0xff] }
0x1020   :  { %4599 = vmatpush.bf16.msra.mxu2 %v13983_v23  ;;  %v3543_v31 = vpop.f32.mrf.mxu2  ;;  %v13998_v6 = vld [vmem:[%s14795_s14 + $0x750] sm:$0xff] }
0x1021   :  { %4575 = vmatpush.bf16.msra.mxu0 %v13965_v25  ;;  %v3567_v33 = vpop.f32.mrf.mxu0  ;;  %v14007_v25 = vld [vmem:[%s14795_s14 + $0x798] sm:$0xff]  ;;  %v14006_v31 = vld [vmem:[%s14795_s14 + $0x790] sm:$0xff] }
0x1022   :  { %4588 = vmatpush.bf16.msra.mxu1 %v13973_v27  ;;  %v3568_v35 = vadd.f32 %v3567_v33, %v3255_v28  ;;  %v3580_v36 = vpop.f32.mrf.mxu1  ;;  %v13992_v27 = vld [vmem:[%s14795_s14 + $0x720] sm:$0xff] }
0x1023   :  { %v3581_v39 = vadd.f32 %v3580_v36, %v3256_v29  ;;  %4561 = vmatpush.bf16.msrb.mxu3 %v13958_v30  ;;  %v14016_v28 = vld [vmem:[%s14795_s14 + $0x7e0] sm:$0xff]  ;;  %v3259_v29 = vperm.slane %v15588_v21, 5 }
0x1024   :  { %v3658_v42 = vmax.f32 %v3568_v35, 0.0  ;;  %4600 = vmatpush.bf16.msra.mxu2 %v13982_v32  ;;  %v3260_v32 = vperm.slane %v15588_v21, 6 }
0x1025   :  { %v3659_v48 = vmax.f32 %v3581_v39, 0.0  ;;  %4576 = vmatpush.bf16.msra.mxu0 %v13964_v34  ;;  %v13991_v34 = vld [vmem:[%s14795_s14 + $0x718] sm:$0xff]  ;;  %v15632_v35 = vpop.permute.xlu1 %4776  ;;  %v13997_v39 = vld [vmem:[%s14795_s14 + $0x748] sm:$0xff] }
0x1026   :  { %v3674_v51 = vpack.c.bf16 %v3658_v42, %v3658_v42  ;;  %4589 = vmatpush.bf16.msra.mxu1 %v13972_v37  ;;  %v14015_v37 = vld [vmem:[%s14795_s14 + $0x7d8] sm:$0xff] }
0x1027   :  { %v3675_v54 = vpack.c.bf16 %v3659_v48, %v3659_v48  ;;  %4562 = vmatpush.bf16.msrb.mxu3 %v13957_v41  ;;  %v3554_v55 = vpop.f32.mrf.mxu3  ;;  %v14005_v41 = vld [vmem:[%s14795_s14 + $0x788] sm:$0xff]  ;;  %v14014_v48 = vld [vmem:[%s14795_s14 + $0x7d0] sm:$0xff] }
0x1028   :  { %4601 = vmatpush.bf16.msra.mxu2 %v13981_v43  ;;  %v3555_v61 = vadd.f32 %v3554_v55, %v3254_v44  ;;  %v3593_v62 = vpop.f32.mrf.mxu2  ;;  %4577 = vmatmul.bf16.vlgmr.msra.gmra.mxu0 %v3674_v51  ;;  %v13990_v43 = vld [vmem:[%s14795_s14 + $0x710] sm:$0xff]  ;;  %v3258_v44 = vperm.slane %v15588_v21, 4  ;;  %v3261_v51 = vperm.slane %v15588_v21, 7  ;;  %v14429_v55 = vunpack.i.l.bf16 %v15604_v45 }
0x1029   :  { %4621 = vmatpush.bf16.msrb.mxu0 %v14003_v38  ;;  %v3594_v49 = vadd.f32 %v3593_v62, %v3257_v50  ;;  %4590 = vmatmul.bf16.vlgmr.msra.gmra.mxu1 %v3675_v54  ;;  %v3569_v3 = vpop.f32.mrf.mxu0  ;;  %v14438_v50 = vpop.permute.xlu2 %14437 }
0x102a   :  { %4634 = vmatpush.bf16.msrb.mxu1 %v14011_v40  ;;  %v3657_v5 = vmax.f32 %v3555_v61, 0.0  ;;  %v3582_v7 = vpop.f32.mrf.mxu1  ;;  %v14013_v3 = vld [vmem:[%s14795_s14 + $0x7c8] sm:$0xff] }
0x102b   :  { %v3660_v52 = vmax.f32 %v3594_v49, 0.0  ;;  %4563 = vmatpush.bf16.msrb.mxu3 %v13956_v60  ;;  %v14004_v60 = vld [vmem:[%s14795_s14 + $0x780] sm:$0xff] }
0x102c   :  { %v3673_v11 = vpack.c.bf16 %v3657_v5, %v3657_v5  ;;  %4602 = vmatpush.bf16.msra.mxu2 %v13980_v63  ;;  %v13989_v63 = vld [vmem:[%s14795_s14 + $0x708] sm:$0xff] }
0x102d   :  { %4622 = vmatpush.bf16.msrb.mxu0 %v14002_v53  ;;  %v3676_v14 = vpack.c.bf16 %v3660_v52, %v3660_v52  ;;  %v13996_v53 = vld [vmem:[%s14795_s14 + $0x740] sm:$0xff]  ;;  %v14443_v5 = vpop.permute.xlu1 %14442 }
0x102e   :  { %4635 = vmatpush.bf16.msrb.mxu1 %v14010_v56  ;;  %4564 = vmatmul.bf16.vlgmr.msrb.gmra.mxu3 %v3673_v11  ;;  %v13988_v11 = vld [vmem:[%s14795_s14 + $0x700] sm:$0xff] }
0x102f   :  { %4608 = vmatpush.bf16.msra.mxu3 %v13995_v0  ;;  %4603 = vmatmul.bf16.vlgmr.msra.gmra.mxu2 %v3676_v14  ;;  %v3556_v16 = vpop.f32.mrf.mxu3  ;;  %v14439_v0 = vunpack.i.l.bf16 %v14438_v50  ;;  %v14012_v14 = vld [vmem:[%s14795_s14 + $0x7c0] sm:$0xff]  ;;  %s16546_s14 = sld [smem:[#allocation13_spill]] }
0x1030   :  { %4647 = vmatpush.bf16.msrb.mxu2 %v14019_v4  ;;  %v3595_v18 = vpop.f32.mrf.mxu2  ;;  %v14430_v4 = vunpack.i.h.bf16 %v15604_v45  ;;  %v14445_v16 = vunpack.i.h.bf16 %v14443_v5 }
0x1031   :  { %4623 = vmatpush.bf16.msrb.mxu0 %v14001_v9  ;;  %v3619_v20 = vpop.f32.mrf.mxu0  ;;  %v14440_v9 = vunpack.i.h.bf16 %v14438_v50 }
0x1032   :  { %4636 = vmatpush.bf16.msrb.mxu1 %v14009_v10  ;;  %v3632_v23 = vpop.f32.mrf.mxu1  ;;  %v3620_v40 = vadd.f32 %v3619_v20, %v3259_v29  ;;  %v14434_v10 = vunpack.i.l.bf16 %v15618_v58 }
0x1033   :  { %4609 = vmatpush.bf16.msra.mxu3 %v13994_v13  ;;  %v3633_v42 = vadd.f32 %v3632_v23, %v3260_v32 }
0x1034   :  { %4648 = vmatpush.bf16.msrb.mxu2 %v14018_v15  ;;  %v3662_v54 = vmax.f32 %v3620_v40, 0.0  ;;  %v14444_v15 = vunpack.i.l.bf16 %v14443_v5 }
0x1035   :  { %4624 = vmatpush.bf16.msrb.mxu0 %v14000_v12  ;;  %v3663_v61 = vmax.f32 %v3633_v42, 0.0  ;;  %v14435_v12 = vunpack.i.h.bf16 %v15618_v58 }
0x1036   :  { %4637 = vmatpush.bf16.msrb.mxu1 %v14008_v17  ;;  %v3678_v7 = vpack.c.bf16 %v3662_v54, %v3662_v54 }
0x1037   :  { %4610 = vmatpush.bf16.msra.mxu3 %v13993_v19  ;;  %v3606_v30 = vpop.f32.mrf.mxu3  ;;  %v3679_v52 = vpack.c.bf16 %v3663_v61, %v3663_v61 }
0x1038   :  { %4649 = vmatpush.bf16.msrb.mxu2 %v14017_v22  ;;  %v3645_v33 = vpop.f32.mrf.mxu2  ;;  %v3607_v49 = vadd.f32 %v3606_v30, %v3258_v44  ;;  %v14519_v22 = vld [vmem:[%s14800_s19 + $0x1] ss:$0 sm:$0xff]  ;;  %s16547_s19 = sld [smem:[#allocation6_spill]] }
0x1039   :  { %4625 = vmatpush.bf16.msrb.mxu0 %v13999_v24  ;;  %v3621_v36 = vpop.f32.mrf.mxu0  ;;  %v3646_v21 = vadd.f32 %v3645_v33, %v3261_v51 }
0x103a   :  { %4638 = vmatpush.bf16.msrb.mxu1 %v14007_v25  ;;  %v3634_v38 = vpop.f32.mrf.mxu1  ;;  %v3661_v13 = vmax.f32 %v3607_v49, 0.0 }
0x103b   :  { %4611 = vmatpush.bf16.msra.mxu3 %v13992_v27  ;;  %v3664_v45 = vmax.f32 %v3646_v21, 0.0 }
0x103c   :  { %4650 = vmatpush.bf16.msrb.mxu2 %v14016_v28  ;;  %v3677_v17 = vpack.c.bf16 %v3661_v13, %v3661_v13 }
0x103d   :  { %4626 = vmatpush.bf16.msrb.mxu0 %v13998_v6  ;;  %v3680_v18 = vpack.c.bf16 %v3664_v45, %v3664_v45 }
0x103e   :  { %4639 = vmatpush.bf16.msrb.mxu1 %v14006_v31 }
0x103f   :  { %4612 = vmatpush.bf16.msra.mxu3 %v13991_v34  ;;  %v3608_v56 = vpop.f32.mrf.mxu3 }
0x1040   :  { %4651 = vmatpush.bf16.msrb.mxu2 %v14015_v37  ;;  %v3647_v62 = vpop.f32.mrf.mxu2 }
0x1041   :  { %4627 = vmatpush.bf16.msrb.mxu0 %v13997_v39 }
0x1042   :  { %4640 = vmatpush.bf16.msrb.mxu1 %v14005_v41 }
0x1043   :  { %4613 = vmatpush.bf16.msra.mxu3 %v13990_v43 }
0x1044   :  { %4652 = vmatpush.bf16.msrb.mxu2 %v14014_v48 }
0x1045   :  { %4628 = vmatpush.bf16.msrb.mxu0 %v13996_v53 }
0x1046   :  { %4641 = vmatpush.bf16.msrb.mxu1 %v14004_v60 }
0x1047   :  { %4614 = vmatpush.bf16.msra.mxu3 %v13989_v63 }
0x1048   :  { %4653 = vmatpush.bf16.msrb.mxu2 %v14013_v3  ;;  %4629 = vmatmul.bf16.vlgmr.msrb.gmra.mxu0 %v3678_v7 }
0x1049   :  { %4791 = vmatpush.msra.mxu0 %v14429_v55  ;;  %4642 = vmatmul.bf16.vlgmr.msrb.gmra.mxu1 %v3679_v52 }
0x104a   :  { %4826 = vmatpush.msra.mxu1 %v14439_v0 }
0x104b   :  { %4792 = vmatpush.msra.mxu0 %v14430_v4  ;;  %4615 = vmatpush.bf16.msra.mxu3 %v13988_v11 }
0x104c   :  { %4827 = vmatpush.msra.mxu1 %v14440_v9  ;;  %4654 = vmatpush.bf16.msrb.mxu2 %v14012_v14 }
0x104d   :  { %4793 = vmatpush.msra.mxu0 %v14434_v10 }
0x104e   :  { %4828 = vmatpush.msra.mxu1 %v14444_v15  ;;  %4616 = vmatmul.bf16.vlgmr.msra.gmra.mxu3 %v3677_v17 }
0x104f   :  { %4752 = vmatpush.msrb.mxu3 %v15454_v59  ;;  %4794 = vmatpush.msra.mxu0 %v14435_v12 }
0x1050   :  { %4829 = vmatpush.msra.mxu1 %v14445_v16  ;;  %4655 = vmatmul.bf16.vlgmr.msrb.gmra.mxu2 %v3680_v18 }
0x1051   :  { %4753 = vmatpush.msrb.mxu3 %v15451_v57 }
0x1053   :  { %4754 = vmatpush.msrb.mxu3 %v15463_v2 }
0x1055   :  { %4755 = vmatpush.msrb.mxu3 %v15460_v1 }
0x1058   :  { %11995 = vmatmul.msk.f32.vlgmr.msra.gmra.mxu0 %vm209_vm1, %v14963_v26 }
0x1059   :  { %11996 = vmatmul.msk.f32.vlgmr.msra.gmra.mxu1 %vm209_vm1, %v14963_v26 }
0x105e   :  { %11994 = vmatmul.msk.f32.vlgmr.msrb.gmra.mxu3 %vm209_vm1, %v14963_v26 }
0x1085   :  { %v4474_v59 = vpop.f32.mrf.mxu0 }
0x1086   :  { %v4487_v58 = vpop.f32.mrf.mxu1 }
0x108d   :  { %v4476_v19 = vpop.f32.mrf.mxu0 }
0x108e   :  { %v4489_v20 = vpop.f32.mrf.mxu1 }
0x1091   :  { %v4461_v23 = vpop.f32.mrf.mxu3 }
0x1092   :  { %v4462_v57 = vadd.f32 %v14519_v22, %v4461_v23  ;;  %v4500_v24 = vpop.f32.mrf.mxu2 }
0x1094   :  { %v4475_v2 = vadd.f32 %v4474_v59, %v4462_v57 }
0x1095   :  { %v4526_v25 = vpop.f32.mrf.mxu0 }
0x1096   :  { %v4539_v1 = vpop.f32.mrf.mxu1  ;;  %v4488_v6 = vadd.f32 %v4487_v58, %v4475_v2 }
0x1098   :  { %v4501_v31 = vadd.f32 %v4500_v24, %v4488_v6 }
0x1099   :  { %v4463_v27 = vpop.f32.mrf.mxu3 }
0x109a   :  { %v4502_v28 = vpop.f32.mrf.mxu2 }
0x109d   :  { %v4528_v29 = vpop.f32.mrf.mxu0 }
0x109e   :  { %v4541_v30 = vpop.f32.mrf.mxu1 }
0x10a1   :  { %v4513_v32 = vpop.f32.mrf.mxu3 }
0x10a2   :  { %v4514_v33 = vadd.f32 %v4513_v32, %v4501_v31  ;;  %v4552_v34 = vpop.f32.mrf.mxu2 }
0x10a4   :  { %v4527_v36 = vadd.f32 %v4526_v25, %v4514_v33 }
0x10a5   :  { %v4578_v37 = vpop.f32.mrf.mxu0 }
0x10a6   :  { %v4591_v38 = vpop.f32.mrf.mxu1  ;;  %v4540_v41 = vadd.f32 %v4539_v1, %v4527_v36 }
0x10a8   :  { %v4553_v44 = vadd.f32 %v4552_v34, %v4540_v41 }
0x10a9   :  { %v4515_v39 = vpop.f32.mrf.mxu3 }
0x10aa   :  { %v4554_v40 = vpop.f32.mrf.mxu2 }
0x10ad   :  { %v4580_v42 = vpop.f32.mrf.mxu0 }
0x10ae   :  { %v4593_v43 = vpop.f32.mrf.mxu1 }
0x10b1   :  { %v4565_v48 = vpop.f32.mrf.mxu3 }
0x10b2   :  { %v4566_v50 = vadd.f32 %v4565_v48, %v4553_v44  ;;  %v4604_v51 = vpop.f32.mrf.mxu2 }
0x10b4   :  { %v4579_v53 = vadd.f32 %v4578_v37, %v4566_v50 }
0x10b6   :  { %v4592_v61 = vadd.f32 %v4591_v38, %v4579_v53  ;;  %v4732_v38 = vld [vmem:[%s16543_s29] sm:$0xff] }
0x10b8   :  { %v4605_v0 = vadd.f32 %v4604_v51, %v4592_v61 }
0x10b9   :  { %v4567_v54 = vpop.f32.mrf.mxu3 }
0x10ba   :  { %v4606_v55 = vpop.f32.mrf.mxu2 }
0x10bb   :  { %v4733_v55 = vld [vmem:[%s16543_s29 + $0x8] sm:$0xff] }
0x10c5   :  { %v4630_v56 = vpop.f32.mrf.mxu0 }
0x10c6   :  { %v15662_v60 = vpop.f32.mrf.mxu1 }
0x10cd   :  { %v4632_v62 = vpop.f32.mrf.mxu0 }
0x10ce   :  { %v4645_v63 = vpop.f32.mrf.mxu1 }
0x10d1   :  { %v4617_v49 = vpop.f32.mrf.mxu3 }
0x10d2   :  { %v4618_v3 = vadd.f32 %v4617_v49, %v4605_v0 }
0x10d3   :  { %v15664_v4 = vpop.f32.mrf.mxu2 }
0x10d4   :  { %v15666_v21 = vadd.f32 %v4630_v56, %v4618_v3  ;;  %v4734_v56 = vld [vmem:[%s16543_s29 + $0x10] sm:$0xff] }
0x10d5   :  { %v4796_v5 = vpop.f32.mrf.mxu0 }
0x10d6   :  { %v4797_v7 = vadd.f32 %v4796_v5, %v15632_v35  ;;  %v4831_v33 = vpop.f32.mrf.mxu1 }
0x10d8   :  { %4897 = vrot.lane.b32.xlu2 %v4797_v7, %s14737_s5  ;;  %11997 = vmatpush.xpose.msk.msra.mxu2 %vm308_vm2, %v4797_v7 }
0x10d9   :  { %v4619_v9 = vpop.f32.mrf.mxu3 }
0x10da   :  { %v4644_v9 = vadd.f32 %v15662_v60, %v15666_v21 }
0x10db   :  { %v4658_v52 = vpop.f32.mrf.mxu2 }
0x10dc   :  { %4979 = vmatpush.msrb.mxu2 %v4733_v55  ;;  %v5225_v55 = vld [vmem:[%s16545_s8 + $0x18] sm:$0xff] }
0x10e1   :  { %v4757_v10 = vpop.f32.mrf.mxu3 }
0x10e2   :  { %v4758_v11 = vadd.f32 %v15477_v8, %v4757_v10  ;;  %v4657_v10 = vadd.f32 %v15664_v4, %v4644_v9 }
0x10e4   :  { %v4834_v13 = vmul.f32 0.35355338, %v4758_v11 }
0x10e6   :  { %4895 = vrot.lane.b32.xlu2 %v4834_v13, %s14737_s5  ;;  %11998 = vmatmul.msk.f32.vlgmr.msra.gmra.mxu2 %vm308_vm2, %v4834_v13 }
0x10e7   :  { %5090 = vmatpush.msra.mxu2 %v4734_v56 }
0x10ee   :  { %5009 = vrot.lane.b32.xlu2 %v4797_v7, %s14738_s9 }
0x10f6   :  { %5007 = vrot.lane.b32.xlu2 %v4834_v13, %s14738_s9 }
0x1132   :  { %v4898_v14 = vpop.permute.xlu2 %4897 }
0x1133   :  { %12000 = vmatpush.xpose.msk.msrb.mxu0 %vm308_vm2, %v4898_v14 }
0x1140   :  { %v4896_v35 = vpop.permute.xlu2 %4895 }
0x1141   :  { %12001 = vmatmul.msk.f32.vlgmr.msrb.gmra.mxu0 %vm308_vm2, %v4896_v35 }
0x1148   :  { %v5010_v15 = vpop.permute.xlu2 %5009 }
0x1149   :  { %12005 = vmatpush.xpose.msk.msra.mxu0 %vm308_vm2, %v5010_v15 }
0x1150   :  { %v5008_v45 = vpop.permute.xlu2 %5007 }
0x1151   :  { %12006 = vmatmul.msk.f32.vlgmr.msra.gmra.mxu0 %vm308_vm2, %v5008_v45 }
0x1169   :  { %v4858_v12 = vpop.f32.mrf.mxu2 }
0x116a   :  { %v4861_v16 = vsel %vm308_vm2, %v4858_v12, -inf }
0x116b   :  { %4862 = vmax.xlane.f32.xlu1 %v4861_v16 }
0x11be   :  { %v4920_v17 = vpop.f32.mrf.mxu0 }
0x11bf   :  { %v4923_v18 = vsel %vm308_vm2, %v4920_v17, -inf }
0x11c0   :  { %4924 = vmax.xlane.f32.xlu1 %v4923_v18 }
0x11ce   :  { %v5032_v59 = vpop.f32.mrf.mxu0 }
0x11cf   :  { %v5035_v58 = vsel %vm308_vm2, %v5032_v59, -inf }
0x11d0   :  { %5036 = vmax.xlane.f32.xlu2 %v5035_v58 }
0x11de   :  { %v4863_v19 = vpop.xlane.xlu1 %4862 }
0x11df   :  { %v4864_v20 = vsub.f32 %v4858_v12, %v4863_v19 }
0x11e1   :  { %v4865_v22 = vmul.f32 1.442695, %v4864_v20 }
0x11e3   :  { %14588 = vpow2.f32 %v4865_v22 }
0x11e9   :  { %v14589_v23 = vpop.eup %14588 }
0x11ea   :  { %v4867_v57 = vsel %vm308_vm2, %v14589_v23, 0.0 }
0x11eb   :  { %4868 = vadd.xlane.f32.xlu0 %v4867_v57 }
0x11ff   :  { %4811 = vrot.lane.b32.xlu0 %v15477_v8, %s14736_s0 }
0x1207   :  { %5098 = vrot.lane.b32.xlu0 %v4797_v7, %s14739_s13 }
0x120f   :  { %5096 = vrot.lane.b32.xlu0 %v4834_v13, %s14739_s13  ;;  %v4660_v13 = vadd.f32 %v4657_v10, %v15401_v47  ;;  %v4735_v47 = vld [vmem:[%s16543_s29 + $0x18] sm:$0xff] }
0x1211   :  { %v4665_v35 = vsel %vm209_vm1, %v4660_v13, 0.0 }
0x1233   :  { %v4925_v24 = vpop.xlane.xlu1 %4924 }
0x1234   :  { %v4926_v2 = vsub.f32 %v4920_v17, %v4925_v24 }
0x1236   :  { %v4927_v25 = vmul.f32 1.442695, %v4926_v2 }
0x1238   :  { %14590 = vpow2.f32 %v4927_v25  ;;  %v14520_v25 = vld [vmem:[%s14815_s6 + $0x1] ss:$0 sm:$0xff]  ;;  %s16550_s6 = sld [smem:[#allocation21_spill]] }
0x123e   :  { %v14591_v1 = vpop.eup %14590 }
0x123f   :  { %v4929_v27 = vsel %vm308_vm2, %v14591_v1, 0.0 }
0x1240   :  { %4930 = vadd.xlane.f32.xlu1 %v4929_v27 }
0x1243   :  { %v5037_v28 = vpop.xlane.xlu2 %5036 }
0x1244   :  { %v5038_v6 = vsub.f32 %v5032_v59, %v5037_v28  ;;  %v14521_v28 = vld [vmem:[%s16540_s17 + $0x1] ss:$0 sm:$0xff] }
0x1246   :  { %v5039_v29 = vmul.f32 1.442695, %v5038_v6 }
0x1248   :  { %14592 = vpow2.f32 %v5039_v29 }
0x124e   :  { %v14593_v30 = vpop.eup %14592 }
0x124f   :  { %v5041_v8 = vsel %vm308_vm2, %v14593_v30, 0.0 }
0x1250   :  { %5042 = vadd.xlane.f32.xlu1 %v5041_v8 }
0x125e   :  { %v4869_v31 = vpop.xlane.xlu0 %4868 }
0x125f   :  { %14594 = vrcp.f32 %v4869_v31 }
0x1265   :  { %v14595_v32 = vpop.eup %14594 }
0x1266   :  { %v4871_v37 = vmul.f32 %v14595_v32, %v14589_v23 }
0x1271   :  { %v4812_v34 = vpop.permute.xlu0 %4811 }
0x1272   :  { %v4832_v36 = vadd.f32 %v4831_v33, %v4812_v34  ;;  %v14522_v34 = vld [vmem:[%s16544_s3] ss:$0 sm:$0xff] }
0x1274   :  { %4935 = vrot.lane.b32.xlu1 %v4832_v36, %s14737_s5  ;;  %4890 = vmatpush.msra.mxu3 %v4832_v36 }
0x1275   :  { %11999 = vmatmul.msk.f32.vlgmr.msra.gmra.mxu3 %vm308_vm2, %v4871_v37 }
0x1276   :  { %5002 = vmatpush.msrb.mxu3 %v4732_v38 }
0x1279   :  { %v5099_v39 = vpop.permute.xlu0 %5098 }
0x127a   :  { %12009 = vmatpush.xpose.msk.msra.mxu3 %vm308_vm2, %v5099_v39 }
0x127c   :  { %5046 = vrot.lane.b32.xlu1 %v4832_v36, %s14738_s9 }
0x1281   :  { %v5097_v54 = vpop.permute.xlu0 %5096 }
0x12b3   :  { %v4931_v40 = vpop.xlane.xlu1 %4930 }
0x12b4   :  { %14596 = vrcp.f32 %v4931_v40 }
0x12ba   :  { %v14597_v42 = vpop.eup %14596 }
0x12bb   :  { %v4933_v43 = vmul.f32 %v14597_v42, %v14591_v1 }
0x12c3   :  { %v5043_v41 = vpop.xlane.xlu1 %5042 }
0x12c4   :  { %14598 = vrcp.f32 %v5043_v41 }
0x12ca   :  { %v14599_v48 = vpop.eup %14598 }
0x12cb   :  { %v5045_v50 = vmul.f32 %v14599_v48, %v14593_v30 }
0x12e6   :  { %v4936_v44 = vpop.permute.xlu1 %4935 }
0x12e7   :  { %4956 = vmatpush.msrb.mxu1 %v4936_v44 }
0x12e8   :  { %12002 = vmatmul.msk.f32.vlgmr.msrb.gmra.mxu1 %vm308_vm2, %v4933_v43 }
0x12ee   :  { %v5047_v51 = vpop.permute.xlu1 %5046 }
0x12ef   :  { %5067 = vmatpush.msra.mxu1 %v5047_v51  ;;  %v5223_v51 = vld [vmem:[%s16545_s8 + $0x8] sm:$0xff] }
0x12f0   :  { %12007 = vmatmul.msk.f32.vlgmr.msra.gmra.mxu1 %vm308_vm2, %v5045_v50  ;;  %v5222_v50 = vld [vmem:[%s16545_s8] sm:$0xff] }
0x12f1   :  { %5179 = vmatpush.msrb.mxu1 %v4735_v47 }
0x12f8   :  { %v4892_v53 = vpop.f32.mrf.mxu3 }
0x12f9   :  { %12004 = vmatmul.msk.f32.vlgmr.msrb.gmra.mxu3 %vm308_vm2, %v4892_v53  ;;  %v14451_v53 = vpack.i.bf16 %v5222_v50, %v5223_v51 }
0x1301   :  { %12010 = vmatmul.msk.f32.vlgmr.msra.gmra.mxu3 %vm308_vm2, %v5097_v54  ;;  %v5224_v54 = vld [vmem:[%s16545_s8 + $0x10] sm:$0xff] }
0x1365   :  { %v4958_v61 = vpop.f32.mrf.mxu1 }
0x1366   :  { %12003 = vmatmul.msk.f32.vlgmr.msrb.gmra.mxu2 %vm308_vm2, %v4958_v61 }
0x1367   :  { %5250 = vmatpush.msrb.mxu2 %v5225_v55 }
0x1369   :  { %5251 = vmatpush.msrb.mxu2 %v5224_v54 }
0x136b   :  { %5252 = vmatpush.msrb.mxu2 %v5223_v51 }
0x136d   :  { %v5069_v62 = vpop.f32.mrf.mxu1  ;;  %5253 = vmatpush.msrb.mxu2 %v5222_v50 }
0x136e   :  { %12008 = vmatmul.msk.f32.vlgmr.msra.gmra.mxu2 %vm308_vm2, %v5069_v62 }
0x137c   :  { %v5004_v63 = vpop.f32.mrf.mxu3 }
0x1384   :  { %v5121_v0 = vpop.f32.mrf.mxu3 }
0x1385   :  { %v5124_v49 = vsel %vm308_vm2, %v5121_v0, -inf }
0x1386   :  { %5125 = vmax.xlane.f32.xlu0 %v5124_v49  ;;  %v15734_v49 = vld [vmem:[%s16546_s14] ss:$0 sm:$0xff] }
0x139a   :  { %5135 = vrot.lane.b32.xlu0 %v4832_v36, %s14739_s13 }
0x13e9   :  { %v4981_v8 = vpop.f32.mrf.mxu2 }
0x13ea   :  { %v5005_v32 = vadd.f32 %v5004_v63, %v4981_v8  ;;  %v14527_v8 = vld [vmem:[%s16550_s6] ss:$0 sm:$0xff] }
0x13f1   :  { %v5092_v31 = vpop.f32.mrf.mxu2 }
0x13f2   :  { %v5095_v33 = vadd.f32 %v5092_v31, %v5005_v32 }
0x13f9   :  { %v5126_v3 = vpop.xlane.xlu0 %5125 }
0x13fa   :  { %v5127_v5 = vsub.f32 %v5121_v0, %v5126_v3 }
0x13fc   :  { %v5128_v7 = vmul.f32 1.442695, %v5127_v5 }
0x13fe   :  { %14600 = vpow2.f32 %v5128_v7 }
0x1404   :  { %v14601_v52 = vpop.eup %14600 }
0x1405   :  { %v5130_v11 = vsel %vm308_vm2, %v14601_v52, 0.0 }
0x1406   :  { %5131 = vadd.xlane.f32.xlu2 %v5130_v11 }
0x140c   :  { %v5136_v14 = vpop.permute.xlu0 %5135 }
0x140d   :  { %5156 = vmatpush.msrb.mxu0 %v5136_v14 }
0x140e   :  { %4666 = vadd.xlane.f32.xlu2 %v4665_v35 }
0x1479   :  { %v5132_v15 = vpop.xlane.xlu2 %5131 }
0x147a   :  { %14602 = vrcp.f32 %v5132_v15 }
0x1480   :  { %v14603_v45 = vpop.eup %14602 }
0x1481   :  { %v5134_v12 = vmul.f32 %v14603_v45, %v14601_v52  ;;  %v4667_v16 = vpop.xlane.xlu2 %4666 }
0x1482   :  { %v4668_v60 = vmul.f32 %v4667_v16, %v15017_v46 }
0x1483   :  { %12011 = vmatmul.msk.f32.vlgmr.msrb.gmra.mxu0 %vm308_vm2, %v5134_v12 }
0x1484   :  { %v4669_v4 = vsub.f32 %v4660_v13, %v4668_v60 }
0x1486   :  { %v4670_v21 = vmul.f32 %v4669_v4, %v4669_v4 }
0x1488   :  { %v4671_v17 = vsel %vm209_vm1, %v4670_v21, 0.0  ;;  %v14523_v21 = vld [vmem:[%s16547_s19] ss:$0 sm:$0xff] }
0x1489   :  { %4672 = vadd.xlane.f32.xlu1 %v4671_v17 }
0x14a2   :  { %14452 = vrot.lane.b32.xlu1 %v14451_v53, %s14735_s22 }
0x14fc   :  { %v4673_v18 = vpop.xlane.xlu1 %4672 }
0x14fd   :  { %v4674_v59 = vmul.f32 %v4673_v18, %v15017_v46 }
0x14ff   :  { %v4675_v58 = vadd.f32 1e-05, %v4674_v59 }
0x1500   :  { %v5158_v19 = vpop.f32.mrf.mxu0 }
0x1501   :  { %14604 = vrsqrt.f32 %v4675_v58  ;;  %12012 = vmatmul.msk.f32.vlgmr.msrb.gmra.mxu1 %vm308_vm2, %v5158_v19  ;;  %vm4682_vm14 = vweird.f32 %v4675_v58 }
0x1507   :  { %v14605_v20 = vpop.eup %14604 }
0x1508   :  { %v4677_v22 = vmul.f32 %v14605_v20, %v4675_v58  ;;  %vm4683_vm13 = vweird.f32 %v14605_v20 }
0x1509   :  { %vm4684_vm15 = vmor %vm4682_vm14, %vm4683_vm13 }
0x150a   :  { %v4678_v23 = vmul.f32 %v14605_v20, %v4677_v22  ;;  %v14524_v22 = vld [vmem:[%s16548_s24] ss:$0 sm:$0xff] }
0x150c   :  { %v4679_v57 = vmul.f32 0.5, %v4678_v23 }
0x150e   :  { %v4680_v24 = vsub.f32 1.5, %v4679_v57 }
0x1510   :  { %v4681_v2 = vmul.f32 %v14605_v20, %v4680_v24 }
0x1512   :  { %v4685_v1 = vsel %vm4684_vm15, %v14605_v20, %v4681_v2 }
0x1513   :  { %v4686_v27 = vmul.f32 %v4685_v1, %v4669_v4 }
0x1514   :  { %v14453_v18 = vpop.permute.xlu1 %14452 }
0x1515   :  { %v4690_v6 = vmul.f32 %v14520_v25, %v4686_v27  ;;  %v14454_v20 = vunpack.i.l.bf16 %v14453_v18  ;;  %v14455_v24 = vunpack.i.h.bf16 %v14453_v18 }
0x1517   :  { %v4694_v29 = vadd.f32 %v14521_v28, %v4690_v6 }
0x1519   :  { %v4697_v30 = vsel %vm209_vm1, %v4694_v29, 0.0 }
0x151a   :  { %4698 = vadd.xlane.f32.xlu2 %v4697_v30 }
0x157e   :  { %v5181_v36 = vpop.f32.mrf.mxu1 }
0x157f   :  { %v5184_v37 = vadd.f32 %v5181_v36, %v5095_v33 }
0x1581   :  { %v5188_v38 = vadd.f32 %v14522_v34, %v5184_v37 }
0x1583   :  { %v5189_v39 = vadd.f32 %v5188_v38, %v14963_v26  ;;  %v14456_v26 = vpack.i.bf16 %v5224_v54, %v5225_v55 }
0x1585   :  { %v5192_v40 = vsel %vm209_vm1, %v5189_v39, 0.0 }
0x1586   :  { %5193 = vadd.xlane.f32.xlu2 %v5192_v40 }
0x158d   :  { %v4699_v41 = vpop.xlane.xlu2 %4698 }
0x158e   :  { %v4700_v42 = vmul.f32 %v4699_v41, %v15017_v46 }
0x1590   :  { %v4701_v43 = vsub.f32 %v4694_v29, %v4700_v42  ;;  %v14526_v29 = vld [vmem:[%s16549_s30] ss:$0 sm:$0xff] }
0x1592   :  { %v4702_v44 = vmul.f32 %v4701_v43, %v4701_v43 }
0x1594   :  { %v4703_v48 = vsel %vm209_vm1, %v4702_v44, 0.0 }
0x1595   :  { %4704 = vadd.xlane.f32.xlu0 %v4703_v48 }
0x15a9   :  { %14457 = vrot.lane.b32.xlu0 %v14456_v26, %s14736_s0 }
0x15b1   :  { %5312 = vrot.lane.b32.xlu0 %v15734_v49, %s14736_s0 }
0x15f9   :  { %v5194_v56 = vpop.xlane.xlu2 %5193 }
0x15fa   :  { %v5195_v61 = vmul.f32 %v5194_v56, %v15017_v46 }
0x15fc   :  { %v5196_v62 = vsub.f32 %v5189_v39, %v5195_v61 }
0x15fe   :  { %v5197_v63 = vmul.f32 %v5196_v62, %v5196_v62 }
0x1600   :  { %v5198_v0 = vsel %vm209_vm1, %v5197_v63, 0.0 }
0x1601   :  { %5199 = vadd.xlane.f32.xlu2 %v5198_v0 }
0x1608   :  { %v4705_v3 = vpop.xlane.xlu0 %4704 }
0x1609   :  { %v4706_v5 = vmul.f32 %v4705_v3, %v15017_v46 }
0x160b   :  { %v4707_v7 = vadd.f32 1e-05, %v4706_v5  ;;  %v5227_v5 = vld [vmem:[%s16551_s23] sm:$0xff] }
0x160d   :  { %14606 = vrsqrt.f32 %v4707_v7  ;;  %vm4714_vm4 = vweird.f32 %v4707_v7 }
0x1613   :  { %v14607_v9 = vpop.eup %14606 }
0x1614   :  { %v4709_v52 = vmul.f32 %v14607_v9, %v4707_v7  ;;  %vm4715_vm3 = vweird.f32 %v14607_v9 }
0x1615   :  { %vm4716_vm5 = vmor %vm4714_vm4, %vm4715_vm3 }
0x1616   :  { %v4710_v10 = vmul.f32 %v14607_v9, %v4709_v52 }
0x1618   :  { %v4711_v35 = vmul.f32 0.5, %v4710_v10 }
0x1619   :  { %14447 = vrot.lane.b32.xlu2 %v14456_v26, %s14735_s22 }
0x161a   :  { %v4712_v15 = vsub.f32 1.5, %v4711_v35 }
0x161b   :  { %v14458_v11 = vpop.permute.xlu0 %14457 }
0x161c   :  { %v14459_v13 = vunpack.i.l.bf16 %v14458_v11  ;;  %v14460_v14 = vunpack.i.h.bf16 %v14458_v11  ;;  %v4713_v12 = vmul.f32 %v14607_v9, %v4712_v15 }
0x161e   :  { %5327 = vmatpush.msra.mxu0 %v14459_v13  ;;  %v4717_v4 = vsel %vm4716_vm5, %v14607_v9, %v4713_v12 }
0x161f   :  { %v4718_v17 = vmul.f32 %v4717_v4, %v4701_v43 }
0x1620   :  { %5328 = vmatpush.msra.mxu0 %v14460_v14 }
0x1621   :  { %5274 = vrot.lane.b32.xlu2 %v15734_v49, %s14735_s22  ;;  %v4722_v23 = vmul.f32 %v14523_v21, %v4718_v17 }
0x1623   :  { %v15746_v25 = vadd.f32 %v14524_v22, %v4722_v23  ;;  %v5313_v40 = vpop.permute.xlu0 %5312 }
0x1629   :  { %14462 = vrot.lane.b32.xlu2 %v14451_v53, %s14736_s0 }
0x1674   :  { %v5200_v45 = vpop.xlane.xlu2 %5199 }
0x1675   :  { %v5201_v16 = vmul.f32 %v5200_v45, %v15017_v46 }
0x1677   :  { %v5202_v60 = vadd.f32 1e-05, %v5201_v16 }
0x1679   :  { %14608 = vrsqrt.f32 %v5202_v60  ;;  %vm5209_vm7 = vweird.f32 %v5202_v60 }
0x167c   :  { %v14448_v47 = vpop.permute.xlu2 %14447 }
0x167d   :  { %v14450_v59 = vunpack.i.h.bf16 %v14448_v47  ;;  %v14449_v58 = vunpack.i.l.bf16 %v14448_v47 }
0x167f   :  { %v14609_v19 = vpop.eup %14608  ;;  %5292 = vmatpush.msrb.mxu3 %v14449_v58 }
0x1680   :  { %v5204_v57 = vmul.f32 %v14609_v19, %v5202_v60  ;;  %vm5210_vm6 = vweird.f32 %v14609_v19 }
0x1681   :  { %5293 = vmatpush.msrb.mxu3 %v14450_v59  ;;  %vm5211_vm8 = vmor %vm5209_vm7, %vm5210_vm6 }
0x1682   :  { %v5205_v2 = vmul.f32 %v14609_v19, %v5204_v57 }
0x1683   :  { %5294 = vmatpush.msrb.mxu3 %v14454_v20 }
0x1684   :  { %v5206_v1 = vmul.f32 0.5, %v5205_v2  ;;  %v5275_v27 = vpop.permute.xlu2 %5274 }
0x1685   :  { %5295 = vmatpush.msrb.mxu3 %v14455_v24 }
0x1686   :  { %v5207_v28 = vsub.f32 1.5, %v5206_v1  ;;  %12014 = vmatmul.msk.f32.vlgmr.msrb.gmra.mxu3 %vm209_vm1, %v15746_v25 }
0x1688   :  { %v5208_v6 = vmul.f32 %v14609_v19, %v5207_v28 }
0x168a   :  { %v5212_v30 = vsel %vm5211_vm8, %v14609_v19, %v5208_v6 }
0x168b   :  { %v5213_v31 = vmul.f32 %v5212_v30, %v5196_v62 }
0x168c   :  { %v14463_v32 = vpop.permute.xlu2 %14462 }
0x168d   :  { %v5217_v33 = vmul.f32 %v14526_v29, %v5213_v31  ;;  %v14465_v34 = vunpack.i.h.bf16 %v14463_v32  ;;  %v14464_v36 = vunpack.i.l.bf16 %v14463_v32  ;;  %v5228_v29 = vld [vmem:[%s16551_s23 + $0x8] sm:$0xff] }
0x168f   :  { %v15752_v37 = vadd.f32 %v14527_v8, %v5217_v33  ;;  %5329 = vmatpush.msra.mxu0 %v14464_v36 }
0x1691   :  { %12013 = vmatmul.msk.f32.vlgmr.msrb.gmra.mxu2 %vm209_vm1, %v15752_v37  ;;  %5330 = vmatpush.msra.mxu0 %v14465_v34 }
0x1692   :  { %12015 = vmatmul.msk.f32.vlgmr.msra.gmra.mxu0 %vm209_vm1, %v15746_v25 }
0x1709   :  { %v5297_v38 = vpop.f32.mrf.mxu3 }
0x170a   :  { %v5298_v39 = vadd.f32 %v5297_v38, %v5275_v27 }
0x170c   :  { %5398 = vrot.lane.b32.xlu0 %v5298_v39, %s14737_s5  ;;  %12016 = vmatpush.xpose.msk.msra.mxu1 %vm308_vm2, %v5298_v39 }
0x170f   :  { %v5332_v41 = vpop.f32.mrf.mxu0 }
0x1710   :  { %v15760_v42 = vadd.f32 %v5332_v41, %v5313_v40  ;;  %5480 = vmatpush.msrb.mxu1 %v5228_v29  ;;  %v5229_v40 = vld [vmem:[%s16551_s23 + $0x10] sm:$0xff] }
0x1712   :  { %5391 = vmatpush.msra.mxu2 %v15760_v42 }
0x1714   :  { %v5255_v43 = vpop.f32.mrf.mxu2  ;;  %5503 = vmatpush.msrb.mxu2 %v5227_v5  ;;  %v14036_v5 = vld [vmem:[%s16553_s28 + $0x84] sm:$0xf] }
0x1715   :  { %v5256_v44 = vadd.f32 %v15734_v49, %v5255_v43 }
0x1717   :  { %v5335_v48 = vmul.f32 0.35355338, %v5256_v44 }
0x1719   :  { %5396 = vrot.lane.b32.xlu0 %v5335_v48, %s14737_s5  ;;  %12017 = vmatmul.msk.f32.vlgmr.msra.gmra.mxu1 %vm308_vm2, %v5335_v48 }
0x171a   :  { %5591 = vmatpush.msra.mxu1 %v5229_v40  ;;  %v12058_v40 = vld [vmem:[%s16553_s28 + $0x18] sm:$0xf] }
0x1721   :  { %5599 = vrot.lane.b32.xlu0 %v5298_v39, %s14739_s13 }
0x1729   :  { %5597 = vrot.lane.b32.xlu0 %v5335_v48, %s14739_s13 }
0x177e   :  { %v5399_v50 = vpop.permute.xlu0 %5398 }
0x177f   :  { %12019 = vmatpush.xpose.msk.msra.mxu3 %vm308_vm2, %v5399_v50 }
0x178b   :  { %v5397_v51 = vpop.permute.xlu0 %5396 }
0x178c   :  { %12020 = vmatmul.msk.f32.vlgmr.msra.gmra.mxu3 %vm308_vm2, %v5397_v51  ;;  %v14528_v51 = vld [vmem:[%s16552_s26] ss:$0 sm:$0xff] }
0x1793   :  { %v5600_v3 = vpop.permute.xlu0 %5599 }
0x1796   :  { %v5359_v53 = vpop.f32.mrf.mxu1 }
0x1797   :  { %v5362_v54 = vsel %vm308_vm2, %v5359_v53, -inf }
0x1798   :  { %5363 = vmax.xlane.f32.xlu1 %v5362_v54 }
0x179b   :  { %v5598_v7 = vpop.permute.xlu0 %5597 }
0x17b1   :  { %5510 = vrot.lane.b32.xlu1 %v5298_v39, %s14738_s9  ;;  %v5230_v39 = vld [vmem:[%s16551_s23 + $0x18] sm:$0xff] }
0x180b   :  { %v5364_v55 = vpop.xlane.xlu1 %5363 }
0x180c   :  { %v5365_v26 = vsub.f32 %v5359_v53, %v5364_v55 }
0x180e   :  { %v5366_v56 = vmul.f32 1.442695, %v5365_v26 }
0x180f   :  { %v5421_v61 = vpop.f32.mrf.mxu3 }
0x1810   :  { %14610 = vpow2.f32 %v5366_v56  ;;  %v5424_v62 = vsel %vm308_vm2, %v5421_v61, -inf }
0x1811   :  { %5425 = vmax.xlane.f32.xlu0 %v5424_v62 }
0x1816   :  { %v14611_v63 = vpop.eup %14610 }
0x1817   :  { %v5368_v0 = vsel %vm308_vm2, %v14611_v63, 0.0 }
0x1818   :  { %5369 = vadd.xlane.f32.xlu2 %v5368_v0 }
0x1823   :  { %v5511_v49 = vpop.permute.xlu1 %5510 }
0x1824   :  { %12024 = vmatpush.xpose.msk.msrb.mxu3 %vm308_vm2, %v5511_v49 }
0x1830   :  { %5508 = vrot.lane.b32.xlu2 %v5335_v48, %s14738_s9 }
0x1884   :  { %v5426_v9 = vpop.xlane.xlu0 %5425 }
0x1885   :  { %v5427_v52 = vsub.f32 %v5421_v61, %v5426_v9  ;;  %v12100_v9 = vld [vmem:[%s16553_s28 + $0xc0] sm:$0xf0] }
0x1887   :  { %v5428_v10 = vmul.f32 1.442695, %v5427_v52  ;;  %v12106_v52 = vld [vmem:[%s16553_s28 + $0x88] sm:$0xf] }
0x1889   :  { %14612 = vpow2.f32 %v5428_v10  ;;  %v14045_v10 = vld [vmem:[%s16553_s28 + $0xc4] sm:$0xf0] }
0x188b   :  { %v5370_v11 = vpop.xlane.xlu2 %5369 }
0x188c   :  { %14614 = vrcp.f32 %v5370_v11  ;;  %v12103_v11 = vor.u32 %v14036_v5, %v12100_v9  ;;  %v14048_v5 = vld [vmem:[%s16553_s28 + $0xdc] sm:$0xf0]  ;;  %v12132_v9 = vld [vmem:[%s16553_s28 + $0xe0] sm:$0xf0] }
0x188f   :  { %v14613_v13 = vpop.eup %14612 }
0x1890   :  { %v5430_v14 = vsel %vm308_vm2, %v14613_v13, 0.0 }
0x1891   :  { %5431 = vadd.xlane.f32.xlu0 %v5430_v14  ;;  %v14037_v14 = vld [vmem:[%s16553_s28 + $0x8c] sm:$0xf] }
0x1892   :  { %v14615_v35 = vpop.eup %14614 }
0x1893   :  { %v5372_v15 = vmul.f32 %v14615_v35, %v14611_v63  ;;  %v5509_v45 = vpop.permute.xlu2 %5508  ;;  %v12108_v35 = vld [vmem:[%s16553_s28 + $0xc8] sm:$0xf0] }
0x1894   :  { %12025 = vmatmul.msk.f32.vlgmr.msrb.gmra.mxu3 %vm308_vm2, %v5509_v45  ;;  %v12034_v45 = vld [vmem:[%s16553_s28] sm:$0xf] }
0x1895   :  { %12018 = vmatmul.msk.f32.vlgmr.msra.gmra.mxu2 %vm308_vm2, %v5372_v15  ;;  %v12111_v15 = vor.u32 %v14037_v14, %v12108_v35  ;;  %v12140_v14 = vld [vmem:[%s16553_s28 + $0xe8] sm:$0xf0] }
0x1896   :  { %12028 = vmatpush.xpose.msk.msra.mxu2 %vm308_vm2, %v5600_v3  ;;  %v12098_v3 = vld [vmem:[%s16553_s28 + $0x80] sm:$0xf] }
0x1904   :  { %v5432_v22 = vpop.xlane.xlu0 %5431 }
0x1917   :  { %v5533_v12 = vpop.f32.mrf.mxu3 }
0x1918   :  { %v5393_v16 = vpop.f32.mrf.mxu2  ;;  %v5536_v60 = vsel %vm308_vm2, %v5533_v12, -inf }
0x1919   :  { %12023 = vmatmul.msk.f32.vlgmr.msrb.gmra.mxu2 %vm308_vm2, %v5393_v16  ;;  %5537 = vmax.xlane.f32.xlu1 %v5536_v60  ;;  %v14020_v16 = vld [vmem:[%s16553_s28 + $0x4] sm:$0xf] }
0x191a   :  { %6231 = vmatpush.bf16.msrb.mxu2 %v12103_v11  ;;  %v14049_v11 = vld [vmem:[%s16553_s28 + $0xe4] sm:$0xf0] }
0x1921   :  { %12029 = vmatmul.msk.f32.vlgmr.msra.gmra.mxu2 %vm308_vm2, %v5598_v7 }
0x1932   :  { %5636 = vrot.lane.b32.xlu1 %v15760_v42, %s14739_s13 }
0x198c   :  { %v5538_v4 = vpop.xlane.xlu1 %5537 }
0x198d   :  { %v5539_v21 = vsub.f32 %v5533_v12, %v5538_v4  ;;  %v14028_v12 = vld [vmem:[%s16553_s28 + $0x3c] sm:$0xf0]  ;;  %v12036_v4 = vld [vmem:[%s16553_s28 + $0x40] sm:$0xf0] }
0x198e   :  { %v12035_v60 = vor.u32 %v14028_v12, %v12034_v45  ;;  %v12066_v45 = vld [vmem:[%s16553_s28 + $0x20] sm:$0xf] }
0x198f   :  { %v5540_v17 = vmul.f32 1.442695, %v5539_v21  ;;  %v12042_v21 = vld [vmem:[%s16553_s28 + $0x8] sm:$0xf]  ;;  %v14032_v12 = vld [vmem:[%s16553_s28 + $0x5c] sm:$0xf0] }
0x1991   :  { %14616 = vpow2.f32 %v5540_v17  ;;  %v14029_v17 = vld [vmem:[%s16553_s28 + $0x44] sm:$0xf0] }
0x1992   :  { %14618 = vrcp.f32 %v5432_v22  ;;  %v12114_v22 = vld [vmem:[%s16553_s28 + $0x90] sm:$0xf] }
0x1997   :  { %v14617_v47 = vpop.eup %14616 }
0x1998   :  { %v5542_v18 = vsel %vm308_vm2, %v14617_v47, 0.0  ;;  %v14619_v2 = vpop.eup %14618 }
0x1999   :  { %5543 = vadd.xlane.f32.xlu0 %v5542_v18  ;;  %v5434_v1 = vmul.f32 %v14619_v2, %v14613_v13  ;;  %v12107_v13 = vor.u32 %v14045_v10, %v12106_v52  ;;  %v12043_v18 = vor.u32 %v14029_v17, %v12042_v21  ;;  %v12138_v52 = vld [vmem:[%s16553_s28 + $0xa8] sm:$0xf]  ;;  %v12068_v21 = vld [vmem:[%s16553_s28 + $0x60] sm:$0xf0] }
0x199a   :  { %v12074_v17 = vld [vmem:[%s16553_s28 + $0x28] sm:$0xf] }
0x199c   :  { %v5505_v59 = vpop.f32.mrf.mxu2 }
0x19a4   :  { %v5622_v58 = vpop.f32.mrf.mxu2  ;;  %v5637_v19 = vpop.permute.xlu1 %5636 }
0x19a5   :  { %5657 = vmatpush.msra.mxu3 %v5637_v19  ;;  %v5625_v20 = vsel %vm308_vm2, %v5622_v58, -inf }
0x19a6   :  { %5626 = vmax.xlane.f32.xlu2 %v5625_v20 }
0x19a7   :  { %6244 = vmatpush.bf16.msrb.mxu3 %v12107_v13  ;;  %v14041_v13 = vld [vmem:[%s16553_s28 + $0xac] sm:$0xf] }
0x19ab   :  { %6245 = vmatpush.bf16.msrb.mxu3 %v12043_v18  ;;  %v14025_v18 = vld [vmem:[%s16553_s28 + $0x2c] sm:$0xf] }
0x19be   :  { %5436 = vrot.lane.b32.xlu2 %v15760_v42, %s14737_s5 }
0x1a0c   :  { %v5544_v30 = vpop.xlane.xlu0 %5543 }
0x1a19   :  { %v5627_v23 = vpop.xlane.xlu2 %5626 }
0x1a1a   :  { %v5628_v57 = vsub.f32 %v5622_v58, %v5627_v23  ;;  %v12044_v58 = vld [vmem:[%s16553_s28 + $0x48] sm:$0xf0]  ;;  %v14046_v23 = vld [vmem:[%s16553_s28 + $0xcc] sm:$0xf0] }
0x1a1b   :  { %v12115_v2 = vor.u32 %v14046_v23, %v12114_v22  ;;  %v12146_v23 = vld [vmem:[%s16553_s28 + $0xb0] sm:$0xf] }
0x1a1c   :  { %v5629_v24 = vmul.f32 1.442695, %v5628_v57  ;;  %v14038_v57 = vld [vmem:[%s16553_s28 + $0x94] sm:$0xf] }
0x1a1e   :  { %14620 = vpow2.f32 %v5629_v24 }
0x1a21   :  { %v5437_v27 = vpop.permute.xlu2 %5436 }
0x1a22   :  { %5457 = vmatpush.msrb.mxu0 %v5437_v27  ;;  %v12122_v27 = vld [vmem:[%s16553_s28 + $0x98] sm:$0xf] }
0x1a23   :  { %12021 = vmatmul.msk.f32.vlgmr.msrb.gmra.mxu0 %vm308_vm2, %v5434_v1  ;;  %v12116_v1 = vld [vmem:[%s16553_s28 + $0xd0] sm:$0xf0] }
0x1a24   :  { %v14621_v28 = vpop.eup %14620 }
0x1a25   :  { %v5631_v6 = vsel %vm308_vm2, %v14621_v28, 0.0 }
0x1a26   :  { %5632 = vadd.xlane.f32.xlu0 %v5631_v6  ;;  %v12119_v6 = vor.u32 %v14038_v57, %v12116_v1  ;;  %v14050_v57 = vld [vmem:[%s16553_s28 + $0xec] sm:$0xf0]  ;;  %v12154_v1 = vld [vmem:[%s16553_s28 + $0xb8] sm:$0xf] }
0x1a3a   :  { %5547 = vrot.lane.b32.xlu0 %v15760_v42, %s14738_s9 }
0x1a99   :  { %v5633_v8 = vpop.xlane.xlu0 %5632 }
0x1a9a   :  { %14622 = vrcp.f32 %v5633_v8  ;;  %v12124_v8 = vld [vmem:[%s16553_s28 + $0xd8] sm:$0xf0] }
0x1a9b   :  { %14624 = vrcp.f32 %v5544_v30  ;;  %v14039_v30 = vld [vmem:[%s16553_s28 + $0x9c] sm:$0xf] }
0x1aa0   :  { %v14623_v31 = vpop.eup %14622  ;;  %v5459_v32 = vpop.f32.mrf.mxu0 }
0x1aa1   :  { %v5635_v33 = vmul.f32 %v14623_v31, %v14621_v28  ;;  %12022 = vmatmul.msk.f32.vlgmr.msrb.gmra.mxu1 %vm308_vm2, %v5459_v32  ;;  %v14625_v34 = vpop.eup %14624  ;;  %v14047_v28 = vld [vmem:[%s16553_s28 + $0xd4] sm:$0xf0]  ;;  %v12050_v31 = vld [vmem:[%s16553_s28 + $0x10] sm:$0xf] }
0x1aa2   :  { %v5546_v36 = vmul.f32 %v14625_v34, %v14617_v47  ;;  %v12039_v47 = vor.u32 %v14020_v16, %v12036_v4  ;;  %v12123_v29 = vor.u32 %v14047_v28, %v12122_v27  ;;  %v14030_v34 = vld [vmem:[%s16553_s28 + $0x4c] sm:$0xf0]  ;;  %v12139_v16 = vor.u32 %v14049_v11, %v12138_v52  ;;  %v14024_v4 = vld [vmem:[%s16553_s28 + $0x24] sm:$0xf]  ;;  %v14051_v27 = vld [vmem:[%s16553_s28 + $0xf4] sm:$0xf0] }
0x1aa3   :  { %12030 = vmatmul.msk.f32.vlgmr.msra.gmra.mxu3 %vm308_vm2, %v5635_v33  ;;  %v12127_v33 = vor.u32 %v14039_v30, %v12124_v8  ;;  %v14043_v28 = vld [vmem:[%s16553_s28 + $0xbc] sm:$0xf]  ;;  %v12082_v8 = vld [vmem:[%s16553_s28 + $0x30] sm:$0xf] }
0x1aa4   :  { %6232 = vmatpush.bf16.msrb.mxu2 %v12039_v47  ;;  %6296 = vmatpush.bf16.msra.mxu3 %v12123_v29  ;;  %v14033_v47 = vld [vmem:[%s16553_s28 + $0x64] sm:$0xf0]  ;;  %v12147_v29 = vor.u32 %v14050_v57, %v12146_v23  ;;  %v14055_v52 = vld [vmem:[%s16556_s7 + $0x18] sm:$0xff]  ;;  %v14114_v23 = vld [vmem:[%s16556_s7 + $0x1f0] sm:$0xff] }
0x1aa5   :  { %v14079_v11 = vld [vmem:[%s16556_s7 + $0xd8] sm:$0xff]  ;;  %v14098_v57 = vld [vmem:[%s16556_s7 + $0x170] sm:$0xff] }
0x1aa8   :  { %6283 = vmatpush.bf16.msra.mxu2 %v12119_v6  ;;  %v12156_v6 = vld [vmem:[%s16553_s28 + $0xf8] sm:$0xf0] }
0x1aac   :  { %v5548_v38 = vpop.permute.xlu0 %5547 }
0x1aad   :  { %5568 = vmatpush.msra.mxu0 %v5548_v38  ;;  %v12051_v38 = vor.u32 %v14030_v34, %v12050_v31  ;;  %v14034_v31 = vld [vmem:[%s16553_s28 + $0x6c] sm:$0xf0]  ;;  %v14026_v34 = vld [vmem:[%s16553_s28 + $0x34] sm:$0xf] }
0x1aae   :  { %12026 = vmatmul.msk.f32.vlgmr.msra.gmra.mxu0 %vm308_vm2, %v5546_v36  ;;  %v14022_v36 = vld [vmem:[%s16553_s28 + $0x14] sm:$0xf] }
0x1aaf   :  { %5680 = vmatpush.msrb.mxu0 %v5230_v39  ;;  %v12052_v39 = vld [vmem:[%s16553_s28 + $0x50] sm:$0xf0] }
0x1ab1   :  { %6257 = vmatpush.bf16.msra.mxu0 %v12111_v15 }
0x1b1e   :  { %v5482_v43 = vpop.f32.mrf.mxu1 }
0x1b1f   :  { %v5506_v44 = vadd.f32 %v5505_v59, %v5482_v43  ;;  %v14021_v59 = vld [vmem:[%s16553_s28 + $0xc] sm:$0xf] }
0x1b20   :  { %v12047_v19 = vor.u32 %v14021_v59, %v12044_v58  ;;  %v12076_v59 = vld [vmem:[%s16553_s28 + $0x68] sm:$0xf0]  ;;  %v12067_v58 = vor.u32 %v14032_v12, %v12066_v45  ;;  %v14062_v45 = vld [vmem:[%s16556_s7 + $0x50] sm:$0xff] }
0x1b21   :  { %v12079_v22 = vor.u32 %v14025_v18, %v12076_v59  ;;  %v14070_v12 = vld [vmem:[%s16556_s7 + $0x90] sm:$0xff]  ;;  %v14115_v18 = vld [vmem:[%s16556_s7 + $0x1f8] sm:$0xff]  ;;  %v14060_v59 = vld [vmem:[%s16556_s7 + $0x40] sm:$0xff] }
0x1b22   :  { %6258 = vmatpush.bf16.msra.mxu0 %v12047_v19  ;;  %v12071_v19 = vor.u32 %v14024_v4, %v12068_v21  ;;  %v14069_v4 = vld [vmem:[%s16556_s7 + $0x88] sm:$0xff]  ;;  %v14052_v21 = vld [vmem:[%s16556_s7] sm:$0xff] }
0x1b26   :  { %v5659_v41 = vpop.f32.mrf.mxu3 }
0x1b27   :  { %12031 = vmatmul.msk.f32.vlgmr.msrb.gmra.mxu0 %vm308_vm2, %v5659_v41  ;;  %v14031_v41 = vld [vmem:[%s16553_s28 + $0x54] sm:$0xf0] }
0x1b28   :  { %6309 = vmatpush.bf16.msrb.mxu0 %v12127_v33  ;;  %v12059_v43 = vor.u32 %v14031_v41, %v12058_v40  ;;  %v12159_v33 = vor.u32 %v14043_v28, %v12156_v6  ;;  %v14027_v40 = vld [vmem:[%s16553_s28 + $0x3c] sm:$0xf]  ;;  %v14105_v28 = vld [vmem:[%s16556_s7 + $0x1a8] sm:$0xff]  ;;  %v14088_v6 = vld [vmem:[%s16556_s7 + $0x120] sm:$0xff] }
0x1b29   :  { %v12092_v41 = vld [vmem:[%s16553_s28 + $0x78] sm:$0xf0] }
0x1b2a   :  { %6297 = vmatpush.bf16.msra.mxu3 %v12059_v43 }
0x1b2b   :  { %v5570_v42 = vpop.f32.mrf.mxu0 }
0x1b2c   :  { %12027 = vmatmul.msk.f32.vlgmr.msra.gmra.mxu1 %vm308_vm2, %v5570_v42  ;;  %v12055_v42 = vor.u32 %v14022_v36, %v12052_v39  ;;  %v12084_v36 = vld [vmem:[%s16553_s28 + $0x70] sm:$0xf0]  ;;  %v14035_v39 = vld [vmem:[%s16553_s28 + $0x74] sm:$0xf0] }
0x1b2d   :  { %v12087_v43 = vor.u32 %v14026_v34, %v12084_v36  ;;  %v14110_v34 = vld [vmem:[%s16556_s7 + $0x1d0] sm:$0xff]  ;;  %v14095_v36 = vld [vmem:[%s16556_s7 + $0x158] sm:$0xff] }
0x1b2e   :  { %6284 = vmatpush.bf16.msra.mxu2 %v12055_v42  ;;  %v12083_v42 = vor.u32 %v14034_v31, %v12082_v8  ;;  %v14104_v8 = vld [vmem:[%s16556_s7 + $0x1a0] sm:$0xff]  ;;  %v14087_v31 = vld [vmem:[%s16556_s7 + $0x118] sm:$0xff] }
0x1ba4   :  { %v5682_v53 = vpop.f32.mrf.mxu0 }
0x1ba9   :  { %v5593_v48 = vpop.f32.mrf.mxu1 }
0x1baa   :  { %v5596_v50 = vadd.f32 %v5593_v48, %v5506_v44  ;;  %v14023_v44 = vld [vmem:[%s16553_s28 + $0x1c] sm:$0xf] }
0x1bab   :  { %v12060_v48 = vld [vmem:[%s16553_s28 + $0x58] sm:$0xf0] }
0x1bac   :  { %v5685_v54 = vadd.f32 %v5682_v53, %v5596_v50  ;;  %v12063_v50 = vor.u32 %v14023_v44, %v12060_v48  ;;  %v12095_v48 = vor.u32 %v14027_v40, %v12092_v41  ;;  %v14109_v40 = vld [vmem:[%s16556_s7 + $0x1c8] sm:$0xff]  ;;  %v14094_v41 = vld [vmem:[%s16556_s7 + $0x150] sm:$0xff] }
0x1bae   :  { %v5689_v55 = vadd.f32 %v14528_v51, %v5685_v54  ;;  %6310 = vmatpush.bf16.msrb.mxu0 %v12063_v50  ;;  %v14059_v50 = vld [vmem:[%s16556_s7 + $0x38] sm:$0xff] }
0x1bb0   :  { %v5690_v26 = vadd.f32 %v5689_v55, %v15752_v37  ;;  %v14044_v37 = vld [vmem:[%s16553_s28 + $0xbc] sm:$0xf0] }
0x1bb1   :  { %v12099_v7 = vor.u32 %v14044_v37, %v12098_v3  ;;  %v12130_v37 = vld [vmem:[%s16553_s28 + $0xa0] sm:$0xf] }
0x1bb2   :  { %v5693_v56 = vsel %vm209_vm1, %v5690_v26, 0.0  ;;  %v12131_v35 = vor.u32 %v14048_v5, %v12130_v37  ;;  %v14056_v37 = vld [vmem:[%s16556_s7 + $0x20] sm:$0xff] }
0x1bb3   :  { %5694 = vadd.xlane.f32.xlu2 %v5693_v56  ;;  %6218 = vmatpush.bf16.msrb.mxu1 %v12099_v7  ;;  %v14040_v7 = vld [vmem:[%s16553_s28 + $0xa4] sm:$0xf] }
0x1bb4   :  { %v12135_v15 = vor.u32 %v14040_v7, %v12132_v9  ;;  %v14080_v5 = vld [vmem:[%s16556_s7 + $0xe0] sm:$0xff] }
0x1bb5   :  { %v14064_v7 = vld [vmem:[%s16556_s7 + $0x60] sm:$0xff] }
0x1bb6   :  { %v14072_v9 = vld [vmem:[%s16556_s7 + $0xa0] sm:$0xff] }
0x1bb7   :  { %6219 = vmatpush.bf16.msrb.mxu1 %v12035_v60  ;;  %v12143_v60 = vor.u32 %v14041_v13, %v12140_v14  ;;  %v14063_v13 = vld [vmem:[%s16556_s7 + $0x58] sm:$0xff] }
0x1bb8   :  { %v14071_v14 = vld [vmem:[%s16556_s7 + $0x98] sm:$0xff] }
0x1bbb   :  { %6270 = vmatpush.bf16.msra.mxu1 %v12115_v2  ;;  %v12148_v2 = vld [vmem:[%s16553_s28 + $0xf0] sm:$0xf0] }
0x1bbf   :  { %6271 = vmatpush.bf16.msra.mxu1 %v12051_v38  ;;  %v12090_v38 = vld [vmem:[%s16553_s28 + $0x38] sm:$0xf] }
0x1bc0   :  { %v12091_v44 = vor.u32 %v14035_v39, %v12090_v38  ;;  %v14103_v38 = vld [vmem:[%s16556_s7 + $0x198] sm:$0xff]  ;;  %v14085_v39 = vld [vmem:[%s16556_s7 + $0x108] sm:$0xff] }
0x1c26   :  { %v5695_v61 = vpop.xlane.xlu2 %5694 }
0x1c27   :  { %v5696_v62 = vmul.f32 %v5695_v61, %v15017_v46  ;;  %v14529_v61 = vld [vmem:[%s16554_s1] ss:$0 sm:$0xff] }
0x1c29   :  { %v15806_v63 = vsub.f32 %v5690_v26, %v5696_v62 }
0x1c2b   :  { %v5698_v0 = vmul.f32 %v15806_v63, %v15806_v63 }
0x1c2d   :  { %v5699_v49 = vsel %vm209_vm1, %v5698_v0, 0.0  ;;  %v14530_v0 = vld [vmem:[%s16555_s2] ss:$0 sm:$0xff] }
0x1c2e   :  { %5700 = vadd.xlane.f32.xlu0 %v5699_v49 }
0x1ca1   :  { %v5701_v20 = vpop.xlane.xlu0 %5700 }
0x1ca2   :  { %v5702_v24 = vmul.f32 %v5701_v20, %v15017_v46  ;;  %v12075_v20 = vor.u32 %v14033_v47, %v12074_v17  ;;  %v14076_v17 = vld [vmem:[%s16556_s7 + $0xc0] sm:$0xff]  ;;  %v14091_v47 = vld [vmem:[%s16556_s7 + $0x138] sm:$0xff] }
0x1ca4   :  { %v5703_v32 = vadd.f32 1e-05, %v5702_v24  ;;  %v14042_v24 = vld [vmem:[%s16553_s28 + $0xb4] sm:$0xf] }
0x1ca5   :  { %v12151_v30 = vor.u32 %v14042_v24, %v12148_v2  ;;  %v14106_v24 = vld [vmem:[%s16556_s7 + $0x1b0] sm:$0xff]  ;;  %v14089_v2 = vld [vmem:[%s16556_s7 + $0x128] sm:$0xff] }
0x1ca6   :  { %14626 = vrsqrt.f32 %v5703_v32  ;;  %vm5710_vm10 = vweird.f32 %v5703_v32 }
0x1cac   :  { %v14627_v51 = vpop.eup %14626 }
0x1cad   :  { %v5705_v53 = vmul.f32 %v14627_v51, %v5703_v32  ;;  %vm5711_vm9 = vweird.f32 %v14627_v51  ;;  %v12155_v32 = vor.u32 %v14051_v27, %v12154_v1  ;;  %v14113_v1 = vld [vmem:[%s16556_s7 + $0x1e8] sm:$0xff] }
0x1cae   :  { %vm5712_vm11 = vmor %vm5710_vm10, %vm5711_vm9  ;;  %v14097_v27 = vld [vmem:[%s16556_s7 + $0x168] sm:$0xff] }
0x1caf   :  { %v5706_v54 = vmul.f32 %v14627_v51, %v5705_v53  ;;  %v14067_v53 = vld [vmem:[%s16556_s7 + $0x78] sm:$0xff] }
0x1cb1   :  { %v5707_v55 = vmul.f32 0.5, %v5706_v54  ;;  %v14075_v54 = vld [vmem:[%s16556_s7 + $0xb8] sm:$0xff] }
0x1cb3   :  { %v5708_v26 = vsub.f32 1.5, %v5707_v55  ;;  %v14058_v55 = vld [vmem:[%s16556_s7 + $0x30] sm:$0xff] }
0x1cb5   :  { %v5709_v56 = vmul.f32 %v14627_v51, %v5708_v26  ;;  %v14082_v26 = vld [vmem:[%s16556_s7 + $0xf0] sm:$0xff] }
0x1cb7   :  { %v5713_v62 = vsel %vm5712_vm11, %v14627_v51, %v5709_v56  ;;  %v14083_v51 = vld [vmem:[%s16556_s7 + $0xf8] sm:$0xff]  ;;  %v14066_v56 = vld [vmem:[%s16556_s7 + $0x70] sm:$0xff] }
0x1cb8   :  { %v5714_v49 = vmul.f32 %v5713_v62, %v15806_v63  ;;  %v14057_v62 = vld [vmem:[%s16556_s7 + $0x28] sm:$0xff] }
0x1cba   :  { %v5718_v3 = vmul.f32 %v14529_v61, %v5714_v49  ;;  %v14074_v61 = vld [vmem:[%s16556_s7 + $0xb0] sm:$0xff]  ;;  %v14065_v49 = vld [vmem:[%s16556_s7 + $0x68] sm:$0xff] }
0x1cbc   :  { %v15852_v10 = vadd.f32 %v14530_v0, %v5718_v3  ;;  %v14081_v0 = vld [vmem:[%s16556_s7 + $0xe8] sm:$0xff] }
0x1cbd   :  { %v14073_v3 = vld [vmem:[%s16556_s7 + $0xa8] sm:$0xff] }
0x1cbe   :  { %v15859_v63 = vpack.c.bf16 %v15852_v10, %v15852_v10 }
0x1cc0   :  { %12160 = vmatmul.msk.bf16.vlgmr.msrb.gmra.mxu1 %vm209_vm1, %v15859_v63  ;;  %12161 = vmatmul.msk.bf16.vlgmr.msrb.gmra.mxu2 %vm209_vm1, %v15859_v63 }
0x1cc1   :  { %12162 = vmatmul.msk.bf16.vlgmr.msrb.gmra.mxu3 %vm209_vm1, %v15859_v63  ;;  %12163 = vmatmul.msk.bf16.vlgmr.msra.gmra.mxu0 %vm209_vm1, %v15859_v63 }
0x1cc2   :  { %6322 = vmatpush.bf16.msrb.mxu1 %v12131_v35  ;;  %6335 = vmatpush.bf16.msrb.mxu2 %v12135_v15  ;;  %v14054_v35 = vld [vmem:[%s16556_s7 + $0x10] sm:$0xff] }
0x1cc3   :  { %6348 = vmatpush.bf16.msrb.mxu3 %v12139_v16  ;;  %6361 = vmatpush.bf16.msra.mxu0 %v12143_v60  ;;  %v14078_v15 = vld [vmem:[%s16556_s7 + $0xd0] sm:$0xff]  ;;  %v14053_v16 = vld [vmem:[%s16556_s7 + $0x8] sm:$0xff] }
0x1cc4   :  { %v14061_v60 = vld [vmem:[%s16556_s7 + $0x48] sm:$0xff] }
0x1cc6   :  { %6323 = vmatpush.bf16.msrb.mxu1 %v12067_v58  ;;  %6336 = vmatpush.bf16.msrb.mxu2 %v12071_v19  ;;  %v14068_v58 = vld [vmem:[%s16556_s7 + $0x80] sm:$0xff]  ;;  %v14099_v19 = vld [vmem:[%s16556_s7 + $0x178] sm:$0xff] }
0x1cc7   :  { %6349 = vmatpush.bf16.msrb.mxu3 %v12075_v20  ;;  %6362 = vmatpush.bf16.msra.mxu0 %v12079_v22  ;;  %v14107_v20 = vld [vmem:[%s16556_s7 + $0x1b8] sm:$0xff]  ;;  %v14090_v22 = vld [vmem:[%s16556_s7 + $0x130] sm:$0xff] }
0x1cd0   :  { %12164 = vmatmul.msk.bf16.vlgmr.msra.gmra.mxu1 %vm209_vm1, %v15859_v63  ;;  %12165 = vmatmul.msk.bf16.vlgmr.msra.gmra.mxu2 %vm209_vm1, %v15859_v63 }
0x1cd1   :  { %12166 = vmatmul.msk.bf16.vlgmr.msra.gmra.mxu3 %vm209_vm1, %v15859_v63  ;;  %12167 = vmatmul.msk.bf16.vlgmr.msrb.gmra.mxu0 %vm209_vm1, %v15859_v63 }
0x1cd2   :  { %6374 = vmatpush.bf16.msra.mxu1 %v12147_v29  ;;  %6387 = vmatpush.bf16.msra.mxu2 %v12151_v30  ;;  %v14112_v29 = vld [vmem:[%s16556_s7 + $0x1e0] sm:$0xff] }
0x1cd3   :  { %6400 = vmatpush.bf16.msra.mxu3 %v12155_v32  ;;  %6413 = vmatpush.bf16.msrb.mxu0 %v12159_v33  ;;  %v14096_v30 = vld [vmem:[%s16556_s7 + $0x160] sm:$0xff]  ;;  %v14111_v32 = vld [vmem:[%s16556_s7 + $0x1d8] sm:$0xff]  ;;  %v14086_v33 = vld [vmem:[%s16556_s7 + $0x110] sm:$0xff] }
0x1cd6   :  { %6375 = vmatpush.bf16.msra.mxu1 %v12083_v42  ;;  %6388 = vmatpush.bf16.msra.mxu2 %v12087_v43  ;;  %v14102_v42 = vld [vmem:[%s16556_s7 + $0x190] sm:$0xff]  ;;  %v14084_v43 = vld [vmem:[%s16556_s7 + $0x100] sm:$0xff] }
0x1cd7   :  { %6401 = vmatpush.bf16.msra.mxu3 %v12091_v44  ;;  %6414 = vmatpush.bf16.msrb.mxu0 %v12095_v48  ;;  %v14108_v44 = vld [vmem:[%s16556_s7 + $0x1c0] sm:$0xff]  ;;  %v14093_v48 = vld [vmem:[%s16556_s7 + $0x148] sm:$0xff] }
0x1ce0   :  { %12168 = vmatmul.msk.bf16.vlgmr.msrb.gmra.mxu1 %vm209_vm1, %v15859_v63  ;;  %12169 = vmatmul.msk.bf16.vlgmr.msrb.gmra.mxu2 %vm209_vm1, %v15859_v63 }
0x1ce1   :  { %12170 = vmatmul.msk.bf16.vlgmr.msrb.gmra.mxu3 %vm209_vm1, %v15859_v63  ;;  %12171 = vmatmul.msk.bf16.vlgmr.msra.gmra.mxu0 %vm209_vm1, %v15859_v63 }
0x1ce2   :  { %7223 = vmatpush.bf16.msrb.mxu1 %v14059_v50  ;;  %7262 = vmatpush.bf16.msra.mxu0 %v14083_v51  ;;  %v14101_v50 = vld [vmem:[%s16556_s7 + $0x188] sm:$0xff]  ;;  %v14092_v51 = vld [vmem:[%s16556_s7 + $0x140] sm:$0xff] }
0x1ce3   :  { %7236 = vmatpush.bf16.msrb.mxu2 %v14067_v53  ;;  %7249 = vmatpush.bf16.msrb.mxu3 %v14075_v54  ;;  %v14100_v53 = vld [vmem:[%s16556_s7 + $0x180] sm:$0xff] }
0x1ce4   :  { %v15982_v54 = vld [vmem:[%s16557_s10] sm:$0xff] }
0x1ce6   :  { %7224 = vmatpush.bf16.msrb.mxu1 %v14058_v55  ;;  %7263 = vmatpush.bf16.msra.mxu0 %v14082_v26  ;;  %v6017_v55 = vperm.slane %v15982_v54, 0  ;;  %v6020_v26 = vperm.slane %v15982_v54, 3 }
0x1ce7   :  { %7237 = vmatpush.bf16.msrb.mxu2 %v14066_v56  ;;  %7250 = vmatpush.bf16.msrb.mxu3 %v14074_v61 }
0x1cea   :  { %7225 = vmatpush.bf16.msrb.mxu1 %v14057_v62  ;;  %7264 = vmatpush.bf16.msra.mxu0 %v14081_v0 }
0x1ceb   :  { %7238 = vmatpush.bf16.msrb.mxu2 %v14065_v49  ;;  %7251 = vmatpush.bf16.msrb.mxu3 %v14073_v3  ;;  %v6018_v3 = vperm.slane %v15982_v54, 1 }
0x1cee   :  { %7226 = vmatpush.bf16.msrb.mxu1 %v14056_v37  ;;  %7265 = vmatpush.bf16.msra.mxu0 %v14080_v5  ;;  %v6019_v5 = vperm.slane %v15982_v54, 2 }
0x1cef   :  { %7239 = vmatpush.bf16.msrb.mxu2 %v14064_v7  ;;  %7252 = vmatpush.bf16.msrb.mxu3 %v14072_v9  ;;  %v14123_v7 = vld [vmem:[%s16556_s7 + $0x238] sm:$0xff] }
0x1cf0   :  { %12172 = vmatmul.msk.bf16.vlgmr.msra.gmra.mxu1 %vm209_vm1, %v15859_v63  ;;  %12173 = vmatmul.msk.bf16.vlgmr.msra.gmra.mxu2 %vm209_vm1, %v15859_v63 }
0x1cf1   :  { %12174 = vmatmul.msk.bf16.vlgmr.msra.gmra.mxu3 %vm209_vm1, %v15859_v63  ;;  %12175 = vmatmul.msk.bf16.vlgmr.msrb.gmra.mxu0 %vm209_vm1, %v15859_v63  ;;  %v14077_v63 = vld [vmem:[%s16556_s7 + $0xc8] sm:$0xff] }
0x1cf2   :  { %7227 = vmatpush.bf16.msrb.mxu1 %v14055_v52  ;;  %7266 = vmatpush.bf16.msra.mxu0 %v14079_v11  ;;  %v14147_v52 = vld [vmem:[%s16556_s7 + $0x2f8] sm:$0xff] }
0x1cf3   :  { %7240 = vmatpush.bf16.msrb.mxu2 %v14063_v13  ;;  %7253 = vmatpush.bf16.msrb.mxu3 %v14071_v14 }
0x1cf6   :  { %7228 = vmatpush.bf16.msrb.mxu1 %v14054_v35  ;;  %7267 = vmatpush.bf16.msra.mxu0 %v14078_v15 }
0x1cf7   :  { %7241 = vmatpush.bf16.msrb.mxu2 %v14062_v45  ;;  %7254 = vmatpush.bf16.msrb.mxu3 %v14070_v12  ;;  %v14122_v12 = vld [vmem:[%s16556_s7 + $0x230] sm:$0xff] }
0x1cfa   :  { %7229 = vmatpush.bf16.msrb.mxu1 %v14053_v16  ;;  %7268 = vmatpush.bf16.msra.mxu0 %v14077_v63 }
0x1cfb   :  { %7242 = vmatpush.bf16.msrb.mxu2 %v14061_v60  ;;  %7255 = vmatpush.bf16.msrb.mxu3 %v14069_v4  ;;  %v14146_v60 = vld [vmem:[%s16556_s7 + $0x2f0] sm:$0xff] }
0x1cfe   :  { %7230 = vmatpush.bf16.msrb.mxu1 %v14052_v21  ;;  %7269 = vmatpush.bf16.msra.mxu0 %v14076_v17  ;;  %v14131_v21 = vld [vmem:[%s16556_s7 + $0x278] sm:$0xff] }
0x1cff   :  { %7243 = vmatpush.bf16.msrb.mxu2 %v14060_v59  ;;  %7256 = vmatpush.bf16.msrb.mxu3 %v14068_v58  ;;  %v14121_v59 = vld [vmem:[%s16556_s7 + $0x228] sm:$0xff] }
0x1d00   :  { %v14145_v58 = vld [vmem:[%s16556_s7 + $0x2e8] sm:$0xff] }
0x1d02   :  { %7275 = vmatpush.bf16.msra.mxu1 %v14091_v47  ;;  %7314 = vmatpush.bf16.msrb.mxu0 %v14115_v18  ;;  %v14139_v47 = vld [vmem:[%s16556_s7 + $0x2b8] sm:$0xff] }
0x1d03   :  { %7288 = vmatpush.bf16.msra.mxu2 %v14099_v19  ;;  %7301 = vmatpush.bf16.msra.mxu3 %v14107_v20  ;;  %v6021_v19 = vperm.slane %v15982_v54, 4 }
0x1d06   :  { %7276 = vmatpush.bf16.msra.mxu1 %v14090_v22  ;;  %7315 = vmatpush.bf16.msrb.mxu0 %v14114_v23  ;;  %v6024_v22 = vperm.slane %v15982_v54, 7  ;;  %v14130_v23 = vld [vmem:[%s16556_s7 + $0x270] sm:$0xff] }
0x1d07   :  { %7289 = vmatpush.bf16.msra.mxu2 %v14098_v57  ;;  %7302 = vmatpush.bf16.msra.mxu3 %v14106_v24  ;;  %v14138_v24 = vld [vmem:[%s16556_s7 + $0x2b0] sm:$0xff] }
0x1d0a   :  { %7277 = vmatpush.bf16.msra.mxu1 %v14089_v2  ;;  %7316 = vmatpush.bf16.msrb.mxu0 %v14113_v1  ;;  %v14120_v1 = vld [vmem:[%s16556_s7 + $0x220] sm:$0xff] }
0x1d0b   :  { %7290 = vmatpush.bf16.msra.mxu2 %v14097_v27  ;;  %7303 = vmatpush.bf16.msra.mxu3 %v14105_v28 }
0x1d0e   :  { %7278 = vmatpush.bf16.msra.mxu1 %v14088_v6  ;;  %7317 = vmatpush.bf16.msrb.mxu0 %v14112_v29  ;;  %v14144_v6 = vld [vmem:[%s16556_s7 + $0x2e0] sm:$0xff] }
0x1d0f   :  { %7291 = vmatpush.bf16.msra.mxu2 %v14096_v30  ;;  %7304 = vmatpush.bf16.msra.mxu3 %v14104_v8  ;;  %v14129_v30 = vld [vmem:[%s16556_s7 + $0x268] sm:$0xff] }
0x1d12   :  { %7279 = vmatpush.bf16.msra.mxu1 %v14087_v31  ;;  %7318 = vmatpush.bf16.msrb.mxu0 %v14111_v32  ;;  %v14137_v31 = vld [vmem:[%s16556_s7 + $0x2a8] sm:$0xff]  ;;  %v6022_v32 = vperm.slane %v15982_v54, 5 }
0x1d13   :  { %7292 = vmatpush.bf16.msra.mxu2 %v14095_v36  ;;  %7305 = vmatpush.bf16.msra.mxu3 %v14103_v38  ;;  %v14119_v36 = vld [vmem:[%s16556_s7 + $0x218] sm:$0xff] }
0x1d16   :  { %7280 = vmatpush.bf16.msra.mxu1 %v14086_v33  ;;  %7319 = vmatpush.bf16.msrb.mxu0 %v14110_v34  ;;  %v6023_v34 = vperm.slane %v15982_v54, 6 }
0x1d17   :  { %7293 = vmatpush.bf16.msra.mxu2 %v14094_v41  ;;  %7306 = vmatpush.bf16.msra.mxu3 %v14102_v42  ;;  %v14128_v42 = vld [vmem:[%s16556_s7 + $0x260] sm:$0xff] }
0x1d1a   :  { %7281 = vmatpush.bf16.msra.mxu1 %v14085_v39  ;;  %7320 = vmatpush.bf16.msrb.mxu0 %v14109_v40  ;;  %v14143_v39 = vld [vmem:[%s16556_s7 + $0x2d8] sm:$0xff] }
0x1d1b   :  { %7294 = vmatpush.bf16.msra.mxu2 %v14093_v48  ;;  %7307 = vmatpush.bf16.msra.mxu3 %v14101_v50  ;;  %v14136_v48 = vld [vmem:[%s16556_s7 + $0x2a0] sm:$0xff] }
0x1d1e   :  { %7282 = vmatpush.bf16.msra.mxu1 %v14084_v43  ;;  %7321 = vmatpush.bf16.msrb.mxu0 %v14108_v44 }
0x1d1f   :  { %7295 = vmatpush.bf16.msra.mxu2 %v14092_v51  ;;  %7308 = vmatpush.bf16.msra.mxu3 %v14100_v53  ;;  %v14118_v53 = vld [vmem:[%s16556_s7 + $0x210] sm:$0xff] }
0x1d3d   :  { %v6221_v56 = vpop.f32.mrf.mxu1 }
0x1d3e   :  { %v6222_v61 = vadd.f32 %v6221_v56, %v6017_v55  ;;  %v6260_v62 = vpop.f32.mrf.mxu0 }
0x1d3f   :  { %v6261_v0 = vadd.f32 %v6260_v62, %v6020_v26  ;;  %v14142_v26 = vld [vmem:[%s16556_s7 + $0x2d0] sm:$0xff]  ;;  %v16014_v62 = vld [vmem:[%s16557_s10 + $0x8] sm:$0xff] }
0x1d40   :  { %v6420_v49 = vmax.f32 %v6222_v61, 0.0  ;;  %v14127_v61 = vld [vmem:[%s16556_s7 + $0x258] sm:$0xff] }
0x1d41   :  { %v6423_v37 = vmax.f32 %v6261_v0, 0.0 }
0x1d42   :  { %v6436_v9 = vpack.c.bf16 %v6420_v49, %v6420_v49  ;;  %v14135_v49 = vld [vmem:[%s16556_s7 + $0x298] sm:$0xff] }
0x1d43   :  { %v6439_v11 = vpack.c.bf16 %v6423_v37, %v6423_v37  ;;  %v6234_v13 = vpop.f32.mrf.mxu2  ;;  %v14117_v37 = vld [vmem:[%s16556_s7 + $0x208] sm:$0xff] }
0x1d44   :  { %v6235_v14 = vadd.f32 %v6234_v13, %v6018_v3  ;;  %v6247_v35 = vpop.f32.mrf.mxu3  ;;  %7231 = vmatmul.bf16.vlgmr.msrb.gmra.mxu1 %v6436_v9 }
0x1d45   :  { %v6248_v15 = vadd.f32 %v6247_v35, %v6019_v5  ;;  %7270 = vmatmul.bf16.vlgmr.msra.gmra.mxu0 %v6439_v11  ;;  %7327 = vmatpush.bf16.msrb.mxu1 %v14123_v7  ;;  %v6223_v45 = vpop.f32.mrf.mxu1  ;;  %v14141_v5 = vld [vmem:[%s16556_s7 + $0x2c8] sm:$0xff]  ;;  %v6025_v7 = vperm.slane %v16014_v62, 0  ;;  %v14126_v11 = vld [vmem:[%s16556_s7 + $0x250] sm:$0xff] }
0x1d46   :  { %v6421_v16 = vmax.f32 %v6235_v14, 0.0  ;;  %7366 = vmatpush.bf16.msra.mxu0 %v14147_v52  ;;  %v6262_v63 = vpop.f32.mrf.mxu0  ;;  %v6028_v52 = vperm.slane %v16014_v62, 3  ;;  %v14134_v14 = vld [vmem:[%s16556_s7 + $0x290] sm:$0xff] }
0x1d47   :  { %v6422_v4 = vmax.f32 %v6248_v15, 0.0  ;;  %v14116_v15 = vld [vmem:[%s16556_s7 + $0x200] sm:$0xff]  ;;  %v14155_v63 = vld [vmem:[%s16556_s7 + $0x338] sm:$0xff] }
0x1d48   :  { %v6437_v17 = vpack.c.bf16 %v6421_v16, %v6421_v16  ;;  %v14140_v16 = vld [vmem:[%s16556_s7 + $0x2c0] sm:$0xff] }
0x1d49   :  { %v6438_v18 = vpack.c.bf16 %v6422_v4, %v6422_v4  ;;  %7328 = vmatpush.bf16.msrb.mxu1 %v14122_v12  ;;  %v14179_v4 = vld [vmem:[%s16556_s7 + $0x3f8] sm:$0xff] }
0x1d4a   :  { %7367 = vmatpush.bf16.msra.mxu0 %v14146_v60  ;;  %7244 = vmatmul.bf16.vlgmr.msrb.gmra.mxu2 %v6437_v17 }
0x1d4b   :  { %7257 = vmatmul.bf16.vlgmr.msrb.gmra.mxu3 %v6438_v18  ;;  %7340 = vmatpush.bf16.msrb.mxu2 %v14131_v21  ;;  %v6236_v20 = vpop.f32.mrf.mxu2  ;;  %v14125_v21 = vld [vmem:[%s16556_s7 + $0x248] sm:$0xff]  ;;  %v6026_v18 = vperm.slane %v16014_v62, 1 }
0x1d4c   :  { %7353 = vmatpush.bf16.msrb.mxu3 %v14139_v47  ;;  %v6249_v57 = vpop.f32.mrf.mxu3  ;;  %v14133_v47 = vld [vmem:[%s16556_s7 + $0x288] sm:$0xff]  ;;  %v14154_v20 = vld [vmem:[%s16556_s7 + $0x330] sm:$0xff] }
0x1d4d   :  { %7329 = vmatpush.bf16.msrb.mxu1 %v14121_v59  ;;  %v6273_v2 = vpop.f32.mrf.mxu1  ;;  %v14178_v57 = vld [vmem:[%s16556_s7 + $0x3f0] sm:$0xff] }
0x1d4e   :  { %7368 = vmatpush.bf16.msra.mxu0 %v14145_v58  ;;  %v6274_v27 = vadd.f32 %v6273_v2, %v6021_v19  ;;  %v6312_v28 = vpop.f32.mrf.mxu0  ;;  %v6027_v58 = vperm.slane %v16014_v62, 2 }
0x1d4f   :  { %v6313_v29 = vadd.f32 %v6312_v28, %v6024_v22  ;;  %7341 = vmatpush.bf16.msrb.mxu2 %v14130_v23  ;;  %v14163_v28 = vld [vmem:[%s16556_s7 + $0x378] sm:$0xff] }
0x1d50   :  { %v6424_v8 = vmax.f32 %v6274_v27, 0.0  ;;  %7354 = vmatpush.bf16.msrb.mxu3 %v14138_v24  ;;  %v14124_v24 = vld [vmem:[%s16556_s7 + $0x240] sm:$0xff] }
0x1d51   :  { %v6427_v33 = vmax.f32 %v6313_v29, 0.0  ;;  %7330 = vmatpush.bf16.msrb.mxu1 %v14120_v1  ;;  %v14132_v27 = vld [vmem:[%s16556_s7 + $0x280] sm:$0xff] }
0x1d52   :  { %v6440_v38 = vpack.c.bf16 %v6424_v8, %v6424_v8  ;;  %7369 = vmatpush.bf16.msra.mxu0 %v14144_v6 }
0x1d53   :  { %v6443_v40 = vpack.c.bf16 %v6427_v33, %v6427_v33  ;;  %7342 = vmatpush.bf16.msrb.mxu2 %v14129_v30  ;;  %v6286_v41 = vpop.f32.mrf.mxu2  ;;  %v14171_v30 = vld [vmem:[%s16556_s7 + $0x3b8] sm:$0xff] }
0x1d54   :  { %7355 = vmatpush.bf16.msrb.mxu3 %v14137_v31  ;;  %v6287_v43 = vadd.f32 %v6286_v41, %v6022_v32  ;;  %v6299_v44 = vpop.f32.mrf.mxu3  ;;  %7283 = vmatmul.bf16.vlgmr.msra.gmra.mxu1 %v6440_v38  ;;  %v14153_v32 = vld [vmem:[%s16556_s7 + $0x328] sm:$0xff]  ;;  %v14162_v38 = vld [vmem:[%s16556_s7 + $0x370] sm:$0xff]  ;;  %v14152_v41 = vld [vmem:[%s16556_s7 + $0x320] sm:$0xff] }
0x1d55   :  { %v6300_v50 = vadd.f32 %v6299_v44, %v6023_v34  ;;  %7322 = vmatmul.bf16.vlgmr.msrb.gmra.mxu0 %v6443_v40  ;;  %7331 = vmatpush.bf16.msrb.mxu1 %v14119_v36  ;;  %v6275_v51 = vpop.f32.mrf.mxu1  ;;  %v14177_v34 = vld [vmem:[%s16556_s7 + $0x3e8] sm:$0xff]  ;;  %v14170_v40 = vld [vmem:[%s16556_s7 + $0x3b0] sm:$0xff] }
0x1d56   :  { %v6425_v54 = vmax.f32 %v6287_v43, 0.0  ;;  %7370 = vmatpush.bf16.msra.mxu0 %v14143_v39  ;;  %v6314_v55 = vpop.f32.mrf.mxu0  ;;  %v14176_v43 = vld [vmem:[%s16556_s7 + $0x3e0] sm:$0xff]  ;;  %v14169_v51 = vld [vmem:[%s16556_s7 + $0x3a8] sm:$0xff] }
0x1d57   :  { %v6426_v56 = vmax.f32 %v6300_v50, 0.0  ;;  %7343 = vmatpush.bf16.msrb.mxu2 %v14128_v42  ;;  %v14175_v55 = vld [vmem:[%s16556_s7 + $0x3d8] sm:$0xff] }
0x1d58   :  { %v6441_v0 = vpack.c.bf16 %v6425_v54, %v6425_v54  ;;  %7356 = vmatpush.bf16.msrb.mxu3 %v14136_v48  ;;  %v14161_v48 = vld [vmem:[%s16556_s7 + $0x368] sm:$0xff]  ;;  %v14151_v54 = vld [vmem:[%s16556_s7 + $0x318] sm:$0xff] }
0x1d59   :  { %v6442_v3 = vpack.c.bf16 %v6426_v56, %v6426_v56  ;;  %7332 = vmatpush.bf16.msrb.mxu1 %v14118_v53  ;;  %v14168_v56 = vld [vmem:[%s16556_s7 + $0x3a0] sm:$0xff] }
0x1d5a   :  { %7371 = vmatpush.bf16.msra.mxu0 %v14142_v26  ;;  %7296 = vmatmul.bf16.vlgmr.msra.gmra.mxu2 %v6441_v0  ;;  %v14160_v26 = vld [vmem:[%s16556_s7 + $0x360] sm:$0xff]  ;;  %v6029_v0 = vperm.slane %v16014_v62, 4 }
0x1d5b   :  { %7309 = vmatmul.bf16.vlgmr.msra.gmra.mxu3 %v6442_v3  ;;  %7344 = vmatpush.bf16.msrb.mxu2 %v14127_v61  ;;  %v6288_v9 = vpop.f32.mrf.mxu2  ;;  %v14150_v61 = vld [vmem:[%s16556_s7 + $0x310] sm:$0xff] }
0x1d5c   :  { %7357 = vmatpush.bf16.msrb.mxu3 %v14135_v49  ;;  %v6301_v13 = vpop.f32.mrf.mxu3  ;;  %v14174_v3 = vld [vmem:[%s16556_s7 + $0x3d0] sm:$0xff] }
0x1d5d   :  { %7333 = vmatpush.bf16.msrb.mxu1 %v14117_v37  ;;  %v6325_v35 = vpop.f32.mrf.mxu1  ;;  %v6032_v37 = vperm.slane %v16014_v62, 7  ;;  %v14149_v13 = vld [vmem:[%s16556_s7 + $0x308] sm:$0xff] }
0x1d5e   :  { %7372 = vmatpush.bf16.msra.mxu0 %v14141_v5  ;;  %v6326_v45 = vadd.f32 %v6325_v35, %v6025_v7  ;;  %v6364_v12 = vpop.f32.mrf.mxu0  ;;  %v14159_v7 = vld [vmem:[%s16556_s7 + $0x358] sm:$0xff]  ;;  %v14173_v35 = vld [vmem:[%s16556_s7 + $0x3c8] sm:$0xff] }
0x1d5f   :  { %v6365_v60 = vadd.f32 %v6364_v12, %v6028_v52  ;;  %7345 = vmatpush.bf16.msrb.mxu2 %v14126_v11  ;;  %v14167_v52 = vld [vmem:[%s16556_s7 + $0x398] sm:$0xff]  ;;  %v6030_v12 = vperm.slane %v16014_v62, 5 }
0x1d60   :  { %v6428_v17 = vmax.f32 %v6326_v45, 0.0  ;;  %7358 = vmatpush.bf16.msrb.mxu3 %v14134_v14  ;;  %v14158_v45 = vld [vmem:[%s16556_s7 + $0x350] sm:$0xff] }
0x1d61   :  { %v6431_v59 = vmax.f32 %v6365_v60, 0.0  ;;  %7334 = vmatpush.bf16.msrb.mxu1 %v14116_v15  ;;  %v14148_v60 = vld [vmem:[%s16556_s7 + $0x300] sm:$0xff] }
0x1d62   :  { %v6444_v19 = vpack.c.bf16 %v6428_v17, %v6428_v17  ;;  %7373 = vmatpush.bf16.msra.mxu0 %v14140_v16  ;;  %v14166_v16 = vld [vmem:[%s16556_s7 + $0x390] sm:$0xff]  ;;  %v14172_v17 = vld [vmem:[%s16556_s7 + $0x3c0] sm:$0xff] }
0x1d63   :  { %v6447_v22 = vpack.c.bf16 %v6431_v59, %v6431_v59  ;;  %7346 = vmatpush.bf16.msrb.mxu2 %v14125_v21  ;;  %v6338_v23 = vpop.f32.mrf.mxu2  ;;  %v14157_v59 = vld [vmem:[%s16556_s7 + $0x348] sm:$0xff] }
0x1d64   :  { %7359 = vmatpush.bf16.msrb.mxu3 %v14133_v47  ;;  %v6339_v2 = vadd.f32 %v6338_v23, %v6026_v18  ;;  %v6351_v1 = vpop.f32.mrf.mxu3  ;;  %7335 = vmatmul.bf16.vlgmr.msrb.gmra.mxu1 %v6444_v19  ;;  %v14165_v19 = vld [vmem:[%s16556_s7 + $0x388] sm:$0xff]  ;;  %v14156_v23 = vld [vmem:[%s16556_s7 + $0x340] sm:$0xff] }
0x1d65   :  { %7379 = vmatpush.bf16.msra.mxu1 %v14155_v63  ;;  %v6352_v6 = vadd.f32 %v6351_v1, %v6027_v58  ;;  %7374 = vmatmul.bf16.vlgmr.msra.gmra.mxu0 %v6447_v22  ;;  %v6327_v29 = vpop.f32.mrf.mxu1  ;;  %v6031_v63 = vperm.slane %v16014_v62, 6 }
0x1d66   :  { %7418 = vmatpush.bf16.msrb.mxu0 %v14179_v4  ;;  %v6429_v8 = vmax.f32 %v6339_v2, 0.0  ;;  %v6366_v31 = vpop.f32.mrf.mxu0 }
0x1d67   :  { %v6430_v33 = vmax.f32 %v6352_v6, 0.0  ;;  %7347 = vmatpush.bf16.msrb.mxu2 %v14124_v24  ;;  %v14164_v24 = vld [vmem:[%s16556_s7 + $0x380] sm:$0xff] }
0x1d68   :  { %v6445_v36 = vpack.c.bf16 %v6429_v8, %v6429_v8  ;;  %7360 = vmatpush.bf16.msrb.mxu3 %v14132_v27 }
0x1d69   :  { %7380 = vmatpush.bf16.msra.mxu1 %v14154_v20  ;;  %v6446_v39 = vpack.c.bf16 %v6430_v33, %v6430_v33 }
0x1d6a   :  { %7419 = vmatpush.bf16.msrb.mxu0 %v14178_v57  ;;  %7348 = vmatmul.bf16.vlgmr.msrb.gmra.mxu2 %v6445_v36 }
0x1d6b   :  { %7392 = vmatpush.bf16.msra.mxu2 %v14163_v28  ;;  %7361 = vmatmul.bf16.vlgmr.msrb.gmra.mxu3 %v6446_v39  ;;  %v6340_v42 = vpop.f32.mrf.mxu2 }
0x1d6c   :  { %7405 = vmatpush.bf16.msra.mxu3 %v14171_v30  ;;  %v6353_v44 = vpop.f32.mrf.mxu3 }
0x1d6d   :  { %7381 = vmatpush.bf16.msra.mxu1 %v14153_v32  ;;  %v6377_v50 = vpop.f32.mrf.mxu1 }
0x1d6e   :  { %7420 = vmatpush.bf16.msrb.mxu0 %v14177_v34  ;;  %v6416_v53 = vpop.f32.mrf.mxu0  ;;  %v6378_v14 = vadd.f32 %v6377_v50, %v6029_v0 }
0x1d6f   :  { %7393 = vmatpush.bf16.msra.mxu2 %v14162_v38  ;;  %v6417_v15 = vadd.f32 %v6416_v53, %v6032_v37 }
0x1d70   :  { %7406 = vmatpush.bf16.msra.mxu3 %v14170_v40  ;;  %v6432_v4 = vmax.f32 %v6378_v14, 0.0  ;;  %v14531_v40 = vld [vmem:[%s16558_s11] ss:$0 sm:$0xff] }
0x1d71   :  { %7382 = vmatpush.bf16.msra.mxu1 %v14152_v41  ;;  %v6435_v47 = vmax.f32 %v6417_v15, 0.0 }
0x1d72   :  { %7421 = vmatpush.bf16.msrb.mxu0 %v14176_v43  ;;  %v6448_v22 = vpack.c.bf16 %v6432_v4, %v6432_v4 }
0x1d73   :  { %7394 = vmatpush.bf16.msra.mxu2 %v14161_v48  ;;  %v6390_v49 = vpop.f32.mrf.mxu2  ;;  %v6451_v62 = vpack.c.bf16 %v6435_v47, %v6435_v47 }
0x1d74   :  { %7407 = vmatpush.bf16.msra.mxu3 %v14169_v51  ;;  %v6403_v5 = vpop.f32.mrf.mxu3  ;;  %v6391_v58 = vadd.f32 %v6390_v49, %v6030_v12 }
0x1d75   :  { %7383 = vmatpush.bf16.msra.mxu1 %v14151_v54  ;;  %v6379_v9 = vpop.f32.mrf.mxu1  ;;  %v6404_v20 = vadd.f32 %v6403_v5, %v6031_v63 }
0x1d76   :  { %7422 = vmatpush.bf16.msrb.mxu0 %v14175_v55  ;;  %v6418_v11 = vpop.f32.mrf.mxu0  ;;  %v6433_v57 = vmax.f32 %v6391_v58, 0.0 }
0x1d77   :  { %7395 = vmatpush.bf16.msra.mxu2 %v14160_v26  ;;  %v6434_v2 = vmax.f32 %v6404_v20, 0.0  ;;  %v12691_v20 = vld [vmem:[%s16541_s21 + $0x38] sm:$0xff] }
0x1d78   :  { %7408 = vmatpush.bf16.msra.mxu3 %v14168_v56  ;;  %v6449_v1 = vpack.c.bf16 %v6433_v57, %v6433_v57 }
0x1d79   :  { %7384 = vmatpush.bf16.msra.mxu1 %v14150_v61  ;;  %v6450_v27 = vpack.c.bf16 %v6434_v2, %v6434_v2 }
0x1d7a   :  { %7423 = vmatpush.bf16.msrb.mxu0 %v14174_v3 }
0x1d7b   :  { %7396 = vmatpush.bf16.msra.mxu2 %v14159_v7  ;;  %v6392_v21 = vpop.f32.mrf.mxu2 }
0x1d7c   :  { %7409 = vmatpush.bf16.msra.mxu3 %v14167_v52  ;;  %v6405_v18 = vpop.f32.mrf.mxu3 }
0x1d7d   :  { %7385 = vmatpush.bf16.msra.mxu1 %v14149_v13 }
0x1d7e   :  { %7424 = vmatpush.bf16.msrb.mxu0 %v14173_v35 }
0x1d7f   :  { %7397 = vmatpush.bf16.msra.mxu2 %v14158_v45 }
0x1d80   :  { %7410 = vmatpush.bf16.msra.mxu3 %v14166_v16 }
0x1d81   :  { %7386 = vmatpush.bf16.msra.mxu1 %v14148_v60 }
0x1d82   :  { %7425 = vmatpush.bf16.msrb.mxu0 %v14172_v17 }
0x1d83   :  { %7398 = vmatpush.bf16.msra.mxu2 %v14157_v59 }
0x1d84   :  { %7411 = vmatpush.bf16.msra.mxu3 %v14165_v19  ;;  %7387 = vmatmul.bf16.vlgmr.msra.gmra.mxu1 %v6448_v22  ;;  %v12690_v19 = vld [vmem:[%s16541_s21 + $0x30] sm:$0xff]  ;;  %v12688_v22 = vld [vmem:[%s16541_s21 + $0x20] sm:$0xff] }
0x1d85   :  { %7426 = vmatmul.bf16.vlgmr.msrb.gmra.mxu0 %v6451_v62  ;;  %v14466_v62 = vpack.i.bf16 %v12690_v19, %v12691_v20  ;;  %7496 = vmatpush.msrb.mxu1 %v12691_v20 }
0x1d87   :  { %7399 = vmatpush.bf16.msra.mxu2 %v14156_v23  ;;  %v12689_v23 = vld [vmem:[%s16541_s21 + $0x28] sm:$0xff]  ;;  %14467 = vrot.lane.b32.xlu0 %v14466_v62, %s14735_s22 }
0x1d88   :  { %7412 = vmatpush.bf16.msra.mxu3 %v14164_v24  ;;  %v14471_v57 = vpack.i.bf16 %v12688_v22, %v12689_v23  ;;  %7497 = vmatpush.msrb.mxu1 %v12690_v19 }
0x1d8a   :  { %7400 = vmatmul.bf16.vlgmr.msra.gmra.mxu2 %v6449_v1  ;;  %7498 = vmatpush.msrb.mxu1 %v12689_v23 }
0x1d8b   :  { %7413 = vmatmul.bf16.vlgmr.msra.gmra.mxu3 %v6450_v27 }
0x1d8c   :  { %7499 = vmatpush.msrb.mxu1 %v12688_v22 }
0x1d8f   :  { %14477 = vrot.lane.b32.xlu0 %v14466_v62, %s14736_s0 }
0x1dc1   :  { %v7232_v28 = vpop.f32.mrf.mxu1 }
0x1dc2   :  { %v7271_v6 = vpop.f32.mrf.mxu0  ;;  %v7233_v43 = vadd.f32 %v14531_v40, %v7232_v28  ;;  %v14534_v40 = vld [vmem:[%s16542_s25 + $0x1] ss:$0 sm:$0xff] }
0x1dc9   :  { %v7234_v29 = vpop.f32.mrf.mxu1 }
0x1dca   :  { %v7273_v30 = vpop.f32.mrf.mxu0 }
0x1dcd   :  { %v7245_v8 = vpop.f32.mrf.mxu2 }
0x1dce   :  { %v7258_v31 = vpop.f32.mrf.mxu3  ;;  %v7246_v50 = vadd.f32 %v7245_v8, %v7233_v43 }
0x1dd0   :  { %v7259_v54 = vadd.f32 %v7258_v31, %v7246_v50 }
0x1dd1   :  { %v7284_v32 = vpop.f32.mrf.mxu1 }
0x1dd2   :  { %v7323_v33 = vpop.f32.mrf.mxu0  ;;  %v7272_v56 = vadd.f32 %v7271_v6, %v7259_v54 }
0x1dd4   :  { %v7285_v49 = vadd.f32 %v7284_v32, %v7272_v56  ;;  %v14533_v56 = vld [vmem:[%s16560_s16] ss:$0 sm:$0xff] }
0x1dd5   :  { %v7247_v34 = vpop.f32.mrf.mxu2 }
0x1dd6   :  { %v7260_v36 = vpop.f32.mrf.mxu3 }
0x1dd9   :  { %v7286_v38 = vpop.f32.mrf.mxu1 }
0x1dda   :  { %v7325_v39 = vpop.f32.mrf.mxu0 }
0x1ddd   :  { %v7297_v41 = vpop.f32.mrf.mxu2 }
0x1dde   :  { %v7310_v42 = vpop.f32.mrf.mxu3  ;;  %v7298_v3 = vadd.f32 %v7297_v41, %v7285_v49 }
0x1de0   :  { %v7311_v37 = vadd.f32 %v7310_v42, %v7298_v3 }
0x1de1   :  { %v7336_v44 = vpop.f32.mrf.mxu1 }
0x1de2   :  { %v7375_v48 = vpop.f32.mrf.mxu0  ;;  %v7324_v9 = vadd.f32 %v7323_v33, %v7311_v37 }
0x1de4   :  { %v7337_v52 = vadd.f32 %v7336_v44, %v7324_v9 }
0x1de5   :  { %v7299_v51 = vpop.f32.mrf.mxu2 }
0x1de6   :  { %v7312_v53 = vpop.f32.mrf.mxu3 }
0x1de9   :  { %v7338_v55 = vpop.f32.mrf.mxu1 }
0x1dea   :  { %v7377_v26 = vpop.f32.mrf.mxu0  ;;  %v14532_v55 = vld [vmem:[%s16559_s15] ss:$0 sm:$0xff] }
0x1ded   :  { %v7349_v61 = vpop.f32.mrf.mxu2 }
0x1dee   :  { %v7362_v0 = vpop.f32.mrf.mxu3  ;;  %v7350_v13 = vadd.f32 %v7349_v61, %v7337_v52 }
0x1df0   :  { %v7363_v35 = vadd.f32 %v7362_v0, %v7350_v13 }
0x1df2   :  { %v7376_v45 = vadd.f32 %v7375_v48, %v7363_v35 }
0x1df5   :  { %v7351_v5 = vpop.f32.mrf.mxu2 }
0x1df6   :  { %v7364_v7 = vpop.f32.mrf.mxu3 }
0x1df9   :  { %v14468_v28 = vpop.permute.xlu0 %14467 }
0x1dfa   :  { %v14469_v29 = vunpack.i.l.bf16 %v14468_v28  ;;  %v14470_v8 = vunpack.i.h.bf16 %v14468_v28 }
0x1dfc   :  { %7535 = vmatpush.msrb.mxu2 %v14469_v29 }
0x1dfe   :  { %7536 = vmatpush.msrb.mxu2 %v14470_v8 }
0x1e01   :  { %v7388_v11 = vpop.f32.mrf.mxu1  ;;  %v14478_v30 = vpop.permute.xlu0 %14477 }
0x1e02   :  { %v7427_v14 = vpop.f32.mrf.mxu0  ;;  %v7389_v16 = vadd.f32 %v7388_v11, %v7376_v45  ;;  %v14479_v31 = vunpack.i.l.bf16 %v14478_v30  ;;  %v14480_v33 = vunpack.i.h.bf16 %v14478_v30 }
0x1e04   :  { %7570 = vmatpush.msrb.mxu3 %v14479_v31 }
0x1e06   :  { %7571 = vmatpush.msrb.mxu3 %v14480_v33 }
0x1e09   :  { %v7390_v15 = vpop.f32.mrf.mxu1 }
0x1e0a   :  { %v7429_v12 = vpop.f32.mrf.mxu0 }
0x1e0d   :  { %v7401_v63 = vpop.f32.mrf.mxu2 }
0x1e0e   :  { %v7402_v60 = vadd.f32 %v7401_v63, %v7389_v16  ;;  %v7414_v4 = vpop.f32.mrf.mxu3 }
0x1e10   :  { %v7415_v21 = vadd.f32 %v7414_v4, %v7402_v60 }
0x1e12   :  { %v7428_v17 = vadd.f32 %v7427_v14, %v7415_v21 }
0x1e14   :  { %v7431_v47 = vadd.f32 %v7428_v17, %v15852_v10 }
0x1e15   :  { %v7403_v18 = vpop.f32.mrf.mxu2 }
0x1e16   :  { %v7416_v59 = vpop.f32.mrf.mxu3  ;;  %v7434_v58 = vsel %vm209_vm1, %v7431_v47, 0.0 }
0x1e17   :  { %7435 = vadd.xlane.f32.xlu1 %v7434_v58  ;;  %v12693_v59 = vld [vmem:[%s16543_s29 + $0x20] sm:$0xff] }
0x1e30   :  { %14472 = vrot.lane.b32.xlu1 %v14471_v57, %s14735_s22 }
0x1e38   :  { %14482 = vrot.lane.b32.xlu1 %v14471_v57, %s14736_s0 }
0x1e40   :  { %7555 = vrot.lane.b32.xlu1 %v14534_v40, %s14736_s0 }
0x1e8a   :  { %v7436_v10 = vpop.xlane.xlu1 %7435 }
0x1e8b   :  { %v7437_v24 = vmul.f32 %v7436_v10, %v15017_v46 }
0x1e8d   :  { %v7438_v2 = vsub.f32 %v7431_v47, %v7437_v24 }
0x1e8f   :  { %v7439_v1 = vmul.f32 %v7438_v2, %v7438_v2 }
0x1e91   :  { %v7440_v27 = vsel %vm209_vm1, %v7439_v1, 0.0 }
0x1e92   :  { %7441 = vadd.xlane.f32.xlu2 %v7440_v27 }
0x1ea2   :  { %v14473_v6 = vpop.permute.xlu1 %14472 }
0x1ea3   :  { %v14474_v32 = vunpack.i.l.bf16 %v14473_v6  ;;  %v14475_v36 = vunpack.i.h.bf16 %v14473_v6 }
0x1ea5   :  { %7537 = vmatpush.msrb.mxu2 %v14474_v32 }
0x1ea7   :  { %7538 = vmatpush.msrb.mxu2 %v14475_v36 }
0x1eaa   :  { %v14483_v34 = vpop.permute.xlu1 %14482  ;;  %7520 = vrot.lane.b32.xlu2 %v14534_v40, %s14735_s22 }
0x1eab   :  { %v14484_v38 = vunpack.i.l.bf16 %v14483_v34  ;;  %v14485_v39 = vunpack.i.h.bf16 %v14483_v34 }
0x1ead   :  { %7572 = vmatpush.msrb.mxu3 %v14484_v38 }
0x1eaf   :  { %7573 = vmatpush.msrb.mxu3 %v14485_v39 }
0x1eb2   :  { %v7556_v5 = vpop.permute.xlu1 %7555 }
0x1f05   :  { %v7442_v41 = vpop.xlane.xlu2 %7441 }
0x1f06   :  { %v7443_v42 = vmul.f32 %v7442_v41, %v15017_v46 }
0x1f08   :  { %v7444_v43 = vadd.f32 1e-05, %v7443_v42 }
0x1f0a   :  { %14628 = vrsqrt.f32 %v7444_v43  ;;  %vm7451_vm13 = vweird.f32 %v7444_v43 }
0x1f0d   :  { %v7521_v37 = vpop.permute.xlu2 %7520 }
0x1f10   :  { %v14629_v44 = vpop.eup %14628 }
0x1f11   :  { %v7446_v48 = vmul.f32 %v14629_v44, %v7444_v43  ;;  %vm7452_vm12 = vweird.f32 %v14629_v44 }
0x1f12   :  { %vm7453_vm14 = vmor %vm7451_vm13, %vm7452_vm12 }
0x1f13   :  { %v7447_v50 = vmul.f32 %v14629_v44, %v7446_v48 }
0x1f15   :  { %v7448_v51 = vmul.f32 0.5, %v7447_v50 }
0x1f17   :  { %v7449_v53 = vsub.f32 1.5, %v7448_v51 }
0x1f19   :  { %v7450_v54 = vmul.f32 %v14629_v44, %v7449_v53  ;;  %v12721_v53 = vld [vmem:[%s16545_s8 + $0x30] sm:$0xff] }
0x1f1b   :  { %v7454_v26 = vsel %vm7453_vm14, %v14629_v44, %v7450_v54  ;;  %v12722_v54 = vld [vmem:[%s16545_s8 + $0x38] sm:$0xff] }
0x1f1c   :  { %v7455_v61 = vmul.f32 %v7454_v26, %v7438_v2  ;;  %v12719_v26 = vld [vmem:[%s16545_s8 + $0x20] sm:$0xff] }
0x1f1e   :  { %v7459_v0 = vmul.f32 %v14532_v55, %v7455_v61  ;;  %v14486_v55 = vpack.i.bf16 %v12721_v53, %v12722_v54 }
0x1f20   :  { %v16086_v49 = vadd.f32 %v14533_v56, %v7459_v0  ;;  %v12720_v56 = vld [vmem:[%s16545_s8 + $0x28] sm:$0xff] }
0x1f21   :  { %v14491_v61 = vpack.i.bf16 %v12719_v26, %v12720_v56  ;;  %v12694_v0 = vld [vmem:[%s16543_s29 + $0x28] sm:$0xff] }
0x1f22   :  { %12698 = vmatmul.msk.f32.vlgmr.msrb.gmra.mxu1 %vm209_vm1, %v16086_v49  ;;  %12699 = vmatmul.msk.f32.vlgmr.msrb.gmra.mxu2 %vm209_vm1, %v16086_v49 }
0x1f23   :  { %12700 = vmatmul.msk.f32.vlgmr.msrb.gmra.mxu3 %vm209_vm1, %v16086_v49 }
0x1f9f   :  { %v7501_v3 = vpop.f32.mrf.mxu1 }
0x1fa0   :  { %v7502_v7 = vadd.f32 %v14534_v40, %v7501_v3 }
0x1fa2   :  { %v7578_v14 = vmul.f32 0.35355338, %v7502_v7 }
0x1fa5   :  { %v7540_v9 = vpop.f32.mrf.mxu2 }
0x1fa6   :  { %v7541_v52 = vadd.f32 %v7540_v9, %v7521_v37  ;;  %v7575_v11 = vpop.f32.mrf.mxu3  ;;  %v16140_v9 = vld [vmem:[%s16546_s14 + $0x1] ss:$0 sm:$0xff] }
0x1fa7   :  { %v16094_v13 = vadd.f32 %v7575_v11, %v7556_v5 }
0x1fa8   :  { %7641 = vrot.lane.b32.xlu1 %v7541_v52, %s14737_s5  ;;  %12701 = vmatpush.xpose.msk.msra.mxu0 %vm308_vm2, %v7541_v52 }
0x1fa9   :  { %7634 = vmatpush.msra.mxu1 %v16094_v13 }
0x1fab   :  { %12702 = vmatmul.msk.f32.vlgmr.msra.gmra.mxu0 %vm308_vm2, %v7578_v14  ;;  %7746 = vmatpush.msrb.mxu1 %v12693_v59 }
0x1fac   :  { %7723 = vmatpush.msrb.mxu0 %v12694_v0 }
0x1fb0   :  { %7639 = vrot.lane.b32.xlu1 %v7578_v14, %s14737_s5 }
0x1fb8   :  { %7753 = vrot.lane.b32.xlu1 %v7541_v52, %s14738_s9 }
0x1fc0   :  { %7842 = vrot.lane.b32.xlu1 %v7541_v52, %s14739_s13 }
0x201a   :  { %v7642_v35 = vpop.permute.xlu1 %7641 }
0x201b   :  { %12704 = vmatpush.xpose.msk.msra.mxu2 %vm308_vm2, %v7642_v35 }
0x2022   :  { %v7640_v15 = vpop.permute.xlu1 %7639 }
0x2023   :  { %12705 = vmatmul.msk.f32.vlgmr.msra.gmra.mxu2 %vm308_vm2, %v7640_v15 }
0x2028   :  { %v7602_v45 = vpop.f32.mrf.mxu0 }
0x2029   :  { %v7605_v12 = vsel %vm308_vm2, %v7602_v45, -inf }
0x202a   :  { %v7754_v16 = vpop.permute.xlu1 %7753  ;;  %7606 = vmax.xlane.f32.xlu0 %v7605_v12 }
0x202b   :  { %12709 = vmatpush.xpose.msk.msrb.mxu2 %vm308_vm2, %v7754_v16 }
0x2032   :  { %v7843_v58 = vpop.permute.xlu1 %7842 }
0x203e   :  { %7840 = vrot.lane.b32.xlu0 %v7578_v14, %s14739_s13 }
0x209d   :  { %v7607_v63 = vpop.xlane.xlu0 %7606 }
0x209e   :  { %v7608_v60 = vsub.f32 %v7602_v45, %v7607_v63 }
0x20a0   :  { %v7609_v4 = vmul.f32 1.442695, %v7608_v60  ;;  %v12696_v60 = vld [vmem:[%s16543_s29 + $0x38] sm:$0xff] }
0x20a2   :  { %14630 = vpow2.f32 %v7609_v4  ;;  %v12695_v4 = vld [vmem:[%s16543_s29 + $0x30] sm:$0xff] }
0x20a3   :  { %7834 = vmatpush.msra.mxu0 %v12695_v4 }
0x20a6   :  { %v7664_v21 = vpop.f32.mrf.mxu2 }
0x20a7   :  { %v7667_v17 = vsel %vm308_vm2, %v7664_v21, -inf }
0x20a8   :  { %v14631_v47 = vpop.eup %14630  ;;  %7668 = vmax.xlane.f32.xlu1 %v7667_v17 }
0x20a9   :  { %v7611_v18 = vsel %vm308_vm2, %v14631_v47, 0.0 }
0x20aa   :  { %7612 = vadd.xlane.f32.xlu2 %v7611_v18 }
0x20b0   :  { %v7841_v6 = vpop.permute.xlu0 %7840 }
0x20c2   :  { %7751 = vrot.lane.b32.xlu2 %v7578_v14, %s14738_s9 }
0x211b   :  { %v7669_v19 = vpop.xlane.xlu1 %7668 }
0x211c   :  { %v7670_v20 = vsub.f32 %v7664_v21, %v7669_v19 }
0x211d   :  { %v7613_v22 = vpop.xlane.xlu2 %7612 }
0x211e   :  { %v7671_v62 = vmul.f32 1.442695, %v7670_v20  ;;  %14632 = vrcp.f32 %v7613_v22 }
0x2120   :  { %14634 = vpow2.f32 %v7671_v62  ;;  %v14536_v62 = vld [vmem:[%s16544_s3 + $0x1] ss:$0 sm:$0xff] }
0x2124   :  { %v14633_v23 = vpop.eup %14632 }
0x2125   :  { %v7615_v57 = vmul.f32 %v14633_v23, %v14631_v47  ;;  %v7752_v10 = vpop.permute.xlu2 %7751 }
0x2126   :  { %v14635_v24 = vpop.eup %14634  ;;  %12710 = vmatmul.msk.f32.vlgmr.msrb.gmra.mxu2 %vm308_vm2, %v7752_v10 }
0x2127   :  { %12703 = vmatmul.msk.f32.vlgmr.msra.gmra.mxu1 %vm308_vm2, %v7615_v57  ;;  %v7673_v2 = vsel %vm308_vm2, %v14635_v24, 0.0 }
0x2128   :  { %12713 = vmatpush.xpose.msk.msra.mxu1 %vm308_vm2, %v7843_v58  ;;  %7674 = vadd.xlane.f32.xlu1 %v7673_v2 }
0x219b   :  { %v7675_v42 = vpop.xlane.xlu1 %7674 }
0x21a4   :  { %v7636_v1 = vpop.f32.mrf.mxu1 }
0x21a5   :  { %12708 = vmatmul.msk.f32.vlgmr.msrb.gmra.mxu1 %vm308_vm2, %v7636_v1 }
0x21a9   :  { %v7776_v27 = vpop.f32.mrf.mxu2 }
0x21aa   :  { %v7779_v28 = vsel %vm308_vm2, %v7776_v27, -inf }
0x21ab   :  { %7780 = vmax.xlane.f32.xlu2 %v7779_v28 }
0x21ad   :  { %12714 = vmatmul.msk.f32.vlgmr.msra.gmra.mxu1 %vm308_vm2, %v7841_v6 }
0x21c3   :  { %7879 = vrot.lane.b32.xlu2 %v16094_v13, %s14739_s13 }
0x221e   :  { %v7781_v29 = vpop.xlane.xlu2 %7780 }
0x221f   :  { %v7782_v30 = vsub.f32 %v7776_v27, %v7781_v29 }
0x2221   :  { %v7783_v8 = vmul.f32 1.442695, %v7782_v30 }
0x2222   :  { %v16121_v31 = vpop.f32.mrf.mxu1 }
0x2223   :  { %14636 = vpow2.f32 %v7783_v8 }
0x2226   :  { %v7880_v32 = vpop.permute.xlu2 %7879 }
0x2227   :  { %7900 = vmatpush.msra.mxu2 %v7880_v32 }
0x2229   :  { %v14637_v33 = vpop.eup %14636 }
0x222a   :  { %v7865_v34 = vpop.f32.mrf.mxu1  ;;  %v7785_v36 = vsel %vm308_vm2, %v14637_v33, 0.0 }
0x222b   :  { %7786 = vadd.xlane.f32.xlu1 %v7785_v36  ;;  %v7868_v38 = vsel %vm308_vm2, %v7865_v34, -inf }
0x222c   :  { %7869 = vmax.xlane.f32.xlu0 %v7868_v38 }
0x2240   :  { %7679 = vrot.lane.b32.xlu0 %v16094_v13, %s14737_s5 }
0x229e   :  { %v7787_v3 = vpop.xlane.xlu1 %7786 }
0x229f   :  { %v7870_v39 = vpop.xlane.xlu0 %7869 }
0x22a0   :  { %v7871_v40 = vsub.f32 %v7865_v34, %v7870_v39 }
0x22a2   :  { %v7872_v41 = vmul.f32 1.442695, %v7871_v40 }
0x22a4   :  { %14638 = vpow2.f32 %v7872_v41 }
0x22a5   :  { %14640 = vrcp.f32 %v7675_v42 }
0x22aa   :  { %v14639_v43 = vpop.eup %14638 }
0x22ab   :  { %v7874_v44 = vsel %vm308_vm2, %v14639_v43, 0.0  ;;  %v14641_v48 = vpop.eup %14640 }
0x22ac   :  { %7875 = vadd.xlane.f32.xlu1 %v7874_v44  ;;  %v7677_v50 = vmul.f32 %v14641_v48, %v14635_v24 }
0x22b2   :  { %v7680_v51 = vpop.permute.xlu0 %7679 }
0x22b3   :  { %7700 = vmatpush.msra.mxu3 %v7680_v51  ;;  %v14538_v51 = vld [vmem:[%s16550_s6 + $0x1] ss:$0 sm:$0xff] }
0x22b4   :  { %12706 = vmatmul.msk.f32.vlgmr.msra.gmra.mxu3 %vm308_vm2, %v7677_v50  ;;  %v14537_v50 = vld [vmem:[%s16549_s30 + $0x1] ss:$0 sm:$0xff] }
0x22c5   :  { %7790 = vrot.lane.b32.xlu1 %v16094_v13, %s14738_s9 }
0x22cd   :  { %14487 = vrot.lane.b32.xlu1 %v14486_v55, %s14735_s22 }
0x22d5   :  { %14492 = vrot.lane.b32.xlu1 %v14491_v61, %s14735_s22 }
0x22dd   :  { %8024 = vrot.lane.b32.xlu1 %v16140_v9, %s14735_s22 }
0x22e5   :  { %14497 = vrot.lane.b32.xlu1 %v14486_v55, %s14736_s0 }
0x231f   :  { %v7876_v37 = vpop.xlane.xlu1 %7875 }
0x2320   :  { %14642 = vrcp.f32 %v7876_v37 }
0x2321   :  { %14644 = vrcp.f32 %v7787_v3 }
0x2326   :  { %v14643_v5 = vpop.eup %14642 }
0x2327   :  { %v7878_v7 = vmul.f32 %v14643_v5, %v14639_v43  ;;  %v14645_v52 = vpop.eup %14644 }
0x2328   :  { %v7789_v11 = vmul.f32 %v14645_v52, %v14637_v33 }
0x2329   :  { %12715 = vmatmul.msk.f32.vlgmr.msra.gmra.mxu2 %vm308_vm2, %v7878_v7 }
0x2337   :  { %v7791_v13 = vpop.permute.xlu1 %7790  ;;  %v7702_v14 = vpop.f32.mrf.mxu3 }
0x2338   :  { %12707 = vmatmul.msk.f32.vlgmr.msrb.gmra.mxu0 %vm308_vm2, %v7702_v14  ;;  %7811 = vmatpush.msrb.mxu3 %v7791_v13 }
0x2339   :  { %12711 = vmatmul.msk.f32.vlgmr.msrb.gmra.mxu3 %vm308_vm2, %v7789_v11  ;;  %8000 = vmatpush.msrb.mxu0 %v12722_v54 }
0x233a   :  { %7923 = vmatpush.msra.mxu3 %v12696_v60 }
0x233b   :  { %8001 = vmatpush.msrb.mxu0 %v12721_v53 }
0x233d   :  { %8002 = vmatpush.msrb.mxu0 %v12720_v56 }
0x233f   :  { %v14488_v35 = vpop.permute.xlu1 %14487  ;;  %8003 = vmatpush.msrb.mxu0 %v12719_v26 }
0x2340   :  { %v14490_v15 = vunpack.i.h.bf16 %v14488_v35  ;;  %v14489_v45 = vunpack.i.l.bf16 %v14488_v35 }
0x2342   :  { %8039 = vmatpush.msrb.mxu1 %v14489_v45 }
0x2344   :  { %8040 = vmatpush.msrb.mxu1 %v14490_v15 }
0x2347   :  { %v14493_v12 = vpop.permute.xlu1 %14492 }
0x2348   :  { %v14495_v16 = vunpack.i.h.bf16 %v14493_v12  ;;  %v14494_v63 = vunpack.i.l.bf16 %v14493_v12 }
0x234a   :  { %8041 = vmatpush.msrb.mxu1 %v14494_v63 }
0x234c   :  { %8042 = vmatpush.msrb.mxu1 %v14495_v16 }
0x234d   :  { %12730 = vmatmul.msk.f32.vlgmr.msrb.gmra.mxu1 %vm209_vm1, %v15746_v25 }
0x234f   :  { %v8025_v47 = vpop.permute.xlu1 %8024 }
0x2357   :  { %v14498_v1 = vpop.permute.xlu1 %14497 }
0x2358   :  { %v14500_v27 = vunpack.i.h.bf16 %v14498_v1  ;;  %v14499_v28 = vunpack.i.l.bf16 %v14498_v1 }
0x235a   :  { %8074 = vmatpush.msrb.mxu2 %v14499_v28 }
0x235c   :  { %8075 = vmatpush.msrb.mxu2 %v14500_v27 }
0x23ac   :  { %v7902_v21 = vpop.f32.mrf.mxu2 }
0x23ad   :  { %12716 = vmatmul.msk.f32.vlgmr.msra.gmra.mxu3 %vm308_vm2, %v7902_v21  ;;  %v12724_v21 = vld [vmem:[%s16551_s23 + $0x20] sm:$0xff] }
0x23b5   :  { %v7725_v58 = vpop.f32.mrf.mxu0 }
0x23b6   :  { %v7749_v19 = vadd.f32 %v16121_v31, %v7725_v58 }
0x23bc   :  { %v7813_v17 = vpop.f32.mrf.mxu3 }
0x23bd   :  { %12712 = vmatmul.msk.f32.vlgmr.msra.gmra.mxu0 %vm308_vm2, %v7813_v17 }
0x23ca   :  { %v8044_v18 = vpop.f32.mrf.mxu1 }
0x23cb   :  { %v8045_v59 = vadd.f32 %v8044_v18, %v8025_v47 }
0x23cd   :  { %12732 = vmatpush.xpose.msk.msrb.mxu3 %vm308_vm2, %v8045_v59 }
0x2430   :  { %v7925_v23 = vpop.f32.mrf.mxu3 }
0x243a   :  { %v7836_v20 = vpop.f32.mrf.mxu0 }
0x243b   :  { %v7839_v22 = vadd.f32 %v7836_v20, %v7749_v19 }
0x243d   :  { %v7928_v57 = vadd.f32 %v7925_v23, %v7839_v22 }
0x243f   :  { %v7932_v10 = vadd.f32 %v14536_v62, %v7928_v57 }
0x2441   :  { %v7933_v24 = vadd.f32 %v7932_v10, %v16086_v49 }
0x2443   :  { %v7938_v2 = vsel %vm209_vm1, %v7933_v24, 0.0 }
0x2444   :  { %7939 = vadd.xlane.f32.xlu0 %v7938_v2 }
0x2458   :  { %14502 = vrot.lane.b32.xlu0 %v14491_v61, %s14736_s0 }
0x2460   :  { %8145 = vrot.lane.b32.xlu0 %v8045_v59, %s14737_s5 }
0x24b7   :  { %v7940_v6 = vpop.xlane.xlu0 %7939 }
0x24b8   :  { %v7941_v29 = vmul.f32 %v7940_v6, %v15017_v46 }
0x24ba   :  { %v7942_v30 = vsub.f32 %v7933_v24, %v7941_v29 }
0x24bc   :  { %v7943_v8 = vmul.f32 %v7942_v30, %v7942_v30 }
0x24be   :  { %v7944_v31 = vsel %vm209_vm1, %v7943_v8, 0.0 }
0x24bf   :  { %7945 = vadd.xlane.f32.xlu2 %v7944_v31 }
0x24ca   :  { %v14503_v49 = vpop.permute.xlu0 %14502 }
0x24cb   :  { %v14505_v32 = vunpack.i.h.bf16 %v14503_v49  ;;  %v14504_v33 = vunpack.i.l.bf16 %v14503_v49  ;;  %v12725_v49 = vld [vmem:[%s16551_s23 + $0x28] sm:$0xff] }
0x24cc   :  { %8227 = vmatpush.msra.mxu3 %v12725_v49 }
0x24cd   :  { %8076 = vmatpush.msrb.mxu2 %v14504_v33 }
0x24cf   :  { %8077 = vmatpush.msrb.mxu2 %v14505_v32 }
0x24d0   :  { %12731 = vmatmul.msk.f32.vlgmr.msrb.gmra.mxu2 %vm209_vm1, %v15746_v25 }
0x24d2   :  { %v8146_v34 = vpop.permute.xlu0 %8145 }
0x24d3   :  { %12735 = vmatpush.xpose.msk.msra.mxu1 %vm308_vm2, %v8146_v34 }
0x2532   :  { %v7946_v36 = vpop.xlane.xlu2 %7945 }
0x2533   :  { %v7947_v38 = vmul.f32 %v7946_v36, %v15017_v46 }
0x2535   :  { %v7948_v39 = vadd.f32 1e-05, %v7947_v38 }
0x2537   :  { %14646 = vrsqrt.f32 %v7948_v39  ;;  %vm7955_vm3 = vweird.f32 %v7948_v39 }
0x253d   :  { %v14647_v40 = vpop.eup %14646 }
0x253e   :  { %v7950_v41 = vmul.f32 %v14647_v40, %v7948_v39  ;;  %vm7956_vm15 = vweird.f32 %v14647_v40 }
0x253f   :  { %vm7957_vm4 = vmor %vm7955_vm3, %vm7956_vm15 }
0x2540   :  { %v7951_v42 = vmul.f32 %v14647_v40, %v7950_v41 }
0x2542   :  { %v7952_v43 = vmul.f32 0.5, %v7951_v42 }
0x2544   :  { %v7953_v44 = vsub.f32 1.5, %v7952_v43 }
0x2546   :  { %v7954_v48 = vmul.f32 %v14647_v40, %v7953_v44 }
0x2548   :  { %v7958_v25 = vsel %vm7957_vm4, %v14647_v40, %v7954_v48 }
0x2549   :  { %v7959_v53 = vmul.f32 %v7958_v25, %v7942_v30 }
0x254b   :  { %v7963_v54 = vmul.f32 %v14537_v50, %v7959_v53  ;;  %v12726_v53 = vld [vmem:[%s16551_s23 + $0x30] sm:$0xff] }
0x254d   :  { %v16168_v55 = vadd.f32 %v14538_v51, %v7963_v54  ;;  %v12727_v51 = vld [vmem:[%s16551_s23 + $0x38] sm:$0xff] }
0x254f   :  { %12729 = vmatmul.msk.f32.vlgmr.msrb.gmra.mxu0 %vm209_vm1, %v16168_v55 }
0x2553   :  { %v8079_v16 = vpop.f32.mrf.mxu2 }
0x25cc   :  { %v8005_v26 = vpop.f32.mrf.mxu0 }
0x25cd   :  { %v8006_v56 = vadd.f32 %v16140_v9, %v8005_v26 }
0x25cf   :  { %v8082_v61 = vmul.f32 0.35355338, %v8006_v56 }
0x25d1   :  { %8143 = vrot.lane.b32.xlu0 %v8082_v61, %s14737_s5  ;;  %12733 = vmatmul.msk.f32.vlgmr.msrb.gmra.mxu3 %vm308_vm2, %v8082_v61 }
0x25d2   :  { %8338 = vmatpush.msrb.mxu3 %v12726_v53  ;;  %v14191_v53 = vld [vmem:[%s16553_s28 + $0x154] sm:$0xf0] }
0x25d9   :  { %8257 = vrot.lane.b32.xlu0 %v8045_v59, %s14738_s9 }
0x25e1   :  { %8346 = vrot.lane.b32.xlu0 %v8045_v59, %s14739_s13 }
0x2643   :  { %v8144_v0 = vpop.permute.xlu0 %8143 }
0x2644   :  { %12736 = vmatmul.msk.f32.vlgmr.msra.gmra.mxu1 %vm308_vm2, %v8144_v0 }
0x264b   :  { %v8258_v3 = vpop.permute.xlu0 %8257 }
0x264c   :  { %12740 = vmatpush.xpose.msk.msrb.mxu1 %vm308_vm2, %v8258_v3 }
0x2653   :  { %v8347_v17 = vpop.permute.xlu0 %8346 }
0x2654   :  { %v8106_v37 = vpop.f32.mrf.mxu3 }
0x2655   :  { %v8109_v5 = vsel %vm308_vm2, %v8106_v37, -inf }
0x2656   :  { %8110 = vmax.xlane.f32.xlu1 %v8109_v5 }
0x266f   :  { %8344 = vrot.lane.b32.xlu1 %v8082_v61, %s14739_s13 }
0x26c1   :  { %v8168_v35 = vpop.f32.mrf.mxu1 }
0x26c2   :  { %v8171_v15 = vsel %vm308_vm2, %v8168_v35, -inf }
0x26c9   :  { %v8111_v7 = vpop.xlane.xlu1 %8110 }
0x26ca   :  { %v8112_v52 = vsub.f32 %v8106_v37, %v8111_v7  ;;  %v14539_v37 = vld [vmem:[%s16552_s26 + $0x1] ss:$0 sm:$0xff] }
0x26cc   :  { %v8113_v11 = vmul.f32 1.442695, %v8112_v52 }
0x26ce   :  { %14648 = vpow2.f32 %v8113_v11 }
0x26d4   :  { %v14649_v13 = vpop.eup %14648 }
0x26d5   :  { %v8115_v14 = vsel %vm308_vm2, %v14649_v13, 0.0 }
0x26d6   :  { %8116 = vadd.xlane.f32.xlu2 %v8115_v14 }
0x26e1   :  { %v8345_v23 = vpop.permute.xlu1 %8344 }
0x26ee   :  { %8059 = vrot.lane.b32.xlu2 %v16140_v9, %s14736_s0  ;;  %s10290_s0 = sshll.u32 %s14945_s20, 4  ;;  %s10291_s0 = int_to_ptr.hbm [resolvable:$true] %s10290_s0 }
0x26f6   :  { %8255 = vrot.lane.b32.xlu2 %v8082_v61, %s14738_s9 }
0x271f   :  { %8172 = vmax.xlane.f32.xlu2 %v8171_v15 }
0x2749   :  { %v8117_v45 = vpop.xlane.xlu2 %8116 }
0x274a   :  { %14650 = vrcp.f32 %v8117_v45 }
0x2750   :  { %v14651_v12 = vpop.eup %14650 }
0x2751   :  { %v8060_v63 = vpop.permute.xlu2 %8059  ;;  %v8119_v4 = vmul.f32 %v14651_v12, %v14649_v13 }
0x2752   :  { %v8080_v60 = vadd.f32 %v8079_v16, %v8060_v63  ;;  %v13107_v16 = vld [vmem:[%s16553_s28 + $0x180] sm:$0xf]  ;;  %v14196_v63 = vld [vmem:[%s16553_s28 + $0x184] sm:$0xf] }
0x2754   :  { %8138 = vmatpush.msra.mxu0 %v8080_v60 }
0x2755   :  { %12734 = vmatmul.msk.f32.vlgmr.msra.gmra.mxu0 %vm308_vm2, %v8119_v4  ;;  %v13109_v4 = vld [vmem:[%s16553_s28 + $0x1c0] sm:$0xf0] }
0x2756   :  { %8250 = vmatpush.msrb.mxu0 %v12724_v21  ;;  %v13115_v21 = vld [vmem:[%s16553_s28 + $0x188] sm:$0xf] }
0x2758   :  { %12744 = vmatpush.xpose.msk.msra.mxu0 %vm308_vm2, %v8347_v17  ;;  %v14205_v17 = vld [vmem:[%s16553_s28 + $0x1c4] sm:$0xf0] }
0x2759   :  { %v8256_v9 = vpop.permute.xlu2 %8255 }
0x275a   :  { %12741 = vmatmul.msk.f32.vlgmr.msrb.gmra.mxu1 %vm308_vm2, %v8256_v9  ;;  %v13112_v9 = vor.u32 %v14196_v63, %v13109_v4  ;;  %v14200_v63 = vld [vmem:[%s16553_s28 + $0x1a4] sm:$0xf]  ;;  %v13147_v4 = vld [vmem:[%s16553_s28 + $0x1a8] sm:$0xf] }
0x2792   :  { %v8173_v47 = vpop.xlane.xlu2 %8172 }
0x2793   :  { %v8174_v18 = vsub.f32 %v8168_v35, %v8173_v47  ;;  %v13116_v47 = vor.u32 %v14205_v17, %v13115_v21  ;;  %v14209_v17 = vld [vmem:[%s16553_s28 + $0x1e4] sm:$0xf0] }
0x2795   :  { %v8175_v59 = vmul.f32 1.442695, %v8174_v18  ;;  %v14197_v18 = vld [vmem:[%s16553_s28 + $0x18c] sm:$0xf] }
0x2797   :  { %14652 = vpow2.f32 %v8175_v59  ;;  %v13117_v59 = vld [vmem:[%s16553_s28 + $0x1c8] sm:$0xf0] }
0x279d   :  { %v14653_v58 = vpop.eup %14652 }
0x279e   :  { %v8177_v19 = vsel %vm308_vm2, %v14653_v58, 0.0 }
0x279f   :  { %8178 = vadd.xlane.f32.xlu2 %v8177_v19  ;;  %v13043_v19 = vld [vmem:[%s16553_s28 + $0x100] sm:$0xf] }
0x27b7   :  { %8183 = vrot.lane.b32.xlu2 %v8080_v60, %s14737_s5  ;;  %s14682_s5 = sshra.s32 %s10291_s0, 4  ;;  %s14683_s5 = int_to_ptr.hbm [resolvable:$true] %s14682_s5 }
0x27b8   :  { %p14687_p1 = scmp.lt.s32.totalorder %s14683_s5, %s14945_s20 }
0x27d2   :  { %v8140_v20 = vpop.f32.mrf.mxu0 }
0x27d3   :  { %12739 = vmatmul.msk.f32.vlgmr.msrb.gmra.mxu0 %vm308_vm2, %v8140_v20  ;;  %v14188_v20 = vld [vmem:[%s16553_s28 + $0x13c] sm:$0xf0] }
0x27d4   :  { %8984 = vmatpush.bf16.msrb.mxu0 %v13112_v9  ;;  %v14201_v9 = vld [vmem:[%s16553_s28 + $0x1ac] sm:$0xf] }
0x27d7   :  { %v8280_v22 = vpop.f32.mrf.mxu1 }
0x27d8   :  { %v8283_v62 = vsel %vm308_vm2, %v8280_v22, -inf }
0x27d9   :  { %8284 = vmax.xlane.f32.xlu0 %v8283_v62  ;;  %v13044_v62 = vor.u32 %v14188_v20, %v13043_v19  ;;  %v14192_v19 = vld [vmem:[%s16553_s28 + $0x15c] sm:$0xf0]  ;;  %v13148_v20 = vor.u32 %v14209_v17, %v13147_v4  ;;  %v14231_v4 = vld [vmem:[%s16556_s7 + $0x498] sm:$0xff] }
0x27da   :  { %v14215_v17 = vld [vmem:[%s16556_s7 + $0x418] sm:$0xff] }
0x27db   :  { %12745 = vmatmul.msk.f32.vlgmr.msra.gmra.mxu0 %vm308_vm2, %v8345_v23  ;;  %v13045_v23 = vld [vmem:[%s16553_s28 + $0x140] sm:$0xf0] }
0x2812   :  { %v8179_v57 = vpop.xlane.xlu2 %8178 }
0x2813   :  { %14654 = vrcp.f32 %v8179_v57  ;;  %v13051_v57 = vld [vmem:[%s16553_s28 + $0x108] sm:$0xf] }
0x2819   :  { %v14655_v10 = vpop.eup %14654 }
0x281a   :  { %v8181_v24 = vmul.f32 %v14655_v10, %v14653_v58  ;;  %v8184_v2 = vpop.permute.xlu2 %8183  ;;  %v13120_v58 = vor.u32 %v14197_v18, %v13117_v59  ;;  %v14189_v10 = vld [vmem:[%s16553_s28 + $0x144] sm:$0xf0] }
0x281b   :  { %8204 = vmatpush.msra.mxu2 %v8184_v2  ;;  %v13052_v2 = vor.u32 %v14189_v10, %v13051_v57  ;;  %v13083_v57 = vld [vmem:[%s16553_s28 + $0x128] sm:$0xf] }
0x281c   :  { %12737 = vmatmul.msk.f32.vlgmr.msra.gmra.mxu2 %vm308_vm2, %v8181_v24  ;;  %v14193_v10 = vld [vmem:[%s16553_s28 + $0x164] sm:$0xf0] }
0x284c   :  { %v8285_v1 = vpop.xlane.xlu0 %8284 }
0x284d   :  { %v8286_v27 = vsub.f32 %v8280_v22, %v8285_v1  ;;  %v14180_v22 = vld [vmem:[%s16553_s28 + $0x104] sm:$0xf]  ;;  %v14181_v1 = vld [vmem:[%s16553_s28 + $0x10c] sm:$0xf] }
0x284e   :  { %v13048_v24 = vor.u32 %v14180_v22, %v13045_v23  ;;  %v13077_v23 = vld [vmem:[%s16553_s28 + $0x160] sm:$0xf0] }
0x284f   :  { %v8287_v28 = vmul.f32 1.442695, %v8286_v27  ;;  %v13053_v27 = vld [vmem:[%s16553_s28 + $0x148] sm:$0xf0] }
0x2850   :  { %v8252_v6 = vpop.f32.mrf.mxu0  ;;  %8985 = vmatpush.bf16.msrb.mxu0 %v13048_v24  ;;  %v14185_v24 = vld [vmem:[%s16553_s28 + $0x12c] sm:$0xf] }
0x2851   :  { %14656 = vpow2.f32 %v8287_v28  ;;  %v13056_v28 = vor.u32 %v14181_v1, %v13053_v27 }
0x2857   :  { %v14657_v29 = vpop.eup %14656 }
0x2858   :  { %v8369_v30 = vpop.f32.mrf.mxu0  ;;  %v8289_v8 = vsel %vm308_vm2, %v14657_v29, 0.0 }
0x2859   :  { %8290 = vadd.xlane.f32.xlu0 %v8289_v8  ;;  %v8372_v31 = vsel %vm308_vm2, %v8369_v30, -inf  ;;  %v14198_v8 = vld [vmem:[%s16553_s28 + $0x194] sm:$0xf] }
0x285a   :  { %8373 = vmax.xlane.f32.xlu1 %v8372_v31 }
0x2873   :  { %8383 = vrot.lane.b32.xlu1 %v8080_v60, %s14739_s13 }
0x289f   :  { %v8206_v32 = vpop.f32.mrf.mxu2 }
0x28a0   :  { %12738 = vmatmul.msk.f32.vlgmr.msra.gmra.mxu3 %vm308_vm2, %v8206_v32  ;;  %v13125_v32 = vld [vmem:[%s16553_s28 + $0x1d0] sm:$0xf0] }
0x28cc   :  { %v8291_v41 = vpop.xlane.xlu0 %8290 }
0x28cd   :  { %v8374_v33 = vpop.xlane.xlu1 %8373 }
0x28ce   :  { %v8375_v34 = vsub.f32 %v8369_v30, %v8374_v33  ;;  %v14206_v30 = vld [vmem:[%s16553_s28 + $0x1cc] sm:$0xf0]  ;;  %v13131_v33 = vld [vmem:[%s16553_s28 + $0x198] sm:$0xf] }
0x28d0   :  { %v8376_v36 = vmul.f32 1.442695, %v8375_v34  ;;  %v14207_v34 = vld [vmem:[%s16553_s28 + $0x1d4] sm:$0xf0] }
0x28d2   :  { %14658 = vpow2.f32 %v8376_v36  ;;  %v13128_v36 = vor.u32 %v14198_v8, %v13125_v32  ;;  %v14202_v8 = vld [vmem:[%s16553_s28 + $0x1b4] sm:$0xf]  ;;  %v14211_v32 = vld [vmem:[%s16553_s28 + $0x1f4] sm:$0xf0] }
0x28d4   :  { %9036 = vmatpush.bf16.msra.mxu0 %v13128_v36 }
0x28d8   :  { %v14659_v38 = vpop.eup %14658 }
0x28d9   :  { %v8378_v39 = vsel %vm308_vm2, %v14659_v38, 0.0 }
0x28da   :  { %8379 = vadd.xlane.f32.xlu0 %v8378_v39  ;;  %v14199_v39 = vld [vmem:[%s16553_s28 + $0x19c] sm:$0xf] }
0x28e5   :  { %v8384_v40 = vpop.permute.xlu1 %8383 }
0x28e6   :  { %8404 = vmatpush.msra.mxu1 %v8384_v40  ;;  %v13133_v40 = vld [vmem:[%s16553_s28 + $0x1d8] sm:$0xf0] }
0x28e8   :  { %8997 = vmatpush.bf16.msrb.mxu1 %v13116_v47  ;;  %v13149_v47 = vld [vmem:[%s16553_s28 + $0x1e8] sm:$0xf0] }
0x28e9   :  { %v13152_v22 = vor.u32 %v14201_v9, %v13149_v47  ;;  %v14239_v9 = vld [vmem:[%s16556_s7 + $0x4d8] sm:$0xff]  ;;  %v14222_v47 = vld [vmem:[%s16556_s7 + $0x450] sm:$0xff] }
0x28ec   :  { %8998 = vmatpush.bf16.msrb.mxu1 %v13052_v2  ;;  %v13085_v2 = vld [vmem:[%s16553_s28 + $0x168] sm:$0xf0] }
0x28ee   :  { %8294 = vrot.lane.b32.xlu0 %v8080_v60, %s14738_s9  ;;  %s14686_s9 = scalar_lea.hbm %s14945_s20, 8 }
0x2923   :  { %v8229_v56 = vpop.f32.mrf.mxu3 }
0x2924   :  { %v8253_v61 = vadd.f32 %v8252_v6, %v8229_v56  ;;  %v14183_v56 = vld [vmem:[%s16553_s28 + $0x11c] sm:$0xf] }
0x294d   :  { %v8380_v42 = vpop.xlane.xlu0 %8379 }
0x294e   :  { %14660 = vrcp.f32 %v8380_v42 }
0x294f   :  { %14662 = vrcp.f32 %v8291_v41  ;;  %v13059_v41 = vld [vmem:[%s16553_s28 + $0x110] sm:$0xf] }
0x2954   :  { %v14661_v43 = vpop.eup %14660 }
0x2955   :  { %v8382_v44 = vmul.f32 %v14661_v43, %v14659_v38  ;;  %v14663_v48 = vpop.eup %14662  ;;  %v13132_v38 = vor.u32 %v14207_v34, %v13131_v33  ;;  %v13136_v43 = vor.u32 %v14199_v39, %v13133_v40  ;;  %v14203_v33 = vld [vmem:[%s16553_s28 + $0x1bc] sm:$0xf]  ;;  %v13091_v39 = vld [vmem:[%s16553_s28 + $0x130] sm:$0xf] }
0x2956   :  { %v8293_v50 = vmul.f32 %v14663_v48, %v14657_v29  ;;  %v13123_v29 = vld [vmem:[%s16553_s28 + $0x190] sm:$0xf]  ;;  %v14182_v48 = vld [vmem:[%s16553_s28 + $0x114] sm:$0xf]  ;;  %v13165_v34 = vld [vmem:[%s16553_s28 + $0x1f8] sm:$0xf0] }
0x2957   :  { %12746 = vmatmul.msk.f32.vlgmr.msra.gmra.mxu1 %vm308_vm2, %v8382_v44  ;;  %v13124_v49 = vor.u32 %v14206_v30, %v13123_v29  ;;  %v14190_v44 = vld [vmem:[%s16553_s28 + $0x14c] sm:$0xf0] }
0x2958   :  { %9049 = vmatpush.bf16.msra.mxu1 %v13132_v38  ;;  %v13155_v29 = vld [vmem:[%s16553_s28 + $0x1b0] sm:$0xf] }
0x2959   :  { %v14210_v30 = vld [vmem:[%s16553_s28 + $0x1ec] sm:$0xf0] }
0x295a   :  { %v13156_v36 = vor.u32 %v14210_v30, %v13155_v29  ;;  %v14194_v40 = vld [vmem:[%s16553_s28 + $0x16c] sm:$0xf0] }
0x295b   :  { %v14250_v29 = vld [vmem:[%s16556_s7 + $0x530] sm:$0xff] }
0x295c   :  { %v14274_v30 = vld [vmem:[%s16556_s7 + $0x5f0] sm:$0xff] }
0x2960   :  { %v8295_v25 = vpop.permute.xlu0 %8294 }
0x2961   :  { %8315 = vmatpush.msrb.mxu2 %v8295_v25  ;;  %v13061_v25 = vld [vmem:[%s16553_s28 + $0x150] sm:$0xf0] }
0x2962   :  { %12742 = vmatmul.msk.f32.vlgmr.msrb.gmra.mxu2 %vm308_vm2, %v8293_v50  ;;  %v13060_v50 = vor.u32 %v14190_v44, %v13059_v41  ;;  %v13093_v44 = vld [vmem:[%s16553_s28 + $0x170] sm:$0xf0] }
0x2963   :  { %8427 = vmatpush.msra.mxu2 %v12727_v51  ;;  %v13067_v51 = vld [vmem:[%s16553_s28 + $0x118] sm:$0xf] }
0x2965   :  { %9010 = vmatpush.bf16.msrb.mxu2 %v13120_v58  ;;  %v13075_v58 = vld [vmem:[%s16553_s28 + $0x120] sm:$0xf] }
0x2966   :  { %v13076_v1 = vor.u32 %v14192_v19, %v13075_v58  ;;  %v14238_v58 = vld [vmem:[%s16556_s7 + $0x4d0] sm:$0xff]  ;;  %v14221_v19 = vld [vmem:[%s16556_s7 + $0x448] sm:$0xff] }
0x2969   :  { %9011 = vmatpush.bf16.msrb.mxu2 %v13056_v28  ;;  %v13084_v28 = vor.u32 %v14193_v10, %v13083_v57  ;;  %v14259_v57 = vld [vmem:[%s16556_s7 + $0x578] sm:$0xff] }
0x296a   :  { %v14267_v10 = vld [vmem:[%s16556_s7 + $0x5b8] sm:$0xff] }
0x29d4   :  { %v8406_v54 = vpop.f32.mrf.mxu1 }
0x29d5   :  { %12747 = vmatmul.msk.f32.vlgmr.msra.gmra.mxu2 %vm308_vm2, %v8406_v54  ;;  %v13064_v54 = vor.u32 %v14182_v48, %v13061_v25  ;;  %v13099_v48 = vld [vmem:[%s16553_s28 + $0x138] sm:$0xf]  ;;  %v14187_v25 = vld [vmem:[%s16553_s28 + $0x13c] sm:$0xf] }
0x29d6   :  { %9062 = vmatpush.bf16.msra.mxu2 %v13136_v43  ;;  %v14186_v43 = vld [vmem:[%s16553_s28 + $0x134] sm:$0xf] }
0x29d7   :  { %9037 = vmatpush.bf16.msra.mxu0 %v13064_v54  ;;  %v13096_v54 = vor.u32 %v14186_v43, %v13093_v44  ;;  %v14247_v43 = vld [vmem:[%s16556_s7 + $0x518] sm:$0xff] }
0x29d8   :  { %v14271_v44 = vld [vmem:[%s16556_s7 + $0x5d8] sm:$0xff] }
0x29e5   :  { %v8317_v26 = vpop.f32.mrf.mxu2 }
0x29e6   :  { %12743 = vmatmul.msk.f32.vlgmr.msrb.gmra.mxu3 %vm308_vm2, %v8317_v26  ;;  %v13068_v26 = vor.u32 %v14191_v53, %v13067_v51  ;;  %v13101_v51 = vld [vmem:[%s16553_s28 + $0x178] sm:$0xf0]  ;;  %v13092_v53 = vor.u32 %v14194_v40, %v13091_v39 }
0x29e7   :  { %v14255_v39 = vld [vmem:[%s16556_s7 + $0x558] sm:$0xff] }
0x29e8   :  { %9050 = vmatpush.bf16.msra.mxu1 %v13068_v26  ;;  %v14263_v40 = vld [vmem:[%s16556_s7 + $0x598] sm:$0xff] }
0x2a58   :  { %v8429_v5 = vpop.f32.mrf.mxu2 }
0x2a69   :  { %v8340_v0 = vpop.f32.mrf.mxu3 }
0x2a6a   :  { %v8343_v3 = vadd.f32 %v8340_v0, %v8253_v61  ;;  %v13069_v61 = vld [vmem:[%s16553_s28 + $0x158] sm:$0xf0] }
0x2a6b   :  { %v13072_v0 = vor.u32 %v14183_v56, %v13069_v61  ;;  %v13104_v56 = vor.u32 %v14187_v25, %v13101_v51  ;;  %v14227_v61 = vld [vmem:[%s16556_s7 + $0x478] sm:$0xff]  ;;  %v14246_v25 = vld [vmem:[%s16556_s7 + $0x510] sm:$0xff] }
0x2a6c   :  { %v8432_v7 = vadd.f32 %v8429_v5, %v8343_v3  ;;  %v14270_v51 = vld [vmem:[%s16556_s7 + $0x5d0] sm:$0xff] }
0x2a6d   :  { %9063 = vmatpush.bf16.msra.mxu2 %v13072_v0  ;;  %v14235_v0 = vld [vmem:[%s16556_s7 + $0x4b8] sm:$0xff] }
0x2a6e   :  { %v8436_v52 = vadd.f32 %v14539_v37, %v8432_v7 }
0x2a70   :  { %v8437_v11 = vadd.f32 %v8436_v52, %v16168_v55  ;;  %v14204_v55 = vld [vmem:[%s16553_s28 + $0x1bc] sm:$0xf0] }
0x2a71   :  { %v13108_v60 = vor.u32 %v14204_v55, %v13107_v16  ;;  %v13139_v16 = vld [vmem:[%s16553_s28 + $0x1a0] sm:$0xf] }
0x2a72   :  { %v8442_v13 = vsel %vm209_vm1, %v8437_v11, 0.0  ;;  %v14208_v55 = vld [vmem:[%s16553_s28 + $0x1dc] sm:$0xf0] }
0x2a73   :  { %8443 = vadd.xlane.f32.xlu2 %v8442_v13  ;;  %8971 = vmatpush.bf16.msra.mxu3 %v13108_v60  ;;  %v14540_v13 = vld [vmem:[%s16554_s1 + $0x1] ss:$0 sm:$0xff]  ;;  %v13141_v60 = vld [vmem:[%s16553_s28 + $0x1e0] sm:$0xf0]  ;;  %v13140_v18 = vor.u32 %v14208_v55, %v13139_v16 }
0x2a74   :  { %v13144_v59 = vor.u32 %v14200_v63, %v13141_v60  ;;  %v14232_v16 = vld [vmem:[%s16556_s7 + $0x4a0] sm:$0xff]  ;;  %v14223_v60 = vld [vmem:[%s16556_s7 + $0x458] sm:$0xff] }
0x2a75   :  { %v14216_v55 = vld [vmem:[%s16556_s7 + $0x420] sm:$0xff] }
0x2a76   :  { %v14240_v63 = vld [vmem:[%s16556_s7 + $0x4e0] sm:$0xff] }
0x2a77   :  { %8972 = vmatpush.bf16.msra.mxu3 %v13044_v62  ;;  %v14184_v62 = vld [vmem:[%s16553_s28 + $0x124] sm:$0xf] }
0x2a78   :  { %v13080_v27 = vor.u32 %v14184_v62, %v13077_v23  ;;  %v14220_v62 = vld [vmem:[%s16556_s7 + $0x440] sm:$0xff] }
0x2a79   :  { %v14228_v23 = vld [vmem:[%s16556_s7 + $0x480] sm:$0xff] }
0x2a7b   :  { %9023 = vmatpush.bf16.msrb.mxu3 %v13124_v49  ;;  %v13163_v49 = vld [vmem:[%s16553_s28 + $0x1b8] sm:$0xf] }
0x2a7c   :  { %v13164_v41 = vor.u32 %v14211_v32, %v13163_v49  ;;  %v14249_v49 = vld [vmem:[%s16556_s7 + $0x528] sm:$0xff] }
0x2a7d   :  { %v14273_v32 = vld [vmem:[%s16556_s7 + $0x5e8] sm:$0xff] }
0x2a7f   :  { %9024 = vmatpush.bf16.msrb.mxu3 %v13060_v50  ;;  %v14195_v50 = vld [vmem:[%s16553_s28 + $0x174] sm:$0xf0] }
0x2a80   :  { %v13100_v26 = vor.u32 %v14195_v50, %v13099_v48  ;;  %v14253_v48 = vld [vmem:[%s16556_s7 + $0x548] sm:$0xff] }
0x2a81   :  { %v14261_v50 = vld [vmem:[%s16556_s7 + $0x588] sm:$0xff] }
0x2ae6   :  { %v8444_v14 = vpop.xlane.xlu2 %8443 }
0x2ae7   :  { %v8445_v35 = vmul.f32 %v8444_v14, %v15017_v46 }
0x2ae9   :  { %v16213_v15 = vsub.f32 %v8437_v11, %v8445_v35  ;;  %v14541_v35 = vld [vmem:[%s16555_s2 + $0x1] ss:$0 sm:$0xff] }
0x2aeb   :  { %v8447_v45 = vmul.f32 %v16213_v15, %v16213_v15 }
0x2aed   :  { %v8448_v12 = vsel %vm209_vm1, %v8447_v45, 0.0 }
0x2aee   :  { %8449 = vadd.xlane.f32.xlu0 %v8448_v12 }
0x2b61   :  { %v8450_v6 = vpop.xlane.xlu0 %8449 }
0x2b62   :  { %v8451_v31 = vmul.f32 %v8450_v6, %v15017_v46  ;;  %v13088_v6 = vor.u32 %v14185_v24, %v13085_v2  ;;  %v14212_v24 = vld [vmem:[%s16556_s7 + $0x400] sm:$0xff] }
0x2b63   :  { %v14236_v2 = vld [vmem:[%s16556_s7 + $0x4c0] sm:$0xff] }
0x2b64   :  { %v8452_v42 = vadd.f32 1e-05, %v8451_v31  ;;  %v13157_v31 = vld [vmem:[%s16553_s28 + $0x1f0] sm:$0xf0] }
0x2b65   :  { %v13160_v38 = vor.u32 %v14202_v8, %v13157_v31  ;;  %v14257_v8 = vld [vmem:[%s16556_s7 + $0x568] sm:$0xff] }
0x2b66   :  { %14664 = vrsqrt.f32 %v8452_v42  ;;  %vm8459_vm5 = vweird.f32 %v8452_v42  ;;  %v14265_v31 = vld [vmem:[%s16556_s7 + $0x5a8] sm:$0xff] }
0x2b6c   :  { %v14665_v3 = vpop.eup %14664 }
0x2b6d   :  { %v8454_v37 = vmul.f32 %v14665_v3, %v8452_v42  ;;  %vm8460_vm2 = vweird.f32 %v14665_v3  ;;  %v13168_v42 = vor.u32 %v14203_v33, %v13165_v34  ;;  %v14256_v33 = vld [vmem:[%s16556_s7 + $0x560] sm:$0xff] }
0x2b6e   :  { %vm8461_vm6 = vmor %vm8459_vm5, %vm8460_vm2  ;;  %v14264_v34 = vld [vmem:[%s16556_s7 + $0x5a0] sm:$0xff] }
0x2b6f   :  { %v8455_v5 = vmul.f32 %v14665_v3, %v8454_v37  ;;  %v14243_v37 = vld [vmem:[%s16556_s7 + $0x4f8] sm:$0xff] }
0x2b71   :  { %v8456_v7 = vmul.f32 0.5, %v8455_v5  ;;  %v14226_v5 = vld [vmem:[%s16556_s7 + $0x470] sm:$0xff] }
0x2b73   :  { %v8457_v52 = vsub.f32 1.5, %v8456_v7  ;;  %v14234_v7 = vld [vmem:[%s16556_s7 + $0x4b0] sm:$0xff] }
0x2b75   :  { %v8458_v11 = vmul.f32 %v14665_v3, %v8457_v52  ;;  %v14218_v52 = vld [vmem:[%s16556_s7 + $0x430] sm:$0xff] }
0x2b77   :  { %v8462_v14 = vsel %vm8461_vm6, %v14665_v3, %v8458_v11  ;;  %v14219_v3 = vld [vmem:[%s16556_s7 + $0x438] sm:$0xff]  ;;  %v14242_v11 = vld [vmem:[%s16556_s7 + $0x4f0] sm:$0xff] }
0x2b78   :  { %v8463_v45 = vmul.f32 %v8462_v14, %v16213_v15  ;;  %v14233_v14 = vld [vmem:[%s16556_s7 + $0x4a8] sm:$0xff] }
0x2b7a   :  { %v8467_v12 = vmul.f32 %v14540_v13, %v8463_v45  ;;  %v14225_v13 = vld [vmem:[%s16556_s7 + $0x468] sm:$0xff] }
0x2b7b   :  { %v14241_v45 = vld [vmem:[%s16556_s7 + $0x4e8] sm:$0xff] }
0x2b7c   :  { %v16259_v21 = vadd.f32 %v14541_v35, %v8467_v12  ;;  %v14217_v35 = vld [vmem:[%s16556_s7 + $0x428] sm:$0xff]  ;;  %v14224_v12 = vld [vmem:[%s16556_s7 + $0x460] sm:$0xff] }
0x2b7e   :  { %v16266_v15 = vpack.c.bf16 %v16259_v21, %v16259_v21 }
0x2b80   :  { %13169 = vmatmul.msk.bf16.vlgmr.msra.gmra.mxu3 %vm209_vm1, %v16266_v15  ;;  %13170 = vmatmul.msk.bf16.vlgmr.msrb.gmra.mxu0 %vm209_vm1, %v16266_v15 }
0x2b81   :  { %13171 = vmatmul.msk.bf16.vlgmr.msrb.gmra.mxu1 %vm209_vm1, %v16266_v15  ;;  %13172 = vmatmul.msk.bf16.vlgmr.msrb.gmra.mxu2 %vm209_vm1, %v16266_v15 }
0x2b82   :  { %9075 = vmatpush.bf16.msra.mxu3 %v13140_v18  ;;  %9088 = vmatpush.bf16.msrb.mxu0 %v13144_v59  ;;  %v14230_v18 = vld [vmem:[%s16556_s7 + $0x490] sm:$0xff] }
0x2b83   :  { %9101 = vmatpush.bf16.msrb.mxu1 %v13148_v20  ;;  %9114 = vmatpush.bf16.msrb.mxu2 %v13152_v22  ;;  %v14214_v59 = vld [vmem:[%s16556_s7 + $0x410] sm:$0xff]  ;;  %v14213_v20 = vld [vmem:[%s16556_s7 + $0x408] sm:$0xff] }
0x2b84   :  { %v14237_v22 = vld [vmem:[%s16556_s7 + $0x4c8] sm:$0xff] }
0x2b86   :  { %9076 = vmatpush.bf16.msra.mxu3 %v13076_v1  ;;  %9089 = vmatpush.bf16.msrb.mxu0 %v13080_v27  ;;  %v14251_v1 = vld [vmem:[%s16556_s7 + $0x538] sm:$0xff] }
0x2b87   :  { %9102 = vmatpush.bf16.msrb.mxu1 %v13084_v28  ;;  %9115 = vmatpush.bf16.msrb.mxu2 %v13088_v6  ;;  %v14275_v27 = vld [vmem:[%s16556_s7 + $0x5f8] sm:$0xff]  ;;  %v14258_v28 = vld [vmem:[%s16556_s7 + $0x570] sm:$0xff] }
0x2b88   :  { %v14266_v6 = vld [vmem:[%s16556_s7 + $0x5b0] sm:$0xff] }
0x2b90   :  { %13173 = vmatmul.msk.bf16.vlgmr.msrb.gmra.mxu3 %vm209_vm1, %v16266_v15  ;;  %13174 = vmatmul.msk.bf16.vlgmr.msra.gmra.mxu0 %vm209_vm1, %v16266_v15 }
0x2b91   :  { %13175 = vmatmul.msk.bf16.vlgmr.msra.gmra.mxu1 %vm209_vm1, %v16266_v15  ;;  %13176 = vmatmul.msk.bf16.vlgmr.msra.gmra.mxu2 %vm209_vm1, %v16266_v15 }
0x2b92   :  { %9127 = vmatpush.bf16.msrb.mxu3 %v13156_v36  ;;  %9140 = vmatpush.bf16.msra.mxu0 %v13160_v38  ;;  %v14248_v36 = vld [vmem:[%s16556_s7 + $0x520] sm:$0xff] }
0x2b93   :  { %9153 = vmatpush.bf16.msra.mxu1 %v13164_v41  ;;  %9166 = vmatpush.bf16.msra.mxu2 %v13168_v42  ;;  %v14272_v38 = vld [vmem:[%s16556_s7 + $0x5e0] sm:$0xff]  ;;  %v14254_v41 = vld [vmem:[%s16556_s7 + $0x550] sm:$0xff] }
0x2b94   :  { %v14262_v42 = vld [vmem:[%s16556_s7 + $0x590] sm:$0xff] }
0x2b96   :  { %9128 = vmatpush.bf16.msrb.mxu3 %v13092_v53  ;;  %9141 = vmatpush.bf16.msra.mxu0 %v13096_v54  ;;  %v14252_v53 = vld [vmem:[%s16556_s7 + $0x540] sm:$0xff] }
0x2b97   :  { %9154 = vmatpush.bf16.msra.mxu1 %v13100_v26  ;;  %9167 = vmatpush.bf16.msra.mxu2 %v13104_v56  ;;  %v14260_v54 = vld [vmem:[%s16556_s7 + $0x580] sm:$0xff]  ;;  %v14245_v26 = vld [vmem:[%s16556_s7 + $0x508] sm:$0xff] }
0x2b98   :  { %v14269_v56 = vld [vmem:[%s16556_s7 + $0x5c8] sm:$0xff] }
0x2ba0   :  { %13177 = vmatmul.msk.bf16.vlgmr.msra.gmra.mxu3 %vm209_vm1, %v16266_v15  ;;  %13178 = vmatmul.msk.bf16.vlgmr.msrb.gmra.mxu0 %vm209_vm1, %v16266_v15 }
0x2ba1   :  { %13179 = vmatmul.msk.bf16.vlgmr.msrb.gmra.mxu1 %vm209_vm1, %v16266_v15  ;;  %13180 = vmatmul.msk.bf16.vlgmr.msrb.gmra.mxu2 %vm209_vm1, %v16266_v15 }
0x2ba2   :  { %9989 = vmatpush.bf16.msrb.mxu0 %v14227_v61  ;;  %10002 = vmatpush.bf16.msrb.mxu1 %v14235_v0  ;;  %v14244_v61 = vld [vmem:[%s16556_s7 + $0x500] sm:$0xff] }
0x2ba3   :  { %9976 = vmatpush.bf16.msra.mxu3 %v14219_v3  ;;  %10015 = vmatpush.bf16.msrb.mxu2 %v14243_v37  ;;  %v14268_v0 = vld [vmem:[%s16556_s7 + $0x5c0] sm:$0xff]  ;;  %v16389_v3 = vld [vmem:[%s16557_s10 + $0x10] sm:$0xff] }
0x2ba4   :  { %v8771_v37 = vperm.slane %v16389_v3, 1 }
0x2ba6   :  { %9990 = vmatpush.bf16.msrb.mxu0 %v14226_v5  ;;  %10003 = vmatpush.bf16.msrb.mxu1 %v14234_v7  ;;  %v8772_v5 = vperm.slane %v16389_v3, 2 }
0x2ba7   :  { %9977 = vmatpush.bf16.msra.mxu3 %v14218_v52  ;;  %10016 = vmatpush.bf16.msrb.mxu2 %v14242_v11 }
0x2baa   :  { %9991 = vmatpush.bf16.msrb.mxu0 %v14225_v13  ;;  %10004 = vmatpush.bf16.msrb.mxu1 %v14233_v14 }
0x2bab   :  { %9978 = vmatpush.bf16.msra.mxu3 %v14217_v35  ;;  %10017 = vmatpush.bf16.msrb.mxu2 %v14241_v45  ;;  %v8770_v35 = vperm.slane %v16389_v3, 0 }
0x2bae   :  { %9992 = vmatpush.bf16.msrb.mxu0 %v14224_v12  ;;  %10005 = vmatpush.bf16.msrb.mxu1 %v14232_v16  ;;  %v8773_v12 = vperm.slane %v16389_v3, 3  ;;  %v14291_v16 = vld [vmem:[%s16556_s7 + $0x678] sm:$0xff] }
0x2baf   :  { %9979 = vmatpush.bf16.msra.mxu3 %v14216_v55  ;;  %10018 = vmatpush.bf16.msrb.mxu2 %v14240_v63  ;;  %v14299_v63 = vld [vmem:[%s16556_s7 + $0x6b8] sm:$0xff] }
0x2bb0   :  { %13181 = vmatmul.msk.bf16.vlgmr.msrb.gmra.mxu3 %vm209_vm1, %v16266_v15  ;;  %13182 = vmatmul.msk.bf16.vlgmr.msra.gmra.mxu0 %vm209_vm1, %v16266_v15 }
0x2bb1   :  { %13183 = vmatmul.msk.bf16.vlgmr.msra.gmra.mxu1 %vm209_vm1, %v16266_v15  ;;  %13184 = vmatmul.msk.bf16.vlgmr.msra.gmra.mxu2 %vm209_vm1, %v16266_v15  ;;  %v14229_v15 = vld [vmem:[%s16556_s7 + $0x488] sm:$0xff] }
0x2bb2   :  { %9993 = vmatpush.bf16.msrb.mxu0 %v14223_v60  ;;  %10006 = vmatpush.bf16.msrb.mxu1 %v14231_v4 }
0x2bb3   :  { %9980 = vmatpush.bf16.msra.mxu3 %v14215_v17  ;;  %10019 = vmatpush.bf16.msrb.mxu2 %v14239_v9 }
0x2bb6   :  { %9994 = vmatpush.bf16.msrb.mxu0 %v14222_v47  ;;  %10007 = vmatpush.bf16.msrb.mxu1 %v14230_v18 }
0x2bb7   :  { %9981 = vmatpush.bf16.msra.mxu3 %v14214_v59  ;;  %10020 = vmatpush.bf16.msrb.mxu2 %v14238_v58  ;;  %v14290_v59 = vld [vmem:[%s16556_s7 + $0x670] sm:$0xff] }
0x2bba   :  { %9995 = vmatpush.bf16.msrb.mxu0 %v14221_v19  ;;  %10008 = vmatpush.bf16.msrb.mxu1 %v14229_v15  ;;  %v14298_v15 = vld [vmem:[%s16556_s7 + $0x6b0] sm:$0xff] }
0x2bbb   :  { %9982 = vmatpush.bf16.msra.mxu3 %v14213_v20  ;;  %10021 = vmatpush.bf16.msrb.mxu2 %v14237_v22  ;;  %v14283_v22 = vld [vmem:[%s16556_s7 + $0x638] sm:$0xff] }
0x2bbe   :  { %9996 = vmatpush.bf16.msrb.mxu0 %v14220_v62  ;;  %10009 = vmatpush.bf16.msrb.mxu1 %v14228_v23  ;;  %v14307_v23 = vld [vmem:[%s16556_s7 + $0x6f8] sm:$0xff] }
0x2bbf   :  { %9983 = vmatpush.bf16.msra.mxu3 %v14212_v24  ;;  %10022 = vmatpush.bf16.msrb.mxu2 %v14236_v2  ;;  %v14297_v24 = vld [vmem:[%s16556_s7 + $0x6a8] sm:$0xff]  ;;  %v8775_v2 = vperm.slane %v16389_v3, 5 }
0x2bc2   :  { %10041 = vmatpush.bf16.msra.mxu0 %v14259_v57  ;;  %10054 = vmatpush.bf16.msra.mxu1 %v14267_v10  ;;  %v14289_v10 = vld [vmem:[%s16556_s7 + $0x668] sm:$0xff] }
0x2bc3   :  { %10028 = vmatpush.bf16.msrb.mxu3 %v14251_v1  ;;  %10067 = vmatpush.bf16.msra.mxu2 %v14275_v27  ;;  %v8776_v27 = vperm.slane %v16389_v3, 6 }
0x2bc6   :  { %10042 = vmatpush.bf16.msra.mxu0 %v14258_v28  ;;  %10055 = vmatpush.bf16.msra.mxu1 %v14266_v6  ;;  %v14282_v28 = vld [vmem:[%s16556_s7 + $0x630] sm:$0xff] }
0x2bc7   :  { %10029 = vmatpush.bf16.msrb.mxu3 %v14250_v29  ;;  %10068 = vmatpush.bf16.msra.mxu2 %v14274_v30  ;;  %v14306_v29 = vld [vmem:[%s16556_s7 + $0x6f0] sm:$0xff] }
0x2bca   :  { %10043 = vmatpush.bf16.msra.mxu0 %v14257_v8  ;;  %10056 = vmatpush.bf16.msra.mxu1 %v14265_v31  ;;  %v14288_v8 = vld [vmem:[%s16556_s7 + $0x660] sm:$0xff] }
0x2bcb   :  { %10030 = vmatpush.bf16.msrb.mxu3 %v14249_v49  ;;  %10069 = vmatpush.bf16.msra.mxu2 %v14273_v32  ;;  %v14296_v32 = vld [vmem:[%s16556_s7 + $0x6a0] sm:$0xff] }
0x2bce   :  { %10044 = vmatpush.bf16.msra.mxu0 %v14256_v33  ;;  %10057 = vmatpush.bf16.msra.mxu1 %v14264_v34  ;;  %v14281_v34 = vld [vmem:[%s16556_s7 + $0x628] sm:$0xff] }
0x2bcf   :  { %10031 = vmatpush.bf16.msrb.mxu3 %v14248_v36  ;;  %10070 = vmatpush.bf16.msra.mxu2 %v14272_v38  ;;  %v14305_v38 = vld [vmem:[%s16556_s7 + $0x6e8] sm:$0xff] }
0x2bd2   :  { %10045 = vmatpush.bf16.msra.mxu0 %v14255_v39  ;;  %10058 = vmatpush.bf16.msra.mxu1 %v14263_v40  ;;  %v8774_v39 = vperm.slane %v16389_v3, 4 }
0x2bd3   :  { %10032 = vmatpush.bf16.msrb.mxu3 %v14247_v43  ;;  %10071 = vmatpush.bf16.msra.mxu2 %v14271_v44  ;;  %v14295_v44 = vld [vmem:[%s16556_s7 + $0x698] sm:$0xff] }
0x2bd6   :  { %10046 = vmatpush.bf16.msra.mxu0 %v14254_v41  ;;  %10059 = vmatpush.bf16.msra.mxu1 %v14262_v42  ;;  %v8777_v41 = vperm.slane %v16389_v3, 7  ;;  %v14287_v42 = vld [vmem:[%s16556_s7 + $0x658] sm:$0xff] }
0x2bd7   :  { %10033 = vmatpush.bf16.msrb.mxu3 %v14246_v25  ;;  %10072 = vmatpush.bf16.msra.mxu2 %v14270_v51  ;;  %v14280_v25 = vld [vmem:[%s16556_s7 + $0x620] sm:$0xff] }
0x2bda   :  { %10047 = vmatpush.bf16.msra.mxu0 %v14253_v48  ;;  %10060 = vmatpush.bf16.msra.mxu1 %v14261_v50 }
0x2bdb   :  { %10034 = vmatpush.bf16.msrb.mxu3 %v14245_v26  ;;  %10073 = vmatpush.bf16.msra.mxu2 %v14269_v56 }
0x2bde   :  { %10048 = vmatpush.bf16.msra.mxu0 %v14252_v53  ;;  %10061 = vmatpush.bf16.msra.mxu1 %v14260_v54  ;;  %v14304_v54 = vld [vmem:[%s16556_s7 + $0x6e0] sm:$0xff] }
0x2bdf   :  { %10035 = vmatpush.bf16.msrb.mxu3 %v14244_v61  ;;  %10074 = vmatpush.bf16.msra.mxu2 %v14268_v0  ;;  %v14286_v61 = vld [vmem:[%s16556_s7 + $0x650] sm:$0xff] }
0x2bfd   :  { %v8987_v7 = vpop.f32.mrf.mxu0 }
0x2bfe   :  { %v8988_v52 = vadd.f32 %v8987_v7, %v8771_v37  ;;  %v9000_v11 = vpop.f32.mrf.mxu1  ;;  %v14294_v37 = vld [vmem:[%s16556_s7 + $0x690] sm:$0xff]  ;;  %v14279_v7 = vld [vmem:[%s16556_s7 + $0x618] sm:$0xff] }
0x2bff   :  { %v9001_v13 = vadd.f32 %v9000_v11, %v8772_v5 }
0x2c00   :  { %v9174_v14 = vmax.f32 %v8988_v52, 0.0  ;;  %v16421_v52 = vld [vmem:[%s16557_s10 + $0x18] sm:$0xff] }
0x2c01   :  { %v9175_v45 = vmax.f32 %v9001_v13, 0.0  ;;  %v14303_v13 = vld [vmem:[%s16556_s7 + $0x6d8] sm:$0xff] }
0x2c02   :  { %v9190_v55 = vpack.c.bf16 %v9174_v14, %v9174_v14 }
0x2c03   :  { %v9191_v60 = vpack.c.bf16 %v9175_v45, %v9175_v45  ;;  %v8974_v4 = vpop.f32.mrf.mxu3  ;;  %v14293_v45 = vld [vmem:[%s16556_s7 + $0x688] sm:$0xff] }
0x2c04   :  { %v8975_v17 = vadd.f32 %v8974_v4, %v8770_v35  ;;  %v9013_v9 = vpop.f32.mrf.mxu2  ;;  %9997 = vmatmul.bf16.vlgmr.msrb.gmra.mxu0 %v9190_v55  ;;  %v14285_v35 = vld [vmem:[%s16556_s7 + $0x648] sm:$0xff]  ;;  %v8780_v55 = vperm.slane %v16421_v52, 2  ;;  %v14302_v4 = vld [vmem:[%s16556_s7 + $0x6d0] sm:$0xff] }
0x2c05   :  { %v9014_v47 = vadd.f32 %v9013_v9, %v8773_v12  ;;  %10010 = vmatmul.bf16.vlgmr.msrb.gmra.mxu1 %v9191_v60  ;;  %10093 = vmatpush.bf16.msrb.mxu0 %v14291_v16  ;;  %v8989_v18 = vpop.f32.mrf.mxu0  ;;  %v8779_v12 = vperm.slane %v16421_v52, 1  ;;  %v14284_v9 = vld [vmem:[%s16556_s7 + $0x640] sm:$0xff] }
0x2c06   :  { %v9173_v58 = vmax.f32 %v8975_v17, 0.0  ;;  %10106 = vmatpush.bf16.msrb.mxu1 %v14299_v63  ;;  %v9002_v19 = vpop.f32.mrf.mxu1  ;;  %v14278_v63 = vld [vmem:[%s16556_s7 + $0x610] sm:$0xff] }
0x2c07   :  { %v9176_v20 = vmax.f32 %v9014_v47, 0.0 }
0x2c08   :  { %v9189_v62 = vpack.c.bf16 %v9173_v58, %v9173_v58  ;;  %v14323_v58 = vld [vmem:[%s16556_s7 + $0x778] sm:$0xff] }
0x2c09   :  { %v9192_v57 = vpack.c.bf16 %v9176_v20, %v9176_v20  ;;  %10094 = vmatpush.bf16.msrb.mxu0 %v14290_v59  ;;  %v14292_v59 = vld [vmem:[%s16556_s7 + $0x680] sm:$0xff]  ;;  %v14277_v20 = vld [vmem:[%s16556_s7 + $0x608] sm:$0xff] }
0x2c0a   :  { %10107 = vmatpush.bf16.msrb.mxu1 %v14298_v15  ;;  %9984 = vmatmul.bf16.vlgmr.msra.gmra.mxu3 %v9189_v62  ;;  %v14331_v15 = vld [vmem:[%s16556_s7 + $0x7b8] sm:$0xff]  ;;  %v14301_v62 = vld [vmem:[%s16556_s7 + $0x6c8] sm:$0xff] }
0x2c0b   :  { %10023 = vmatmul.bf16.vlgmr.msrb.gmra.mxu2 %v9192_v57  ;;  %10080 = vmatpush.bf16.msra.mxu3 %v14283_v22  ;;  %v8976_v1 = vpop.f32.mrf.mxu3 }
0x2c0c   :  { %10119 = vmatpush.bf16.msrb.mxu2 %v14307_v23  ;;  %v9015_v6 = vpop.f32.mrf.mxu2  ;;  %v8778_v23 = vperm.slane %v16421_v52, 0 }
0x2c0d   :  { %10095 = vmatpush.bf16.msrb.mxu0 %v14289_v10  ;;  %v9039_v30 = vpop.f32.mrf.mxu0  ;;  %v8781_v10 = vperm.slane %v16421_v52, 3  ;;  %v14276_v6 = vld [vmem:[%s16556_s7 + $0x600] sm:$0xff] }
0x2c0e   :  { %10108 = vmatpush.bf16.msrb.mxu1 %v14297_v24  ;;  %v9040_v31 = vadd.f32 %v9039_v30, %v8775_v2  ;;  %v9052_v49 = vpop.f32.mrf.mxu1  ;;  %v14322_v2 = vld [vmem:[%s16556_s7 + $0x770] sm:$0xff] }
0x2c0f   :  { %v9053_v33 = vadd.f32 %v9052_v49, %v8776_v27  ;;  %10081 = vmatpush.bf16.msra.mxu3 %v14282_v28  ;;  %v14330_v28 = vld [vmem:[%s16556_s7 + $0x7b0] sm:$0xff] }
0x2c10   :  { %v9178_v36 = vmax.f32 %v9040_v31, 0.0  ;;  %10120 = vmatpush.bf16.msrb.mxu2 %v14306_v29  ;;  %v14315_v31 = vld [vmem:[%s16556_s7 + $0x738] sm:$0xff] }
0x2c11   :  { %v9179_v40 = vmax.f32 %v9053_v33, 0.0  ;;  %10096 = vmatpush.bf16.msrb.mxu0 %v14288_v8  ;;  %v14300_v8 = vld [vmem:[%s16556_s7 + $0x6c0] sm:$0xff]  ;;  %v14339_v33 = vld [vmem:[%s16556_s7 + $0x7f8] sm:$0xff] }
0x2c12   :  { %v9194_v43 = vpack.c.bf16 %v9178_v36, %v9178_v36  ;;  %10109 = vmatpush.bf16.msrb.mxu1 %v14296_v32 }
0x2c13   :  { %v9195_v48 = vpack.c.bf16 %v9179_v40, %v9179_v40  ;;  %10082 = vmatpush.bf16.msra.mxu3 %v14281_v34  ;;  %v9026_v50 = vpop.f32.mrf.mxu3  ;;  %v14329_v40 = vld [vmem:[%s16556_s7 + $0x7a8] sm:$0xff] }
0x2c14   :  { %10121 = vmatpush.bf16.msrb.mxu2 %v14305_v38  ;;  %v9027_v51 = vadd.f32 %v9026_v50, %v8774_v39  ;;  %v9065_v53 = vpop.f32.mrf.mxu2  ;;  %10049 = vmatmul.bf16.vlgmr.msra.gmra.mxu0 %v9194_v43  ;;  %v14321_v38 = vld [vmem:[%s16556_s7 + $0x768] sm:$0xff] }
0x2c15   :  { %v9066_v26 = vadd.f32 %v9065_v53, %v8777_v41  ;;  %10062 = vmatmul.bf16.vlgmr.msra.gmra.mxu1 %v9195_v48  ;;  %10097 = vmatpush.bf16.msrb.mxu0 %v14287_v42  ;;  %v9041_v56 = vpop.f32.mrf.mxu0  ;;  %v14314_v42 = vld [vmem:[%s16556_s7 + $0x730] sm:$0xff]  ;;  %v14320_v48 = vld [vmem:[%s16556_s7 + $0x760] sm:$0xff]  ;;  %v14313_v53 = vld [vmem:[%s16556_s7 + $0x728] sm:$0xff] }
0x2c16   :  { %v9177_v0 = vmax.f32 %v9027_v51, 0.0  ;;  %10110 = vmatpush.bf16.msrb.mxu1 %v14295_v44  ;;  %v9054_v3 = vpop.f32.mrf.mxu1  ;;  %v14338_v44 = vld [vmem:[%s16556_s7 + $0x7f0] sm:$0xff] }
0x2c17   :  { %v9180_v5 = vmax.f32 %v9066_v26, 0.0  ;;  %10083 = vmatpush.bf16.msra.mxu3 %v14280_v25  ;;  %v14328_v25 = vld [vmem:[%s16556_s7 + $0x7a0] sm:$0xff]  ;;  %v14337_v26 = vld [vmem:[%s16556_s7 + $0x7e8] sm:$0xff] }
0x2c18   :  { %v9193_v11 = vpack.c.bf16 %v9177_v0, %v9177_v0  ;;  %10122 = vmatpush.bf16.msrb.mxu2 %v14304_v54  ;;  %v14327_v0 = vld [vmem:[%s16556_s7 + $0x798] sm:$0xff]  ;;  %v14312_v3 = vld [vmem:[%s16556_s7 + $0x720] sm:$0xff] }
0x2c19   :  { %v9196_v14 = vpack.c.bf16 %v9180_v5, %v9180_v5  ;;  %10098 = vmatpush.bf16.msrb.mxu0 %v14286_v61  ;;  %v14319_v61 = vld [vmem:[%s16556_s7 + $0x758] sm:$0xff]  ;;  %v14318_v5 = vld [vmem:[%s16556_s7 + $0x750] sm:$0xff] }
0x2c1a   :  { %10111 = vmatpush.bf16.msrb.mxu1 %v14294_v37  ;;  %10036 = vmatmul.bf16.vlgmr.msrb.gmra.mxu3 %v9193_v11  ;;  %v14336_v37 = vld [vmem:[%s16556_s7 + $0x7e0] sm:$0xff] }
0x2c1b   :  { %10075 = vmatmul.bf16.vlgmr.msra.gmra.mxu2 %v9196_v14  ;;  %10084 = vmatpush.bf16.msra.mxu3 %v14279_v7  ;;  %v9028_v16 = vpop.f32.mrf.mxu3  ;;  %v8783_v7 = vperm.slane %v16421_v52, 5  ;;  %v8784_v14 = vperm.slane %v16421_v52, 6 }
0x2c1c   :  { %10123 = vmatpush.bf16.msrb.mxu2 %v14303_v13  ;;  %v9067_v60 = vpop.f32.mrf.mxu2  ;;  %v14326_v13 = vld [vmem:[%s16556_s7 + $0x790] sm:$0xff]  ;;  %v14335_v16 = vld [vmem:[%s16556_s7 + $0x7d8] sm:$0xff] }
0x2c1d   :  { %10099 = vmatpush.bf16.msrb.mxu0 %v14285_v35  ;;  %v9091_v17 = vpop.f32.mrf.mxu0 }
0x2c1e   :  { %10112 = vmatpush.bf16.msrb.mxu1 %v14293_v45  ;;  %v9092_v47 = vadd.f32 %v9091_v17, %v8779_v12  ;;  %v9104_v18 = vpop.f32.mrf.mxu1  ;;  %v14311_v45 = vld [vmem:[%s16556_s7 + $0x718] sm:$0xff] }
0x2c1f   :  { %v9105_v19 = vadd.f32 %v9104_v18, %v8780_v55  ;;  %10085 = vmatpush.bf16.msra.mxu3 %v14278_v63  ;;  %v14317_v63 = vld [vmem:[%s16556_s7 + $0x748] sm:$0xff]  ;;  %v14334_v18 = vld [vmem:[%s16556_s7 + $0x7d0] sm:$0xff] }
0x2c20   :  { %v9182_v22 = vmax.f32 %v9092_v47, 0.0  ;;  %10124 = vmatpush.bf16.msrb.mxu2 %v14302_v4  ;;  %v14325_v4 = vld [vmem:[%s16556_s7 + $0x788] sm:$0xff]  ;;  %v8782_v47 = vperm.slane %v16421_v52, 4 }
0x2c21   :  { %v9183_v57 = vmax.f32 %v9105_v19, 0.0  ;;  %10100 = vmatpush.bf16.msrb.mxu0 %v14284_v9  ;;  %v14310_v9 = vld [vmem:[%s16556_s7 + $0x710] sm:$0xff] }
0x2c22   :  { %v9198_v24 = vpack.c.bf16 %v9182_v22, %v9182_v22  ;;  %10113 = vmatpush.bf16.msrb.mxu1 %v14292_v59  ;;  %v8785_v59 = vperm.slane %v16421_v52, 7 }
0x2c23   :  { %v9199_v1 = vpack.c.bf16 %v9183_v57, %v9183_v57  ;;  %10086 = vmatpush.bf16.msra.mxu3 %v14277_v20  ;;  %v9078_v27 = vpop.f32.mrf.mxu3  ;;  %v14324_v20 = vld [vmem:[%s16556_s7 + $0x780] sm:$0xff] }
0x2c24   :  { %10125 = vmatpush.bf16.msrb.mxu2 %v14301_v62  ;;  %v9079_v29 = vadd.f32 %v9078_v27, %v8778_v23  ;;  %v9117_v30 = vpop.f32.mrf.mxu2  ;;  %10101 = vmatmul.bf16.vlgmr.msrb.gmra.mxu0 %v9198_v24  ;;  %v14309_v23 = vld [vmem:[%s16556_s7 + $0x708] sm:$0xff] }
0x2c25   :  { %10145 = vmatpush.bf16.msra.mxu0 %v14323_v58  ;;  %v9118_v49 = vadd.f32 %v9117_v30, %v8781_v10  ;;  %10114 = vmatmul.bf16.vlgmr.msrb.gmra.mxu1 %v9199_v1  ;;  %v9093_v32 = vpop.f32.mrf.mxu0  ;;  %v14316_v58 = vld [vmem:[%s16556_s7 + $0x740] sm:$0xff]  ;;  %v14333_v10 = vld [vmem:[%s16556_s7 + $0x7c8] sm:$0xff] }
0x2c26   :  { %10158 = vmatpush.bf16.msra.mxu1 %v14331_v15  ;;  %v9181_v34 = vmax.f32 %v9079_v29, 0.0  ;;  %v9106_v36 = vpop.f32.mrf.mxu1  ;;  %v14308_v1 = vld [vmem:[%s16556_s7 + $0x700] sm:$0xff] }
0x2c27   :  { %v9184_v39 = vmax.f32 %v9118_v49, 0.0  ;;  %10087 = vmatpush.bf16.msra.mxu3 %v14276_v6 }
0x2c28   :  { %v9197_v41 = vpack.c.bf16 %v9181_v34, %v9181_v34  ;;  %10126 = vmatpush.bf16.msrb.mxu2 %v14300_v8 }
0x2c29   :  { %10146 = vmatpush.bf16.msra.mxu0 %v14322_v2  ;;  %v9200_v43 = vpack.c.bf16 %v9184_v39, %v9184_v39 }
0x2c2a   :  { %10159 = vmatpush.bf16.msra.mxu1 %v14330_v28  ;;  %10088 = vmatmul.bf16.vlgmr.msra.gmra.mxu3 %v9197_v41  ;;  %v14332_v28 = vld [vmem:[%s16556_s7 + $0x7c0] sm:$0xff] }
0x2c2b   :  { %10132 = vmatpush.bf16.msrb.mxu3 %v14315_v31  ;;  %10127 = vmatmul.bf16.vlgmr.msrb.gmra.mxu2 %v9200_v43  ;;  %v9080_v50 = vpop.f32.mrf.mxu3  ;;  %v14542_v43 = vld [vmem:[%s16558_s11 + $0x1] ss:$0 sm:$0xff] }
0x2c2c   :  { %10171 = vmatpush.bf16.msra.mxu2 %v14339_v33  ;;  %v9119_v51 = vpop.f32.mrf.mxu2 }
0x2c2d   :  { %10147 = vmatpush.bf16.msra.mxu0 %v14321_v38  ;;  %v9143_v54 = vpop.f32.mrf.mxu0 }
0x2c2e   :  { %10160 = vmatpush.bf16.msra.mxu1 %v14329_v40  ;;  %v9156_v56 = vpop.f32.mrf.mxu1  ;;  %v9144_v60 = vadd.f32 %v9143_v54, %v8783_v7 }
0x2c2f   :  { %10133 = vmatpush.bf16.msrb.mxu3 %v14314_v42  ;;  %v9157_v17 = vadd.f32 %v9156_v56, %v8784_v14 }
0x2c30   :  { %10172 = vmatpush.bf16.msra.mxu2 %v14338_v44  ;;  %v9186_v19 = vmax.f32 %v9144_v60, 0.0 }
0x2c31   :  { %10148 = vmatpush.bf16.msra.mxu0 %v14320_v48  ;;  %v9187_v22 = vmax.f32 %v9157_v17, 0.0 }
0x2c32   :  { %10161 = vmatpush.bf16.msra.mxu1 %v14328_v25  ;;  %v9202_v2 = vpack.c.bf16 %v9186_v19, %v9186_v19 }
0x2c33   :  { %10134 = vmatpush.bf16.msrb.mxu3 %v14313_v53  ;;  %v9130_v11 = vpop.f32.mrf.mxu3  ;;  %v9203_v52 = vpack.c.bf16 %v9187_v22, %v9187_v22 }
0x2c34   :  { %10173 = vmatpush.bf16.msra.mxu2 %v14337_v26  ;;  %v9169_v35 = vpop.f32.mrf.mxu2  ;;  %v9131_v57 = vadd.f32 %v9130_v11, %v8782_v47 }
0x2c35   :  { %10149 = vmatpush.bf16.msra.mxu0 %v14319_v61  ;;  %v9145_v12 = vpop.f32.mrf.mxu0  ;;  %v9170_v24 = vadd.f32 %v9169_v35, %v8785_v59 }
0x2c36   :  { %10162 = vmatpush.bf16.msra.mxu1 %v14327_v0  ;;  %v9158_v55 = vpop.f32.mrf.mxu1  ;;  %v9185_v27 = vmax.f32 %v9131_v57, 0.0 }
0x2c37   :  { %10135 = vmatpush.bf16.msrb.mxu3 %v14312_v3  ;;  %v9188_v6 = vmax.f32 %v9170_v24, 0.0 }
0x2c38   :  { %10174 = vmatpush.bf16.msra.mxu2 %v14336_v37  ;;  %v9201_v29 = vpack.c.bf16 %v9185_v27, %v9185_v27 }
0x2c39   :  { %10150 = vmatpush.bf16.msra.mxu0 %v14318_v5  ;;  %v9204_v30 = vpack.c.bf16 %v9188_v6, %v9188_v6 }
0x2c3a   :  { %10163 = vmatpush.bf16.msra.mxu1 %v14326_v13 }
0x2c3b   :  { %10136 = vmatpush.bf16.msrb.mxu3 %v14311_v45  ;;  %v9132_v15 = vpop.f32.mrf.mxu3 }
0x2c3c   :  { %10175 = vmatpush.bf16.msra.mxu2 %v14335_v16  ;;  %v9171_v62 = vpop.f32.mrf.mxu2 }
0x2c3d   :  { %10151 = vmatpush.bf16.msra.mxu0 %v14317_v63 }
0x2c3e   :  { %10164 = vmatpush.bf16.msra.mxu1 %v14325_v4 }
0x2c3f   :  { %10137 = vmatpush.bf16.msrb.mxu3 %v14310_v9 }
0x2c40   :  { %10176 = vmatpush.bf16.msra.mxu2 %v14334_v18 }
0x2c41   :  { %10152 = vmatpush.bf16.msra.mxu0 %v14316_v58 }
0x2c42   :  { %10165 = vmatpush.bf16.msra.mxu1 %v14324_v20 }
0x2c43   :  { %10138 = vmatpush.bf16.msrb.mxu3 %v14309_v23 }
0x2c44   :  { %10177 = vmatpush.bf16.msra.mxu2 %v14333_v10  ;;  %10153 = vmatmul.bf16.vlgmr.msra.gmra.mxu0 %v9202_v2 }
0x2c45   :  { %10166 = vmatmul.bf16.vlgmr.msra.gmra.mxu1 %v9203_v52 }
0x2c47   :  { %10139 = vmatpush.bf16.msrb.mxu3 %v14308_v1 }
0x2c48   :  { %10178 = vmatpush.bf16.msra.mxu2 %v14332_v28 }
0x2c4a   :  { %10140 = vmatmul.bf16.vlgmr.msrb.gmra.mxu3 %v9201_v29 }
0x2c4b   :  { %10179 = vmatmul.bf16.vlgmr.msra.gmra.mxu2 %v9204_v30 }
0x2c81   :  { %v9998_v8 = vpop.f32.mrf.mxu0 }
0x2c82   :  { %v10011_v31 = vpop.f32.mrf.mxu1 }
0x2c89   :  { %v10000_v49 = vpop.f32.mrf.mxu0 }
0x2c8a   :  { %v10013_v32 = vpop.f32.mrf.mxu1  ;;  %v14543_v49 = vld [vmem:[%s16559_s15 + $0x1] ss:$0 sm:$0xff] }
0x2c8d   :  { %v9985_v33 = vpop.f32.mrf.mxu3 }
0x2c8e   :  { %v10024_v34 = vpop.f32.mrf.mxu2  ;;  %v9986_v50 = vadd.f32 %v14542_v43, %v9985_v33 }
0x2c90   :  { %v9999_v53 = vadd.f32 %v9998_v8, %v9986_v50  ;;  %v10253_v50 = vld [vmem:[%s14935_s4 + $0x10] sm:$0xff] }
0x2c91   :  { %v10050_v36 = vpop.f32.mrf.mxu0 }
0x2c92   :  { %v10063_v38 = vpop.f32.mrf.mxu1  ;;  %v10012_v56 = vadd.f32 %v10011_v31, %v9999_v53 }
0x2c94   :  { %v10025_v3 = vadd.f32 %v10024_v34, %v10012_v56  ;;  %v14544_v34 = vld [vmem:[%s16560_s16 + $0x1] ss:$0 sm:$0xff] }
0x2c95   :  { %v9987_v39 = vpop.f32.mrf.mxu3 }
0x2c96   :  { %v10026_v40 = vpop.f32.mrf.mxu2 }
0x2c99   :  { %v10052_v41 = vpop.f32.mrf.mxu0 }
0x2c9a   :  { %v10065_v42 = vpop.f32.mrf.mxu1 }
0x2c9d   :  { %v10037_v44 = vpop.f32.mrf.mxu3 }
0x2c9e   :  { %v10076_v48 = vpop.f32.mrf.mxu2  ;;  %v10038_v7 = vadd.f32 %v10037_v44, %v10025_v3 }
0x2ca0   :  { %v10051_v11 = vadd.f32 %v10050_v36, %v10038_v7  ;;  %v14545_v7 = vld [vmem:[%s16561_s18] ss:$0 sm:$0xff] }
0x2ca1   :  { %v10102_v25 = vpop.f32.mrf.mxu0 }
0x2ca2   :  { %v10115_v51 = vpop.f32.mrf.mxu1  ;;  %v10064_v35 = vadd.f32 %v10063_v38, %v10051_v11 }
0x2ca4   :  { %v10077_v45 = vadd.f32 %v10076_v48, %v10064_v35  ;;  %v10254_v48 = vld [vmem:[%s14935_s4 + $0x18] sm:$0xff] }
0x2ca5   :  { %v10039_v54 = vpop.f32.mrf.mxu3  ;;  %10274 = vmatpush.msra.mxu3 %v10254_v48 }
0x2ca6   :  { %v10078_v26 = vpop.f32.mrf.mxu2 }
0x2ca7   :  { %10275 = vmatpush.msra.mxu3 %v10253_v50 }
0x2ca9   :  { %v10104_v61 = vpop.f32.mrf.mxu0 }
0x2caa   :  { %v10117_v0 = vpop.f32.mrf.mxu1 }
0x2cad   :  { %v10089_v37 = vpop.f32.mrf.mxu3 }
0x2cae   :  { %v10128_v5 = vpop.f32.mrf.mxu2  ;;  %v10090_v12 = vadd.f32 %v10089_v37, %v10077_v45  ;;  %v14547_v45 = vld [vmem:[%s14940_s12] ss:$0 sm:$0xff] }
0x2cb0   :  { %v10103_v63 = vadd.f32 %v10102_v25, %v10090_v12  ;;  %v10252_v25 = vld [vmem:[%s14935_s4 + $0x8] sm:$0xff] }
0x2cb1   :  { %10276 = vmatpush.msra.mxu3 %v10252_v25 }
0x2cb2   :  { %v10116_v60 = vadd.f32 %v10115_v51, %v10103_v63  ;;  %v10251_v51 = vld [vmem:[%s14935_s4] sm:$0xff]  ;;  %s14741_s4 = smov [#allocation2]  }
0x2cb3   :  { %10277 = vmatpush.msra.mxu3 %v10251_v51  ;;  %s10288_s22 = sshll.u32 %s14741_s4, 4  ;;  %s10289_s22 = int_to_ptr.vmem [resolvable:$true] %s10288_s22 }
0x2cb4   :  { %v10129_v9 = vadd.f32 %v10128_v5, %v10116_v60 }
0x2cb5   :  { %v10091_v13 = vpop.f32.mrf.mxu3 }
0x2cb6   :  { %v10130_v14 = vpop.f32.mrf.mxu2  ;;  %v14546_v13 = vld [vmem:[%s14930_s27] ss:$0 sm:$0xff]  ;;  %s14684_s27 = scalar_lea.hbm %s14683_s5, 8 }
0x2cb7   :  { %p14685_p0 = scmp.ne.s32.totalorder %s14683_s5, %s14684_s27  ;;  %p14688_p2 = scmp.lt.s32.totalorder %s14686_s9, %s14684_s27 }
0x2cb9   :  { %p14689_p3 = por %p14688_p2, %p14687_p1 }
0x2cbb   :  { %p14690_p4 = pnand %p14689_p3, %p14685_p0 }
0x2cc1   :  { %v10154_v16 = vpop.f32.mrf.mxu0 }
0x2cc2   :  { %v10167_v55 = vpop.f32.mrf.mxu1 }
0x2cc9   :  { %v10156_v4 = vpop.f32.mrf.mxu0 }
0x2cca   :  { %v10169_v17 = vpop.f32.mrf.mxu1 }
0x2ccd   :  { %v10141_v47 = vpop.f32.mrf.mxu3 }
0x2cce   :  { %v10142_v18 = vadd.f32 %v10141_v47, %v10129_v9  ;;  %v10180_v59 = vpop.f32.mrf.mxu2 }
0x2cd0   :  { %v10155_v58 = vadd.f32 %v10154_v16, %v10142_v18 }
0x2cd2   :  { %v10168_v19 = vadd.f32 %v10167_v55, %v10155_v58 }
0x2cd4   :  { %v10181_v15 = vadd.f32 %v10180_v59, %v10168_v19 }
0x2cd5   :  { %v10143_v20 = vpop.f32.mrf.mxu3 }
0x2cd6   :  { %v10184_v22 = vadd.f32 %v10181_v15, %v16259_v21  ;;  %v10182_v62 = vpop.f32.mrf.mxu2 }
0x2cd8   :  { %v10189_v23 = vsel %vm209_vm1, %v10184_v22, 0.0 }
0x2cd9   :  { %10190 = vadd.xlane.f32.xlu1 %v10189_v23 }
0x2d4c   :  { %v10191_v57 = vpop.xlane.xlu1 %10190 }
0x2d4d   :  { %v10192_v10 = vmul.f32 %v10191_v57, %v15017_v46 }
0x2d4f   :  { %v10193_v24 = vsub.f32 %v10184_v22, %v10192_v10 }
0x2d51   :  { %v10194_v2 = vmul.f32 %v10193_v24, %v10193_v24 }
0x2d53   :  { %v10195_v52 = vsel %vm209_vm1, %v10194_v2, 0.0 }
0x2d54   :  { %10196 = vadd.xlane.f32.xlu2 %v10195_v52 }
0x2dc7   :  { %v10197_v1 = vpop.xlane.xlu2 %10196 }
0x2dc8   :  { %v10198_v27 = vmul.f32 %v10197_v1, %v15017_v46 }
0x2dca   :  { %v10199_v28 = vadd.f32 1e-05, %v10198_v27 }
0x2dcc   :  { %14666 = vrsqrt.f32 %v10199_v28  ;;  %vm10206_vm8 = vweird.f32 %v10199_v28 }
0x2dd2   :  { %v14667_v21 = vpop.eup %14666 }
0x2dd3   :  { %v10201_v6 = vmul.f32 %v14667_v21, %v10199_v28  ;;  %vm10207_vm7 = vweird.f32 %v14667_v21 }
0x2dd4   :  { %vm10208_vm9 = vmor %vm10206_vm8, %vm10207_vm7 }
0x2dd5   :  { %v10202_v29 = vmul.f32 %v14667_v21, %v10201_v6 }
0x2dd7   :  { %v10203_v30 = vmul.f32 0.5, %v10202_v29 }
0x2dd9   :  { %v10204_v8 = vsub.f32 1.5, %v10203_v30 }
0x2ddb   :  { %v10205_v31 = vmul.f32 %v14667_v21, %v10204_v8 }
0x2ddd   :  { %v10209_v32 = vsel %vm10208_vm9, %v14667_v21, %v10205_v31 }
0x2dde   :  { %v10210_v33 = vmul.f32 %v10209_v32, %v10193_v24 }
0x2de0   :  { %v10214_v36 = vmul.f32 %v14543_v49, %v10210_v33 }
0x2de2   :  { %v10218_v38 = vadd.f32 %v14544_v34, %v10214_v36 }
0x2de4   :  { %v10221_v39 = vsel %vm209_vm1, %v10218_v38, 0.0 }
0x2de5   :  { %10222 = vadd.xlane.f32.xlu2 %v10221_v39 }
0x2e58   :  { %v10223_v40 = vpop.xlane.xlu2 %10222 }
0x2e59   :  { %v10224_v41 = vmul.f32 %v10223_v40, %v15017_v46 }
0x2e5b   :  { %v10225_v42 = vsub.f32 %v10218_v38, %v10224_v41 }
0x2e5d   :  { %v10226_v43 = vmul.f32 %v10225_v42, %v10225_v42 }
0x2e5f   :  { %v10227_v44 = vsel %vm209_vm1, %v10226_v43, 0.0 }
0x2e60   :  { %10228 = vadd.xlane.f32.xlu0 %v10227_v44 }
0x2ed3   :  { %v10229_v53 = vpop.xlane.xlu0 %10228 }
0x2ed4   :  { %v10230_v54 = vmul.f32 %v10229_v53, %v15017_v46 }
0x2ed6   :  { %v10231_v26 = vadd.f32 1e-05, %v10230_v54 }
0x2ed8   :  { %14668 = vrsqrt.f32 %v10231_v26  ;;  %vm10238_vm11 = vweird.f32 %v10231_v26 }
0x2ede   :  { %v14669_v56 = vpop.eup %14668 }
0x2edf   :  { %v10233_v61 = vmul.f32 %v14669_v56, %v10231_v26  ;;  %vm10239_vm10 = vweird.f32 %v14669_v56 }
0x2ee0   :  { %vm10240_vm12 = vmor %vm10238_vm11, %vm10239_vm10 }
0x2ee1   :  { %v10234_v0 = vmul.f32 %v14669_v56, %v10233_v61 }
0x2ee3   :  { %v10235_v3 = vmul.f32 0.5, %v10234_v0 }
0x2ee5   :  { %v10236_v37 = vsub.f32 1.5, %v10235_v3 }
0x2ee7   :  { %v10237_v5 = vmul.f32 %v14669_v56, %v10236_v37 }
0x2ee9   :  { %v10241_v11 = vsel %vm10240_vm12, %v14669_v56, %v10237_v5 }
0x2eea   :  { %v10242_v14 = vmul.f32 %v10241_v11, %v10225_v42 }
0x2eec   :  { %v10246_v35 = vmul.f32 %v14545_v7, %v10242_v14 }
0x2eee   :  { %v10250_v46 = vadd.f32 %v14546_v13, %v10246_v35 }
0x2ef0   :  { %13699 = vmatmul.msk.f32.vlgmr.msra.gmra.mxu3 %vm209_vm1, %v10250_v46 }
0x2f73   :  { %v10279_v12 = vpop.f32.mrf.mxu3 }
0x2f74   :  { %v10280_v16 = vadd.f32 %v14547_v45, %v10279_v12 }
0x2f76   :  { %10282 = vst.msk [vmem:[#allocation2] sm:$0xff] %vm171_vm0, %v10280_v16 }
0x2f77   :  { %14693 = shalt.err (!%p14690_p4)
}
0x2f78   :  { %10293 = dma.vmem_to_hbm [thread:$0]  %s10289_s22, 128, %s10291_s0, [#allocation3]  }
0x2f79   :  { %14694 = dma.done.wait [#allocation3], 128  }
0x2f7a   :  { %14695 = vsyncadd [#allocation3], 4294967168 }
0x2f7b   :  { %10298 = vsyncpa [#allocation3], 1 }

</bundles_post_ra>
